<compile_context>
chip_gen: v5e
topology: v5e:2x2
jax: 0.10.0
libtpu: 0.0.40
codegen_flags: <defaults>
</compile_context>

<pallas_src>
import functools

import jax
import jax.numpy as jnp
from jax import lax
from jax.experimental import pallas as pl
from jax.experimental.pallas import tpu as pltpu


def _per_block_agent_kernel(x_ref, prev_ref, wqt_ref, wk_ref, bq_ref, bk_ref,
                            out_ref, *, num_heads, eps):
    TB, N, C = x_ref.shape
    D = C // num_heads

    prev = prev_ref[...]                               # (TB, N)    f32
    x = x_ref[...].astype(jnp.float32)                 # (TB, N, C) f32

    # Mask by previous policy, then LayerNorm over C (no affine), all in f32.
    xp = x * prev[:, :, None]
    mean = jnp.mean(xp, axis=-1, keepdims=True)
    var = jnp.mean(jnp.square(xp - mean), axis=-1, keepdims=True)
    xn = (xp - mean) * lax.rsqrt(var + eps)            # (TB, N, C)

    # Query for token 0 only; the attention scale is folded into wq/bq.
    q0 = jnp.dot(xn[:, 0, :], wqt_ref[...],
                 preferred_element_type=jnp.float32) + bq_ref[...]     # (TB, C)

    # k projection folded through the query:
    #   <q0_h, k_h[n]> = xn[n] . (q0_h @ Wk_h) + q0_h . bk_h
    wk = wk_ref[...]                                   # (C_out, C_in)
    bk = bk_ref[...]                                   # (1, C)
    acc = jnp.zeros((TB, N), dtype=jnp.float32)
    for h in range(num_heads):                         # H is small: static unroll
        qh = q0[:, h * D:(h + 1) * D]                                  # (TB, D)
        rh = jnp.dot(qh, wk[h * D:(h + 1) * D, :],
                     preferred_element_type=jnp.float32)               # (TB, C)
        ch = jnp.sum(qh * bk[:, h * D:(h + 1) * D], axis=-1,
                     keepdims=True)                                    # (TB, 1)
        logits = jnp.sum(xn * rh[:, None, :], axis=-1) + ch            # (TB, N)
        acc = acc + jax.nn.sigmoid(logits)

    out = acc * (1.0 / num_heads) * prev               # (TB, N)
    # Lane-dense store: batch on lanes, tokens on sublanes -> unmasked vst and
    # a contiguous writeback DMA once TB >= 128 (the wrapper transposes back).
    out_ref[0] = out.T                                  # (N, TB)


def _choose_batch_tile(B, N, C, batch_tile):
    """Pick a batch tile that divides B (no padding pass) and is sublane-aligned."""
    if batch_tile is not None:
        assert B % batch_tile == 0, "batch_tile must divide B"
        assert batch_tile == B or batch_tile % 8 == 0, \
            "batch_tile must be a multiple of 8 (sublane tiling) or equal B"
        return batch_tile
    row_bytes = N * C * 4                               # one f32 batch row of x
    # ~2 MiB of x per grid step reaches >=85% of the HBM roofline in tile
    # sweeps; ~10x that in live f32 copies fits the 32 MiB scoped-VMEM default.
    target = max(1, (2 << 20) // row_bytes)
    if B <= target:
        # Tiny input: a single grid step — unless it is big enough that
        # splitting in two gives both v7x TensorCores useful (>=1 MiB) work.
        half = B // 2
        if B % 2 == 0 and half % 8 == 0 and row_bytes * half >= (1 << 20):
            return half
        return B
    for d in range(target, 0, -1):                      # largest aligned divisor
        if B % d == 0 and d % 8 == 0:
            return d
    return B                                            # fallback: one grid step


def per_block_agent(x, prev_policy, w_qk, b_qk, *, num_heads=2, qk_scale=None,
                    eps=1e-5, batch_tile=None):
    """x: (B, N, C); prev_policy: (B, N) or None; w_qk: (3C, C); b_qk: (3C,)."""
    B, N, C = x.shape
    assert C % num_heads == 0
    D = C // num_heads
    scale = qk_scale if qk_scale is not None else D ** (-0.5)

    if prev_policy is None:
        prev_policy = jnp.ones((B, N), jnp.float32)
    prev_f = prev_policy.astype(jnp.float32)

    # Split the fused qkv weight: only q (token 0) and k are used; the v third
    # is never computed.  Fold the attention scale into the q projection.
    # These are (C, C)-sized wrapper ops — negligible next to x traffic.
    w = jnp.asarray(w_qk, jnp.float32)
    b = jnp.asarray(b_qk, jnp.float32)
    wq_t = (scale * w[:C, :]).T                         # (C_in, C_out)
    wk = w[C:2 * C, :]                                  # (C_out, C_in), row-sliced per head
    bq = (scale * b[:C]).reshape(1, C)
    bk = b[C:2 * C].reshape(1, C)

    tb = _choose_batch_tile(B, N, C, batch_tile)
    grid = (B // tb,)

    kernel = functools.partial(_per_block_agent_kernel,
                               num_heads=num_heads, eps=eps)

    # Keep the VMEM request comfortably below v7x's 64 MiB physical VMEM; the
    # default tiling needs well under the 32 MiB scoped default anyway.
    tile_bytes = tb * N * C * 4
    vmem_limit = int(min(48 << 20, max(32 << 20, 12 * tile_bytes)))

    out = pl.pallas_call(
        kernel,
        out_shape=jax.ShapeDtypeStruct((grid[0], N, tb), jnp.float32),
        grid=grid,
        in_specs=[
            pl.BlockSpec((tb, N, C), lambda i: (i, 0, 0)),   # x tile, native dtype
            pl.BlockSpec((tb, N), lambda i: (i, 0)),         # prev tile
            pl.BlockSpec((C, C), lambda i: (0, 0)),          # (scale*Wq)^T
            pl.BlockSpec((C, C), lambda i: (0, 0)),          # Wk (out, in)
            pl.BlockSpec((1, C), lambda i: (0, 0)),          # scale*bq
            pl.BlockSpec((1, C), lambda i: (0, 0)),          # bk
        ],
        out_specs=pl.BlockSpec((1, N, tb), lambda i: (i, 0, 0)),
        compiler_params=pltpu.CompilerParams(
            dimension_semantics=("parallel",),
            vmem_limit_bytes=vmem_limit),
    )(x, prev_f, wq_t, wk, bq, bk)

    # (G, N, tb) -> (B, N); the output is only B*N floats, so this costs
    # nothing next to the kernel's x traffic.
    return jnp.swapaxes(out, 1, 2).reshape(B, N)


def _reference(x, prev, w, b, num_heads, eps=1e-5):
    """Pure-JAX f32 reference mirroring the PyTorch forward."""
    B, N, C = x.shape
    D = C // num_heads
    scale = D ** (-0.5)
    xp = x * prev[:, :, None]
    mean = jnp.mean(xp, -1, keepdims=True)
    var = jnp.mean(jnp.square(xp - mean), -1, keepdims=True)
    xn = (xp - mean) / jnp.sqrt(var + eps)
    qkv = xn @ w.T + b                                      # (B, N, 3C)
    qkv = qkv.reshape(B, N, 3, num_heads, D).transpose(2, 0, 3, 1, 4)
    q, k = qkv[0], qkv[1]                                   # (B, H, N, D)
    attn = (q[:, :, :1] @ jnp.swapaxes(k, -2, -1)) * scale  # (B, H, 1, N)
    attn = jax.nn.sigmoid(attn)
    attn = attn[:, :, 0, :].mean(axis=1)                    # (B, N)
    return attn * prev


if __name__ == "__main__":
    B, N, C, H = 64, 8, 32, 2

    key = jax.random.PRNGKey(0)
    kx, kp, kw, kb = jax.random.split(key, 4)

    x = jax.random.normal(kx, (B, N, C), dtype=jnp.float32)
    prev_policy = (jax.random.uniform(kp, (B, N)) > 0.3).astype(jnp.float32)
    # deterministic synthetic nn.Linear(dim, 3*dim) parameters
    w_qk = 0.1 * jax.random.normal(kw, (3 * C, C), dtype=jnp.float32)
    b_qk = 0.01 * jax.random.normal(kb, (3 * C,), dtype=jnp.float32)

    ref = _reference(x, prev_policy, w_qk, b_qk, H)

    # Default tiling: tiny input -> single grid step (per review).
    out_single = jax.block_until_ready(
        per_block_agent(x, prev_policy, w_qk, b_qk, num_heads=H))
    # Forced multi-tile launch to exercise the pipelined grid path and the
    # multi-block lane-dense output layout.
    out_tiled = jax.block_until_ready(
        per_block_agent(x, prev_policy, w_qk, b_qk, num_heads=H, batch_tile=16))

    assert out_single.shape == (B, N) and out_tiled.shape == (B, N)
    # The kernel is f32 end-to-end (only the two tiny matmuls touch the MXU),
    # so it tracks the f32 reference closely.
    assert jnp.allclose(out_single, ref, atol=5e-3, rtol=5e-3), "mismatch (single tile)"
    assert jnp.allclose(out_tiled, ref, atol=5e-3, rtol=5e-3), "mismatch (multi tile)"

    print("KERNEL_OK")
</pallas_src>

<mosaic_0001>
module attributes {stable_mosaic.version = 11 : i64} {
  func.func @_per_block_agent_kernel(%arg0: i32, %arg1: memref<64x8x32xf32, #tpu.memory_space<vmem>>, %arg2: memref<64x8xf32, #tpu.memory_space<vmem>>, %arg3: memref<32x32xf32, #tpu.memory_space<vmem>>, %arg4: memref<32x32xf32, #tpu.memory_space<vmem>>, %arg5: memref<1x32xf32, #tpu.memory_space<vmem>>, %arg6: memref<1x32xf32, #tpu.memory_space<vmem>>, %arg7: memref<1x8x64xf32, #tpu.memory_space<vmem>>) attributes {dimension_semantics = [#tpu.dimension_semantics<parallel>], iteration_bounds = array<i64: 1>, scalar_prefetch = 0 : i64, scratch_operands = 0 : i64, tpu.core_type = #tpu.core_type<tc>, window_params = [{transform_indices = @transform_0, window_bounds = array<i64: 64, 8, 32>}, {transform_indices = @transform_1, window_bounds = array<i64: 64, 8>}, {pipeline_mode = #tpu.pipeline_mode<synchronous>, transform_indices = @transform_2, window_bounds = array<i64: 32, 32>}, {pipeline_mode = #tpu.pipeline_mode<synchronous>, transform_indices = @transform_3, window_bounds = array<i64: 32, 32>}, {pipeline_mode = #tpu.pipeline_mode<synchronous>, transform_indices = @transform_4, window_bounds = array<i64: 1, 32>}, {pipeline_mode = #tpu.pipeline_mode<synchronous>, transform_indices = @transform_5, window_bounds = array<i64: 1, 32>}, {transform_indices = @transform_6, window_bounds = array<i64: 1, 8, 64>}]} {
    %c0 = arith.constant 0 : index
    %c0_0 = arith.constant 0 : index
    %0 = vector.load %arg2[%c0, %c0_0] : memref<64x8xf32, #tpu.memory_space<vmem>>, vector<64x8xf32>
    %c0_1 = arith.constant 0 : index
    %c0_2 = arith.constant 0 : index
    %c0_3 = arith.constant 0 : index
    %1 = vector.load %arg1[%c0_1, %c0_2, %c0_3] : memref<64x8x32xf32, #tpu.memory_space<vmem>>, vector<64x8x32xf32>
    %2 = vector.shape_cast %0 : vector<64x8xf32> to vector<64x8x1xf32>
    %3 = vector.broadcast %2 : vector<64x8x1xf32> to vector<64x8x32xf32>
    %4 = arith.mulf %1, %3 : vector<64x8x32xf32>
    %cst = arith.constant dense<0.000000e+00> : vector<64x8xf32>
    %5 = vector.multi_reduction <add>, %4, %cst [2] : vector<64x8x32xf32> to vector<64x8xf32>
    %6 = vector.shape_cast %5 : vector<64x8xf32> to vector<64x8x1xf32>
    %cst_4 = arith.constant 3.200000e+01 : f32
    %7 = vector.broadcast %cst_4 : f32 to vector<64x8x1xf32>
    %8 = arith.divf %6, %7 : vector<64x8x1xf32>
    %9 = vector.broadcast %8 : vector<64x8x1xf32> to vector<64x8x32xf32>
    %10 = arith.subf %4, %9 : vector<64x8x32xf32>
    %11 = arith.mulf %10, %10 : vector<64x8x32xf32>
    %cst_5 = arith.constant dense<0.000000e+00> : vector<64x8xf32>
    %12 = vector.multi_reduction <add>, %11, %cst_5 [2] : vector<64x8x32xf32> to vector<64x8xf32>
    %13 = vector.shape_cast %12 : vector<64x8xf32> to vector<64x8x1xf32>
    %cst_6 = arith.constant 3.200000e+01 : f32
    %14 = vector.broadcast %cst_6 : f32 to vector<64x8x1xf32>
    %15 = arith.divf %13, %14 : vector<64x8x1xf32>
    %16 = vector.broadcast %8 : vector<64x8x1xf32> to vector<64x8x32xf32>
    %17 = arith.subf %4, %16 : vector<64x8x32xf32>
    %cst_7 = arith.constant 9.99999974E-6 : f32
    %18 = vector.broadcast %cst_7 : f32 to vector<64x8x1xf32>
    %19 = arith.addf %15, %18 : vector<64x8x1xf32>
    %20 = math.rsqrt %19 : vector<64x8x1xf32>
    %21 = vector.broadcast %20 : vector<64x8x1xf32> to vector<64x8x32xf32>
    %22 = arith.mulf %17, %21 : vector<64x8x32xf32>
    %23 = vector.extract_strided_slice %22 {offsets = [0, 0, 0], sizes = [64, 1, 32], strides = [1, 1, 1]} : vector<64x8x32xf32> to vector<64x1x32xf32>
    %24 = vector.shape_cast %23 : vector<64x1x32xf32> to vector<64x32xf32>
    %c0_8 = arith.constant 0 : index
    %c0_9 = arith.constant 0 : index
    %25 = vector.load %arg3[%c0_8, %c0_9] : memref<32x32xf32, #tpu.memory_space<vmem>>, vector<32x32xf32>
    %cst_10 = arith.constant dense<0.000000e+00> : vector<64x32xf32>
    %26 = tpu.matmul %24, %25, %cst_10 {dimension_numbers = #tpu.dot_dimension_numbers<[1], [0], [0], [1], [0, 0, 1, 1], [], []>} : vector<64x32xf32>, vector<32x32xf32>, vector<64x32xf32> -> vector<64x32xf32>
    %c0_11 = arith.constant 0 : index
    %c0_12 = arith.constant 0 : index
    %27 = vector.load %arg5[%c0_11, %c0_12] : memref<1x32xf32, #tpu.memory_space<vmem>>, vector<1x32xf32>
    %28 = vector.broadcast %27 : vector<1x32xf32> to vector<64x32xf32>
    %29 = arith.addf %26, %28 : vector<64x32xf32>
    %c0_13 = arith.constant 0 : index
    %c0_14 = arith.constant 0 : index
    %30 = vector.load %arg4[%c0_13, %c0_14] : memref<32x32xf32, #tpu.memory_space<vmem>>, vector<32x32xf32>
    %c0_15 = arith.constant 0 : index
    %c0_16 = arith.constant 0 : index
    %31 = vector.load %arg6[%c0_15, %c0_16] : memref<1x32xf32, #tpu.memory_space<vmem>>, vector<1x32xf32>
    %cst_17 = arith.constant 0.000000e+00 : f32
    %32 = vector.broadcast %cst_17 : f32 to vector<64x8xf32>
    %33 = vector.extract_strided_slice %29 {offsets = [0, 0], sizes = [64, 16], strides = [1, 1]} : vector<64x32xf32> to vector<64x16xf32>
    %34 = vector.extract_strided_slice %30 {offsets = [0, 0], sizes = [16, 32], strides = [1, 1]} : vector<32x32xf32> to vector<16x32xf32>
    %cst_18 = arith.constant dense<0.000000e+00> : vector<64x32xf32>
    %35 = tpu.matmul %33, %34, %cst_18 {dimension_numbers = #tpu.dot_dimension_numbers<[1], [0], [0], [1], [0, 0, 1, 1], [], []>} : vector<64x16xf32>, vector<16x32xf32>, vector<64x32xf32> -> vector<64x32xf32>
    %36 = vector.extract_strided_slice %31 {offsets = [0, 0], sizes = [1, 16], strides = [1, 1]} : vector<1x32xf32> to vector<1x16xf32>
    %37 = vector.broadcast %36 : vector<1x16xf32> to vector<64x16xf32>
    %38 = arith.mulf %33, %37 : vector<64x16xf32>
    %cst_19 = arith.constant dense<0.000000e+00> : vector<64xf32>
    %39 = vector.multi_reduction <add>, %38, %cst_19 [1] : vector<64x16xf32> to vector<64xf32>
    %40 = vector.shape_cast %39 : vector<64xf32> to vector<64x1xf32>
    %41 = vector.shape_cast %35 : vector<64x32xf32> to vector<64x1x32xf32>
    %42 = vector.broadcast %41 : vector<64x1x32xf32> to vector<64x8x32xf32>
    %43 = arith.mulf %22, %42 : vector<64x8x32xf32>
    %cst_20 = arith.constant dense<0.000000e+00> : vector<64x8xf32>
    %44 = vector.multi_reduction <add>, %43, %cst_20 [2] : vector<64x8x32xf32> to vector<64x8xf32>
    %45 = vector.broadcast %40 : vector<64x1xf32> to vector<64x8xf32>
    %46 = arith.addf %44, %45 : vector<64x8xf32>
    %47 = arith.negf %46 : vector<64x8xf32>
    %48 = math.exp %47 : vector<64x8xf32>
    %cst_21 = arith.constant 1.000000e+00 : f32
    %49 = vector.broadcast %cst_21 : f32 to vector<64x8xf32>
    %50 = arith.addf %49, %48 : vector<64x8xf32>
    %51 = arith.divf %49, %50 : vector<64x8xf32>
    %52 = arith.addf %32, %51 : vector<64x8xf32>
    %53 = vector.extract_strided_slice %29 {offsets = [0, 16], sizes = [64, 16], strides = [1, 1]} : vector<64x32xf32> to vector<64x16xf32>
    %54 = vector.extract_strided_slice %30 {offsets = [16, 0], sizes = [16, 32], strides = [1, 1]} : vector<32x32xf32> to vector<16x32xf32>
    %cst_22 = arith.constant dense<0.000000e+00> : vector<64x32xf32>
    %55 = tpu.matmul %53, %54, %cst_22 {dimension_numbers = #tpu.dot_dimension_numbers<[1], [0], [0], [1], [0, 0, 1, 1], [], []>} : vector<64x16xf32>, vector<16x32xf32>, vector<64x32xf32> -> vector<64x32xf32>
    %56 = vector.extract_strided_slice %31 {offsets = [0, 16], sizes = [1, 16], strides = [1, 1]} : vector<1x32xf32> to vector<1x16xf32>
    %57 = vector.broadcast %56 : vector<1x16xf32> to vector<64x16xf32>
    %58 = arith.mulf %53, %57 : vector<64x16xf32>
    %cst_23 = arith.constant dense<0.000000e+00> : vector<64xf32>
    %59 = vector.multi_reduction <add>, %58, %cst_23 [1] : vector<64x16xf32> to vector<64xf32>
    %60 = vector.shape_cast %59 : vector<64xf32> to vector<64x1xf32>
    %61 = vector.shape_cast %55 : vector<64x32xf32> to vector<64x1x32xf32>
    %62 = vector.broadcast %61 : vector<64x1x32xf32> to vector<64x8x32xf32>
    %63 = arith.mulf %22, %62 : vector<64x8x32xf32>
    %cst_24 = arith.constant dense<0.000000e+00> : vector<64x8xf32>
    %64 = vector.multi_reduction <add>, %63, %cst_24 [2] : vector<64x8x32xf32> to vector<64x8xf32>
    %65 = vector.broadcast %60 : vector<64x1xf32> to vector<64x8xf32>
    %66 = arith.addf %64, %65 : vector<64x8xf32>
    %67 = arith.negf %66 : vector<64x8xf32>
    %68 = math.exp %67 : vector<64x8xf32>
    %cst_25 = arith.constant 1.000000e+00 : f32
    %69 = vector.broadcast %cst_25 : f32 to vector<64x8xf32>
    %70 = arith.addf %69, %68 : vector<64x8xf32>
    %71 = arith.divf %69, %70 : vector<64x8xf32>
    %72 = arith.addf %52, %71 : vector<64x8xf32>
    %cst_26 = arith.constant 5.000000e-01 : f32
    %73 = vector.broadcast %cst_26 : f32 to vector<64x8xf32>
    %74 = arith.mulf %72, %73 : vector<64x8xf32>
    %75 = arith.mulf %74, %0 : vector<64x8xf32>
    %76 = tpu.transpose %75, [1, 0] : vector<64x8xf32> -> vector<8x64xf32>
    %c0_27 = arith.constant 0 : index
    %c0_28 = arith.constant 0 : index
    %c0_29 = arith.constant 0 : index
    %77 = vector.load %arg7[%c0_27, %c0_28, %c0_29] : memref<1x8x64xf32, #tpu.memory_space<vmem>>, vector<1x8x64xf32>
    %78 = vector.shape_cast %77 : vector<1x8x64xf32> to vector<8x64xf32>
    %79 = vector.shape_cast %76 : vector<8x64xf32> to vector<1x8x64xf32>
    tpu.vector_store %arg7[%c0_27, %c0_28, %c0_29], %79 {strides = array<i32>} : memref<1x8x64xf32, #tpu.memory_space<vmem>>, vector<1x8x64xf32>,
    return
  }
  func.func @transform_0(%arg0: i32) -> (i32, i32, i32) {
    %c0_i32 = arith.constant 0 : i32
    %c0_i32_0 = arith.constant 0 : i32
    %c0_i32_1 = arith.constant 0 : i32
    return %arg0, %c0_i32, %c0_i32_0 : i32, i32, i32
  }
  func.func @transform_1(%arg0: i32) -> (i32, i32) {
    %c0_i32 = arith.constant 0 : i32
    %c0_i32_0 = arith.constant 0 : i32
    return %arg0, %c0_i32 : i32, i32
  }
  func.func @transform_2(%arg0: i32) -> (i32, i32) {
    %c0_i32 = arith.constant 0 : i32
    %c0_i32_0 = arith.constant 0 : i32
    %c0_i32_1 = arith.constant 0 : i32
    return %c0_i32, %c0_i32_0 : i32, i32
  }
  func.func @transform_3(%arg0: i32) -> (i32, i32) {
    %c0_i32 = arith.constant 0 : i32
    %c0_i32_0 = arith.constant 0 : i32
    %c0_i32_1 = arith.constant 0 : i32
    return %c0_i32, %c0_i32_0 : i32, i32
  }
  func.func @transform_4(%arg0: i32) -> (i32, i32) {
    %c0_i32 = arith.constant 0 : i32
    %c0_i32_0 = arith.constant 0 : i32
    %c0_i32_1 = arith.constant 0 : i32
    return %c0_i32, %c0_i32_0 : i32, i32
  }
  func.func @transform_5(%arg0: i32) -> (i32, i32) {
    %c0_i32 = arith.constant 0 : i32
    %c0_i32_0 = arith.constant 0 : i32
    %c0_i32_1 = arith.constant 0 : i32
    return %c0_i32, %c0_i32_0 : i32, i32
  }
  func.func @transform_6(%arg0: i32) -> (i32, i32, i32) {
    %c0_i32 = arith.constant 0 : i32
    %c0_i32_0 = arith.constant 0 : i32
    %c0_i32_1 = arith.constant 0 : i32
    return %arg0, %c0_i32, %c0_i32_0 : i32, i32, i32
  }
}

</mosaic_0001>

<bundles_post_ra>
// kernel: tpu_custom_call.1
= control target key start
LH: loop header
LB: loop body
LE: loop exit
PB: predicated region body
PF: predicated region fallthrough
CT: control target
= control target key end

     0   :  { %v17403_v0 = vlaneseq  ;;  %s17332_s0 = inlined_call_operand.vmem [shape: f32[64,8,32], index: 0, kind: input, shape index: {}]   ;;  %s17333_s1 = inlined_call_operand.vmem [shape: f32[64,8], index: 1, kind: input, shape index: {}]   ;;  %s17334_s2 = inlined_call_operand.vmem [shape: f32[32,32], index: 2, kind: input, shape index: {}]   ;;  %s17335_s3 = inlined_call_operand.vmem [shape: f32[32,32], index: 3, kind: input, shape index: {}]   ;;  %s17336_s4 = inlined_call_operand.vmem [shape: f32[1,32], index: 4, kind: input, shape index: {}]   ;;  %s17337_s5 = inlined_call_operand.vmem [shape: f32[1,32], index: 5, kind: input, shape index: {}]   ;;  %s17338_s6 = inlined_call_operand.hbm [shape: f32[1,8,64], index: 6, kind: output, shape index: {}]  }
   0x2   :  { %v98_v1 = vshrl.u32 %v17403_v0, 7 }
   0x3   :  { %11 = vsyncpa [#allocation3], 0  ;;  %v8331_v2 = vld [vmem:[%s17333_s1] sm:$0xff]  ;;  %v8354_v9 = vld [vmem:[%s17333_s1 + $0x8] sm:$0xff]  ;;  %vm17497_vm0 = vcmask 261120   ;;  %s7438_s11 = sshll.u32 %s17338_s6, 4  ;;  %s7439_s11 = int_to_ptr.hbm [resolvable:$true] %s7438_s11 }
   0x4   :  { %7614 = vset.pattern.permute.xlu2 %v98_v1  ;;  %7613 = vset.pattern.permute.xlu1 %v98_v1  ;;  %17801 = vst [vmem:[#allocation5_spill] sm:$0xff] %v8331_v2  ;;  %v17398_v3 = vperm.slane %v8331_v2, 4  ;;  %v17401_v4 = vperm.slane %v8331_v2, 2  ;;  %v17402_v5 = vperm.slane %v8331_v2, 0  ;;  %v17397_v6 = vperm.slane %v8331_v2, 5  ;;  %v8386_v19 = vld [vmem:[%s17333_s1 + $0x10] sm:$0xff] }
   0x5   :  { %7612 = vset.pattern.permute.xlu0 %v98_v1  ;;  %v17399_v7 = vperm.slane %v8331_v2, 3  ;;  %v17400_v8 = vperm.slane %v8331_v2, 1  ;;  %17802 = vst [vmem:[#allocation6_spill] sm:$0xff] %v8354_v9  ;;  %v17394_v10 = vperm.slane %v8354_v9, 0  ;;  %v17395_v11 = vperm.slane %v8331_v2, 7  ;;  %v8418_v29 = vld [vmem:[%s17333_s1 + $0x18] sm:$0xff] }
   0x6   :  { %v17396_v12 = vperm.slane %v8331_v2, 6  ;;  %v17391_v13 = vperm.slane %v8354_v9, 3  ;;  %v17392_v14 = vperm.slane %v8354_v9, 2  ;;  %v17393_v15 = vperm.slane %v8354_v9, 1  ;;  %17803 = vst [vmem:[#allocation7_spill] sm:$0xff] %v8386_v19  ;;  %v8441_v36 = vld [vmem:[%s17333_s1 + $0x20] sm:$0xff] }
   0x7   :  { %v17388_v16 = vperm.slane %v8354_v9, 6  ;;  %v17389_v17 = vperm.slane %v8354_v9, 5  ;;  %v17390_v18 = vperm.slane %v8354_v9, 4  ;;  %v17385_v20 = vperm.slane %v8386_v19, 1  ;;  %17804 = vst [vmem:[#allocation8_spill] sm:$0xff] %v8418_v29  ;;  %v8473_v46 = vld [vmem:[%s17333_s1 + $0x28] sm:$0xff] }
   0x8   :  { %v17386_v21 = vperm.slane %v8386_v19, 0  ;;  %v17387_v22 = vperm.slane %v8354_v9, 7  ;;  %v17382_v23 = vperm.slane %v8386_v19, 4  ;;  %v17383_v24 = vperm.slane %v8386_v19, 3  ;;  %17805 = vst [vmem:[#allocation9_spill] sm:$0xff] %v8441_v36  ;;  %v8513_v60 = vld [vmem:[%s17333_s1 + $0x30] sm:$0xff] }
   0x9   :  { %v17384_v25 = vperm.slane %v8386_v19, 2  ;;  %v17379_v26 = vperm.slane %v8386_v19, 7  ;;  %v17380_v27 = vperm.slane %v8386_v19, 6  ;;  %v17381_v28 = vperm.slane %v8386_v19, 5  ;;  %17806 = vst [vmem:[#allocation10_spill] sm:$0xff] %v8473_v46 }
   0xa   :  { %v17375_v30 = vperm.slane %v8418_v29, 2  ;;  %v17377_v31 = vperm.slane %v8418_v29, 1  ;;  %v17378_v32 = vperm.slane %v8418_v29, 0  ;;  %v17369_v33 = vperm.slane %v8418_v29, 5  ;;  %17807 = vst [vmem:[#allocation11_spill] sm:$0xff] %v8513_v60 }
   0xb   :  { %v17371_v34 = vperm.slane %v8418_v29, 4  ;;  %v17374_v35 = vperm.slane %v8418_v29, 3  ;;  %v17363_v37 = vperm.slane %v8441_v36, 0  ;;  %v17364_v38 = vperm.slane %v8418_v29, 7 }
   0xc   :  { %129 = vperm.xlu2 %7614, %v17398_v3   ;;  %115 = vperm.xlu1 %7613, %v17401_v4   ;;  %v17368_v39 = vperm.slane %v8418_v29, 6  ;;  %v17357_v40 = vperm.slane %v8441_v36, 3  ;;  %v17358_v41 = vperm.slane %v8441_v36, 2  ;;  %v17362_v42 = vperm.slane %v8441_v36, 1  ;;  %v55_v4 = vld [vmem:[%s17332_s0 + $0xb8] sm:$0xff] }
   0xd   :  { %101 = vperm.xlu0 %7612, %v17402_v5   ;;  %v17354_v43 = vperm.slane %v8441_v36, 6  ;;  %v17355_v44 = vperm.slane %v8441_v36, 5  ;;  %v17356_v45 = vperm.slane %v8441_v36, 4  ;;  %v17345_v47 = vperm.slane %v8473_v46, 1 }
   0xe   :  { %v17349_v48 = vperm.slane %v8473_v46, 0  ;;  %v17350_v49 = vperm.slane %v8441_v36, 7  ;;  %v17340_v51 = vperm.slane %v8473_v46, 4  ;;  %v17343_v52 = vperm.slane %v8473_v46, 3 }
   0xf   :  { %v17344_v53 = vperm.slane %v8473_v46, 2  ;;  %v17339_v56 = vperm.slane %v8473_v46, 7  ;;  %v17341_v57 = vperm.slane %v8473_v46, 6  ;;  %v17342_v58 = vperm.slane %v8473_v46, 5 }
  0x10   :  { %v17346_v63 = vperm.slane %v8513_v60, 2  ;;  %v17347_v1 = vperm.slane %v8513_v60, 1 }
  0x14   :  { %136 = vperm.xlu2 %7614, %v17397_v6   ;;  %122 = vperm.xlu1 %7613, %v17399_v7  }
  0x15   :  { %108 = vperm.xlu0 %7612, %v17400_v8  }
  0x1c   :  { %157 = vperm.xlu2 %7614, %v17394_v10   ;;  %150 = vperm.xlu1 %7613, %v17395_v11  }
  0x1d   :  { %143 = vperm.xlu0 %7612, %v17396_v12  }
  0x24   :  { %178 = vperm.xlu2 %7614, %v17391_v13   ;;  %171 = vperm.xlu1 %7613, %v17392_v14   ;;  %v43_v14 = vld [vmem:[%s17332_s0 + $0x58] sm:$0xff] }
  0x25   :  { %164 = vperm.xlu0 %7612, %v17393_v15  }
  0x2c   :  { %199 = vperm.xlu2 %7614, %v17388_v16   ;;  %192 = vperm.xlu1 %7613, %v17389_v17  }
  0x2d   :  { %185 = vperm.xlu0 %7612, %v17390_v18  }
  0x34   :  { %220 = vperm.xlu2 %7614, %v17385_v20   ;;  %213 = vperm.xlu1 %7613, %v17386_v21  }
  0x35   :  { %206 = vperm.xlu0 %7612, %v17387_v22   ;;  %v37_v22 = vld [vmem:[%s17332_s0 + $0x28] sm:$0xff] }
  0x3c   :  { %241 = vperm.xlu2 %7614, %v17382_v23   ;;  %234 = vperm.xlu1 %7613, %v17383_v24   ;;  %v35_v24 = vld [vmem:[%s17332_s0 + $0x18] sm:$0xff] }
  0x3d   :  { %227 = vperm.xlu0 %7612, %v17384_v25  }
  0x44   :  { %262 = vperm.xlu2 %7614, %v17379_v26   ;;  %255 = vperm.xlu1 %7613, %v17380_v27  }
  0x45   :  { %248 = vperm.xlu0 %7612, %v17381_v28  }
  0x4c   :  { %283 = vperm.xlu2 %7614, %v17375_v30   ;;  %276 = vperm.xlu1 %7613, %v17377_v31   ;;  %v33_v30 = vld [vmem:[%s17332_s0 + $0x8] sm:$0xff] }
  0x4d   :  { %269 = vperm.xlu0 %7612, %v17378_v32  }
  0x54   :  { %304 = vperm.xlu2 %7614, %v17369_v33   ;;  %297 = vperm.xlu1 %7613, %v17371_v34  }
  0x55   :  { %290 = vperm.xlu0 %7612, %v17374_v35  }
  0x5c   :  { %325 = vperm.xlu2 %7614, %v17363_v37   ;;  %318 = vperm.xlu1 %7613, %v17364_v38  }
  0x5d   :  { %311 = vperm.xlu0 %7612, %v17368_v39  }
  0x64   :  { %346 = vperm.xlu2 %7614, %v17357_v40   ;;  %339 = vperm.xlu1 %7613, %v17358_v41  }
  0x65   :  { %332 = vperm.xlu0 %7612, %v17362_v42  }
  0x66   :  { %v8484_v50 = vpop.permute.xlu2 %129 }
  0x6c   :  { %367 = vperm.xlu2 %7614, %v17354_v43   ;;  %360 = vperm.xlu1 %7613, %v17355_v44  }
  0x6d   :  { %353 = vperm.xlu0 %7612, %v17356_v45  }
  0x6e   :  { %v8502_v59 = vpop.permute.xlu2 %136 }
  0x74   :  { %388 = vperm.xlu2 %7614, %v17345_v47   ;;  %381 = vperm.xlu1 %7613, %v17349_v48   ;;  %v17353_v47 = vperm.slane %v8513_v60, 3 }
  0x75   :  { %374 = vperm.xlu0 %7612, %v17350_v49  }
  0x7c   :  { %409 = vperm.xlu2 %7614, %v17340_v51   ;;  %402 = vperm.xlu1 %7613, %v17343_v52   ;;  %v8520_v51 = vpop.permute.xlu2 %157  ;;  %v17351_v52 = vperm.slane %v8513_v60, 5 }
  0x7d   :  { %395 = vperm.xlu0 %7612, %v17344_v53   ;;  %v17352_v53 = vperm.slane %v8513_v60, 4 }
  0x7e   :  { %v8495_v54 = vpop.permute.xlu1 %115 }
  0x7f   :  { %v8497_v55 = vpop.permute.xlu0 %101 }
  0x84   :  { %430 = vperm.xlu2 %7614, %v17339_v56   ;;  %423 = vperm.xlu1 %7613, %v17341_v57   ;;  %v17348_v56 = vperm.slane %v8513_v60, 0 }
  0x85   :  { %416 = vperm.xlu0 %7612, %v17342_v58  }
  0x86   :  { %v8515_v61 = vpop.permute.xlu1 %122 }
  0x87   :  { %v109_v62 = vpop.permute.xlu0 %108 }
  0x88   :  { %v8618_v31 = vmul.f32 %v109_v62, %v33_v30  ;;  %v8643_v62 = vmul.f32 %v8515_v61, %v35_v24  ;;  %v38_v61 = vld [vmem:[%s17332_s0 + $0x30] sm:$0xff] }
  0x8a   :  { %v612_v23 = vsel %vm17497_vm0, %v8618_v31, 0.0 }
  0x8c   :  { %451 = vperm.xlu2 %7614, %v17346_v63   ;;  %444 = vperm.xlu1 %7613, %v17347_v1   ;;  %v8544_v63 = vld [vmem:[%s17333_s1 + $0x38] sm:$0xff]  ;;  %v8546_v1 = vpop.permute.xlu2 %178 }
  0x8d   :  { %437 = vperm.xlu0 %7612, %v17348_v56   ;;  %17808 = vst [vmem:[#allocation12_spill] sm:$0xff] %v8544_v63  ;;  %v17359_v49 = vperm.slane %v8544_v63, 0  ;;  %v17365_v44 = vperm.slane %v8544_v63, 3  ;;  %v17366_v45 = vperm.slane %v8544_v63, 2  ;;  %v17367_v41 = vperm.slane %v8544_v63, 1 }
  0x8e   :  { %v8528_v57 = vpop.permute.xlu1 %150 }
  0x8f   :  { %v8530_v58 = vpop.permute.xlu0 %143 }
  0x94   :  { %472 = vperm.xlu2 %7614, %v17351_v52   ;;  %465 = vperm.xlu1 %7613, %v17352_v53   ;;  %v17360_v52 = vperm.slane %v8513_v60, 7  ;;  %v17361_v53 = vperm.slane %v8513_v60, 6 }
  0x95   :  { %458 = vperm.xlu0 %7612, %v17353_v47   ;;  %v8561_v47 = vpop.permute.xlu2 %199 }
  0x96   :  { %v8548_v56 = vpop.permute.xlu1 %171 }
  0x97   :  { %v8550_v48 = vpop.permute.xlu0 %164 }
  0x9c   :  { %493 = vperm.xlu2 %7614, %v17359_v49   ;;  %486 = vperm.xlu1 %7613, %v17360_v52   ;;  %v17370_v49 = vperm.slane %v8544_v63, 6  ;;  %v17372_v52 = vperm.slane %v8544_v63, 5 }
  0x9d   :  { %479 = vperm.xlu0 %7612, %v17361_v53   ;;  %v17373_v53 = vperm.slane %v8544_v63, 4  ;;  %v8579_v42 = vpop.permute.xlu2 %220 }
  0x9e   :  { %v8567_v40 = vpop.permute.xlu1 %192 }
  0x9f   :  { %v8563_v43 = vpop.permute.xlu0 %185 }
  0xa4   :  { %514 = vperm.xlu2 %7614, %v17365_v44   ;;  %507 = vperm.xlu1 %7613, %v17366_v45   ;;  %v17376_v44 = vperm.slane %v8544_v63, 7  ;;  %v58_v63 = vld [vmem:[%s17332_s0 + $0xd0] sm:$0xff] }
  0xa5   :  { %500 = vperm.xlu0 %7612, %v17367_v41   ;;  %v8592_v45 = vpop.permute.xlu2 %241 }
  0xa6   :  { %v8583_v38 = vpop.permute.xlu1 %213 }
  0xa7   :  { %v8581_v37 = vpop.permute.xlu0 %206 }
  0xac   :  { %535 = vperm.xlu2 %7614, %v17370_v49   ;;  %528 = vperm.xlu1 %7613, %v17372_v52  }
  0xad   :  { %521 = vperm.xlu0 %7612, %v17373_v53   ;;  %v8600_v33 = vpop.permute.xlu2 %262 }
  0xae   :  { %v8596_v39 = vpop.permute.xlu1 %234 }
  0xaf   :  { %v8594_v41 = vpop.permute.xlu0 %227 }
  0xb5   :  { %542 = vperm.xlu0 %7612, %v17376_v44   ;;  %v8606_v52 = vpop.permute.xlu2 %283  ;;  %v32_v44 = vld [vmem:[%s17332_s0] sm:$0xff] }
  0xb6   :  { %v8604_v34 = vpop.permute.xlu1 %255  ;;  %v8621_v32 = vmul.f32 %v8497_v55, %v32_v44  ;;  %v36_v44 = vld [vmem:[%s17332_s0 + $0x20] sm:$0xff]  ;;  %v34_v55 = vld [vmem:[%s17332_s0 + $0x10] sm:$0xff] }
  0xb7   :  { %v8602_v49 = vpop.permute.xlu0 %248  ;;  %v8646_v25 = vmul.f32 %v8484_v50, %v36_v44  ;;  %v39_v50 = vld [vmem:[%s17332_s0 + $0x38] sm:$0xff]  ;;  %v8673_v44 = vmul.f32 %v8502_v59, %v37_v22  ;;  %v42_v22 = vld [vmem:[%s17332_s0 + $0x50] sm:$0xff] }
  0xb8   :  { %v609_v30 = vsel %vm17497_vm0, %v8621_v32, 0.0  ;;  %v8706_v18 = vmul.f32 %v8548_v56, %v42_v22  ;;  %v44_v56 = vld [vmem:[%s17332_s0 + $0x60] sm:$0xff] }
  0xb9   :  { %v621_v24 = vsel %vm17497_vm0, %v8646_v25, 0.0  ;;  %v624_v17 = vsel %vm17497_vm0, %v8673_v44, 0.0 }
  0xbd   :  { %v8623_v26 = vpop.permute.xlu2 %304 }
  0xbe   :  { %v8610_v35 = vpop.permute.xlu1 %276 }
  0xbf   :  { %v8608_v53 = vpop.permute.xlu0 %269 }
  0xc5   :  { %v8651_v20 = vpop.permute.xlu2 %325 }
  0xc6   :  { %v8627_v28 = vpop.permute.xlu1 %297 }
  0xc7   :  { %v8625_v27 = vpop.permute.xlu0 %290 }
  0xce   :  { %v8660_v16 = vpop.permute.xlu1 %318 }
  0xcf   :  { %v8653_v21 = vpop.permute.xlu0 %311 }
  0xd5   :  { %613 = vadd.xlane.f32.xlu2 %v612_v23  ;;  %v8649_v23 = vmul.f32 %v8495_v54, %v34_v55  ;;  %v8676_v55 = vmul.f32 %v8528_v57, %v39_v50  ;;  %v8691_v57 = vpop.permute.xlu2 %346  ;;  %v41_v50 = vld [vmem:[%s17332_s0 + $0x48] sm:$0xff] }
  0xd6   :  { %610 = vadd.xlane.f32.xlu1 %v609_v30  ;;  %v618_v30 = vsel %vm17497_vm0, %v8643_v62, 0.0  ;;  %v8709_v13 = vmul.f32 %v8550_v48, %v41_v50 }
  0xd7   :  { %v615_v54 = vsel %vm17497_vm0, %v8649_v23, 0.0  ;;  %v8693_v59 = vpop.permute.xlu0 %332 }
  0xd8   :  { %v636_v48 = vsel %vm17497_vm0, %v8709_v13, 0.0 }
  0xdd   :  { %619 = vadd.xlane.f32.xlu2 %v618_v30  ;;  %v8679_v30 = vmul.f32 %v8530_v58, %v38_v61  ;;  %v8729_v22 = vpop.permute.xlu2 %367 }
  0xde   :  { %622 = vadd.xlane.f32.xlu1 %v621_v24  ;;  %v40_v24 = vld [vmem:[%s17332_s0 + $0x40] sm:$0xff] }
  0xdf   :  { %616 = vadd.xlane.f32.xlu0 %v615_v54  ;;  %v630_v54 = vsel %vm17497_vm0, %v8676_v55, 0.0  ;;  %v627_v58 = vsel %vm17497_vm0, %v8679_v30, 0.0  ;;  %v8703_v61 = vmul.f32 %v8520_v51, %v40_v24  ;;  %v45_v51 = vld [vmem:[%s17332_s0 + $0x68] sm:$0xff]  ;;  %v8727_v24 = vmul.f32 %v8546_v1, %v43_v14  ;;  %v8731_v50 = vpop.permute.xlu0 %353  ;;  %v46_v14 = vld [vmem:[%s17332_s0 + $0x70] sm:$0xff] }
  0xe1   :  { %v642_v10 = vsel %vm17497_vm0, %v8727_v24, 0.0 }
  0xe5   :  { %625 = vadd.xlane.f32.xlu2 %v624_v17  ;;  %v8700_v17 = vpop.permute.xlu1 %339  ;;  %v8765_v11 = vpop.permute.xlu2 %388 }
  0xe6   :  { %631 = vadd.xlane.f32.xlu1 %v630_v54  ;;  %v633_v54 = vsel %vm17497_vm0, %v8703_v61, 0.0 }
  0xe7   :  { %628 = vadd.xlane.f32.xlu0 %v627_v58  ;;  %v639_v58 = vsel %vm17497_vm0, %v8706_v18, 0.0 }
  0xed   :  { %634 = vadd.xlane.f32.xlu2 %v633_v54  ;;  %v8734_v54 = vmul.f32 %v8567_v40, %v45_v51  ;;  %v8736_v15 = vpop.permute.xlu1 %360  ;;  %v48_v40 = vld [vmem:[%s17332_s0 + $0x80] sm:$0xff]  ;;  %v47_v51 = vld [vmem:[%s17332_s0 + $0x78] sm:$0xff]  ;;  %v8795_v3 = vpop.permute.xlu2 %409 }
  0xee   :  { %640 = vadd.xlane.f32.xlu1 %v639_v58  ;;  %v8739_v58 = vmul.f32 %v8563_v43, %v44_v56  ;;  %v8763_v56 = vmul.f32 %v8581_v37, %v47_v51  ;;  %v51_v37 = vld [vmem:[%s17332_s0 + $0x98] sm:$0xff] }
  0xef   :  { %637 = vadd.xlane.f32.xlu0 %v636_v48  ;;  %v648_v1 = vsel %vm17497_vm0, %v8734_v54, 0.0  ;;  %v8757_v48 = vmul.f32 %v8561_v47, %v46_v14  ;;  %v49_v47 = vld [vmem:[%s17332_s0 + $0x88] sm:$0xff] }
  0xf0   :  { %v645_v43 = vsel %vm17497_vm0, %v8739_v58, 0.0  ;;  %v654_v14 = vsel %vm17497_vm0, %v8763_v56, 0.0 }
  0xf1   :  { %v651_v6 = vsel %vm17497_vm0, %v8757_v48, 0.0 }
  0xf5   :  { %643 = vadd.xlane.f32.xlu2 %v642_v10  ;;  %v8760_v10 = vmul.f32 %v8583_v38, %v48_v40  ;;  %v8769_v12 = vpop.permute.xlu1 %381  ;;  %v50_v40 = vld [vmem:[%s17332_s0 + $0x90] sm:$0xff] }
  0xf6   :  { %649 = vadd.xlane.f32.xlu1 %v648_v1  ;;  %v8767_v1 = vpop.permute.xlu0 %374  ;;  %v8793_v51 = vmul.f32 %v8594_v41, %v50_v40  ;;  %v54_v41 = vld [vmem:[%s17332_s0 + $0xb0] sm:$0xff] }
  0xf7   :  { %646 = vadd.xlane.f32.xlu0 %v645_v43  ;;  %v657_v38 = vsel %vm17497_vm0, %v8760_v10, 0.0  ;;  %v8787_v43 = vmul.f32 %v8579_v42, %v49_v47  ;;  %v53_v47 = vld [vmem:[%s17332_s0 + $0xa8] sm:$0xff] }
  0xf8   :  { %v663_v42 = vsel %vm17497_vm0, %v8793_v51, 0.0  ;;  %v8823_v40 = vmul.f32 %v8602_v49, %v53_v47 }
  0xf9   :  { %v660_v7 = vsel %vm17497_vm0, %v8787_v43, 0.0 }
  0xfa   :  { %v672_v49 = vsel %vm17497_vm0, %v8823_v40, 0.0 }
  0xfd   :  { %652 = vadd.xlane.f32.xlu2 %v651_v6  ;;  %v8790_v6 = vmul.f32 %v8596_v39, %v51_v37  ;;  %v8804_v8 = vpop.permute.xlu1 %402 }
  0xfe   :  { %658 = vadd.xlane.f32.xlu1 %v657_v38  ;;  %v8797_v38 = vpop.permute.xlu0 %395 }
  0xff   :  { %655 = vadd.xlane.f32.xlu0 %v654_v14  ;;  %v52_v14 = vld [vmem:[%s17332_s0 + $0xa0] sm:$0xff]  ;;  %v666_v39 = vsel %vm17497_vm0, %v8790_v6, 0.0 }
 0x100   :  { %v8817_v37 = vmul.f32 %v8592_v45, %v52_v14  ;;  %v57_v45 = vld [vmem:[%s17332_s0 + $0xc8] sm:$0xff] }
 0x101   :  { %v8850_v5 = vmul.f32 %v8610_v35, %v57_v45  ;;  %v59_v35 = vld [vmem:[%s17332_s0 + $0xd8] sm:$0xff] }
 0x105   :  { %661 = vadd.xlane.f32.xlu2 %v660_v7  ;;  %v8820_v7 = vmul.f32 %v8604_v34, %v54_v41  ;;  %v8835_v34 = vpop.permute.xlu2 %430  ;;  %v56_v41 = vld [vmem:[%s17332_s0 + $0xc0] sm:$0xff]  ;;  %v8844_v47 = vpop.permute.xlu1 %423 }
 0x106   :  { %667 = vadd.xlane.f32.xlu1 %v666_v39  ;;  %v669_v39 = vsel %vm17497_vm0, %v8817_v37, 0.0  ;;  %v8837_v14 = vpop.permute.xlu0 %416  ;;  %v8853_v0 = vmul.f32 %v8608_v53, %v56_v41  ;;  %v8871_v53 = vmul.f32 %v8606_v52, %v58_v63  ;;  %v61_v52 = vld [vmem:[%s17332_s0 + $0xe8] sm:$0xff] }
 0x107   :  { %664 = vadd.xlane.f32.xlu0 %v663_v42  ;;  %v675_v42 = vsel %vm17497_vm0, %v8820_v7, 0.0 }
 0x108   :  { %v687_v46 = vsel %vm17497_vm0, %v8871_v53, 0.0 }
 0x10d   :  { %670 = vadd.xlane.f32.xlu2 %v669_v39  ;;  %v8847_v39 = vmul.f32 %v8600_v33, %v55_v4  ;;  %v60_v4 = vld [vmem:[%s17332_s0 + $0xe0] sm:$0xff]  ;;  %v681_v33 = vsel %vm17497_vm0, %v8853_v0, 0.0  ;;  %v8873_v45 = vpop.permute.xlu2 %451  ;;  %v8880_v60 = vpop.permute.xlu1 %444 }
 0x10e   :  { %676 = vadd.xlane.f32.xlu1 %v675_v42  ;;  %v8875_v41 = vpop.permute.xlu0 %437 }
 0x10f   :  { %673 = vadd.xlane.f32.xlu0 %v672_v49  ;;  %v678_v42 = vsel %vm17497_vm0, %v8847_v39, 0.0  ;;  %v684_v49 = vsel %vm17497_vm0, %v8850_v5, 0.0 }
 0x115   :  { %679 = vadd.xlane.f32.xlu2 %v678_v42  ;;  %v8878_v42 = vmul.f32 %v8627_v28, %v60_v4  ;;  %v63_v28 = vld [vmem:[%s17332_s0 + $0xf8] sm:$0xff]  ;;  %v62_v4 = vld [vmem:[%s17332_s0 + $0xf0] sm:$0xff]  ;;  %v8909_v36 = vpop.permute.xlu2 %472  ;;  %v8913_v29 = vpop.permute.xlu1 %465 }
 0x116   :  { %685 = vadd.xlane.f32.xlu1 %v684_v49  ;;  %v8883_v49 = vmul.f32 %v8625_v27, %v59_v35  ;;  %v8907_v35 = vmul.f32 %v8653_v21, %v62_v4  ;;  %v66_v21 = vld [vmem:[%s17332_s0 + $0x110] sm:$0xff] }
 0x117   :  { %682 = vadd.xlane.f32.xlu0 %v681_v33  ;;  %v693_v63 = vsel %vm17497_vm0, %v8878_v42, 0.0  ;;  %v8901_v33 = vmul.f32 %v8623_v26, %v61_v52  ;;  %v64_v26 = vld [vmem:[%s17332_s0 + $0x100] sm:$0xff] }
 0x118   :  { %v690_v27 = vsel %vm17497_vm0, %v8883_v49, 0.0  ;;  %v699_v52 = vsel %vm17497_vm0, %v8907_v35, 0.0 }
 0x119   :  { %v696_v19 = vsel %vm17497_vm0, %v8901_v33, 0.0 }
 0x11d   :  { %688 = vadd.xlane.f32.xlu2 %v687_v46  ;;  %v8904_v46 = vmul.f32 %v8660_v16, %v63_v28  ;;  %v65_v28 = vld [vmem:[%s17332_s0 + $0x108] sm:$0xff]  ;;  %v8939_v9 = vpop.permute.xlu2 %493 }
 0x11e   :  { %694 = vadd.xlane.f32.xlu1 %v693_v63  ;;  %v8911_v63 = vpop.permute.xlu0 %458  ;;  %v8937_v4 = vmul.f32 %v8693_v59, %v65_v28  ;;  %v69_v59 = vld [vmem:[%s17332_s0 + $0x128] sm:$0xff] }
 0x11f   :  { %691 = vadd.xlane.f32.xlu0 %v690_v27  ;;  %17809 = vst [vmem:[#allocation13_spill] sm:$0xff] %v8904_v46  ;;  %v702_v16 = vsel %vm17497_vm0, %v8904_v46, 0.0  ;;  %v8931_v27 = vmul.f32 %v8651_v20, %v64_v26  ;;  %v8948_v46 = vpop.permute.xlu1 %486  ;;  %v68_v26 = vld [vmem:[%s17332_s0 + $0x120] sm:$0xff] }
 0x120   :  { %17812 = vst [vmem:[#allocation16_spill] sm:$0xff] %v8937_v4  ;;  %v8967_v28 = vmul.f32 %v8731_v50, %v68_v26 }
 0x121   :  { %17810 = vst [vmem:[#allocation14_spill] sm:$0xff] %v8931_v27  ;;  %v705_v2 = vsel %vm17497_vm0, %v8931_v27, 0.0 }
 0x122   :  { %17815 = vst [vmem:[#allocation19_spill] sm:$0xff] %v8967_v28  ;;  %v717_v50 = vsel %vm17497_vm0, %v8967_v28, 0.0  ;;  %v73_v28 = vld [vmem:[%s17332_s0 + $0x148] sm:$0xff] }
 0x125   :  { %697 = vadd.xlane.f32.xlu2 %v696_v19  ;;  %v8934_v19 = vmul.f32 %v8700_v17, %v66_v21  ;;  %v708_v17 = vsel %vm17497_vm0, %v8937_v4, 0.0 }
 0x126   :  { %703 = vadd.xlane.f32.xlu1 %v702_v16  ;;  %v8941_v16 = vpop.permute.xlu0 %479 }
 0x127   :  { %700 = vadd.xlane.f32.xlu0 %v699_v52  ;;  %17811 = vst [vmem:[#allocation15_spill] sm:$0xff] %v8934_v19  ;;  %v67_v52 = vld [vmem:[%s17332_s0 + $0x118] sm:$0xff]  ;;  %v711_v20 = vsel %vm17497_vm0, %v8934_v19, 0.0  ;;  %v70_v19 = vld [vmem:[%s17332_s0 + $0x130] sm:$0xff]  ;;  %v8988_v26 = vpop.permute.xlu1 %507 }
 0x128   :  { %v8961_v21 = vmul.f32 %v8691_v57, %v67_v52  ;;  %v72_v57 = vld [vmem:[%s17332_s0 + $0x140] sm:$0xff] }
 0x12a   :  { %17813 = vst [vmem:[#allocation17_spill] sm:$0xff] %v8961_v21 }
 0x12d   :  { %706 = vadd.xlane.f32.xlu2 %v705_v2  ;;  %v8964_v2 = vmul.f32 %v8736_v15, %v69_v59  ;;  %v8979_v15 = vpop.permute.xlu2 %514  ;;  %v71_v59 = vld [vmem:[%s17332_s0 + $0x138] sm:$0xff] }
 0x12e   :  { %712 = vadd.xlane.f32.xlu1 %v711_v20  ;;  %v714_v20 = vsel %vm17497_vm0, %v8961_v21, 0.0  ;;  %v8981_v52 = vpop.permute.xlu0 %500  ;;  %v8997_v21 = vmul.f32 %v8767_v1, %v71_v59  ;;  %v74_v1 = vld [vmem:[%s17332_s0 + $0x150] sm:$0xff] }
 0x12f   :  { %709 = vadd.xlane.f32.xlu0 %v708_v17  ;;  %17814 = vst [vmem:[#allocation18_spill] sm:$0xff] %v8964_v2  ;;  %v720_v17 = vsel %vm17497_vm0, %v8964_v2, 0.0  ;;  %v8994_v2 = vmul.f32 %v8769_v12, %v72_v57 }
 0x130   :  { %17818 = vst [vmem:[#allocation22_spill] sm:$0xff] %v8997_v21  ;;  %v726_v12 = vsel %vm17497_vm0, %v8997_v21, 0.0 }
 0x131   :  { %17817 = vst [vmem:[#allocation21_spill] sm:$0xff] %v8994_v2 }
 0x135   :  { %715 = vadd.xlane.f32.xlu2 %v714_v20  ;;  %v8991_v20 = vmul.f32 %v8729_v22, %v70_v19  ;;  %v75_v22 = vld [vmem:[%s17332_s0 + $0x158] sm:$0xff]  ;;  %v9015_v19 = vmul.f32 %v8765_v11, %v73_v28  ;;  %v9017_v57 = vpop.permute.xlu2 %535  ;;  %v76_v11 = vld [vmem:[%s17332_s0 + $0x160] sm:$0xff] }
 0x136   :  { %721 = vadd.xlane.f32.xlu1 %v720_v17  ;;  %v9019_v59 = vpop.permute.xlu0 %521 }
 0x137   :  { %718 = vadd.xlane.f32.xlu0 %v717_v50  ;;  %17816 = vst [vmem:[#allocation20_spill] sm:$0xff] %v8991_v20  ;;  %v723_v17 = vsel %vm17497_vm0, %v8991_v20, 0.0  ;;  %v729_v50 = vsel %vm17497_vm0, %v8994_v2, 0.0  ;;  %v9024_v2 = vpop.permute.xlu1 %528  ;;  %v732_v20 = vsel %vm17497_vm0, %v9015_v19, 0.0 }
 0x138   :  { %17819 = vst [vmem:[#allocation23_spill] sm:$0xff] %v9015_v19 }
 0x13d   :  { %724 = vadd.xlane.f32.xlu2 %v723_v17  ;;  %v9022_v17 = vmul.f32 %v8804_v8, %v75_v22  ;;  %v78_v8 = vld [vmem:[%s17332_s0 + $0x170] sm:$0xff]  ;;  %v77_v22 = vld [vmem:[%s17332_s0 + $0x168] sm:$0xff] }
 0x13e   :  { %730 = vadd.xlane.f32.xlu1 %v729_v50  ;;  %v9027_v50 = vmul.f32 %v8797_v38, %v74_v1  ;;  %v9050_v1 = vmul.f32 %v8844_v47, %v78_v8  ;;  %v9057_v19 = vpop.permute.xlu0 %542  ;;  %v81_v47 = vld [vmem:[%s17332_s0 + $0x188] sm:$0xff]  ;;  %v80_v8 = vld [vmem:[%s17332_s0 + $0x180] sm:$0xff] }
 0x13f   :  { %727 = vadd.xlane.f32.xlu0 %v726_v12  ;;  %17820 = vst [vmem:[#allocation24_spill] sm:$0xff] %v9022_v17  ;;  %v738_v28 = vsel %vm17497_vm0, %v9022_v17, 0.0  ;;  %v9045_v12 = vmul.f32 %v8795_v3, %v76_v11  ;;  %v79_v3 = vld [vmem:[%s17332_s0 + $0x178] sm:$0xff] }
 0x140   :  { %17821 = vst [vmem:[#allocation25_spill] sm:$0xff] %v9027_v50  ;;  %v735_v38 = vsel %vm17497_vm0, %v9027_v50, 0.0  ;;  %v747_v11 = vsel %vm17497_vm0, %v9050_v1, 0.0 }
 0x141   :  { %17822 = vst [vmem:[#allocation26_spill] sm:$0xff] %v9045_v12  ;;  %v741_v50 = vsel %vm17497_vm0, %v9045_v12, 0.0 }
 0x142   :  { %17823 = vst [vmem:[#allocation27_spill] sm:$0xff] %v9050_v1 }
 0x145   :  { %733 = vadd.xlane.f32.xlu2 %v732_v20 }
 0x146   :  { %739 = vadd.xlane.f32.xlu1 %v738_v28  ;;  %v9055_v28 = vmul.f32 %v8837_v14, %v77_v22  ;;  %v9080_v22 = vmul.f32 %v8880_v60, %v81_v47 }
 0x147   :  { %736 = vadd.xlane.f32.xlu0 %v735_v38  ;;  %v9075_v38 = vmul.f32 %v8835_v34, %v79_v3  ;;  %v82_v34 = vld [vmem:[%s17332_s0 + $0x190] sm:$0xff]  ;;  %v8288_v3 = vmov 32.0  }
 0x148   :  { %v9047_v20 = vpop.xlane.xlu2 %613  ;;  %17824 = vst [vmem:[#allocation28_spill] sm:$0xff] %v9055_v28  ;;  %v744_v14 = vsel %vm17497_vm0, %v9055_v28, 0.0  ;;  %7620 = vrcp.f32 %v8288_v3  ;;  %v756_v60 = vsel %vm17497_vm0, %v9080_v22, 0.0 }
 0x149   :  { %v9052_v17 = vpop.xlane.xlu1 %610  ;;  %17825 = vst [vmem:[#allocation29_spill] sm:$0xff] %v9075_v38  ;;  %v750_v28 = vsel %vm17497_vm0, %v9075_v38, 0.0 }
 0x14a   :  { %17826 = vst [vmem:[#allocation30_spill] sm:$0xff] %v9080_v22 }
 0x14d   :  { %742 = vadd.xlane.f32.xlu2 %v741_v50 }
 0x14e   :  { %748 = vadd.xlane.f32.xlu1 %v747_v11  ;;  %v9085_v11 = vmul.f32 %v8875_v41, %v80_v8  ;;  %v84_v41 = vld [vmem:[%s17332_s0 + $0x1a0] sm:$0xff]  ;;  %v9105_v8 = vmul.f32 %v8873_v45, %v82_v34  ;;  %v85_v45 = vld [vmem:[%s17332_s0 + $0x1a8] sm:$0xff]  ;;  %v87_v34 = vld [vmem:[%s17332_s0 + $0x1b8] sm:$0xff] }
 0x14f   :  { %745 = vadd.xlane.f32.xlu0 %v744_v14  ;;  %v83_v14 = vld [vmem:[%s17332_s0 + $0x198] sm:$0xff]  ;;  %v9110_v3 = vmul.f32 %v8913_v29, %v84_v41 }
 0x150   :  { %v9077_v50 = vpop.xlane.xlu2 %619  ;;  %17827 = vst [vmem:[#allocation31_spill] sm:$0xff] %v9085_v11  ;;  %v753_v47 = vsel %vm17497_vm0, %v9085_v11, 0.0  ;;  %v7621_v11 = vpop.eup %7620  ;;  %v759_v21 = vsel %vm17497_vm0, %v9105_v8, 0.0 }
 0x151   :  { %v9082_v1 = vpop.xlane.xlu1 %622  ;;  %17828 = vst [vmem:[#allocation32_spill] sm:$0xff] %v9105_v8  ;;  %v765_v29 = vsel %vm17497_vm0, %v9110_v3, 0.0  ;;  %vm806_vm1 = vweird.f32 %v7621_v11 }
 0x152   :  { %v9087_v12 = vpop.xlane.xlu0 %616  ;;  %17829 = vst [vmem:[#allocation33_spill] sm:$0xff] %v9110_v3  ;;  %v9140_v3 = vmul.f32 %v8948_v46, %v87_v34 }
 0x154   :  { %17831 = vst [vmem:[#allocation35_spill] sm:$0xff] %v9140_v3  ;;  %v774_v46 = vsel %vm17497_vm0, %v9140_v3, 0.0 }
 0x155   :  { %751 = vadd.xlane.f32.xlu2 %v750_v28 }
 0x156   :  { %757 = vadd.xlane.f32.xlu1 %v756_v60  ;;  %v9115_v60 = vmul.f32 %v8911_v63, %v83_v14  ;;  %v802_v63 = vmul.f32 32.0, %v7621_v11  ;;  %v9135_v14 = vmul.f32 %v8909_v36, %v85_v45  ;;  %v88_v36 = vld [vmem:[%s17332_s0 + $0x1c0] sm:$0xff]  ;;  %v90_v45 = vld [vmem:[%s17332_s0 + $0x1d0] sm:$0xff] }
 0x157   :  { %754 = vadd.xlane.f32.xlu0 %v753_v47  ;;  %v86_v47 = vld [vmem:[%s17332_s0 + $0x1b0] sm:$0xff] }
 0x158   :  { %v9107_v28 = vpop.xlane.xlu2 %625  ;;  %17830 = vst [vmem:[#allocation34_spill] sm:$0xff] %v9115_v60  ;;  %v762_v41 = vsel %vm17497_vm0, %v9115_v60, 0.0  ;;  %v803_v27 = vsub.f32 1.0, %v802_v63  ;;  %v768_v4 = vsel %vm17497_vm0, %v9135_v14, 0.0  ;;  %v89_v63 = vld [vmem:[%s17332_s0 + $0x1c8] sm:$0xff] }
 0x159   :  { %v9112_v22 = vpop.xlane.xlu1 %631 }
 0x15a   :  { %v9117_v38 = vpop.xlane.xlu0 %628 }
 0x15d   :  { %760 = vadd.xlane.f32.xlu2 %v759_v21 }
 0x15e   :  { %766 = vadd.xlane.f32.xlu1 %v765_v29  ;;  %v9145_v29 = vmul.f32 %v8941_v16, %v86_v47  ;;  %v804_v16 = vmul.f32 %v7621_v11, %v803_v27  ;;  %v9170_v47 = vmul.f32 %v8988_v26, %v90_v45  ;;  %v9175_v27 = vmul.f32 %v8981_v52, %v89_v63  ;;  %v93_v52 = vld [vmem:[%s17332_s0 + $0x1e8] sm:$0xff] }
 0x15f   :  { %763 = vadd.xlane.f32.xlu0 %v762_v41  ;;  %v9165_v41 = vmul.f32 %v8939_v9, %v88_v36  ;;  %v91_v9 = vld [vmem:[%s17332_s0 + $0x1d8] sm:$0xff] }
 0x160   :  { %v9137_v21 = vpop.xlane.xlu2 %634  ;;  %17832 = vst [vmem:[#allocation36_spill] sm:$0xff] %v9145_v29  ;;  %v771_v34 = vsel %vm17497_vm0, %v9145_v29, 0.0  ;;  %v783_v26 = vsel %vm17497_vm0, %v9170_v47, 0.0  ;;  %v780_v45 = vsel %vm17497_vm0, %v9175_v27, 0.0  ;;  %v9197_v63 = vmul.f32 %v8979_v15, %v91_v9  ;;  %v94_v15 = vld [vmem:[%s17332_s0 + $0x1f0] sm:$0xff]  ;;  %v95_v9 = vld [vmem:[%s17332_s0 + $0x1f8] sm:$0xff] }
 0x161   :  { %v9142_v8 = vpop.xlane.xlu1 %640  ;;  %17833 = vst [vmem:[#allocation37_spill] sm:$0xff] %v9170_v47  ;;  %v9202_v47 = vmul.f32 %v9024_v2, %v93_v52  ;;  %v9229_v52 = vmul.f32 %v9017_v57, %v94_v15 }
 0x162   :  { %v9147_v60 = vpop.xlane.xlu0 %637  ;;  %17834 = vst [vmem:[#allocation38_spill] sm:$0xff] %v9175_v27 }
 0x165   :  { %769 = vadd.xlane.f32.xlu2 %v768_v4 }
 0x166   :  { %775 = vadd.xlane.f32.xlu1 %v774_v46  ;;  %v805_v46 = vadd.f32 %v7621_v11, %v804_v16  ;;  %v92_v16 = vld [vmem:[%s17332_s0 + $0x1e0] sm:$0xff] }
 0x167   :  { %772 = vadd.xlane.f32.xlu0 %v771_v34  ;;  %v777_v34 = vsel %vm17497_vm0, %v9165_v41, 0.0 }
 0x168   :  { %v9167_v4 = vpop.xlane.xlu2 %643  ;;  %v9189_v36 = vsel %vm806_vm1, %v7621_v11, %v805_v46 }
 0x169   :  { %v9172_v3 = vpop.xlane.xlu1 %649  ;;  %v808_v11 = vmul.f32 %v9189_v36, %v9052_v17  ;;  %v792_v17 = vsel %vm17497_vm0, %v9202_v47, 0.0  ;;  %v810_v57 = vmul.f32 %v9189_v36, %v9087_v12 }
 0x16a   :  { %v9177_v29 = vpop.xlane.xlu0 %646 }
 0x16b   :  { %v9219_v2 = vsub.f32 %v8621_v32, %v808_v11  ;;  %v809_v32 = vmul.f32 %v9189_v36, %v9047_v20  ;;  %v811_v11 = vmul.f32 %v9189_v36, %v9077_v50 }
 0x16d   :  { %778 = vadd.xlane.f32.xlu2 %v777_v34  ;;  %17836 = vst [vmem:[#allocation40_spill] sm:$0xff] %v9219_v2  ;;  %v9249_v20 = vsub.f32 %v8618_v31, %v809_v32  ;;  %v9254_v50 = vsub.f32 %v8643_v62, %v811_v11  ;;  %v812_v31 = vmul.f32 %v9189_v36, %v9082_v1 }
 0x16e   :  { %784 = vadd.xlane.f32.xlu1 %v783_v26  ;;  %v9209_v26 = vmul.f32 %v9019_v59, %v92_v16  ;;  %v814_v32 = vmul.f32 %v9189_v36, %v9117_v38 }
 0x16f   :  { %781 = vadd.xlane.f32.xlu0 %v780_v45  ;;  %v786_v45 = vsel %vm17497_vm0, %v9197_v63, 0.0  ;;  %17837 = vst [vmem:[#allocation41_spill] sm:$0xff] %v9254_v50  ;;  %v937_v62 = vmul.f32 %v9249_v20, %v9249_v20 }
 0x170   :  { %v9199_v34 = vpop.xlane.xlu2 %652  ;;  %17835 = vst [vmem:[#allocation39_spill] sm:$0xff] %v9209_v26  ;;  %v789_v59 = vsel %vm17497_vm0, %v9209_v26, 0.0  ;;  %v9242_v26 = vmul.f32 %v9057_v19, %v95_v9  ;;  %v9258_v19 = vsub.f32 %v8649_v23, %v810_v57  ;;  %v939_v23 = vmul.f32 %v9254_v50, %v9254_v50 }
 0x171   :  { %v9206_v46 = vpop.xlane.xlu1 %658  ;;  %v9281_v57 = vsub.f32 %v8646_v25, %v812_v31  ;;  %v9285_v38 = vsub.f32 %v8679_v30, %v814_v32  ;;  %v817_v30 = vmul.f32 %v9189_v36, %v9147_v60  ;;  %v816_v32 = vmul.f32 %v9189_v36, %v9137_v21 }
 0x172   :  { %v9211_v27 = vpop.xlane.xlu0 %655  ;;  %17838 = vst [vmem:[#allocation42_spill] sm:$0xff] %v9258_v19  ;;  %v798_v12 = vsel %vm17497_vm0, %v9242_v26, 0.0  ;;  %v938_v1 = vmul.f32 %v9258_v19, %v9258_v19  ;;  %v815_v19 = vmul.f32 %v9189_v36, %v9112_v22 }
 0x173   :  { %v940_v31 = vmul.f32 %v9281_v57, %v9281_v57  ;;  %v9315_v60 = vsub.f32 %v8709_v13, %v817_v30  ;;  %v820_v13 = vmul.f32 %v9189_v36, %v9177_v29  ;;  %v819_v30 = vmul.f32 %v9189_v36, %v9167_v4 }
 0x175   :  { %787 = vadd.xlane.f32.xlu2 %v786_v45  ;;  %v9345_v29 = vsub.f32 %v8739_v58, %v820_v13  ;;  %v823_v58 = vmul.f32 %v9189_v36, %v9211_v27  ;;  %v822_v13 = vmul.f32 %v9189_v36, %v9199_v34 }
 0x176   :  { %793 = vadd.xlane.f32.xlu1 %v792_v17  ;;  %v936_v17 = vmul.f32 %v9219_v2, %v9219_v2 }
 0x177   :  { %790 = vadd.xlane.f32.xlu0 %v789_v59  ;;  %v795_v59 = vsel %vm17497_vm0, %v9229_v52, 0.0  ;;  %v9375_v27 = vsub.f32 %v8763_v56, %v823_v58 }
 0x178   :  { %v9233_v16 = vpop.xlane.xlu2 %661  ;;  %v1000_v2 = vsel %vm17497_vm0, %v936_v17, 0.0 }
 0x179   :  { %v9237_v45 = vpop.xlane.xlu1 %667  ;;  %v825_v58 = vmul.f32 %v9189_v36, %v9233_v16 }
 0x17a   :  { %v9246_v15 = vpop.xlane.xlu0 %664 }
 0x17b   :  { %v826_v56 = vmul.f32 %v9189_v36, %v9246_v15 }
 0x17d   :  { %796 = vadd.xlane.f32.xlu2 %v795_v59  ;;  %v1003_v59 = vsel %vm17497_vm0, %v937_v62, 0.0  ;;  %v9405_v15 = vsub.f32 %v8793_v51, %v826_v56 }
 0x17e   :  { %1001 = vadd.xlane.f32.xlu1 %v1000_v2  ;;  %v813_v2 = vmul.f32 %v9189_v36, %v9107_v28  ;;  %v1006_v28 = vsel %vm17497_vm0, %v938_v1, 0.0  ;;  %v1012_v1 = vsel %vm17497_vm0, %v940_v31, 0.0 }
 0x17f   :  { %799 = vadd.xlane.f32.xlu0 %v798_v12  ;;  %v1009_v12 = vsel %vm17497_vm0, %v939_v23, 0.0 }
 0x180   :  { %v9264_v9 = vpop.xlane.xlu2 %670  ;;  %v9289_v50 = vsub.f32 %v8673_v44, %v813_v2  ;;  %v942_v44 = vmul.f32 %v9285_v38, %v9285_v38  ;;  %v9311_v2 = vsub.f32 %v8676_v55, %v815_v19 }
 0x181   :  { %v9270_v11 = vpop.xlane.xlu1 %676  ;;  %v828_v56 = vmul.f32 %v9189_v36, %v9264_v9 }
 0x182   :  { %v9276_v17 = vpop.xlane.xlu0 %673  ;;  %v941_v22 = vmul.f32 %v9289_v50, %v9289_v50  ;;  %v943_v19 = vmul.f32 %v9311_v2, %v9311_v2 }
 0x183   :  { %v829_v51 = vmul.f32 %v9189_v36, %v9276_v17 }
 0x184   :  { %v1015_v21 = vsel %vm17497_vm0, %v941_v22, 0.0  ;;  %v1021_v22 = vsel %vm17497_vm0, %v943_v19, 0.0 }
 0x185   :  { %1004 = vadd.xlane.f32.xlu2 %v1003_v59  ;;  %v1018_v59 = vsel %vm17497_vm0, %v942_v44, 0.0  ;;  %v9435_v17 = vsub.f32 %v8823_v40, %v829_v51 }
 0x186   :  { %1010 = vadd.xlane.f32.xlu1 %v1009_v12  ;;  %v9319_v12 = vsub.f32 %v8703_v61, %v816_v32  ;;  %v945_v61 = vmul.f32 %v9315_v60, %v9315_v60 }
 0x187   :  { %1007 = vadd.xlane.f32.xlu0 %v1006_v28  ;;  %v818_v28 = vmul.f32 %v9189_v36, %v9142_v8  ;;  %17840 = vst [vmem:[#allocation44_spill] sm:$0xff] %v9435_v17 }
 0x188   :  { %v9294_v25 = vpop.xlane.xlu2 %679  ;;  %v944_v8 = vmul.f32 %v9319_v12, %v9319_v12 }
 0x189   :  { %v9300_v62 = vpop.xlane.xlu1 %685  ;;  %v9341_v32 = vsub.f32 %v8706_v18, %v818_v28  ;;  %v831_v51 = vmul.f32 %v9189_v36, %v9294_v25 }
 0x18a   :  { %v9306_v23 = vpop.xlane.xlu0 %682  ;;  %v1024_v4 = vsel %vm17497_vm0, %v944_v8, 0.0 }
 0x18b   :  { %v946_v28 = vmul.f32 %v9341_v32, %v9341_v32  ;;  %v832_v40 = vmul.f32 %v9189_v36, %v9306_v23 }
 0x18d   :  { %1013 = vadd.xlane.f32.xlu2 %v1012_v1  ;;  %v1027_v1 = vsel %vm17497_vm0, %v945_v61, 0.0  ;;  %v1030_v8 = vsel %vm17497_vm0, %v946_v28, 0.0  ;;  %v9465_v23 = vsub.f32 %v8853_v0, %v832_v40 }
 0x18e   :  { %1019 = vadd.xlane.f32.xlu1 %v1018_v59  ;;  %v9349_v59 = vsub.f32 %v8727_v24, %v819_v30  ;;  %v948_v24 = vmul.f32 %v9345_v29, %v9345_v29 }
 0x18f   :  { %1016 = vadd.xlane.f32.xlu0 %v1015_v21  ;;  %v821_v21 = vmul.f32 %v9189_v36, %v9172_v3  ;;  %17843 = vst [vmem:[#allocation47_spill] sm:$0xff] %v9465_v23 }
 0x190   :  { %v9324_v55 = vpop.xlane.xlu2 %688  ;;  %v947_v3 = vmul.f32 %v9349_v59, %v9349_v59 }
 0x191   :  { %v9330_v31 = vpop.xlane.xlu1 %694  ;;  %v9371_v30 = vsub.f32 %v8734_v54, %v821_v21  ;;  %v834_v40 = vmul.f32 %v9189_v36, %v9324_v55 }
 0x192   :  { %v9336_v44 = vpop.xlane.xlu0 %691  ;;  %v1033_v34 = vsel %vm17497_vm0, %v947_v3, 0.0 }
 0x193   :  { %v949_v21 = vmul.f32 %v9371_v30, %v9371_v30  ;;  %v835_v0 = vmul.f32 %v9189_v36, %v9336_v44 }
 0x195   :  { %1022 = vadd.xlane.f32.xlu2 %v1021_v22  ;;  %v1036_v22 = vsel %vm17497_vm0, %v948_v24, 0.0  ;;  %v1039_v3 = vsel %vm17497_vm0, %v949_v21, 0.0  ;;  %v9495_v44 = vsub.f32 %v8883_v49, %v835_v0 }
 0x196   :  { %1028 = vadd.xlane.f32.xlu1 %v1027_v1  ;;  %v9379_v1 = vsub.f32 %v8757_v48, %v822_v13  ;;  %v951_v48 = vmul.f32 %v9375_v27, %v9375_v27 }
 0x197   :  { %1025 = vadd.xlane.f32.xlu0 %v1024_v4  ;;  %v824_v4 = vmul.f32 %v9189_v36, %v9206_v46  ;;  %17846 = vst [vmem:[#allocation50_spill] sm:$0xff] %v9495_v44 }
 0x198   :  { %v9354_v18 = vpop.xlane.xlu2 %697  ;;  %v950_v46 = vmul.f32 %v9379_v1, %v9379_v1 }
 0x199   :  { %v9360_v19 = vpop.xlane.xlu1 %703  ;;  %v9401_v13 = vsub.f32 %v8760_v10, %v824_v4  ;;  %v837_v0 = vmul.f32 %v9189_v36, %v9354_v18 }
 0x19a   :  { %v9366_v61 = vpop.xlane.xlu0 %700  ;;  %v1042_v16 = vsel %vm17497_vm0, %v950_v46, 0.0 }
 0x19b   :  { %v952_v4 = vmul.f32 %v9401_v13, %v9401_v13  ;;  %v838_v49 = vmul.f32 %v9189_v36, %v9366_v61 }
 0x19d   :  { %1031 = vadd.xlane.f32.xlu2 %v1030_v8  ;;  %v1045_v8 = vsel %vm17497_vm0, %v951_v48, 0.0  ;;  %v1048_v46 = vsel %vm17497_vm0, %v952_v4, 0.0  ;;  %v9525_v61 = vsub.f32 %v8907_v35, %v838_v49 }
 0x19e   :  { %1037 = vadd.xlane.f32.xlu1 %v1036_v22  ;;  %v9409_v22 = vsub.f32 %v8787_v43, %v825_v58  ;;  %v954_v43 = vmul.f32 %v9405_v15, %v9405_v15 }
 0x19f   :  { %1034 = vadd.xlane.f32.xlu0 %v1033_v34  ;;  %v827_v34 = vmul.f32 %v9189_v36, %v9237_v45  ;;  %17849 = vst [vmem:[#allocation53_spill] sm:$0xff] %v9525_v61 }
 0x1a0   :  { %v9384_v54 = vpop.xlane.xlu2 %706  ;;  %v953_v45 = vmul.f32 %v9409_v22, %v9409_v22 }
 0x1a1   :  { %v9390_v28 = vpop.xlane.xlu1 %712  ;;  %v9431_v58 = vsub.f32 %v8790_v6, %v827_v34  ;;  %v840_v49 = vmul.f32 %v9189_v36, %v9384_v54 }
 0x1a2   :  { %v9396_v24 = vpop.xlane.xlu0 %709  ;;  %v1051_v9 = vsel %vm17497_vm0, %v953_v45, 0.0 }
 0x1a3   :  { %17839 = vst [vmem:[#allocation43_spill] sm:$0xff] %v9431_v58  ;;  %v955_v34 = vmul.f32 %v9431_v58, %v9431_v58  ;;  %v841_v35 = vmul.f32 %v9189_v36, %v9396_v24 }
 0x1a5   :  { %1040 = vadd.xlane.f32.xlu2 %v1039_v3  ;;  %v1054_v3 = vsel %vm17497_vm0, %v954_v43, 0.0  ;;  %v1057_v45 = vsel %vm17497_vm0, %v955_v34, 0.0 }
 0x1a6   :  { %1046 = vadd.xlane.f32.xlu1 %v1045_v8  ;;  %v9439_v8 = vsub.f32 %v8817_v37, %v828_v56  ;;  %v957_v37 = vmul.f32 %v9435_v17, %v9435_v17 }
 0x1a7   :  { %1043 = vadd.xlane.f32.xlu0 %v1042_v16  ;;  %v830_v16 = vmul.f32 %v9189_v36, %v9270_v11 }
 0x1a8   :  { %v9414_v10 = vpop.xlane.xlu2 %715  ;;  %17841 = vst [vmem:[#allocation45_spill] sm:$0xff] %v9439_v8  ;;  %v956_v11 = vmul.f32 %v9439_v8, %v9439_v8 }
 0x1a9   :  { %v9420_v21 = vpop.xlane.xlu1 %721  ;;  %v9461_v56 = vsub.f32 %v8820_v7, %v830_v16 }
 0x1aa   :  { %v9426_v48 = vpop.xlane.xlu0 %718  ;;  %v1060_v25 = vsel %vm17497_vm0, %v956_v11, 0.0 }
 0x1ab   :  { %17842 = vst [vmem:[#allocation46_spill] sm:$0xff] %v9461_v56  ;;  %v958_v16 = vmul.f32 %v9461_v56, %v9461_v56 }
 0x1ad   :  { %1049 = vadd.xlane.f32.xlu2 %v1048_v46  ;;  %v1063_v46 = vsel %vm17497_vm0, %v957_v37, 0.0  ;;  %v1066_v11 = vsel %vm17497_vm0, %v958_v16, 0.0 }
 0x1ae   :  { %1055 = vadd.xlane.f32.xlu1 %v1054_v3  ;;  %v9469_v3 = vsub.f32 %v8847_v39, %v831_v51  ;;  %v960_v39 = vmul.f32 %v9465_v23, %v9465_v23 }
 0x1af   :  { %1052 = vadd.xlane.f32.xlu0 %v1051_v9  ;;  %v833_v9 = vmul.f32 %v9189_v36, %v9300_v62 }
 0x1b0   :  { %v9444_v6 = vpop.xlane.xlu2 %724  ;;  %17844 = vst [vmem:[#allocation48_spill] sm:$0xff] %v9469_v3  ;;  %v959_v62 = vmul.f32 %v9469_v3, %v9469_v3 }
 0x1b1   :  { %v9450_v4 = vpop.xlane.xlu1 %730  ;;  %v9491_v51 = vsub.f32 %v8850_v5, %v833_v9 }
 0x1b2   :  { %v9456_v43 = vpop.xlane.xlu0 %727  ;;  %v1069_v55 = vsel %vm17497_vm0, %v959_v62, 0.0 }
 0x1b3   :  { %17845 = vst [vmem:[#allocation49_spill] sm:$0xff] %v9491_v51  ;;  %v961_v9 = vmul.f32 %v9491_v51, %v9491_v51 }
 0x1b5   :  { %1058 = vadd.xlane.f32.xlu2 %v1057_v45  ;;  %v1072_v45 = vsel %vm17497_vm0, %v960_v39, 0.0  ;;  %v1075_v62 = vsel %vm17497_vm0, %v961_v9, 0.0 }
 0x1b6   :  { %1064 = vadd.xlane.f32.xlu1 %v1063_v46  ;;  %v9499_v46 = vsub.f32 %v8871_v53, %v834_v40  ;;  %v963_v53 = vmul.f32 %v9495_v44, %v9495_v44 }
 0x1b7   :  { %1061 = vadd.xlane.f32.xlu0 %v1060_v25  ;;  %v836_v25 = vmul.f32 %v9189_v36, %v9330_v31 }
 0x1b8   :  { %v9474_v7 = vpop.xlane.xlu2 %733  ;;  %17847 = vst [vmem:[#allocation51_spill] sm:$0xff] %v9499_v46  ;;  %v962_v31 = vmul.f32 %v9499_v46, %v9499_v46 }
 0x1b9   :  { %v9480_v34 = vpop.xlane.xlu1 %739  ;;  %v9521_v40 = vsub.f32 %v8878_v42, %v836_v25 }
 0x1ba   :  { %v9486_v37 = vpop.xlane.xlu0 %736  ;;  %v1078_v18 = vsel %vm17497_vm0, %v962_v31, 0.0 }
 0x1bb   :  { %17848 = vst [vmem:[#allocation52_spill] sm:$0xff] %v9521_v40  ;;  %v964_v25 = vmul.f32 %v9521_v40, %v9521_v40 }
 0x1bd   :  { %1067 = vadd.xlane.f32.xlu2 %v1066_v11  ;;  %v1081_v11 = vsel %vm17497_vm0, %v963_v53, 0.0 }
 0x1be   :  { %1073 = vadd.xlane.f32.xlu1 %v1072_v45  ;;  %v9529_v45 = vsub.f32 %v8901_v33, %v837_v0  ;;  %v966_v33 = vmul.f32 %v9525_v61, %v9525_v61  ;;  %v17851_v0 = vld [vmem:[#allocation13_spill] sm:$0xff]  ;;  %v17855_v61 = vld [vmem:[#allocation14_spill] sm:$0xff] }
 0x1bf   :  { %1070 = vadd.xlane.f32.xlu0 %v1069_v55  ;;  %v839_v55 = vmul.f32 %v9189_v36, %v9360_v19  ;;  %v9559_v40 = vsub.f32 %v17855_v61, %v840_v49 }
 0x1c0   :  { %v9504_v5 = vpop.xlane.xlu2 %742  ;;  %17850 = vst [vmem:[#allocation54_spill] sm:$0xff] %v9529_v45  ;;  %v965_v19 = vmul.f32 %v9529_v45, %v9529_v45  ;;  %v842_v45 = vmul.f32 %v9189_v36, %v9390_v28 }
 0x1c1   :  { %v9510_v16 = vpop.xlane.xlu1 %748  ;;  %v9551_v31 = vsub.f32 %v17851_v0, %v839_v55  ;;  %17856 = vst [vmem:[#allocation14_spill] sm:$0xff] %v9559_v40  ;;  %v968_v28 = vmul.f32 %v9559_v40, %v9559_v40  ;;  %v845_v40 = vmul.f32 %v9189_v36, %v9420_v21 }
 0x1c2   :  { %v9516_v39 = vpop.xlane.xlu0 %745  ;;  %v1087_v54 = vsel %vm17497_vm0, %v965_v19, 0.0  ;;  %v17857_v19 = vld [vmem:[#allocation15_spill] sm:$0xff] }
 0x1c3   :  { %17852 = vst [vmem:[#allocation13_spill] sm:$0xff] %v9551_v31 }
 0x1c5   :  { %1076 = vadd.xlane.f32.xlu2 %v1075_v62  ;;  %v1084_v62 = vsel %vm17497_vm0, %v964_v25, 0.0  ;;  %v967_v25 = vmul.f32 %v9551_v31, %v9551_v31  ;;  %v17861_v31 = vld [vmem:[#allocation17_spill] sm:$0xff] }
 0x1c6   :  { %1082 = vadd.xlane.f32.xlu1 %v1081_v11  ;;  %v17853_v11 = vld [vmem:[#allocation16_spill] sm:$0xff] }
 0x1c7   :  { %1079 = vadd.xlane.f32.xlu0 %v1078_v18  ;;  %v9555_v24 = vsub.f32 %v17853_v11, %v841_v35  ;;  %v1090_v18 = vsel %vm17497_vm0, %v966_v33, 0.0  ;;  %v844_v35 = vmul.f32 %v9189_v36, %v9426_v48  ;;  %v843_v33 = vmul.f32 %v9189_v36, %v9414_v10 }
 0x1c8   :  { %v9534_v42 = vpop.xlane.xlu2 %751  ;;  %v1093_v11 = vsel %vm17497_vm0, %v967_v25, 0.0  ;;  %v1096_v10 = vsel %vm17497_vm0, %v968_v28, 0.0  ;;  %v17863_v28 = vld [vmem:[#allocation18_spill] sm:$0xff] }
 0x1c9   :  { %v9540_v9 = vpop.xlane.xlu1 %757  ;;  %17854 = vst [vmem:[#allocation16_spill] sm:$0xff] %v9555_v24  ;;  %v969_v61 = vmul.f32 %v9555_v24, %v9555_v24  ;;  %v9589_v24 = vsub.f32 %v17861_v31, %v843_v33 }
 0x1ca   :  { %v9546_v53 = vpop.xlane.xlu0 %754 }
 0x1cb   :  { %17862 = vst [vmem:[#allocation17_spill] sm:$0xff] %v9589_v24  ;;  %v971_v21 = vmul.f32 %v9589_v24, %v9589_v24  ;;  %v848_v24 = vmul.f32 %v9189_v36, %v9450_v4 }
 0x1cd   :  { %1085 = vadd.xlane.f32.xlu2 %v1084_v62  ;;  %v9581_v62 = vsub.f32 %v17857_v19, %v842_v45 }
 0x1ce   :  { %1091 = vadd.xlane.f32.xlu1 %v1090_v18  ;;  %v17859_v18 = vld [vmem:[#allocation19_spill] sm:$0xff] }
 0x1cf   :  { %1088 = vadd.xlane.f32.xlu0 %v1087_v54  ;;  %17858 = vst [vmem:[#allocation15_spill] sm:$0xff] %v9581_v62  ;;  %v9585_v48 = vsub.f32 %v17859_v18, %v844_v35  ;;  %v1099_v54 = vsel %vm17497_vm0, %v969_v61, 0.0  ;;  %v970_v25 = vmul.f32 %v9581_v62, %v9581_v62  ;;  %v847_v35 = vmul.f32 %v9189_v36, %v9456_v43 }
 0x1d0   :  { %v9564_v55 = vpop.xlane.xlu2 %760  ;;  %v846_v61 = vmul.f32 %v9189_v36, %v9444_v6  ;;  %v1105_v6 = vsel %vm17497_vm0, %v971_v21, 0.0  ;;  %v17869_v21 = vld [vmem:[#allocation21_spill] sm:$0xff] }
 0x1d1   :  { %v9570_v0 = vpop.xlane.xlu1 %766  ;;  %17860 = vst [vmem:[#allocation19_spill] sm:$0xff] %v9585_v48  ;;  %v972_v31 = vmul.f32 %v9585_v48, %v9585_v48  ;;  %v1102_v18 = vsel %vm17497_vm0, %v970_v25, 0.0  ;;  %v17867_v48 = vld [vmem:[#allocation20_spill] sm:$0xff] }
 0x1d2   :  { %v9576_v49 = vpop.xlane.xlu0 %763  ;;  %v9619_v62 = vsub.f32 %v17867_v48, %v846_v61 }
 0x1d4   :  { %17868 = vst [vmem:[#allocation20_spill] sm:$0xff] %v9619_v62  ;;  %v974_v4 = vmul.f32 %v9619_v62, %v9619_v62  ;;  %v851_v62 = vmul.f32 %v9189_v36, %v9480_v34 }
 0x1d5   :  { %1094 = vadd.xlane.f32.xlu2 %v1093_v11  ;;  %v9611_v11 = vsub.f32 %v17863_v28, %v845_v40 }
 0x1d6   :  { %1100 = vadd.xlane.f32.xlu1 %v1099_v54  ;;  %v17865_v54 = vld [vmem:[#allocation22_spill] sm:$0xff] }
 0x1d7   :  { %1097 = vadd.xlane.f32.xlu0 %v1096_v10  ;;  %17864 = vst [vmem:[#allocation18_spill] sm:$0xff] %v9611_v11  ;;  %v9615_v43 = vsub.f32 %v17865_v54, %v847_v35  ;;  %v1108_v10 = vsel %vm17497_vm0, %v972_v31, 0.0  ;;  %v973_v25 = vmul.f32 %v9611_v11, %v9611_v11  ;;  %v850_v35 = vmul.f32 %v9189_v36, %v9486_v37 }
 0x1d8   :  { %v9594_v45 = vpop.xlane.xlu2 %769  ;;  %v849_v31 = vmul.f32 %v9189_v36, %v9474_v7  ;;  %v1114_v7 = vsel %vm17497_vm0, %v974_v4, 0.0  ;;  %v17875_v4 = vld [vmem:[#allocation24_spill] sm:$0xff] }
 0x1d9   :  { %v9600_v19 = vpop.xlane.xlu1 %775  ;;  %17866 = vst [vmem:[#allocation22_spill] sm:$0xff] %v9615_v43  ;;  %v975_v48 = vmul.f32 %v9615_v43, %v9615_v43  ;;  %v1111_v54 = vsel %vm17497_vm0, %v973_v25, 0.0  ;;  %v17873_v43 = vld [vmem:[#allocation23_spill] sm:$0xff] }
 0x1da   :  { %v9606_v33 = vpop.xlane.xlu0 %772  ;;  %v9649_v11 = vsub.f32 %v17873_v43, %v849_v31 }
 0x1dc   :  { %17874 = vst [vmem:[#allocation23_spill] sm:$0xff] %v9649_v11  ;;  %v977_v34 = vmul.f32 %v9649_v11, %v9649_v11 }
 0x1dd   :  { %1103 = vadd.xlane.f32.xlu2 %v1102_v18  ;;  %v9641_v18 = vsub.f32 %v17869_v21, %v848_v24 }
 0x1de   :  { %1109 = vadd.xlane.f32.xlu1 %v1108_v10  ;;  %v17871_v10 = vld [vmem:[#allocation25_spill] sm:$0xff]  ;;  %v1123_v46 = vsel %vm17497_vm0, %v977_v34, 0.0 }
 0x1df   :  { %1106 = vadd.xlane.f32.xlu0 %v1105_v6  ;;  %17870 = vst [vmem:[#allocation21_spill] sm:$0xff] %v9641_v18  ;;  %v9645_v37 = vsub.f32 %v17871_v10, %v850_v35  ;;  %v1117_v6 = vsel %vm17497_vm0, %v975_v48, 0.0  ;;  %v976_v25 = vmul.f32 %v9641_v18, %v9641_v18  ;;  %v853_v35 = vmul.f32 %v9189_v36, %v9516_v39 }
 0x1e0   :  { %v9624_v40 = vpop.xlane.xlu2 %778  ;;  %v852_v48 = vmul.f32 %v9189_v36, %v9504_v5  ;;  %v854_v5 = vmul.f32 %v9189_v36, %v9510_v16  ;;  %v17881_v16 = vld [vmem:[#allocation27_spill] sm:$0xff] }
 0x1e1   :  { %v9630_v28 = vpop.xlane.xlu1 %784  ;;  %17872 = vst [vmem:[#allocation25_spill] sm:$0xff] %v9645_v37  ;;  %v978_v43 = vmul.f32 %v9645_v37, %v9645_v37  ;;  %v1120_v10 = vsel %vm17497_vm0, %v976_v25, 0.0  ;;  %v17879_v37 = vld [vmem:[#allocation26_spill] sm:$0xff]  ;;  %v855_v25 = vmul.f32 %v9189_v36, %v9534_v42  ;;  %v857_v42 = vmul.f32 %v9189_v36, %v9540_v9 }
 0x1e2   :  { %v9636_v61 = vpop.xlane.xlu0 %781  ;;  %v9679_v18 = vsub.f32 %v17879_v37, %v852_v48 }
 0x1e4   :  { %17880 = vst [vmem:[#allocation26_spill] sm:$0xff] %v9679_v18 }
 0x1e5   :  { %1112 = vadd.xlane.f32.xlu2 %v1111_v54  ;;  %v9671_v54 = vsub.f32 %v17875_v4, %v851_v62  ;;  %v9695_v4 = vsub.f32 %v17881_v16, %v854_v5  ;;  %v860_v5 = vmul.f32 %v9189_v36, %v9570_v0  ;;  %v17885_v16 = vld [vmem:[#allocation31_spill] sm:$0xff]  ;;  %v861_v0 = vmul.f32 %v9189_v36, %v9594_v45 }
 0x1e6   :  { %1118 = vadd.xlane.f32.xlu1 %v1117_v6  ;;  %v17877_v6 = vld [vmem:[#allocation28_spill] sm:$0xff] }
 0x1e7   :  { %1115 = vadd.xlane.f32.xlu0 %v1114_v7  ;;  %17876 = vst [vmem:[#allocation24_spill] sm:$0xff] %v9671_v54  ;;  %v9675_v39 = vsub.f32 %v17877_v6, %v853_v35  ;;  %v1126_v7 = vsel %vm17497_vm0, %v978_v43, 0.0  ;;  %v979_v62 = vmul.f32 %v9671_v54, %v9671_v54  ;;  %v856_v43 = vmul.f32 %v9189_v36, %v9546_v53  ;;  %v17883_v53 = vld [vmem:[#allocation29_spill] sm:$0xff] }
 0x1e8   :  { %v9654_v24 = vpop.xlane.xlu2 %787  ;;  %17882 = vst [vmem:[#allocation27_spill] sm:$0xff] %v9695_v4 }
 0x1e9   :  { %v9660_v21 = vpop.xlane.xlu1 %793  ;;  %17878 = vst [vmem:[#allocation28_spill] sm:$0xff] %v9675_v39  ;;  %v981_v48 = vmul.f32 %v9675_v39, %v9675_v39  ;;  %v1129_v6 = vsel %vm17497_vm0, %v979_v62, 0.0  ;;  %v858_v39 = vmul.f32 %v9189_v36, %v9564_v55  ;;  %v9715_v54 = vsub.f32 %v17885_v16, %v856_v43  ;;  %v17889_v43 = vld [vmem:[#allocation32_spill] sm:$0xff]  ;;  %v17893_v16 = vld [vmem:[#allocation34_spill] sm:$0xff] }
 0x1ea   :  { %v9666_v31 = vpop.xlane.xlu0 %790  ;;  %v982_v55 = vmul.f32 %v9695_v4, %v9695_v4  ;;  %v17903_v4 = vld [vmem:[#allocation38_spill] sm:$0xff] }
 0x1eb   :  { %17886 = vst [vmem:[#allocation31_spill] sm:$0xff] %v9715_v54  ;;  %v1135_v9 = vsel %vm17497_vm0, %v981_v48, 0.0  ;;  %v984_v45 = vmul.f32 %v9715_v54, %v9715_v54 }
 0x1ed   :  { %1121 = vadd.xlane.f32.xlu2 %v1120_v10  ;;  %v980_v10 = vmul.f32 %v9679_v18, %v9679_v18  ;;  %v859_v18 = vmul.f32 %v9189_v36, %v9576_v49  ;;  %v17891_v49 = vld [vmem:[#allocation33_spill] sm:$0xff] }
 0x1ee   :  { %1127 = vadd.xlane.f32.xlu1 %v1126_v7  ;;  %v9706_v7 = vsub.f32 %v17883_v53, %v855_v25  ;;  %v17887_v25 = vld [vmem:[#allocation30_spill] sm:$0xff] }
 0x1ef   :  { %1124 = vadd.xlane.f32.xlu0 %v1123_v46  ;;  %v1132_v62 = vsel %vm17497_vm0, %v980_v10, 0.0  ;;  %v9724_v53 = vsub.f32 %v17887_v25, %v857_v42 }
 0x1f0   :  { %v9688_v35 = vpop.xlane.xlu2 %796  ;;  %17884 = vst [vmem:[#allocation29_spill] sm:$0xff] %v9706_v7  ;;  %v983_v10 = vmul.f32 %v9706_v7, %v9706_v7 }
 0x1f1   :  { %v1002_v37 = vpop.xlane.xlu1 %1001  ;;  %17888 = vst [vmem:[#allocation30_spill] sm:$0xff] %v9724_v53 }
 0x1f2   :  { %v1192_v46 = vmul.f32 %v1002_v37, %v9189_v36  ;;  %v9698_v34 = vpop.xlane.xlu0 %799  ;;  %v1141_v54 = vsel %vm17497_vm0, %v983_v10, 0.0  ;;  %v17896_v10 = vld [vmem:[#allocation35_spill] sm:$0xff] }
 0x1f4   :  { %v9712_v37 = vadd.f32 1e-05, %v1192_v46  ;;  %v9729_v46 = vsub.f32 %v17889_v43, %v858_v39  ;;  %v863_v39 = vmul.f32 %v9189_v36, %v9600_v19  ;;  %v1138_v43 = vsel %vm17497_vm0, %v982_v55, 0.0 }
 0x1f5   :  { %1130 = vadd.xlane.f32.xlu2 %v1129_v6  ;;  %v9732_v6 = vsub.f32 %v17891_v49, %v860_v5  ;;  %v9748_v49 = vsub.f32 %v9135_v14, %v861_v0  ;;  %v862_v14 = vmul.f32 %v9189_v36, %v9606_v33  ;;  %v1144_v0 = vsel %vm17497_vm0, %v984_v45, 0.0 }
 0x1f6   :  { %1136 = vadd.xlane.f32.xlu1 %v1135_v9  ;;  %17890 = vst [vmem:[#allocation32_spill] sm:$0xff] %v9729_v46  ;;  %7622 = vrsqrt.f32 %v9712_v37  ;;  %v9738_v9 = vsub.f32 %v17893_v16, %v859_v18  ;;  %v986_v19 = vmul.f32 %v9729_v46, %v9729_v46  ;;  %v865_v45 = vmul.f32 %v9189_v36, %v9636_v61  ;;  %v17898_v61 = vld [vmem:[#allocation36_spill] sm:$0xff] }
 0x1f7   :  { %1133 = vadd.xlane.f32.xlu0 %v1132_v62  ;;  %17892 = vst [vmem:[#allocation33_spill] sm:$0xff] %v9732_v6  ;;  %v988_v55 = vmul.f32 %v9732_v6, %v9732_v6  ;;  %v866_v6 = vmul.f32 %v9189_v36, %v9630_v28  ;;  %vm1326_vm2 = vweird.f32 %v9712_v37 }
 0x1f8   :  { %v1005_v48 = vpop.xlane.xlu2 %1004  ;;  %17894 = vst [vmem:[#allocation34_spill] sm:$0xff] %v9738_v9  ;;  %v9811_v11 = vsub.f32 %v17903_v4, %v865_v45 }
 0x1f9   :  { %v1193_v42 = vmul.f32 %v1005_v48, %v9189_v36  ;;  %v1011_v25 = vpop.xlane.xlu1 %1010  ;;  %17895 = vst [vmem:[#allocation55_spill] sm:$0xff] %v9748_v49  ;;  %v985_v48 = vmul.f32 %v9724_v53, %v9724_v53 }
 0x1fa   :  { %v1195_v5 = vmul.f32 %v1011_v25, %v9189_v36  ;;  %v1008_v62 = vpop.xlane.xlu0 %1007  ;;  %17904 = vst [vmem:[#allocation38_spill] sm:$0xff] %v9811_v11 }
 0x1fb   :  { %v9750_v7 = vadd.f32 1e-05, %v1193_v42  ;;  %v1194_v18 = vmul.f32 %v1008_v62, %v9189_v36  ;;  %v987_v42 = vmul.f32 %v9738_v9, %v9738_v9  ;;  %v864_v62 = vmul.f32 %v9189_v36, %v9624_v40  ;;  %v17901_v9 = vld [vmem:[#allocation37_spill] sm:$0xff] }
 0x1fc   :  { %v9755_v16 = vadd.f32 1e-05, %v1195_v5  ;;  %v9768_v25 = vpop.eup %7622  ;;  %v9771_v5 = vsub.f32 %v17896_v10, %v863_v39  ;;  %v989_v39 = vmul.f32 %v9748_v49, %v9748_v49  ;;  %v867_v40 = vmul.f32 %v9189_v36, %v9654_v24 }
 0x1fd   :  { %7624 = vrsqrt.f32 %v9750_v7  ;;  %1139 = vadd.xlane.f32.xlu2 %v1138_v43  ;;  %v9777_v33 = vadd.f32 1e-05, %v1194_v18  ;;  %v1147_v43 = vsel %vm17497_vm0, %v985_v48, 0.0  ;;  %v1150_v18 = vsel %vm17497_vm0, %v986_v19, 0.0 }
 0x1fe   :  { %17897 = vst [vmem:[#allocation35_spill] sm:$0xff] %v9771_v5  ;;  %1145 = vadd.xlane.f32.xlu1 %v1144_v0  ;;  %7626 = vrsqrt.f32 %v9755_v16  ;;  %v9790_v0 = vsel %vm17497_vm0, %v988_v55, 0.0  ;;  %v9793_v10 = vsub.f32 %v17898_v61, %v862_v14  ;;  %v1153_v46 = vsel %vm17497_vm0, %v987_v42, 0.0 }
 0x1ff   :  { %1142 = vadd.xlane.f32.xlu0 %v1141_v54  ;;  %7628 = vrsqrt.f32 %v9777_v33  ;;  %v1321_v54 = vmul.f32 %v9768_v25, %v9712_v37  ;;  %v9800_v24 = vsub.f32 %v9165_v41, %v864_v62  ;;  %v9803_v53 = vsub.f32 %v17901_v9, %v866_v6 }
 0x200   :  { %v1014_v28 = vpop.xlane.xlu2 %1013  ;;  %17899 = vst [vmem:[#allocation36_spill] sm:$0xff] %v9793_v10  ;;  %v991_v14 = vmul.f32 %v9771_v5, %v9771_v5  ;;  %v869_v42 = vmul.f32 %v9189_v36, %v9660_v21  ;;  %v9818_v41 = vsel %vm17497_vm0, %v989_v39, 0.0  ;;  %v9821_v6 = vsub.f32 %v9197_v63, %v867_v40 }
 0x201   :  { %v1196_v48 = vmul.f32 %v1014_v28, %v9189_v36  ;;  %v1020_v49 = vpop.xlane.xlu1 %1019  ;;  %17900 = vst [vmem:[#allocation56_spill] sm:$0xff] %v9800_v24  ;;  %v868_v9 = vmul.f32 %v9189_v36, %v9666_v31  ;;  %v870_v21 = vmul.f32 %v9189_v36, %v9688_v35  ;;  %v1322_v45 = vmul.f32 %v9768_v25, %v1321_v54  ;;  %v2027_v31 = vld [vmem:[%s17334_s2 + $0x18] sm:$0xff] }
 0x202   :  { %17902 = vst [vmem:[#allocation37_spill] sm:$0xff] %v9803_v53  ;;  %v1198_v19 = vmul.f32 %v1020_v49, %v9189_v36  ;;  %v1017_v55 = vpop.xlane.xlu0 %1016  ;;  %v990_v63 = vmul.f32 %v9793_v10, %v9793_v10  ;;  %v992_v35 = vmul.f32 %v9800_v24, %v9800_v24  ;;  %2243 = vmatpush.msra.mxu0 %v2027_v31  ;;  %v17907_v24 = vld [vmem:[#allocation39_spill] sm:$0xff]  ;;  %vm1327_vm3 = vweird.f32 %v9768_v25 }
 0x203   :  { %v9808_v61 = vpop.eup %7624  ;;  %v9815_v28 = vadd.f32 1e-05, %v1196_v48  ;;  %17905 = vst [vmem:[#allocation57_spill] sm:$0xff] %v9821_v6  ;;  %v1197_v62 = vmul.f32 %v1017_v55, %v9189_v36  ;;  %v9849_v54 = vsub.f32 %v9202_v47, %v869_v42  ;;  %v2026_v55 = vld [vmem:[%s17334_s2 + $0x10] sm:$0xff]  ;;  %7599 = vmatpush.msra.mxu3 %v2027_v31  ;;  %v871_v47 = vmul.f32 %v9189_v36, %v9698_v34  ;;  %v2025_v34 = vld [vmem:[%s17334_s2 + $0x8] sm:$0xff]  ;;  %vm9950_vm4 = vmor %vm1326_vm2, %vm1327_vm3 }
 0x204   :  { %v9825_v49 = vadd.f32 1e-05, %v1198_v19  ;;  %v9828_v4 = vpop.eup %7626  ;;  %v1331_v40 = vmul.f32 %v9808_v61, %v9750_v7  ;;  %v9854_v19 = vsel %vm17497_vm0, %v991_v14, 0.0  ;;  %v995_v14 = vmul.f32 %v9821_v6, %v9821_v6  ;;  %2244 = vmatpush.msra.mxu0 %v2026_v55 }
 0x205   :  { %7630 = vrsqrt.f32 %v9815_v28  ;;  %1148 = vadd.xlane.f32.xlu2 %v1147_v43  ;;  %v9839_v39 = vpop.eup %7628  ;;  %v994_v43 = vmul.f32 %v9803_v53, %v9803_v53  ;;  %17906 = vst [vmem:[#allocation58_spill] sm:$0xff] %v9849_v54  ;;  %v9862_v53 = vsub.f32 %v17907_v24, %v868_v9  ;;  %v9866_v42 = vadd.f32 1e-05, %v1197_v62  ;;  %7600 = vmatpush.msra.mxu3 %v2026_v55 }
 0x206   :  { %7632 = vrsqrt.f32 %v9825_v49  ;;  %1154 = vadd.xlane.f32.xlu1 %v1153_v46  ;;  %v1341_v48 = vmul.f32 %v9839_v39, %v9777_v33  ;;  %v993_v46 = vmul.f32 %v9811_v11, %v9811_v11  ;;  %v9871_v5 = vsub.f32 %v9229_v52, %v870_v21  ;;  %2245 = vmatpush.msra.mxu0 %v2025_v34 }
 0x207   :  { %1151 = vadd.xlane.f32.xlu0 %v1150_v18  ;;  %17908 = vst [vmem:[#allocation39_spill] sm:$0xff] %v9862_v53  ;;  %v1323_v11 = vmul.f32 0.5, %v1322_v45  ;;  %v1351_v31 = vmul.f32 %v9828_v4, %v9755_v16  ;;  %v1332_v62 = vmul.f32 %v9808_v61, %v1331_v40  ;;  %7634 = vrsqrt.f32 %v9866_v42  ;;  %7601 = vmatpush.msra.mxu3 %v2025_v34 }
 0x208   :  { %v1023_v18 = vpop.xlane.xlu2 %1022  ;;  %17909 = vst [vmem:[#allocation59_spill] sm:$0xff] %v9871_v5  ;;  %v1342_v6 = vmul.f32 %v9839_v39, %v1341_v48  ;;  %v9889_v44 = vsel %vm17497_vm0, %v992_v35, 0.0  ;;  %v997_v40 = vmul.f32 %v9849_v54, %v9849_v54  ;;  %v9896_v55 = vsub.f32 %v9242_v26, %v871_v47  ;;  %v2024_v35 = vld [vmem:[%s17334_s2] sm:$0xff] }
 0x209   :  { %v1199_v24 = vmul.f32 %v1023_v18, %v9189_v36  ;;  %v1029_v9 = vpop.xlane.xlu1 %1028  ;;  %v1162_v18 = vsel %vm17497_vm0, %v990_v63, 0.0  ;;  %v9901_v3 = vsel %vm17497_vm0, %v994_v43, 0.0  ;;  %v996_v63 = vmul.f32 %v9862_v53, %v9862_v53  ;;  %2246 = vmatpush.msra.mxu0 %v2024_v35  ;;  %7602 = vmatpush.msra.mxu3 %v2024_v35 }
 0x20a   :  { %v1201_v52 = vmul.f32 %v1029_v9, %v9189_v36  ;;  %v1026_v21 = vpop.xlane.xlu0 %1025  ;;  %17910 = vst [vmem:[#allocation60_spill] sm:$0xff] %v9896_v55  ;;  %v1171_v34 = vsel %vm17497_vm0, %v993_v46, 0.0  ;;  %v9911_v26 = vsel %vm17497_vm0, %v995_v14, 0.0  ;;  %v998_v43 = vmul.f32 %v9871_v5, %v9871_v5 }
 0x20b   :  { %v9883_v45 = vpop.eup %7630  ;;  %v9885_v10 = vadd.f32 1e-05, %v1199_v24  ;;  %v1324_v24 = vsub.f32 1.5, %v1323_v11  ;;  %v1333_v47 = vmul.f32 0.5, %v1332_v62  ;;  %v1343_v54 = vmul.f32 0.5, %v1342_v6 }
 0x20c   :  { %v9893_v48 = vpop.eup %7632  ;;  %v9898_v9 = vadd.f32 1e-05, %v1201_v52  ;;  %v1352_v52 = vmul.f32 %v9828_v4, %v1351_v31  ;;  %v1200_v53 = vmul.f32 %v1026_v21, %v9189_v36  ;;  %v1361_v11 = vmul.f32 %v9883_v45, %v9815_v28 }
 0x20d   :  { %1157 = vadd.xlane.f32.xlu2 %v9790_v0  ;;  %v1381_v0 = vmul.f32 %v9893_v48, %v9825_v49  ;;  %7636 = vrsqrt.f32 %v9885_v10  ;;  %v9924_v46 = vsel %vm17497_vm0, %v997_v40, 0.0  ;;  %v9926_v14 = vpop.eup %7634  ;;  %v9931_v31 = vsel %vm17497_vm0, %v996_v63, 0.0 }
 0x20e   :  { %1163 = vadd.xlane.f32.xlu1 %v1162_v18  ;;  %7638 = vrsqrt.f32 %v9898_v9  ;;  %v999_v62 = vmul.f32 %v9896_v55, %v9896_v55  ;;  %v1325_v21 = vmul.f32 %v9768_v25, %v1324_v24  ;;  %v9940_v40 = vsel %vm17497_vm0, %v998_v43, 0.0 }
 0x20f   :  { %1160 = vadd.xlane.f32.xlu0 %v9818_v41  ;;  %v1371_v41 = vmul.f32 %v9926_v14, %v9866_v42  ;;  %v1334_v35 = vsub.f32 1.5, %v1333_v47  ;;  %v1353_v5 = vmul.f32 0.5, %v1352_v52  ;;  %v1344_v51 = vsub.f32 1.5, %v1343_v54 }
 0x210   :  { %v1032_v6 = vpop.xlane.xlu2 %1031  ;;  %v9942_v23 = vadd.f32 1e-05, %v1200_v53  ;;  %v1362_v56 = vmul.f32 %v9883_v45, %v1361_v11  ;;  %v1382_v55 = vmul.f32 %v9893_v48, %v1381_v0  ;;  %vm1336_vm5 = vweird.f32 %v9750_v7 }
 0x211   :  { %v1038_v18 = vpop.xlane.xlu1 %1037  ;;  %v1372_v24 = vmul.f32 %v9926_v14, %v1371_v41  ;;  %v1202_v8 = vmul.f32 %v1032_v6, %v9189_v36  ;;  %v9958_v54 = vsel %vm17497_vm0, %v999_v62, 0.0  ;;  %v1329_v47 = vsel %vm9950_vm4, %v9768_v25, %v1325_v21 }
 0x212   :  { %v1035_v63 = vpop.xlane.xlu0 %1034  ;;  %7640 = vrsqrt.f32 %v9942_v23  ;;  %v1204_v53 = vmul.f32 %v1038_v18, %v9189_v36  ;;  %vm1337_vm6 = vweird.f32 %v9808_v61  ;;  %vm1356_vm7 = vweird.f32 %v9755_v16  ;;  %v17913_v18 = vld [vmem:[#allocation40_spill] sm:$0xff] }
 0x213   :  { %v9960_v43 = vpop.eup %7636  ;;  %vm1347_vm8 = vweird.f32 %v9839_v39  ;;  %v1335_v52 = vmul.f32 %v9808_v61, %v1334_v35  ;;  %v1354_v11 = vsub.f32 1.5, %v1353_v5  ;;  %v9972_v0 = vadd.f32 1e-05, %v1202_v8  ;;  %vm9991_vm9 = vmor %vm1336_vm5, %vm1337_vm6 }
 0x214   :  { %v9969_v37 = vpop.eup %7638  ;;  %v1203_v6 = vmul.f32 %v1035_v63, %v9189_v36  ;;  %v1345_v17 = vmul.f32 %v9839_v39, %v1344_v51  ;;  %v1363_v25 = vmul.f32 0.5, %v1362_v56  ;;  %v1383_v62 = vmul.f32 0.5, %v1382_v55 }
 0x215   :  { %1166 = vadd.xlane.f32.xlu2 %v9854_v19  ;;  %v1373_v21 = vmul.f32 0.5, %v1372_v24  ;;  %v1391_v19 = vmul.f32 %v9960_v43, %v9885_v10  ;;  %v1411_v41 = vmul.f32 %v9969_v37, %v9898_v9  ;;  %7642 = vrsqrt.f32 %v9972_v0 }
 0x216   :  { %1172 = vadd.xlane.f32.xlu1 %v1171_v34  ;;  %v9982_v8 = vadd.f32 1e-05, %v1204_v53  ;;  %v9985_v34 = vmul.f32 %v1329_v47, %v17913_v18  ;;  %vm1357_vm10 = vweird.f32 %v9828_v4  ;;  %vm1346_vm11 = vweird.f32 %v9777_v33 }
 0x217   :  { %1169 = vadd.xlane.f32.xlu0 %v9889_v44  ;;  %vm1366_vm12 = vweird.f32 %v9815_v28  ;;  %v1355_v55 = vmul.f32 %v9828_v4, %v1354_v11  ;;  %vm10003_vm13 = vmor %vm1346_vm11, %vm1347_vm8  ;;  %vm1386_vm14 = vweird.f32 %v9825_v49  ;;  %v1412_v7 = vmul.f32 %v9969_v37, %v1411_v41 }
 0x218   :  { %v1041_v5 = vpop.xlane.xlu2 %1040  ;;  %17914 = vst [vmem:[#allocation40_spill] sm:$0xff] %v9985_v34  ;;  %v9998_v44 = vpop.eup %7640  ;;  %v10009_v63 = vadd.f32 1e-05, %v1203_v6  ;;  %v1339_v53 = vsel %vm9991_vm9, %v9808_v61, %v1335_v52  ;;  %v1349_v47 = vsel %vm10003_vm13, %v9839_v39, %v1345_v17  ;;  %v1364_v11 = vsub.f32 1.5, %v1363_v25  ;;  %vm10037_vm1 = vmor %vm1356_vm7, %vm1357_vm10 }
 0x219   :  { %v1047_v51 = vpop.xlane.xlu1 %1046  ;;  %v1205_v33 = vmul.f32 %v1041_v5, %v9189_v36  ;;  %vm1376_vm15 = vweird.f32 %v9866_v42  ;;  %v1401_v18 = vmul.f32 %v9998_v44, %v9942_v23  ;;  %v1384_v41 = vsub.f32 1.5, %v1383_v62 }
 0x21a   :  { %v1044_v24 = vpop.xlane.xlu0 %1043  ;;  %v1374_v6 = vsub.f32 1.5, %v1373_v21  ;;  %v1392_v58 = vmul.f32 %v9960_v43, %v1391_v19  ;;  %7644 = vrsqrt.f32 %v9982_v8  ;;  %v1413_v5 = vmul.f32 0.5, %v1412_v7 }
 0x21b   :  { %7646 = vrsqrt.f32 %v10009_v63  ;;  %v10024_v61 = vadd.f32 1e-05, %v1205_v33  ;;  %v1207_v52 = vmul.f32 %v1047_v51, %v9189_v36  ;;  %v10028_v39 = vpop.eup %7642  ;;  %v10031_v17 = vmul.f32 %v1339_v53, %v9249_v20 }
 0x21c   :  { %vm1367_vm2 = vweird.f32 %v9883_v45  ;;  %v1402_v62 = vmul.f32 %v9998_v44, %v1401_v18  ;;  %v1206_v21 = vmul.f32 %v1044_v24, %v9189_v36  ;;  %v1359_v20 = vsel %vm10037_vm1, %v9828_v4, %v1355_v55 }
 0x21d   :  { %1175 = vadd.xlane.f32.xlu2 %v9901_v3  ;;  %17919 = vst [vmem:[#allocation61_spill] sm:$0xff] %v10031_v17  ;;  %v17922_v3 = vld [vmem:[#allocation42_spill] sm:$0xff]  ;;  %v1365_v16 = vmul.f32 %v9883_v45, %v1364_v11  ;;  %v1421_v56 = vmul.f32 %v10028_v39, %v9972_v0  ;;  %v1385_v51 = vmul.f32 %v9893_v48, %v1384_v41  ;;  %vm1387_vm3 = vweird.f32 %v9893_v48  ;;  %vm10071_vm6 = vmor %vm1366_vm12, %vm1367_vm2 }
 0x21e   :  { %1181 = vadd.xlane.f32.xlu1 %v9931_v31  ;;  %v10049_v19 = vmul.f32 %v1349_v47, %v17922_v3  ;;  %v1393_v35 = vmul.f32 0.5, %v1392_v58  ;;  %7648 = vrsqrt.f32 %v10024_v61  ;;  %vm2097_vm4 = vcmask 1041409   ;;  %vm10090_vm8 = vmor %vm1386_vm14, %vm1387_vm3 }
 0x21f   :  { %1178 = vadd.xlane.f32.xlu0 %v9911_v26  ;;  %v1375_v4 = vmul.f32 %v9926_v14, %v1374_v6  ;;  %vm1377_vm5 = vweird.f32 %v9926_v14  ;;  %v1414_v55 = vsub.f32 1.5, %v1413_v5  ;;  %v10060_v7 = vadd.f32 1e-05, %v1207_v52  ;;  %v17924_v26 = vld [vmem:[#allocation41_spill] sm:$0xff] }
 0x220   :  { %17923 = vst [vmem:[#allocation42_spill] sm:$0xff] %v10049_v19  ;;  %v1050_v31 = vpop.xlane.xlu2 %1049  ;;  %v10062_v24 = vpop.eup %7644  ;;  %v10065_v53 = vmul.f32 %v1359_v20, %v17924_v26  ;;  %vm1396_vm7 = vweird.f32 %v9885_v10  ;;  %v1403_v47 = vmul.f32 0.5, %v1402_v62  ;;  %v1422_v11 = vmul.f32 %v10028_v39, %v1421_v56  ;;  %vm10102_vm10 = vmor %vm1376_vm15, %vm1377_vm5 }
 0x221   :  { %v1056_v33 = vpop.xlane.xlu1 %1055  ;;  %v10077_v18 = vadd.f32 1e-05, %v1206_v21  ;;  %v10079_v6 = vpop.eup %7646  ;;  %v2096_v5 = vrot.slane %v10031_v17, 7  ;;  %v2099_v52 = vrot.slane %v10049_v19, 6  ;;  %v1369_v28 = vsel %vm10071_vm6, %v9883_v45, %v1365_v16 }
 0x222   :  { %17925 = vst [vmem:[#allocation41_spill] sm:$0xff] %v10065_v53  ;;  %v1053_v41 = vpop.xlane.xlu0 %1052  ;;  %vm1416_vm9 = vweird.f32 %v9898_v9  ;;  %v1389_v62 = vsel %vm10090_vm8, %v9893_v48, %v1385_v51  ;;  %v1394_v21 = vsub.f32 1.5, %v1393_v35  ;;  %vm1417_vm11 = vweird.f32 %v9969_v37 }
 0x223   :  { %vm1406_vm12 = vweird.f32 %v9942_v23  ;;  %7650 = vrsqrt.f32 %v10060_v7  ;;  %v1379_v49 = vsel %vm10102_vm10, %v9926_v14, %v1375_v4  ;;  %v1415_v48 = vmul.f32 %v9969_v37, %v1414_v55  ;;  %vm10146_vm1 = vmor %vm1416_vm9, %vm1417_vm11 }
 0x224   :  { %v1441_v42 = vmul.f32 %v10062_v24, %v9982_v8  ;;  %v1208_v20 = vmul.f32 %v1050_v31, %v9189_v36  ;;  %vm2100_vm13 = vcmask 1042434   ;;  %v10117_v3 = vpop.eup %7648  ;;  %v1404_v16 = vsub.f32 1.5, %v1403_v47 }
 0x225   :  { %1184 = vadd.xlane.f32.xlu2 %v9924_v46  ;;  %v1423_v56 = vmul.f32 0.5, %v1422_v11  ;;  %v1431_v51 = vmul.f32 %v10079_v6, %v10009_v63  ;;  %7652 = vrsqrt.f32 %v10077_v18  ;;  %v10124_v14 = vmul.f32 %v1369_v28, %v9281_v57 }
 0x226   :  { %1190 = vadd.xlane.f32.xlu1 %v9958_v54  ;;  %v10127_v35 = vmul.f32 %v1389_v62, %v9285_v38  ;;  %vm1397_vm14 = vweird.f32 %v9960_v43  ;;  %v1451_v46 = vmul.f32 %v10117_v3, %v10024_v61  ;;  %v10134_v31 = vmul.f32 %v9960_v43, %v1394_v21 }
 0x227   :  { %17932 = vst [vmem:[#allocation62_spill] sm:$0xff] %v10124_v14  ;;  %1187 = vadd.xlane.f32.xlu0 %v9940_v40  ;;  %vm1426_vm15 = vweird.f32 %v9972_v0  ;;  %v1210_v54 = vmul.f32 %v1056_v33, %v9189_v36  ;;  %v1209_v57 = vmul.f32 %v1053_v41, %v9189_v36  ;;  %v10140_v4 = vmul.f32 %v1379_v49, %v9289_v50  ;;  %vm10167_vm3 = vmor %vm1396_vm7, %vm1397_vm14 }
 0x228   :  { %17933 = vst [vmem:[#allocation63_spill] sm:$0xff] %v10127_v35  ;;  %vm1407_vm2 = vweird.f32 %v9998_v44  ;;  %v1442_v40 = vmul.f32 %v10062_v24, %v1441_v42  ;;  %v10152_v55 = vadd.f32 1e-05, %v1208_v20  ;;  %v10154_v33 = vpop.xlane.xlu2 %1058  ;;  %v1419_v50 = vsel %vm10146_vm1, %v9969_v37, %v1415_v48 }
 0x229   :  { %17934 = vst [vmem:[#allocation64_spill] sm:$0xff] %v10140_v4  ;;  %v10156_v26 = vpop.eup %7650  ;;  %v1405_v9 = vmul.f32 %v9998_v44, %v1404_v16  ;;  %v1424_v58 = vsub.f32 1.5, %v1423_v56  ;;  %v1432_v47 = vmul.f32 %v10079_v6, %v1431_v51  ;;  %v1452_v41 = vmul.f32 %v10117_v3, %v1451_v46  ;;  %v10177_v62 = vpop.xlane.xlu1 %1064  ;;  %vm10199_vm6 = vmor %vm1406_vm12, %vm1407_vm2 }
 0x22a   :  { %v1471_v28 = vmul.f32 %v10156_v26, %v10060_v7  ;;  %v2098_v37 = vsel %vm2097_vm4, %v2096_v5, %v9985_v34  ;;  %v2102_v25 = vrot.slane %v10065_v53, 5  ;;  %v1399_v10 = vsel %vm10167_vm3, %v9960_v43, %v10134_v31  ;;  %v10190_v48 = vpop.xlane.xlu0 %1061 }
 0x22b   :  { %v10179_v45 = vpop.eup %7652  ;;  %vm1427_vm5 = vweird.f32 %v10028_v39  ;;  %v10186_v21 = vadd.f32 1e-05, %v1210_v54  ;;  %v10188_v49 = vadd.f32 1e-05, %v1209_v57  ;;  %v10193_v5 = vmul.f32 %v1419_v50, %v9315_v60 }
 0x22c   :  { %v1443_v43 = vmul.f32 0.5, %v1442_v40  ;;  %v1461_v20 = vmul.f32 %v10179_v45, %v10077_v18  ;;  %7654 = vrsqrt.f32 %v10152_v55  ;;  %v1409_v16 = vsel %vm10199_vm6, %v9998_v44, %v1405_v9  ;;  %vm10229_vm11 = vmor %vm1426_vm15, %vm1427_vm5 }
 0x22d   :  { %17939 = vst [vmem:[#allocation65_spill] sm:$0xff] %v10193_v5  ;;  %v1425_v60 = vmul.f32 %v10028_v39, %v1424_v58  ;;  %vm1447_vm7 = vweird.f32 %v10062_v24  ;;  %v1433_v56 = vmul.f32 0.5, %v1432_v47  ;;  %7656 = vrsqrt.f32 %v10186_v21 }
 0x22e   :  { %v1453_v23 = vmul.f32 0.5, %v1452_v41  ;;  %v1472_v51 = vmul.f32 %v10156_v26, %v1471_v28  ;;  %v1462_v46 = vmul.f32 %v10179_v45, %v1461_v20  ;;  %7658 = vrsqrt.f32 %v10188_v49 }
 0x22f   :  { %vm1446_vm8 = vweird.f32 %v9982_v8  ;;  %vm1437_vm9 = vweird.f32 %v10079_v6  ;;  %v2101_v44 = vsel %vm2100_vm13, %v2099_v52, %v2098_v37  ;;  %vm17548_vm10 = vcmask 1043459  }
 0x230   :  { %v2105_v31 = vrot.slane %v10124_v14, 4  ;;  %v2117_v54 = vrot.slane %v10193_v5, 7  ;;  %v10223_v57 = vmul.f32 %v1409_v16, %v9319_v12  ;;  %v1444_v40 = vsub.f32 1.5, %v1443_v43  ;;  %v1068_v41 = vpop.xlane.xlu2 %1067 }
 0x231   :  { %vm1436_vm12 = vweird.f32 %v10009_v63  ;;  %v1463_v52 = vmul.f32 0.5, %v1462_v46  ;;  %v1429_v50 = vsel %vm10229_vm11, %v10028_v39, %v1425_v60  ;;  %v1434_v9 = vsub.f32 1.5, %v1433_v56  ;;  %v1074_v56 = vpop.xlane.xlu1 %1073 }
 0x232   :  { %17942 = vst [vmem:[#allocation66_spill] sm:$0xff] %v10223_v57  ;;  %vm1456_vm14 = vweird.f32 %v10024_v61  ;;  %v2104_v12 = vsel %vm17548_vm10, %v2102_v25, %v2101_v44  ;;  %vm17495_vm1 = vcmask 1044484   ;;  %v10239_v58 = vpop.eup %7654  ;;  %v1454_v0 = vsub.f32 1.5, %v1453_v23 }
 0x233   :  { %vm1457_vm15 = vweird.f32 %v10117_v3  ;;  %v1473_v47 = vmul.f32 0.5, %v1472_v51  ;;  %vm1466_vm2 = vweird.f32 %v10077_v18  ;;  %v2107_v11 = vsel %vm17495_vm1, %v2105_v31, %v2104_v12  ;;  %v10244_v28 = vpop.eup %7656 }
 0x234   :  { %v1464_v39 = vsub.f32 1.5, %v1463_v52  ;;  %v10247_v37 = vmul.f32 %v1399_v10, %v9311_v2  ;;  %v2108_v25 = vrot.slane %v10140_v4, 3  ;;  %vm17496_vm3 = vcmask 1045509   ;;  %v10250_v42 = vpop.eup %7658 }
 0x235   :  { %v10253_v43 = vmul.f32 %v1429_v50, %v9341_v32  ;;  %v1445_v20 = vmul.f32 %v10062_v24, %v1444_v40  ;;  %v1501_v16 = vmul.f32 %v10244_v28, %v10186_v21  ;;  %v2111_v60 = vrot.slane %v10127_v35, 2  ;;  %v1071_v32 = vpop.xlane.xlu0 %1070 }
 0x236   :  { %17945 = vst [vmem:[#allocation67_spill] sm:$0xff] %v10247_v37  ;;  %v1435_v23 = vmul.f32 %v10079_v6, %v1434_v9  ;;  %vm1476_vm5 = vweird.f32 %v10060_v7  ;;  %v1491_v2 = vmul.f32 %v10250_v42, %v10188_v49  ;;  %v2110_v10 = vsel %vm17496_vm3, %v2108_v25, %v2107_v11  ;;  %vm10275_vm3 = vmor %vm1446_vm8, %vm1447_vm7 }
 0x237   :  { %17946 = vst [vmem:[#allocation68_spill] sm:$0xff] %v10253_v43  ;;  %vm17505_vm6 = vcmask 1046534   ;;  %v1455_v51 = vmul.f32 %v10117_v3, %v1454_v0  ;;  %v1474_v46 = vsub.f32 1.5, %v1473_v47  ;;  %vm1467_vm11 = vweird.f32 %v10179_v45  ;;  %vm10292_vm7 = vmor %vm1436_vm12, %vm1437_vm9 }
 0x238   :  { %v1481_v44 = vmul.f32 %v10239_v58, %v10152_v55  ;;  %v1465_v31 = vmul.f32 %v10179_v45, %v1464_v39  ;;  %v1502_v38 = vmul.f32 %v10244_v28, %v1501_v16  ;;  %v2114_v40 = vrot.slane %v10247_v37, 1  ;;  %vm10307_vm8 = vmor %vm1456_vm14, %vm1457_vm15 }
 0x239   :  { %vm17498_vm1 = vcmask 1047559   ;;  %v1492_v50 = vmul.f32 %v10250_v42, %v1491_v2  ;;  %v2113_v9 = vsel %vm17505_vm6, %v2111_v60, %v2110_v10  ;;  %v1211_v12 = vmul.f32 %v10154_v33, %v9189_v36  ;;  %vm10326_vm12 = vmor %vm1466_vm2, %vm1467_vm11  ;;  %v1077_v2 = vpop.xlane.xlu2 %1076 }
 0x23a   :  { %v1213_v0 = vmul.f32 %v10177_v62, %v9189_v36  ;;  %v1449_v47 = vsel %vm10275_vm3, %v10062_v24, %v1445_v20  ;;  %v2116_v11 = vsel %vm17498_vm1, %v2114_v40, %v2113_v9  ;;  %v1212_v33 = vmul.f32 %v10190_v48, %v9189_v36 }
 0x23b   :  { %v1214_v39 = vmul.f32 %v1068_v41, %v9189_v36  ;;  %v1439_v62 = vsel %vm10292_vm7, %v10079_v6, %v1435_v23  ;;  %v1482_v24 = vmul.f32 %v10239_v58, %v1481_v44  ;;  %7447 = vmatmul.msk.f32.vlgmr.msra.gmra.mxu0 %vm17497_vm0, %v2116_v11  ;;  %v10313_v25 = vadd.f32 1e-05, %v1211_v12 }
 0x23c   :  { %v10315_v48 = vadd.f32 1e-05, %v1213_v0  ;;  %v1459_v6 = vsel %vm10307_vm8, %v10117_v3, %v1455_v51  ;;  %v1475_v41 = vmul.f32 %v10156_v26, %v1474_v46  ;;  %vm1477_vm9 = vweird.f32 %v10156_v26 }
 0x23d   :  { %v10330_v20 = vadd.f32 1e-05, %v1212_v33  ;;  %v10333_v16 = vmul.f32 %v1449_v47, %v9345_v29  ;;  %v1469_v3 = vsel %vm10326_vm12, %v10179_v45, %v1465_v31  ;;  %v1503_v60 = vmul.f32 0.5, %v1502_v38  ;;  %vm10350_vm14 = vmor %vm1476_vm5, %vm1477_vm9  ;;  %v10364_v7 = vpop.xlane.xlu0 %1079 }
 0x23e   :  { %v1493_v23 = vmul.f32 0.5, %v1492_v50  ;;  %v2119_v10 = vrot.slane %v10253_v43, 6  ;;  %v10340_v18 = vmul.f32 %v1439_v62, %v9349_v59  ;;  %7660 = vrsqrt.f32 %v10313_v25  ;;  %v1083_v59 = vpop.xlane.xlu1 %1082 }
 0x23f   :  { %17955 = vst [vmem:[#allocation69_spill] sm:$0xff] %v10333_v16  ;;  %v10343_v51 = vadd.f32 1e-05, %v1214_v39  ;;  %v10346_v46 = vmul.f32 %v1459_v6, %v9371_v30  ;;  %v1483_v45 = vmul.f32 0.5, %v1482_v24  ;;  %7662 = vrsqrt.f32 %v10315_v48 }
 0x240   :  { %17956 = vst [vmem:[#allocation70_spill] sm:$0xff] %v10340_v18  ;;  %v1216_v44 = vmul.f32 %v1074_v56, %v9189_v36  ;;  %v1479_v31 = vsel %vm10350_vm14, %v10156_v26, %v1475_v41  ;;  %v10360_v38 = vmul.f32 %v1469_v3, %v9379_v1  ;;  %7664 = vrsqrt.f32 %v10330_v20 }
 0x241   :  { %17957 = vst [vmem:[#allocation71_spill] sm:$0xff] %v10346_v46  ;;  %v1215_v30 = vmul.f32 %v1071_v32, %v9189_v36  ;;  %v1504_v40 = vsub.f32 1.5, %v1503_v60  ;;  %v1494_v52 = vsub.f32 1.5, %v1493_v23  ;;  %v2118_v56 = vsel %vm2097_vm4, %v2117_v54, %v10223_v57  ;;  %v1086_v41 = vpop.xlane.xlu2 %1085 }
 0x242   :  { %17960 = vst [vmem:[#allocation72_spill] sm:$0xff] %v10360_v38  ;;  %v10366_v50 = vadd.f32 1e-05, %v1216_v44  ;;  %7666 = vrsqrt.f32 %v10343_v51  ;;  %v2120_v1 = vsel %vm2100_vm13, %v2119_v10, %v2118_v56  ;;  %v2121_v26 = vrot.slane %v10340_v18, 5  ;;  %v18046_v18 = vld [vmem:[#allocation19_spill] sm:$0xff] }
 0x243   :  { %v2123_v9 = vrot.slane %v10333_v16, 4  ;;  %v1484_v32 = vsub.f32 1.5, %v1483_v45  ;;  %vm1486_vm15 = vweird.f32 %v10152_v55  ;;  %vm1506_vm2 = vweird.f32 %v10186_v21 }
 0x244   :  { %v10377_v12 = vpop.eup %7660  ;;  %v10380_v0 = vadd.f32 1e-05, %v1215_v30  ;;  %v10383_v47 = vmul.f32 %v1479_v31, %v9375_v27  ;;  %v2122_v54 = vsel %vm17548_vm10, %v2121_v26, %v2120_v1  ;;  %v1505_v11 = vmul.f32 %v10244_v28, %v1504_v40 }
 0x245   :  { %v10386_v8 = vpop.eup %7662  ;;  %vm1507_vm3 = vweird.f32 %v10244_v28  ;;  %7668 = vrsqrt.f32 %v10366_v50  ;;  %v2125_v33 = vrot.slane %v10346_v46, 3  ;;  %v1495_v62 = vmul.f32 %v10250_v42, %v1494_v52  ;;  %v1089_v52 = vpop.xlane.xlu0 %1088 }
 0x246   :  { %17961 = vst [vmem:[#allocation73_spill] sm:$0xff] %v10383_v47  ;;  %v10392_v39 = vpop.eup %7664  ;;  %vm1497_vm5 = vweird.f32 %v10250_v42  ;;  %vm17962_vm11 = vcmask 1044484   ;;  %v2127_v63 = vrot.slane %v10360_v38, 2  ;;  %v1485_v24 = vmul.f32 %v10239_v58, %v1484_v32  ;;  %vm10406_vm12 = vmor %vm1506_vm2, %vm1507_vm3  ;;  %v1092_v31 = vpop.xlane.xlu1 %1091 }
 0x247   :  { %v2124_v27 = vsel %vm17962_vm11, %v2123_v9, %v2122_v54  ;;  %vm1487_vm7 = vweird.f32 %v10239_v58  ;;  %vm1496_vm8 = vweird.f32 %v10188_v49  ;;  %vm17963_vm9 = vcmask 1045509  }
 0x248   :  { %v2126_v6 = vsel %vm17963_vm9, %v2125_v33, %v2124_v27  ;;  %v10402_v61 = vpop.eup %7666  ;;  %v1511_v60 = vmul.f32 %v10377_v12, %v10313_v25  ;;  %v1531_v23 = vmul.f32 %v10386_v8, %v10315_v48  ;;  %7670 = vrsqrt.f32 %v10380_v0  ;;  %vm10421_vm14 = vmor %vm1496_vm8, %vm1497_vm5 }
 0x249   :  { %v2129_v49 = vrot.slane %v10383_v47, 1  ;;  %v1509_v10 = vsel %vm10406_vm12, %v10244_v28, %v1505_v11  ;;  %v1521_v29 = vmul.f32 %v10392_v39, %v10330_v20  ;;  %v2128_v45 = vsel %vm17505_vm6, %v2127_v63, %v2126_v6  ;;  %vm10433_vm2 = vmor %vm1486_vm15, %vm1487_vm7 }
 0x24a   :  { %v1217_v44 = vmul.f32 %v1077_v2, %v9189_v36  ;;  %v1499_v30 = vsel %vm10421_vm14, %v10250_v42, %v1495_v62  ;;  %v1219_v40 = vmul.f32 %v1083_v59, %v9189_v36  ;;  %v1489_v2 = vsel %vm10433_vm2, %v10239_v58, %v1485_v24 }
 0x24b   :  { %v10441_v56 = vpop.eup %7668  ;;  %v1541_v55 = vmul.f32 %v10402_v61, %v10343_v51  ;;  %v10449_v1 = vmul.f32 %v1509_v10, %v9405_v15  ;;  %v1512_v26 = vmul.f32 %v10377_v12, %v1511_v60  ;;  %v1532_v9 = vmul.f32 %v10386_v8, %v1531_v23  ;;  %v1095_v60 = vpop.xlane.xlu2 %1094 }
 0x24c   :  { %v2130_v42 = vsel %vm17498_vm1, %v2129_v49, %v2128_v45  ;;  %v10455_v59 = vmul.f32 %v1499_v30, %v9409_v22  ;;  %v1522_v32 = vmul.f32 %v10392_v39, %v1521_v29  ;;  %v10459_v58 = vadd.f32 1e-05, %v1217_v44 }
 0x24d   :  { %17970 = vst [vmem:[#allocation74_spill] sm:$0xff] %v10449_v1  ;;  %7448 = vmatmul.msk.f32.gmra.mxu0 %vm17497_vm0, %v2130_v42  ;;  %v1561_v15 = vmul.f32 %v10441_v56, %v10366_v50  ;;  %v10465_v11 = vadd.f32 1e-05, %v1219_v40  ;;  %v10468_v33 = vmul.f32 %v1489_v2, %v9401_v13  ;;  %v1542_v62 = vmul.f32 %v10402_v61, %v1541_v55  ;;  %v1098_v40 = vpop.xlane.xlu0 %1097 }
 0x24e   :  { %17971 = vst [vmem:[#allocation75_spill] sm:$0xff] %v10455_v59  ;;  %v10461_v54 = vpop.eup %7670  ;;  %v1513_v27 = vmul.f32 0.5, %v1512_v26  ;;  %v1533_v63 = vmul.f32 0.5, %v1532_v9  ;;  %7672 = vrsqrt.f32 %v10459_v58  ;;  %v2131_v24 = vrot.slane %v10455_v59, 7  ;;  %v1101_v29 = vpop.xlane.xlu1 %1100  ;;  %v18002_v59 = vld [vmem:[#allocation48_spill] sm:$0xff] }
 0x24f   :  { %17972 = vst [vmem:[#allocation76_spill] sm:$0xff] %v10468_v33  ;;  %vm1517_vm15 = vweird.f32 %v10377_v12  ;;  %v1523_v6 = vmul.f32 0.5, %v1522_v32  ;;  %v1551_v3 = vmul.f32 %v10461_v54, %v10380_v0  ;;  %vm1516_vm3 = vweird.f32 %v10313_v25 }
 0x250   :  { %vm1537_vm5 = vweird.f32 %v10386_v8  ;;  %vm1527_vm11 = vweird.f32 %v10392_v39  ;;  %v1562_v13 = vmul.f32 %v10441_v56, %v1561_v15  ;;  %7674 = vrsqrt.f32 %v10465_v11  ;;  %vm10528_vm2 = vmor %vm1516_vm3, %vm1517_vm15 }
 0x251   :  { %vm1536_vm7 = vweird.f32 %v10315_v48  ;;  %v1543_v23 = vmul.f32 0.5, %v1542_v62  ;;  %vm1547_vm8 = vweird.f32 %v10402_v61  ;;  %v1218_v49 = vmul.f32 %v10364_v7, %v9189_v36 }
 0x252   :  { %v1220_v10 = vmul.f32 %v1086_v41, %v9189_v36  ;;  %v1222_v21 = vmul.f32 %v1092_v31, %v9189_v36  ;;  %v1514_v45 = vsub.f32 1.5, %v1513_v27  ;;  %v1534_v44 = vsub.f32 1.5, %v1533_v63  ;;  %vm10544_vm15 = vmor %vm1536_vm7, %vm1537_vm5 }
 0x253   :  { %vm1526_vm9 = vweird.f32 %v10330_v20  ;;  %v1221_v28 = vmul.f32 %v1089_v52, %v9189_v36  ;;  %v1223_v30 = vmul.f32 %v1095_v60, %v9189_v36  ;;  %v1524_v2 = vsub.f32 1.5, %v1523_v6 }
 0x254   :  { %vm1546_vm12 = vweird.f32 %v10343_v51  ;;  %v1552_v55 = vmul.f32 %v10461_v54, %v1551_v3  ;;  %v10493_v7 = vadd.f32 1e-05, %v1218_v49  ;;  %v10495_v41 = vadd.f32 1e-05, %v1220_v10  ;;  %v10497_v31 = vpop.eup %7672 }
 0x255   :  { %v1563_v26 = vmul.f32 0.5, %v1562_v13  ;;  %v10499_v9 = vadd.f32 1e-05, %v1222_v21  ;;  %v10501_v42 = vadd.f32 1e-05, %v1221_v28  ;;  %v1225_v52 = vmul.f32 %v1101_v29, %v9189_v36  ;;  %vm10574_vm5 = vmor %vm1546_vm12, %vm1547_vm8 }
 0x256   :  { %v1544_v32 = vsub.f32 1.5, %v1543_v23  ;;  %v1571_v15 = vmul.f32 %v10497_v31, %v10459_v58  ;;  %7676 = vrsqrt.f32 %v10493_v7  ;;  %v1224_v62 = vmul.f32 %v1098_v40, %v9189_v36  ;;  %v10508_v27 = vpop.eup %7674 }
 0x257   :  { %v1515_v63 = vmul.f32 %v10377_v12, %v1514_v45  ;;  %v1535_v6 = vmul.f32 %v10386_v8, %v1534_v44  ;;  %vm1566_vm14 = vweird.f32 %v10366_v50  ;;  %7678 = vrsqrt.f32 %v10495_v41 }
 0x258   :  { %v10514_v3 = vadd.f32 1e-05, %v1223_v30  ;;  %v1553_v60 = vmul.f32 0.5, %v1552_v55  ;;  %v1572_v13 = vmul.f32 %v10497_v31, %v1571_v15  ;;  %v1591_v23 = vmul.f32 %v10508_v27, %v10465_v11 }
 0x259   :  { %7680 = vrsqrt.f32 %v10499_v9  ;;  %v1525_v49 = vmul.f32 %v10392_v39, %v1524_v2  ;;  %v1564_v10 = vsub.f32 1.5, %v1563_v26  ;;  %v10522_v21 = vadd.f32 1e-05, %v1225_v52 }
 0x25a   :  { %7682 = vrsqrt.f32 %v10501_v42  ;;  %v1545_v45 = vmul.f32 %v10402_v61, %v1544_v32  ;;  %vm1556_vm0 = vweird.f32 %v10380_v0  ;;  %v1573_v44 = vmul.f32 0.5, %v1572_v13 }
 0x25b   :  { %v1592_v28 = vmul.f32 %v10508_v27, %v1591_v23  ;;  %v10535_v30 = vadd.f32 1e-05, %v1224_v62  ;;  %v1519_v40 = vsel %vm10528_vm2, %v10377_v12, %v1515_v63  ;;  %vm1567_vm3 = vweird.f32 %v10441_v56  ;;  %vm10557_vm2 = vmor %vm1526_vm9, %vm1527_vm11 }
 0x25c   :  { %vm1557_vm1 = vweird.f32 %v10461_v54  ;;  %7684 = vrsqrt.f32 %v10514_v3  ;;  %v10551_v2 = vpop.eup %7676  ;;  %v1554_v48 = vsub.f32 1.5, %v1553_v60  ;;  %v1574_v55 = vsub.f32 1.5, %v1573_v44  ;;  %v10581_v60 = vpop.xlane.xlu2 %1103  ;;  %vm10612_vm7 = vmor %vm1566_vm14, %vm1567_vm3 }
 0x25d   :  { %v1593_v26 = vmul.f32 0.5, %v1592_v28  ;;  %7686 = vrsqrt.f32 %v10522_v21  ;;  %v10562_v52 = vpop.eup %7678  ;;  %v1539_v32 = vsel %vm10544_vm15, %v10386_v8, %v1535_v6  ;;  %v1529_v15 = vsel %vm10557_vm2, %v10392_v39, %v1525_v49  ;;  %v10592_v6 = vpop.xlane.xlu1 %1109  ;;  %v17983_v28 = vld [vmem:[#allocation44_spill] sm:$0xff]  ;;  %vm10649_vm14 = vmor %vm1556_vm0, %vm1557_vm1 }
 0x25e   :  { %v1565_v62 = vmul.f32 %v10441_v56, %v1564_v10  ;;  %v1581_v63 = vmul.f32 %v10551_v2, %v10493_v7  ;;  %v1549_v39 = vsel %vm10574_vm5, %v10402_v61, %v1545_v45  ;;  %vm1577_vm11 = vweird.f32 %v10497_v31  ;;  %v10600_v61 = vpop.xlane.xlu0 %1106  ;;  %v17981_v45 = vld [vmem:[#allocation43_spill] sm:$0xff] }
 0x25f   :  { %v10583_v8 = vpop.eup %7680  ;;  %v1601_v51 = vmul.f32 %v10562_v52, %v10495_v41  ;;  %7688 = vrsqrt.f32 %v10535_v30  ;;  %v1575_v23 = vmul.f32 %v10497_v31, %v1574_v55  ;;  %v1594_v49 = vsub.f32 1.5, %v1593_v26 }
 0x260   :  { %v10594_v13 = vpop.eup %7682  ;;  %v1582_v10 = vmul.f32 %v10551_v2, %v1581_v63  ;;  %v1621_v29 = vmul.f32 %v10583_v8, %v10499_v9  ;;  %v10603_v44 = vmul.f32 %v1519_v40, %v17981_v45  ;;  %v10606_v25 = vmul.f32 %v1539_v32, %v17983_v28  ;;  %v17987_v63 = vld [vmem:[#allocation45_spill] sm:$0xff]  ;;  %v17989_v28 = vld [vmem:[#allocation46_spill] sm:$0xff] }
 0x261   :  { %v1555_v55 = vmul.f32 %v10461_v54, %v1554_v48  ;;  %v1602_v26 = vmul.f32 %v10562_v52, %v1601_v51  ;;  %v10621_v40 = vmul.f32 %v1529_v15, %v17987_v63  ;;  %v1569_v32 = vsel %vm10612_vm7, %v10441_v56, %v1565_v62 }
 0x262   :  { %17982 = vst [vmem:[#allocation43_spill] sm:$0xff] %v10603_v44  ;;  %v10618_v20 = vpop.eup %7684  ;;  %vm1576_vm8 = vweird.f32 %v10459_v58  ;;  %v1611_v50 = vmul.f32 %v10594_v13, %v10501_v42  ;;  %v10632_v48 = vmul.f32 %v1549_v39, %v17989_v28  ;;  %vm1597_vm12 = vweird.f32 %v10508_v27 }
 0x263   :  { %17984 = vst [vmem:[#allocation44_spill] sm:$0xff] %v10606_v25  ;;  %v10629_v45 = vpop.eup %7686  ;;  %vm10636_vm9 = vmor %vm1576_vm8, %vm1577_vm11  ;;  %v1583_v15 = vmul.f32 0.5, %v1582_v10  ;;  %v2132_v56 = vsel %vm2097_vm4, %v2131_v24, %v10468_v33  ;;  %v1595_v39 = vmul.f32 %v10508_v27, %v1594_v49  ;;  %v1603_v10 = vmul.f32 0.5, %v1602_v26  ;;  %v17995_v24 = vld [vmem:[#allocation47_spill] sm:$0xff] }
 0x264   :  { %17988 = vst [vmem:[#allocation45_spill] sm:$0xff] %v10621_v40  ;;  %v1579_v62 = vsel %vm10636_vm9, %v10497_v31, %v1575_v23  ;;  %v1622_v12 = vmul.f32 %v10583_v8, %v1621_v29  ;;  %v10661_v28 = vmul.f32 %v1569_v32, %v17995_v24  ;;  %v1559_v0 = vsel %vm10649_vm14, %v10461_v54, %v1555_v55  ;;  %v17997_v29 = vld [vmem:[#allocation49_spill] sm:$0xff]  ;;  %v18004_v54 = vld [vmem:[#allocation50_spill] sm:$0xff] }
 0x265   :  { %17990 = vst [vmem:[#allocation46_spill] sm:$0xff] %v10632_v48  ;;  %v10658_v63 = vpop.eup %7688  ;;  %vm1596_vm0 = vweird.f32 %v10465_v11  ;;  %v2135_v22 = vrot.slane %v10603_v44, 5  ;;  %vm1586_vm1 = vweird.f32 %v10493_v7  ;;  %v1612_v31 = vmul.f32 %v10594_v13, %v1611_v50 }
 0x266   :  { %17996 = vst [vmem:[#allocation47_spill] sm:$0xff] %v10661_v28  ;;  %v1631_v23 = vmul.f32 %v10618_v20, %v10514_v3  ;;  %v1651_v49 = vmul.f32 %v10629_v45, %v10522_v21  ;;  %v10675_v26 = vmul.f32 %v1579_v62, %v17997_v29  ;;  %vm10679_vm15 = vmor %vm1596_vm0, %vm1597_vm12  ;;  %v1584_v11 = vsub.f32 1.5, %v1583_v15  ;;  %v1113_v29 = vpop.xlane.xlu2 %1112 }
 0x267   :  { %v18001_v55 = vrot.slane %v10449_v1, 6  ;;  %v2137_v50 = vrot.slane %v10621_v40, 4  ;;  %v1599_v51 = vsel %vm10679_vm15, %v10508_v27, %v1595_v39  ;;  %v1604_v58 = vsub.f32 1.5, %v1603_v10  ;;  %v1116_v10 = vpop.xlane.xlu0 %1115 }
 0x268   :  { %17998 = vst [vmem:[#allocation49_spill] sm:$0xff] %v10675_v26  ;;  %v1623_v62 = vmul.f32 0.5, %v1622_v12  ;;  %v1641_v24 = vmul.f32 %v10658_v63, %v10535_v30  ;;  %vm1587_vm3 = vweird.f32 %v10551_v2  ;;  %v1652_v15 = vmul.f32 %v10629_v45, %v1651_v49 }
 0x269   :  { %v2134_v32 = vsel %vm2100_vm13, %v18001_v55, %v2132_v56  ;;  %v10695_v38 = vmul.f32 %v1559_v0, %v18002_v59  ;;  %v1119_v55 = vpop.xlane.xlu1 %1118  ;;  %vm1606_vm2 = vweird.f32 %v10495_v41  ;;  %vm1607_vm5 = vweird.f32 %v10562_v52  ;;  %vm10722_vm14 = vmor %vm1586_vm1, %vm1587_vm3 }
 0x26a   :  { %v2136_v56 = vsel %vm17548_vm10, %v2135_v22, %v2134_v32  ;;  %vm1627_vm11 = vweird.f32 %v10583_v8  ;;  %v1613_v27 = vmul.f32 0.5, %v1612_v31  ;;  %v1632_v39 = vmul.f32 %v10618_v20, %v1631_v23 }
 0x26b   :  { %18003 = vst [vmem:[#allocation48_spill] sm:$0xff] %v10695_v38  ;;  %v10704_v49 = vmul.f32 %v1599_v51, %v18004_v54  ;;  %v1585_v59 = vmul.f32 %v10551_v2, %v1584_v11  ;;  %vm1626_vm7 = vweird.f32 %v10499_v9  ;;  %vm1617_vm8 = vweird.f32 %v10594_v13 }
 0x26c   :  { %v10710_v22 = vmul.f32 %v10562_v52, %v1604_v58  ;;  %v1624_v0 = vsub.f32 1.5, %v1623_v62  ;;  %vm1616_vm9 = vweird.f32 %v10501_v42  ;;  %v1642_v31 = vmul.f32 %v10658_v63, %v1641_v24 }
 0x26d   :  { %18005 = vst [vmem:[#allocation50_spill] sm:$0xff] %v10704_v49  ;;  %vm18006_vm12 = vcmask 1044484   ;;  %v1653_v32 = vmul.f32 0.5, %v1652_v15  ;;  %v2139_v51 = vrot.slane %v10606_v25, 3  ;;  %v2141_v54 = vrot.slane %v10632_v48, 2 }
 0x26e   :  { %v2138_v23 = vsel %vm18006_vm12, %v2137_v50, %v2136_v56  ;;  %v2143_v11 = vrot.slane %v10695_v38, 1  ;;  %v1614_v62 = vsub.f32 1.5, %v1613_v27  ;;  %v1633_v12 = vmul.f32 0.5, %v1632_v39 }
 0x26f   :  { %v1226_v50 = vmul.f32 %v10581_v60, %v9189_v36  ;;  %v1228_v24 = vmul.f32 %v10592_v6, %v9189_v36  ;;  %v1589_v15 = vsel %vm10722_vm14, %v10551_v2, %v1585_v59  ;;  %vm1637_vm0 = vweird.f32 %v10618_v20 }
 0x270   :  { %vm1656_vm15 = vweird.f32 %v10522_v21  ;;  %vm18009_vm1 = vcmask 1045509   ;;  %v1227_v56 = vmul.f32 %v10600_v61, %v9189_v36  ;;  %v1229_v27 = vmul.f32 %v1113_v29, %v9189_v36 }
 0x271   :  { %v2140_v7 = vsel %vm18009_vm1, %v2139_v51, %v2138_v23  ;;  %v1643_v39 = vmul.f32 0.5, %v1642_v31  ;;  %v10740_v38 = vadd.f32 1e-05, %v1226_v50  ;;  %v1231_v6 = vmul.f32 %v1119_v55, %v9189_v36  ;;  %v1122_v31 = vpop.xlane.xlu2 %1121 }
 0x272   :  { %v2142_v60 = vsel %vm17505_vm6, %v2141_v54, %v2140_v7  ;;  %vm1636_vm3 = vweird.f32 %v10514_v3  ;;  %v1654_v2 = vsub.f32 1.5, %v1653_v32  ;;  %vm18010_vm12 = vcmask 1047559   ;;  %v18012_v32 = vld [vmem:[#allocation51_spill] sm:$0xff] }
 0x273   :  { %v2144_v59 = vsel %vm18010_vm12, %v2143_v11, %v2142_v60  ;;  %v10745_v58 = vadd.f32 1e-05, %v1228_v24  ;;  %v10747_v23 = vadd.f32 1e-05, %v1227_v56  ;;  %v1625_v61 = vmul.f32 %v10583_v8, %v1624_v0  ;;  %vm10763_vm12 = vmor %vm1606_vm2, %vm1607_vm5  ;;  %v1128_v11 = vpop.xlane.xlu1 %1127  ;;  %v1125_v24 = vpop.xlane.xlu0 %1124 }
 0x274   :  { %v1615_v29 = vmul.f32 %v10594_v13, %v1614_v62  ;;  %vm1646_vm14 = vweird.f32 %v10535_v30  ;;  %vm18011_vm1 = vcmask 261120   ;;  %7690 = vrsqrt.f32 %v10740_v38  ;;  %vm10788_vm2 = vmor %vm1616_vm9, %vm1617_vm8 }
 0x275   :  { %7449 = vmatmul.msk.f32.gmra.mxu0 %vm18011_vm1, %v2144_v59  ;;  %v10754_v55 = vadd.f32 1e-05, %v1229_v27  ;;  %v10757_v51 = vmul.f32 %v1589_v15, %v18012_v32  ;;  %v1634_v54 = vsub.f32 1.5, %v1633_v12  ;;  %vm1657_vm6 = vweird.f32 %v10629_v45  ;;  %vm10777_vm1 = vmor %vm1626_vm7, %vm1627_vm11 }
 0x276   :  { %7692 = vrsqrt.f32 %v10745_v58  ;;  %v1609_v62 = vsel %vm10763_vm12, %v10562_v52, %v10710_v22  ;;  %v1644_v50 = vsub.f32 1.5, %v1643_v39  ;;  %v10782_v12 = vadd.f32 1e-05, %v1231_v6  ;;  %vm10822_vm5 = vmor %vm1656_vm15, %vm1657_vm6 }
 0x277   :  { %18013 = vst [vmem:[#allocation51_spill] sm:$0xff] %v10757_v51  ;;  %7694 = vrsqrt.f32 %v10747_v23  ;;  %v1655_v9 = vmul.f32 %v10629_v45, %v1654_v2  ;;  %v1230_v22 = vmul.f32 %v1116_v10, %v9189_v36  ;;  %v1232_v15 = vmul.f32 %v1122_v31, %v9189_v36  ;;  %v18020_v2 = vld [vmem:[#allocation52_spill] sm:$0xff]  ;;  %v18024_v31 = vld [vmem:[#allocation53_spill] sm:$0xff]  ;;  %vm10848_vm6 = vmor %vm1636_vm3, %vm1637_vm0 }
 0x278   :  { %7696 = vrsqrt.f32 %v10754_v55  ;;  %v1629_v7 = vsel %vm10777_vm1, %v10583_v8, %v1625_v61  ;;  %v1619_v42 = vsel %vm10788_vm2, %v10594_v13, %v1615_v29  ;;  %v1234_v56 = vmul.f32 %v1128_v11, %v9189_v36  ;;  %v18026_v11 = vld [vmem:[#allocation54_spill] sm:$0xff] }
 0x279   :  { %7698 = vrsqrt.f32 %v10782_v12  ;;  %v10805_v27 = vmul.f32 %v10618_v20, %v1634_v54  ;;  %v10807_v39 = vadd.f32 1e-05, %v1230_v22  ;;  %v10809_v10 = vadd.f32 1e-05, %v1232_v15 }
 0x27a   :  { %v1233_v60 = vmul.f32 %v1125_v24, %v9189_v36  ;;  %v10812_v6 = vpop.eup %7690  ;;  %v2147_v8 = vrot.slane %v10757_v51, 6  ;;  %v10816_v59 = vmul.f32 %v1609_v62, %v18020_v2  ;;  %v1645_v61 = vmul.f32 %v10658_v63, %v1644_v50 }
 0x27b   :  { %vm1647_vm11 = vweird.f32 %v10658_v63  ;;  %v10831_v32 = vmul.f32 %v1629_v7, %v18024_v31  ;;  %v1659_v0 = vsel %vm10822_vm5, %v10629_v45, %v1655_v9  ;;  %v1661_v21 = vmul.f32 %v10812_v6, %v10740_v38 }
 0x27c   :  { %18021 = vst [vmem:[#allocation52_spill] sm:$0xff] %v10816_v59  ;;  %v10828_v29 = vpop.eup %7692  ;;  %7700 = vrsqrt.f32 %v10807_v39  ;;  %v10842_v62 = vmul.f32 %v1619_v42, %v18026_v11  ;;  %v10855_v50 = vadd.f32 1e-05, %v1234_v56  ;;  %v1639_v52 = vsel %vm10848_vm6, %v10618_v20, %v10805_v27  ;;  %vm10865_vm7 = vmor %vm1646_vm14, %vm1647_vm11  ;;  %v18032_v42 = vld [vmem:[#allocation16_spill] sm:$0xff]  ;;  %v10897_v11 = vpop.xlane.xlu1 %1136 }
 0x27d   :  { %18025 = vst [vmem:[#allocation53_spill] sm:$0xff] %v10831_v32  ;;  %v10839_v54 = vpop.eup %7694  ;;  %v1681_v45 = vmul.f32 %v10828_v29, %v10745_v58  ;;  %7702 = vrsqrt.f32 %v10809_v10  ;;  %v1662_v9 = vmul.f32 %v10812_v6, %v1661_v21  ;;  %v10872_v15 = vadd.f32 1e-05, %v1233_v60  ;;  %v10895_v21 = vpop.xlane.xlu2 %1130 }
 0x27e   :  { %18027 = vst [vmem:[#allocation54_spill] sm:$0xff] %v10842_v62  ;;  %v10857_v24 = vpop.eup %7696  ;;  %v1671_v22 = vmul.f32 %v10839_v54, %v10747_v23  ;;  %v10877_v56 = vmul.f32 %v1659_v0, %v18032_v42  ;;  %v1649_v30 = vsel %vm10865_vm7, %v10658_v63, %v1645_v61  ;;  %vm1666_vm8 = vweird.f32 %v10740_v38 }
 0x27f   :  { %v10874_v7 = vpop.eup %7698  ;;  %v1682_v20 = vmul.f32 %v10828_v29, %v1681_v45  ;;  %v1691_v27 = vmul.f32 %v10857_v24, %v10754_v55  ;;  %v1663_v2 = vmul.f32 0.5, %v1662_v9  ;;  %7704 = vrsqrt.f32 %v10855_v50 }
 0x280   :  { %18033 = vst [vmem:[#allocation16_spill] sm:$0xff] %v10877_v56  ;;  %v1672_v60 = vmul.f32 %v10839_v54, %v1671_v22  ;;  %v1711_v13 = vmul.f32 %v10874_v7, %v10782_v12  ;;  %v18034_v63 = vrot.slane %v10675_v26, 7  ;;  %7706 = vrsqrt.f32 %v10872_v15  ;;  %v10903_v22 = vpop.xlane.xlu0 %1133 }
 0x281   :  { %v1683_v31 = vmul.f32 0.5, %v1682_v20  ;;  %v1692_v0 = vmul.f32 %v10857_v24, %v1691_v27  ;;  %v1664_v45 = vsub.f32 1.5, %v1663_v2  ;;  %v18035_v27 = vld [vmem:[#allocation14_spill] sm:$0xff]  ;;  %vm1667_vm9 = vweird.f32 %v10812_v6 }
 0x282   :  { %v2146_v61 = vsel %vm2097_vm4, %v18034_v63, %v10661_v28  ;;  %v10899_v41 = vpop.eup %7700  ;;  %v1673_v3 = vmul.f32 0.5, %v1672_v60  ;;  %v1712_v9 = vmul.f32 %v10874_v7, %v1711_v13  ;;  %v10909_v63 = vmul.f32 %v1649_v30, %v18035_v27  ;;  %vm10927_vm3 = vmor %vm1666_vm8, %vm1667_vm9 }
 0x283   :  { %v10905_v42 = vpop.eup %7702  ;;  %v1684_v51 = vsub.f32 1.5, %v1683_v31  ;;  %v1701_v40 = vmul.f32 %v10899_v41, %v10807_v39  ;;  %v1665_v2 = vmul.f32 %v10812_v6, %v1664_v45  ;;  %vm1686_vm0 = vweird.f32 %v10745_v58 }
 0x284   :  { %18036 = vst [vmem:[#allocation14_spill] sm:$0xff] %v10909_v63  ;;  %v1693_v60 = vmul.f32 0.5, %v1692_v0  ;;  %v1674_v13 = vsub.f32 1.5, %v1673_v3  ;;  %v2148_v48 = vsel %vm2100_vm13, %v2147_v8, %v2146_v61  ;;  %v2149_v20 = vrot.slane %v10704_v49, 5  ;;  %v1146_v49 = vpop.xlane.xlu1 %1145 }
 0x285   :  { %v1702_v26 = vmul.f32 %v10899_v41, %v1701_v40  ;;  %v1685_v30 = vmul.f32 %v10828_v29, %v1684_v51  ;;  %vm1687_vm15 = vweird.f32 %v10828_v29  ;;  %v1713_v31 = vmul.f32 0.5, %v1712_v9  ;;  %v10923_v27 = vpop.eup %7704  ;;  %v18039_v51 = vld [vmem:[#allocation13_spill] sm:$0xff] }
 0x286   :  { %v1721_v45 = vmul.f32 %v10905_v42, %v10809_v10  ;;  %vm1676_vm14 = vweird.f32 %v10747_v23  ;;  %vm1696_vm12 = vweird.f32 %v10754_v55  ;;  %v10934_v8 = vmul.f32 %v1639_v52, %v18039_v51  ;;  %v10936_v61 = vpop.eup %7706  ;;  %vm10945_vm2 = vmor %vm1686_vm0, %vm1687_vm15 }
 0x287   :  { %v1703_v40 = vmul.f32 0.5, %v1702_v26  ;;  %v1669_v3 = vsel %vm10927_vm3, %v10812_v6, %v1665_v2  ;;  %vm1677_vm1 = vweird.f32 %v10839_v54  ;;  %v1694_v38 = vsub.f32 1.5, %v1693_v60 }
 0x288   :  { %18040 = vst [vmem:[#allocation13_spill] sm:$0xff] %v10934_v8  ;;  %v2151_v9 = vrot.slane %v10816_v59, 4  ;;  %v1675_v26 = vmul.f32 %v10839_v54, %v1674_v13  ;;  %vm1697_vm5 = vweird.f32 %v10857_v24  ;;  %vm1717_vm11 = vweird.f32 %v10874_v7  ;;  %v18043_v13 = vld [vmem:[#allocation15_spill] sm:$0xff]  ;;  %v1143_v59 = vpop.xlane.xlu0 %1142  ;;  %vm10978_vm0 = vmor %vm1676_vm14, %vm1677_vm1 }
 0x289   :  { %vm1706_vm6 = vweird.f32 %v10807_v39  ;;  %v2150_v6 = vsel %vm17548_vm10, %v2149_v20, %v2148_v48  ;;  %v1689_v52 = vsel %vm10945_vm2, %v10828_v29, %v1685_v30  ;;  %v1714_v2 = vsub.f32 1.5, %v1713_v31  ;;  %v1140_v20 = vpop.xlane.xlu2 %1139  ;;  %vm10999_vm1 = vmor %vm1696_vm12, %vm1697_vm5 }
 0x28a   :  { %vm1716_vm7 = vweird.f32 %v10782_v12  ;;  %v1722_v58 = vmul.f32 %v10905_v42, %v1721_v45  ;;  %v1741_v60 = vmul.f32 %v10923_v27, %v10855_v50  ;;  %v10962_v0 = vmul.f32 %v1669_v3, %v18043_v13 }
 0x28b   :  { %v1704_v51 = vsub.f32 1.5, %v1703_v40  ;;  %vm1707_vm8 = vweird.f32 %v10899_v41  ;;  %v1731_v48 = vmul.f32 %v10936_v61, %v10872_v15  ;;  %v1695_v29 = vmul.f32 %v10857_v24, %v1694_v38 }
 0x28c   :  { %18044 = vst [vmem:[#allocation15_spill] sm:$0xff] %v10962_v0  ;;  %v1742_v30 = vmul.f32 %v10923_v27, %v1741_v60  ;;  %vm18045_vm9 = vcmask 1044484   ;;  %v2153_v45 = vrot.slane %v10842_v62, 3  ;;  %v10972_v3 = vmul.f32 %v1689_v52, %v18046_v18 }
 0x28d   :  { %v2152_v31 = vsel %vm18045_vm9, %v2151_v9, %v2150_v6  ;;  %v1732_v38 = vmul.f32 %v10936_v61, %v1731_v48  ;;  %v2155_v60 = vrot.slane %v10831_v32, 2  ;;  %v2157_v9 = vrot.slane %v10934_v8, 1  ;;  %vm11023_vm9 = vmor %vm1706_vm6, %vm1707_vm8 }
 0x28e   :  { %18047 = vst [vmem:[#allocation19_spill] sm:$0xff] %v10972_v3  ;;  %v1679_v6 = vsel %vm10978_vm0, %v10839_v54, %v1675_v26  ;;  %v1715_v18 = vmul.f32 %v10874_v7, %v1714_v2  ;;  %v1723_v52 = vmul.f32 0.5, %v1722_v58  ;;  %vm18050_vm15 = vcmask 1045509   ;;  %v18066_v54 = vld [vmem:[#allocation22_spill] sm:$0xff] }
 0x28f   :  { %v2154_v13 = vsel %vm18050_vm15, %v2153_v45, %v2152_v31  ;;  %v1705_v23 = vmul.f32 %v10899_v41, %v1704_v51  ;;  %vm1727_vm3 = vweird.f32 %v10905_v42  ;;  %v1743_v62 = vmul.f32 0.5, %v1742_v30  ;;  %v18055_v30 = vld [vmem:[#allocation17_spill] sm:$0xff]  ;;  %vm11038_vm15 = vmor %vm1716_vm7, %vm1717_vm11 }
 0x290   :  { %vm18051_vm14 = vcmask 1046534   ;;  %v1235_v32 = vmul.f32 %v10895_v21, %v9189_v36  ;;  %v1733_v26 = vmul.f32 0.5, %v1732_v38  ;;  %vm18054_vm2 = vcmask 1047559  }
 0x291   :  { %v2156_v48 = vsel %vm18051_vm14, %v2155_v60, %v2154_v13  ;;  %v1237_v58 = vmul.f32 %v10897_v11, %v9189_v36  ;;  %v1236_v51 = vmul.f32 %v10903_v22, %v9189_v36  ;;  %v11009_v31 = vmul.f32 %v1679_v6, %v18055_v30  ;;  %v18064_v13 = vld [vmem:[#allocation20_spill] sm:$0xff] }
 0x292   :  { %v2158_v2 = vsel %vm18054_vm2, %v2157_v9, %v2156_v48  ;;  %v1699_v55 = vsel %vm10999_vm1, %v10857_v24, %v1695_v29  ;;  %vm1726_vm12 = vweird.f32 %v10809_v10  ;;  %vm18057_vm5 = vcmask 261120   ;;  %v18062_v9 = vld [vmem:[#allocation18_spill] sm:$0xff] }
 0x293   :  { %18056 = vst [vmem:[#allocation17_spill] sm:$0xff] %v11009_v31  ;;  %7450 = vmatmul.msk.f32.gmra.mxu0 %vm18057_vm5, %v2158_v2  ;;  %v11016_v21 = vadd.f32 1e-05, %v1235_v32  ;;  %v1238_v45 = vmul.f32 %v1140_v20, %v9189_v36  ;;  %vm1746_vm0 = vweird.f32 %v10855_v50  ;;  %v11028_v22 = vadd.f32 1e-05, %v1237_v58  ;;  %vm11095_vm7 = vmor %vm1726_vm12, %vm1727_vm3 }
 0x294   :  { %v11030_v24 = vadd.f32 1e-05, %v1236_v51  ;;  %v1240_v29 = vmul.f32 %v1146_v49, %v9189_v36  ;;  %v1239_v32 = vmul.f32 %v1143_v59, %v9189_v36  ;;  %v1709_v20 = vsel %vm11023_vm9, %v10899_v41, %v1705_v23  ;;  %v1149_v41 = vpop.xlane.xlu2 %1148 }
 0x295   :  { %v1724_v40 = vsub.f32 1.5, %v1723_v52  ;;  %7708 = vrsqrt.f32 %v11016_v21  ;;  %v11046_v38 = vadd.f32 1e-05, %v1238_v45  ;;  %v1719_v59 = vsel %vm11038_vm15, %v10874_v7, %v1715_v18  ;;  %v11058_v52 = vpop.xlane.xlu1 %1154  ;;  %v11068_v18 = vpop.xlane.xlu0 %1151 }
 0x296   :  { %v1744_v49 = vsub.f32 1.5, %v1743_v62  ;;  %v1734_v60 = vsub.f32 1.5, %v1733_v26  ;;  %7710 = vrsqrt.f32 %v11028_v22  ;;  %v2161_v12 = vrot.slane %v10962_v0, 6 }
 0x297   :  { %v11054_v6 = vmul.f32 %v1699_v55, %v18062_v9  ;;  %vm1747_vm11 = vweird.f32 %v10923_v27  ;;  %7712 = vrsqrt.f32 %v11030_v24  ;;  %v11061_v23 = vmul.f32 %v1709_v20, %v18064_v13 }
 0x298   :  { %7714 = vrsqrt.f32 %v11046_v38  ;;  %v11064_v62 = vadd.f32 1e-05, %v1240_v29  ;;  %v11066_v7 = vadd.f32 1e-05, %v1239_v32  ;;  %v1725_v48 = vmul.f32 %v10905_v42, %v1724_v40  ;;  %vm11113_vm3 = vmor %vm1746_vm0, %vm1747_vm11 }
 0x299   :  { %18063 = vst [vmem:[#allocation18_spill] sm:$0xff] %v11054_v6  ;;  %vm1737_vm6 = vweird.f32 %v10936_v61  ;;  %v11073_v26 = vmul.f32 %v1719_v59, %v18066_v54  ;;  %v2163_v2 = vrot.slane %v11009_v31, 5  ;;  %v1745_v58 = vmul.f32 %v10923_v27, %v1744_v49 }
 0x29a   :  { %18065 = vst [vmem:[#allocation20_spill] sm:$0xff] %v11061_v23  ;;  %v1735_v51 = vmul.f32 %v10936_v61, %v1734_v60  ;;  %7716 = vrsqrt.f32 %v11064_v62  ;;  %v18068_v30 = vrot.slane %v10877_v56, 7  ;;  %v2165_v29 = vrot.slane %v10972_v3, 4 }
 0x29b   :  { %18067 = vst [vmem:[#allocation22_spill] sm:$0xff] %v11073_v26  ;;  %v11083_v45 = vpop.eup %7708  ;;  %7718 = vrsqrt.f32 %v11066_v7  ;;  %v2167_v32 = vrot.slane %v11054_v6, 3  ;;  %vm1736_vm8 = vweird.f32 %v10872_v15  ;;  %v2169_v49 = vrot.slane %v11061_v23, 2 }
 0x29c   :  { %v2160_v55 = vsel %vm2097_vm4, %v18068_v30, %v10909_v63  ;;  %v11089_v39 = vpop.eup %7710  ;;  %v1751_v40 = vmul.f32 %v11083_v45, %v11016_v21  ;;  %vm18073_vm14 = vcmask 1044484   ;;  %v2171_v13 = vrot.slane %v11073_v26, 1  ;;  %vm11128_vm1 = vmor %vm1736_vm8, %vm1737_vm6  ;;  %v1158_v50 = vpop.xlane.xlu2 %1157 }
 0x29d   :  { %v2162_v11 = vsel %vm2100_vm13, %v2161_v12, %v2160_v55  ;;  %v11104_v60 = vpop.eup %7712  ;;  %v1729_v12 = vsel %vm11095_vm7, %v10905_v42, %v1725_v48  ;;  %v1771_v15 = vmul.f32 %v11089_v39, %v11028_v22  ;;  %v1749_v42 = vsel %vm11113_vm3, %v10923_v27, %v1745_v58 }
 0x29e   :  { %v2164_v59 = vsel %vm17548_vm10, %v2163_v2, %v2162_v11  ;;  %v11121_v54 = vpop.eup %7714  ;;  %v1752_v48 = vmul.f32 %v11083_v45, %v1751_v40  ;;  %v1761_v2 = vmul.f32 %v11104_v60, %v11030_v24  ;;  %vm18076_vm2 = vcmask 1045509  }
 0x29f   :  { %v2166_v9 = vsel %vm18073_vm14, %v2165_v29, %v2164_v59  ;;  %v1739_v55 = vsel %vm11128_vm1, %v10936_v61, %v1735_v51  ;;  %v1772_v11 = vmul.f32 %v11089_v39, %v1771_v15  ;;  %v1781_v27 = vmul.f32 %v11121_v54, %v11046_v38 }
 0x2a0   :  { %v2168_v30 = vsel %vm18076_vm2, %v2167_v32, %v2166_v9  ;;  %vm18077_vm12 = vcmask 1046534   ;;  %v11143_v29 = vpop.eup %7716  ;;  %v1753_v20 = vmul.f32 0.5, %v1752_v48  ;;  %v1762_v40 = vmul.f32 %v11104_v60, %v1761_v2  ;;  %v18079_v9 = vld [vmem:[#allocation21_spill] sm:$0xff]  ;;  %v1164_v48 = vpop.xlane.xlu1 %1163 }
 0x2a1   :  { %v2170_v58 = vsel %vm18077_vm12, %v2169_v49, %v2168_v30  ;;  %vm18078_vm5 = vcmask 1047559   ;;  %v1241_v32 = vmul.f32 %v1149_v41, %v9189_v36  ;;  %v11148_v10 = vpop.eup %7718  ;;  %v11151_v61 = vmul.f32 %v1729_v12, %v18079_v9  ;;  %v18082_v2 = vld [vmem:[#allocation25_spill] sm:$0xff]  ;;  %v1161_v12 = vpop.xlane.xlu0 %1160  ;;  %v18084_v9 = vld [vmem:[#allocation23_spill] sm:$0xff] }
 0x2a2   :  { %v2172_v59 = vsel %vm18078_vm5, %v2171_v13, %v2170_v58  ;;  %v1773_v51 = vmul.f32 0.5, %v1772_v11  ;;  %v1782_v15 = vmul.f32 %v11121_v54, %v1781_v27  ;;  %v1801_v49 = vmul.f32 %v11143_v29, %v11064_v62 }
 0x2a3   :  { %18080 = vst [vmem:[#allocation21_spill] sm:$0xff] %v11151_v61  ;;  %vm18081_vm9 = vcmask 261120   ;;  %v11158_v30 = vmul.f32 %v1749_v42, %v18082_v2  ;;  %v1754_v13 = vsub.f32 1.5, %v1753_v20  ;;  %v1763_v41 = vmul.f32 0.5, %v1762_v40 }
 0x2a4   :  { %7451 = vmatmul.msk.f32.gmra.mxu0 %vm18081_vm9, %v2172_v59  ;;  %v1791_v58 = vmul.f32 %v11148_v10, %v11066_v7  ;;  %v11163_v11 = vmul.f32 %v1739_v55, %v18084_v9  ;;  %v1783_v27 = vmul.f32 0.5, %v1782_v15  ;;  %v1802_v23 = vmul.f32 %v11143_v29, %v1801_v49 }
 0x2a5   :  { %18083 = vst [vmem:[#allocation25_spill] sm:$0xff] %v11158_v30  ;;  %v11166_v31 = vadd.f32 1e-05, %v1241_v32  ;;  %vm1756_vm0 = vweird.f32 %v11016_v21  ;;  %v1774_v59 = vsub.f32 1.5, %v1773_v51  ;;  %v1764_v63 = vsub.f32 1.5, %v1763_v41 }
 0x2a6   :  { %18085 = vst [vmem:[#allocation23_spill] sm:$0xff] %v11163_v11  ;;  %v1243_v42 = vmul.f32 %v11058_v52, %v9189_v36  ;;  %v1755_v20 = vmul.f32 %v11083_v45, %v1754_v13  ;;  %vm1757_vm15 = vweird.f32 %v11083_v45  ;;  %v1792_v40 = vmul.f32 %v11148_v10, %v1791_v58 }
 0x2a7   :  { %7720 = vrsqrt.f32 %v11166_v31  ;;  %vm1776_vm11 = vweird.f32 %v11028_v22  ;;  %vm1766_vm6 = vweird.f32 %v11030_v24  ;;  %v1784_v55 = vsub.f32 1.5, %v1783_v27  ;;  %vm11183_vm3 = vmor %vm1756_vm0, %vm1757_vm15 }
 0x2a8   :  { %vm1786_vm7 = vweird.f32 %v11046_v38  ;;  %vm1777_vm8 = vweird.f32 %v11089_v39  ;;  %v1803_v52 = vmul.f32 0.5, %v1802_v23  ;;  %v1775_v49 = vmul.f32 %v11089_v39, %v1774_v59 }
 0x2a9   :  { %v1765_v2 = vmul.f32 %v11104_v60, %v1764_v63  ;;  %vm1767_vm14 = vweird.f32 %v11104_v60  ;;  %v11190_v13 = vadd.f32 1e-05, %v1243_v42  ;;  %v1759_v41 = vsel %vm11183_vm3, %v11083_v45, %v1755_v20  ;;  %vm11201_vm12 = vmor %vm1776_vm11, %vm1777_vm8  ;;  %v1167_v42 = vpop.xlane.xlu2 %1166  ;;  %v1173_v20 = vpop.xlane.xlu1 %1172 }
 0x2aa   :  { %vm1787_vm1 = vweird.f32 %v11121_v54  ;;  %vm1806_vm2 = vweird.f32 %v11064_v62  ;;  %v1793_v21 = vmul.f32 0.5, %v1792_v40  ;;  %v1242_v23 = vmul.f32 %v11068_v18, %v9189_v36  ;;  %vm11213_vm0 = vmor %vm1766_vm6, %vm1767_vm14  ;;  %v18092_v40 = vld [vmem:[#allocation24_spill] sm:$0xff] }
 0x2ab   :  { %v1785_v58 = vmul.f32 %v11121_v54, %v1784_v55  ;;  %vm1807_vm5 = vweird.f32 %v11143_v29  ;;  %vm1797_vm9 = vweird.f32 %v11148_v10  ;;  %7722 = vrsqrt.f32 %v11190_v13  ;;  %vm11242_vm11 = vmor %vm1786_vm7, %vm1787_vm1 }
 0x2ac   :  { %v1804_v22 = vsub.f32 1.5, %v1803_v52  ;;  %vm1796_vm15 = vweird.f32 %v11066_v7  ;;  %v11218_v9 = vadd.f32 1e-05, %v1242_v23  ;;  %v1244_v27 = vmul.f32 %v1158_v50, %v9189_v36  ;;  %v1170_v23 = vpop.xlane.xlu0 %1169  ;;  %vm11281_vm7 = vmor %vm1806_vm2, %vm1807_vm5 }
 0x2ad   :  { %v11209_v45 = vpop.eup %7720  ;;  %v1246_v59 = vmul.f32 %v1164_v48, %v9189_v36  ;;  %v11223_v55 = vmul.f32 %v1759_v41, %v18092_v40  ;;  %v1779_v24 = vsel %vm11201_vm12, %v11089_v39, %v1775_v49  ;;  %v1769_v52 = vsel %vm11213_vm0, %v11104_v60, %v1765_v2  ;;  %vm11300_vm8 = vmor %vm1796_vm15, %vm1797_vm9 }
 0x2ae   :  { %v1811_v15 = vmul.f32 %v11209_v45, %v11166_v31  ;;  %v1794_v50 = vsub.f32 1.5, %v1793_v21  ;;  %7724 = vrsqrt.f32 %v11218_v9  ;;  %v11234_v48 = vadd.f32 1e-05, %v1244_v27 }
 0x2af   :  { %18093 = vst [vmem:[#allocation24_spill] sm:$0xff] %v11223_v55  ;;  %v11236_v32 = vadd.f32 1e-05, %v1246_v59  ;;  %vm1816_vm6 = vweird.f32 %v11166_v31  ;;  %v1245_v49 = vmul.f32 %v1161_v12, %v9189_v36  ;;  %v1247_v2 = vmul.f32 %v1167_v42, %v9189_v36 }
 0x2b0   :  { %v1812_v60 = vmul.f32 %v11209_v45, %v1811_v15  ;;  %v1249_v41 = vmul.f32 %v1173_v20, %v9189_v36  ;;  %v1789_v21 = vsel %vm11242_vm11, %v11121_v54, %v1785_v58  ;;  %v1805_v38 = vmul.f32 %v11143_v29, %v1804_v22  ;;  %v18096_v20 = vld [vmem:[#allocation28_spill] sm:$0xff]  ;;  %v18098_v15 = vld [vmem:[#allocation26_spill] sm:$0xff] }
 0x2b1   :  { %7726 = vrsqrt.f32 %v11234_v48  ;;  %v1248_v63 = vmul.f32 %v1170_v23, %v9189_v36  ;;  %v11257_v18 = vpop.eup %7722  ;;  %v11260_v12 = vadd.f32 1e-05, %v1245_v49  ;;  %v11262_v59 = vadd.f32 1e-05, %v1247_v2  ;;  %v18102_v49 = vld [vmem:[#allocation27_spill] sm:$0xff] }
 0x2b2   :  { %v1813_v27 = vmul.f32 0.5, %v1812_v60  ;;  %7728 = vrsqrt.f32 %v11236_v32  ;;  %v1795_v42 = vmul.f32 %v11148_v10, %v1794_v50  ;;  %v1831_v54 = vmul.f32 %v11257_v18, %v11190_v13 }
 0x2b3   :  { %v11267_v58 = vadd.f32 1e-05, %v1249_v41  ;;  %v11269_v22 = vadd.f32 1e-05, %v1248_v63  ;;  %v11272_v40 = vmul.f32 %v1779_v24, %v18096_v20  ;;  %v11275_v23 = vmul.f32 %v1769_v52, %v18098_v15 }
 0x2b4   :  { %v1814_v50 = vsub.f32 1.5, %v1813_v27  ;;  %7730 = vrsqrt.f32 %v11260_v12  ;;  %v11286_v60 = vpop.eup %7724  ;;  %v11289_v2 = vmul.f32 %v1789_v21, %v18102_v49  ;;  %v1809_v24 = vsel %vm11281_vm7, %v11143_v29, %v1805_v38  ;;  %v18106_v27 = vld [vmem:[#allocation31_spill] sm:$0xff] }
 0x2b5   :  { %18097 = vst [vmem:[#allocation28_spill] sm:$0xff] %v11272_v40  ;;  %v1832_v52 = vmul.f32 %v11257_v18, %v1831_v54  ;;  %7732 = vrsqrt.f32 %v11262_v59  ;;  %vm1817_vm3 = vweird.f32 %v11209_v45  ;;  %v1821_v21 = vmul.f32 %v11286_v60, %v11218_v9 }
 0x2b6   :  { %18099 = vst [vmem:[#allocation26_spill] sm:$0xff] %v11275_v23  ;;  %v1815_v41 = vmul.f32 %v11209_v45, %v1814_v50  ;;  %7734 = vrsqrt.f32 %v11267_v58  ;;  %v1799_v38 = vsel %vm11300_vm8, %v11148_v10, %v1795_v42  ;;  %vm1836_vm14 = vweird.f32 %v11190_v13  ;;  %vm11327_vm2 = vmor %vm1816_vm6, %vm1817_vm3 }
 0x2b7   :  { %18103 = vst [vmem:[#allocation27_spill] sm:$0xff] %v11289_v2  ;;  %v11309_v29 = vpop.eup %7726  ;;  %v1833_v7 = vmul.f32 0.5, %v1832_v52  ;;  %7736 = vrsqrt.f32 %v11269_v22  ;;  %v11319_v54 = vmul.f32 %v1809_v24, %v18106_v27  ;;  %v1822_v20 = vmul.f32 %v11286_v60, %v1821_v21  ;;  %v18110_v52 = vld [vmem:[#allocation29_spill] sm:$0xff] }
 0x2b8   :  { %v11316_v63 = vpop.eup %7728  ;;  %vm1826_vm1 = vweird.f32 %v11218_v9  ;;  %v1841_v15 = vmul.f32 %v11309_v29, %v11234_v48  ;;  %vm1837_vm12 = vweird.f32 %v11257_v18  ;;  %vm1827_vm5 = vweird.f32 %v11286_v60 }
 0x2b9   :  { %18107 = vst [vmem:[#allocation31_spill] sm:$0xff] %v11319_v54  ;;  %v1834_v42 = vsub.f32 1.5, %v1833_v7  ;;  %v1861_v39 = vmul.f32 %v11316_v63, %v11236_v32  ;;  %v1819_v49 = vsel %vm11327_vm2, %v11209_v45, %v1815_v41  ;;  %v1823_v24 = vmul.f32 0.5, %v1822_v20  ;;  %vm11372_vm6 = vmor %vm1836_vm14, %vm1837_vm12 }
 0x2ba   :  { %v11335_v50 = vpop.eup %7730  ;;  %v1842_v31 = vmul.f32 %v11309_v29, %v1841_v15  ;;  %vm1846_vm9 = vweird.f32 %v11234_v48  ;;  %v11343_v62 = vmul.f32 %v1799_v38, %v18110_v52  ;;  %v18112_v45 = vrot.slane %v11163_v11, 7  ;;  %v18113_v52 = vld [vmem:[#allocation30_spill] sm:$0xff]  ;;  %vm11388_vm7 = vmor %vm1826_vm1, %vm1827_vm5 }
 0x2bb   :  { %v11345_v21 = vpop.eup %7732  ;;  %v1835_v7 = vmul.f32 %v11257_v18, %v1834_v42  ;;  %v1862_v27 = vmul.f32 %v11316_v63, %v1861_v39  ;;  %v1851_v51 = vmul.f32 %v11335_v50, %v11260_v12  ;;  %v1824_v15 = vsub.f32 1.5, %v1823_v24  ;;  %v1176_v42 = vpop.xlane.xlu2 %1175 }
 0x2bc   :  { %18111 = vst [vmem:[#allocation29_spill] sm:$0xff] %v11343_v62  ;;  %v2174_v41 = vsel %vm2097_vm4, %v18112_v45, %v11151_v61  ;;  %v11355_v20 = vpop.eup %7734  ;;  %v1843_v10 = vmul.f32 0.5, %v1842_v31  ;;  %vm1847_vm0 = vweird.f32 %v11309_v29  ;;  %vm1856_vm15 = vweird.f32 %v11260_v12 }
 0x2bd   :  { %v1871_v38 = vmul.f32 %v11345_v21, %v11262_v59  ;;  %v11361_v39 = vpop.eup %7736  ;;  %v11364_v6 = vmul.f32 %v1819_v49, %v18113_v52  ;;  %v1863_v11 = vmul.f32 0.5, %v1862_v27  ;;  %vm1867_vm11 = vweird.f32 %v11316_v63  ;;  %v1179_v52 = vpop.xlane.xlu0 %1178  ;;  %vm11421_vm12 = vmor %vm1846_vm9, %vm1847_vm0 }
 0x2be   :  { %v1852_v45 = vmul.f32 %v11335_v50, %v1851_v51  ;;  %v1825_v31 = vmul.f32 %v11286_v60, %v1824_v15  ;;  %v1844_v61 = vsub.f32 1.5, %v1843_v10  ;;  %v18117_v49 = vrot.slane %v11158_v30, 6  ;;  %v18122_v30 = vld [vmem:[#allocation32_spill] sm:$0xff] }
 0x2bf   :  { %18114 = vst [vmem:[#allocation30_spill] sm:$0xff] %v11364_v6  ;;  %v1872_v26 = vmul.f32 %v11345_v21, %v1871_v38  ;;  %v1839_v51 = vsel %vm11372_vm6, %v11257_v18, %v1835_v7  ;;  %v1864_v15 = vsub.f32 1.5, %v1863_v11  ;;  %vm1866_vm8 = vweird.f32 %v11236_v32  ;;  %v1182_v11 = vpop.xlane.xlu1 %1181 }
 0x2c0   :  { %v2176_v27 = vsel %vm2100_vm13, %v18117_v49, %v2174_v41  ;;  %v1853_v10 = vmul.f32 0.5, %v1852_v45  ;;  %v1891_v38 = vmul.f32 %v11355_v20, %v11267_v58  ;;  %v1829_v41 = vsel %vm11388_vm7, %v11286_v60, %v1825_v31  ;;  %v18120_v31 = vld [vmem:[#allocation34_spill] sm:$0xff]  ;;  %vm11463_vm7 = vmor %vm1866_vm8, %vm1867_vm11 }
 0x2c1   :  { %v11399_v18 = vmul.f32 %v11309_v29, %v1844_v61  ;;  %v1873_v7 = vmul.f32 0.5, %v1872_v26  ;;  %vm1876_vm3 = vweird.f32 %v11262_v59  ;;  %v1881_v9 = vmul.f32 %v11361_v39, %v11269_v22 }
 0x2c2   :  { %v1854_v24 = vsub.f32 1.5, %v1853_v10  ;;  %v1892_v49 = vmul.f32 %v11355_v20, %v1891_v38  ;;  %vm1896_vm14 = vweird.f32 %v11267_v58  ;;  %v2177_v60 = vrot.slane %v11223_v55, 5 }
 0x2c3   :  { %vm1857_vm1 = vweird.f32 %v11335_v50  ;;  %v1874_v61 = vsub.f32 1.5, %v1873_v7  ;;  %vm1877_vm2 = vweird.f32 %v11345_v21  ;;  %v1882_v26 = vmul.f32 %v11361_v39, %v1881_v9  ;;  %v2272_v9 = vld [vmem:[%s17335_s3] sm:$0xff]  ;;  %v1185_v10 = vpop.xlane.xlu2 %1184 }
 0x2c4   :  { %v11412_v13 = vmul.f32 %v1839_v51, %v18120_v31  ;;  %v11415_v0 = vmul.f32 %v1829_v41, %v18122_v30  ;;  %v1855_v38 = vmul.f32 %v11335_v50, %v1854_v24  ;;  %vm1897_vm5 = vweird.f32 %v11355_v20  ;;  %v2273_v51 = vld [vmem:[%s17335_s3 + $0x8] sm:$0xff]  ;;  %vm11443_vm9 = vmor %vm1856_vm15, %vm1857_vm1 }
 0x2c5   :  { %vm1886_vm6 = vweird.f32 %v11269_v22  ;;  %v1849_v30 = vsel %vm11421_vm12, %v11309_v29, %v11399_v18  ;;  %v1865_v48 = vmul.f32 %v11316_v63, %v1864_v15  ;;  %v1893_v41 = vmul.f32 0.5, %v1892_v49  ;;  %2316 = vmatpush.msra.mxu1 %v2273_v51  ;;  %7603 = vmatpush.msrb.mxu3 %v2273_v51  ;;  %vm11475_vm12 = vmor %vm1876_vm3, %vm1877_vm2 }
 0x2c6   :  { %18121 = vst [vmem:[#allocation34_spill] sm:$0xff] %v11412_v13  ;;  %v1883_v7 = vmul.f32 0.5, %v1882_v26  ;;  %vm1887_vm0 = vweird.f32 %v11361_v39  ;;  %v2178_v29 = vsel %vm17548_vm10, %v2177_v60, %v2176_v27  ;;  %v2179_v15 = vrot.slane %v11275_v23, 4  ;;  %vm11492_vm8 = vmor %vm1896_vm14, %vm1897_vm5 }
 0x2c7   :  { %18123 = vst [vmem:[#allocation32_spill] sm:$0xff] %v11415_v0  ;;  %v2181_v18 = vrot.slane %v11272_v40, 3  ;;  %v1859_v49 = vsel %vm11443_vm9, %v11335_v50, %v1855_v38  ;;  %v1875_v26 = vmul.f32 %v11345_v21, %v1874_v61  ;;  %v1894_v31 = vsub.f32 1.5, %v1893_v41  ;;  %2317 = vmatpush.msra.mxu1 %v2272_v9  ;;  %7604 = vmatpush.msrb.mxu3 %v2272_v9  ;;  %vm11522_vm2 = vmor %vm1886_vm6, %vm1887_vm0 }
 0x2c8   :  { %v1884_v12 = vsub.f32 1.5, %v1883_v7  ;;  %vm18128_vm15 = vcmask 1044484   ;;  %v2183_v45 = vrot.slane %v11289_v2, 2  ;;  %v2185_v27 = vrot.slane %v11343_v62, 1 }
 0x2c9   :  { %v2180_v51 = vsel %vm18128_vm15, %v2179_v15, %v2178_v29  ;;  %v1250_v60 = vmul.f32 %v1176_v42, %v9189_v36  ;;  %v1895_v61 = vmul.f32 %v11355_v20, %v1894_v31  ;;  %vm18131_vm1 = vcmask 1045509   ;;  %v1188_v31 = vpop.xlane.xlu0 %1187  ;;  %vm18155_vm9 = vmmov %vm18128_vm15 }
 0x2ca   :  { %v1885_v38 = vmul.f32 %v11361_v39, %v1884_v12  ;;  %v2182_v41 = vsel %vm18131_vm1, %v2181_v18, %v2180_v51  ;;  %v1252_v7 = vmul.f32 %v1182_v11, %v9189_v36  ;;  %vm18134_vm11 = vcmask 1046534   ;;  %v11502_v12 = vld [vmem:[%s17336_s4] ss:$0 sm:$0xff]  ;;  %v2248_v51 = vpop.f32.mrf.mxu0  ;;  %vm18156_vm0 = vmmov %vm18131_vm1 }
 0x2cb   :  { %v2184_v32 = vsel %vm18134_vm11, %v2183_v45, %v2182_v41  ;;  %v11480_v9 = vadd.f32 1e-05, %v1250_v60  ;;  %v1251_v24 = vmul.f32 %v1179_v52, %v9189_v36  ;;  %v1253_v29 = vmul.f32 %v1185_v10, %v9189_v36  ;;  %v1191_v52 = vpop.xlane.xlu1 %1190  ;;  %v18147_v41 = vld [vmem:[#allocation38_spill] sm:$0xff]  ;;  %vm18158_vm1 = vmmov %vm18134_vm11 }
 0x2cc   :  { %v2189_v15 = vrot.slane %v11415_v0, 6  ;;  %v1869_v11 = vsel %vm11463_vm7, %v11316_v63, %v1865_v48  ;;  %vm18137_vm3 = vcmask 1047559   ;;  %v11497_v18 = vadd.f32 1e-05, %v1252_v7  ;;  %v18138_v63 = vld [vmem:[#allocation33_spill] sm:$0xff] }
 0x2cd   :  { %v2186_v45 = vsel %vm18137_vm3, %v2185_v27, %v2184_v32  ;;  %v11505_v48 = vmul.f32 %v1849_v30, %v18138_v63  ;;  %v1879_v58 = vsel %vm11475_vm12, %v11345_v21, %v1875_v26  ;;  %v1899_v10 = vsel %vm11492_vm8, %v11355_v20, %v1895_v61  ;;  %v18141_v27 = vld [vmem:[#allocation55_spill] sm:$0xff]  ;;  %v18145_v26 = vld [vmem:[#allocation36_spill] sm:$0xff]  ;;  %vm18159_vm8 = vmmov %vm18137_vm3 }
 0x2ce   :  { %vm18140_vm14 = vcmask 261120   ;;  %7738 = vrsqrt.f32 %v11480_v9  ;;  %v11516_v60 = vmul.f32 %v1859_v49, %v18141_v27  ;;  %v11527_v21 = vadd.f32 1e-05, %v1251_v24  ;;  %v18150_v32 = vld [vmem:[#allocation35_spill] sm:$0xff] }
 0x2cf   :  { %18139 = vst [vmem:[#allocation33_spill] sm:$0xff] %v11505_v48  ;;  %7452 = vmatmul.msk.f32.gmra.mxu0 %vm18140_vm14, %v2186_v45  ;;  %7740 = vrsqrt.f32 %v11497_v18  ;;  %v11529_v20 = vadd.f32 1e-05, %v1253_v29  ;;  %v11532_v50 = vmul.f32 %v1869_v11, %v18145_v26  ;;  %v1889_v49 = vsel %vm11522_vm2, %v11361_v39, %v1885_v38  ;;  %vm18160_vm3 = vmmov %vm18140_vm14 }
 0x2d0   :  { %18142 = vst [vmem:[#allocation55_spill] sm:$0xff] %v11516_v60  ;;  %v1255_v61 = vmul.f32 %v1191_v52, %v9189_v36  ;;  %v1254_v22 = vmul.f32 %v1188_v31, %v9189_v36  ;;  %v11540_v7 = vmul.f32 %v1899_v10, %v18147_v41  ;;  %7742 = vrsqrt.f32 %v11527_v21  ;;  %v11565_v31 = vld [vmem:[%s17337_s5] ss:$0 sm:$0xff]  ;;  %s8289_s5 = smov 112  }
 0x2d1   :  { %18146 = vst [vmem:[#allocation36_spill] sm:$0xff] %v11532_v50  ;;  %v11544_v42 = vadd.f32 %v11502_v12, %v2248_v51  ;;  %v11547_v24 = vmul.f32 %v1879_v58, %v18150_v32  ;;  %7744 = vrsqrt.f32 %v11529_v20  ;;  %v18152_v36 = vrot.slane %v11364_v6, 7  ;;  %v18153_v58 = vld [vmem:[#allocation56_spill] sm:$0xff] }
 0x2d2   :  { %18148 = vst [vmem:[#allocation38_spill] sm:$0xff] %v11540_v7  ;;  %v11550_v29 = vadd.f32 1e-05, %v1255_v61  ;;  %v11552_v39 = vadd.f32 1e-05, %v1254_v22  ;;  %v2191_v59 = vrot.slane %v11412_v13, 5  ;;  %v11570_v10 = vmul.f32 %v1889_v49, %v18153_v58 }
 0x2d3   :  { %18149 = vst [vmem:[#allocation77_spill] sm:$0xff] %v11544_v42  ;;  %v2188_v38 = vsel %vm2097_vm4, %v18152_v36, %v11319_v54  ;;  %v2193_v45 = vrot.slane %v11505_v48, 4  ;;  %v2195_v52 = vrot.slane %v11516_v60, 3  ;;  %vm1906_vm5 = vweird.f32 %v11480_v9 }
 0x2d4   :  { %18151 = vst [vmem:[#allocation35_spill] sm:$0xff] %v11547_v24  ;;  %v2190_v11 = vsel %vm2100_vm13, %v2189_v15, %v2188_v38  ;;  %v11567_v63 = vpop.eup %7738  ;;  %7746 = vrsqrt.f32 %v11550_v29  ;;  %v2197_v15 = vrot.slane %v11532_v50, 2  ;;  %vm1926_vm6 = vweird.f32 %v11497_v18 }
 0x2d5   :  { %18154 = vst [vmem:[#allocation56_spill] sm:$0xff] %v11570_v10  ;;  %v11574_v51 = vpop.eup %7740  ;;  %v1901_v27 = vmul.f32 %v11567_v63, %v11480_v9  ;;  %7748 = vrsqrt.f32 %v11552_v39  ;;  %v2192_v30 = vsel %vm17548_vm10, %v2191_v59, %v2190_v11  ;;  %v2199_v22 = vrot.slane %v11547_v24, 1  ;;  %v2251_v11 = vpop.f32.mrf.mxu0  ;;  %v18162_v9 = vld [vmem:[#allocation37_spill] sm:$0xff] }
 0x2d6   :  { %v1921_v49 = vmul.f32 %v11574_v51, %v11497_v18  ;;  %v2194_v61 = vsel %vm18155_vm9, %v2193_v45, %v2192_v30  ;;  %v11587_v41 = vpop.eup %7742  ;;  %vm2277_vm15 = vcmask 130048   ;;  %v11593_v38 = vmul.f32 %v11565_v31, %v11544_v42 }
 0x2d7   :  { %v1902_v32 = vmul.f32 %v11567_v63, %v1901_v27  ;;  %v2196_v36 = vsel %vm18156_vm0, %v2195_v52, %v2194_v61  ;;  %v11595_v59 = vpop.eup %7744  ;;  %v1911_v45 = vmul.f32 %v11587_v41, %v11527_v21  ;;  %vm1916_vm7 = vweird.f32 %v11527_v21  ;;  %7455 = vmatmul.msk.f32.vlgmr.msra.gmra.mxu1 %vm2277_vm15, %v11544_v42  ;;  %v18166_v21 = vld [vmem:[#allocation57_spill] sm:$0xff] }
 0x2d8   :  { %18157 = vst [vmem:[#allocation78_spill] sm:$0xff] %v11593_v38  ;;  %v1922_v58 = vmul.f32 %v11574_v51, %v1921_v49  ;;  %v2198_v30 = vsel %vm18158_vm1, %v2197_v15, %v2196_v36  ;;  %vm1907_vm12 = vweird.f32 %v11567_v63  ;;  %v1931_v27 = vmul.f32 %v11595_v59, %v11529_v20 }
 0x2d9   :  { %v1903_v52 = vmul.f32 0.5, %v1902_v32  ;;  %vm1936_vm11 = vweird.f32 %v11529_v20  ;;  %v2200_v49 = vsel %vm18159_vm8, %v2199_v22, %v2198_v30  ;;  %v1912_v60 = vmul.f32 %v11587_v41, %v1911_v45  ;;  %vm1908_vm8 = vmor %vm1906_vm5, %vm1907_vm12 }
 0x2da   :  { %v7747_v61 = vpop.eup %7746  ;;  %v1923_v26 = vmul.f32 0.5, %v1922_v58  ;;  %7453 = vmatmul.msk.f32.vlgmr.msra.gmra.mxu3 %vm18160_vm3, %v2200_v49  ;;  %v2354_v15 = vsel %vm2277_vm15, %v11593_v38, 0.0  ;;  %v11614_v32 = vadd.f32 %v11502_v12, %v2251_v11  ;;  %vm1927_vm14 = vweird.f32 %v11574_v51 }
 0x2db   :  { %v7749_v36 = vpop.eup %7748  ;;  %v1904_v42 = vsub.f32 1.5, %v1903_v52  ;;  %v1932_v0 = vmul.f32 %v11595_v59, %v1931_v27  ;;  %v1951_v22 = vmul.f32 %v7747_v61, %v11550_v29  ;;  %vm1956_vm2 = vweird.f32 %v11550_v29  ;;  %2355 = vadd.xlane.f32.xlu2 %v2354_v15  ;;  %vm1928_vm3 = vmor %vm1926_vm6, %vm1927_vm14 }
 0x2dc   :  { %v1924_v58 = vsub.f32 1.5, %v1923_v26  ;;  %v1913_v45 = vmul.f32 0.5, %v1912_v60  ;;  %vm1917_vm9 = vweird.f32 %v11587_v41  ;;  %v1941_v30 = vmul.f32 %v7749_v36, %v11552_v39 }
 0x2dd   :  { %vm1946_vm0 = vweird.f32 %v11552_v39  ;;  %v1905_v11 = vmul.f32 %v11567_v63, %v1904_v42  ;;  %v1933_v52 = vmul.f32 0.5, %v1932_v0  ;;  %vm1937_vm1 = vweird.f32 %v11595_v59  ;;  %vm1918_vm5 = vmor %vm1916_vm7, %vm1917_vm9 }
 0x2de   :  { %v1952_v49 = vmul.f32 %v7747_v61, %v1951_v22  ;;  %v1925_v26 = vmul.f32 %v11574_v51, %v1924_v58  ;;  %v1914_v60 = vsub.f32 1.5, %v1913_v45  ;;  %v1942_v27 = vmul.f32 %v7749_v36, %v1941_v30  ;;  %vm1938_vm6 = vmor %vm1936_vm11, %vm1937_vm1 }
 0x2df   :  { %v11632_v15 = vmul.f32 %v11565_v31, %v11614_v32  ;;  %v1909_v38 = vsel %vm1908_vm8, %v11567_v63, %v1905_v11  ;;  %v1934_v0 = vsub.f32 1.5, %v1933_v52  ;;  %vm1957_vm10 = vweird.f32 %v7747_v61  ;;  %7456 = vmatmul.msk.f32.gmra.mxu1 %vm2277_vm15, %v11614_v32  ;;  %v18164_v63 = vld [vmem:[#allocation39_spill] sm:$0xff] }
 0x2e0   :  { %v1953_v42 = vmul.f32 0.5, %v1952_v49  ;;  %v11640_v22 = vmul.f32 %v1909_v38, %v18162_v9  ;;  %v1929_v58 = vsel %vm1928_vm3, %v11574_v51, %v1925_v26  ;;  %v1915_v45 = vmul.f32 %v11587_v41, %v1914_v60  ;;  %vm1958_vm7 = vmor %vm1956_vm2, %vm1957_vm10 }
 0x2e1   :  { %18161 = vst [vmem:[#allocation79_spill] sm:$0xff] %v11632_v15  ;;  %v1943_v30 = vmul.f32 0.5, %v1942_v27  ;;  %v11647_v11 = vmul.f32 %v1929_v58, %v18164_v63  ;;  %v1935_v18 = vmul.f32 %v11595_v59, %v1934_v0  ;;  %v2357_v51 = vsel %vm2277_vm15, %v11632_v15, 0.0 }
 0x2e2   :  { %18163 = vst [vmem:[#allocation37_spill] sm:$0xff] %v11640_v22  ;;  %v1954_v38 = vsub.f32 1.5, %v1953_v42  ;;  %v2203_v52 = vrot.slane %v11640_v22, 6  ;;  %v1919_v49 = vsel %vm1918_vm5, %v11587_v41, %v1915_v45  ;;  %vm1947_vm12 = vweird.f32 %v7749_v36  ;;  %2358 = vadd.xlane.f32.xlu0 %v2357_v51  ;;  %v18169_v41 = vld [vmem:[#allocation58_spill] sm:$0xff] }
 0x2e3   :  { %18165 = vst [vmem:[#allocation39_spill] sm:$0xff] %v11647_v11  ;;  %v1944_v26 = vsub.f32 1.5, %v1943_v30  ;;  %v11663_v60 = vmul.f32 %v1919_v49, %v18166_v21  ;;  %v1939_v27 = vsel %vm1938_vm6, %v11595_v59, %v1935_v18  ;;  %v18168_v42 = vrot.slane %v11540_v7, 7  ;;  %vm1948_vm11 = vmor %vm1946_vm0, %vm1947_vm12  ;;  %v18173_v21 = vld [vmem:[#allocation59_spill] sm:$0xff] }
 0x2e4   :  { %v1955_v0 = vmul.f32 %v7747_v61, %v1954_v38  ;;  %v11671_v58 = vmul.f32 %v1939_v27, %v18169_v41  ;;  %v2207_v30 = vrot.slane %v11647_v11, 4  ;;  %v18171_v38 = vld [vmem:[#allocation60_spill] sm:$0xff]  ;;  %vm18175_vm10 = vcmask 1043459  }
 0x2e5   :  { %18167 = vst [vmem:[#allocation57_spill] sm:$0xff] %v11663_v60  ;;  %v2202_v9 = vsel %vm2097_vm4, %v18168_v42, %v11570_v10  ;;  %v1945_v20 = vmul.f32 %v7749_v36, %v1944_v26  ;;  %v2205_v59 = vrot.slane %v11663_v60, 5  ;;  %vm18176_vm14 = vcmask 1044484  }
 0x2e6   :  { %18170 = vst [vmem:[#allocation58_spill] sm:$0xff] %v11671_v58  ;;  %v2204_v45 = vsel %vm2100_vm13, %v2203_v52, %v2202_v9  ;;  %v1959_v63 = vsel %vm1958_vm7, %v7747_v61, %v1955_v0  ;;  %v2209_v49 = vrot.slane %v11671_v58, 3  ;;  %vm18177_vm2 = vcmask 1045509  }
 0x2e7   :  { %v1949_v18 = vsel %vm1948_vm11, %v7749_v36, %v1945_v20  ;;  %v11682_v51 = vmul.f32 %v1959_v63, %v18171_v38  ;;  %v2206_v26 = vsel %vm18175_vm10, %v2205_v59, %v2204_v45  ;;  %vm18178_vm9 = vcmask 1046534  }
 0x2e8   :  { %v11686_v29 = vmul.f32 %v1949_v18, %v18173_v21  ;;  %v2208_v52 = vsel %vm18176_vm14, %v2207_v30, %v2206_v26  ;;  %vm18179_vm0 = vcmask 1047559   ;;  %vm18180_vm1 = vcmask 261120  }
 0x2e9   :  { %18172 = vst [vmem:[#allocation60_spill] sm:$0xff] %v11682_v51  ;;  %v2213_v61 = vrot.slane %v11682_v51, 1  ;;  %v2210_v39 = vsel %vm18177_vm2, %v2209_v49, %v2208_v52  ;;  %vm18182_vm8 = vmmov %vm18180_vm1 }
 0x2ea   :  { %18174 = vst [vmem:[#allocation59_spill] sm:$0xff] %v11686_v29  ;;  %v2211_v27 = vrot.slane %v11686_v29, 2  ;;  %vm18185_vm3 = vmmov %vm18180_vm1 }
 0x2eb   :  { %vm18186_vm5 = vmmov %vm18180_vm1 }
 0x2ec   :  { %v2212_v36 = vsel %vm18178_vm9, %v2211_v27, %v2210_v39  ;;  %vm18187_vm6 = vmmov %vm18180_vm1 }
 0x2ed   :  { %v2214_v0 = vsel %vm18179_vm0, %v2213_v61, %v2212_v36  ;;  %vm18188_vm12 = vmmov %vm18180_vm1 }
 0x2ee   :  { %7454 = vmatmul.msk.f32.gmra.mxu3 %vm18180_vm1, %v2214_v0  ;;  %vm18189_vm7 = vmmov %vm18180_vm1 }
 0x2ef   :  { %vm18190_vm11 = vmmov %vm18180_vm1 }
 0x2f0   :  { %vm18191_vm10 = vmmov %vm18180_vm1 }
 0x2f1   :  { %vm18192_vm14 = vmmov %vm18180_vm1 }
 0x2f2   :  { %v2254_v42 = vpop.f32.mrf.mxu0  ;;  %vm18193_vm2 = vmmov %vm18180_vm1 }
 0x2f3   :  { %v11697_v9 = vadd.f32 %v11502_v12, %v2254_v42  ;;  %vm18194_vm9 = vmmov %vm18180_vm1 }
 0x2f4   :  { %vm18195_vm0 = vmmov %vm18180_vm1 }
 0x2f5   :  { %7457 = vmatmul.msk.f32.gmra.mxu1 %vm2277_vm15, %v11697_v9  ;;  %v11703_v41 = vmul.f32 %v11565_v31, %v11697_v9  ;;  %vm18196_vm1 = vmmov %vm18195_vm0 }
 0x2f7   :  { %v2360_v20 = vsel %vm2277_vm15, %v11703_v41, 0.0 }
 0x2f8   :  { %2361 = vadd.xlane.f32.xlu1 %v2360_v20 }
 0x310   :  { %v2257_v45 = vpop.f32.mrf.mxu0 }
 0x311   :  { %v11708_v30 = vadd.f32 %v11502_v12, %v2257_v45 }
 0x313   :  { %7458 = vmatmul.msk.f32.gmra.mxu1 %vm2277_vm15, %v11708_v30  ;;  %v11714_v63 = vmul.f32 %v11565_v31, %v11708_v30 }
 0x315   :  { %v2363_v59 = vsel %vm2277_vm15, %v11714_v63, 0.0 }
 0x316   :  { %2364 = vadd.xlane.f32.xlu2 %v2363_v59 }
 0x321   :  { %v2260_v18 = vpop.f32.mrf.mxu0 }
 0x322   :  { %v11719_v38 = vadd.f32 %v11502_v12, %v2260_v18 }
 0x324   :  { %7459 = vmatmul.msk.f32.gmra.mxu1 %vm2277_vm15, %v11719_v38 }
 0x34c   :  { %v2263_v49 = vpop.f32.mrf.mxu0 }
 0x34d   :  { %v11724_v21 = vadd.f32 %v11502_v12, %v2263_v49 }
 0x34f   :  { %7460 = vmatmul.msk.f32.gmra.mxu1 %vm2277_vm15, %v11724_v21  ;;  %v11730_v26 = vmul.f32 %v11565_v31, %v11724_v21 }
 0x351   :  { %18181 = vst [vmem:[#allocation80_spill] sm:$0xff] %v11730_v26  ;;  %v2369_v52 = vsel %vm2277_vm15, %v11730_v26, 0.0 }
 0x352   :  { %2370 = vadd.xlane.f32.xlu1 %v2369_v52 }
 0x354   :  { %v11734_v61 = vpop.f32.mrf.mxu1 }
 0x355   :  { %v2442_v39 = vperm.slane %v11734_v61, 0  ;;  %v2388_v27 = vrot.slane %v11734_v61, 3  ;;  %v2386_v18 = vrot.slane %v11734_v61, 1  ;;  %v2391_v49 = vrot.slane %v11734_v61, 6 }
 0x357   :  { %v2570_v36 = vmul.f32 %v2442_v39, %v9985_v34  ;;  %v2445_v42 = vperm.slane %v2388_v27, 0  ;;  %v2389_v34 = vrot.slane %v11734_v61, 4 }
 0x359   :  { %v2634_v0 = vsel %vm18182_vm8, %v2570_v36, 0.0  ;;  %v2573_v59 = vmul.f32 %v2445_v42, %v10065_v53  ;;  %v2443_v36 = vperm.slane %v2386_v18, 0  ;;  %v2446_v26 = vperm.slane %v2389_v34, 0  ;;  %vm18197_vm8 = vmmov %vm18195_vm0 }
 0x35a   :  { %2635 = vadd.xlane.f32.xlu1 %v2634_v0  ;;  %v2448_v0 = vperm.slane %v2391_v49, 0  ;;  %v2392_v49 = vrot.slane %v11734_v61, 7 }
 0x35b   :  { %v2643_v27 = vsel %vm18185_vm3, %v2573_v59, 0.0  ;;  %v2574_v18 = vmul.f32 %v2446_v26, %v10124_v14  ;;  %vm18198_vm3 = vmmov %vm18195_vm0 }
 0x35c   :  { %v11755_v42 = vpop.f32.mrf.mxu1  ;;  %v2576_v53 = vmul.f32 %v2448_v0, %v10127_v35  ;;  %v2449_v35 = vperm.slane %v2392_v49, 0  ;;  %v2387_v49 = vrot.slane %v11734_v61, 2 }
 0x35d   :  { %v2266_v20 = vpop.f32.mrf.mxu3  ;;  %v2393_v15 = vrot.slane %v11755_v42, 1 }
 0x35e   :  { %v11741_v45 = vadd.f32 %v11502_v12, %v2266_v20  ;;  %v2571_v20 = vmul.f32 %v2443_v36, %v10031_v17  ;;  %v2274_v17 = vld [vmem:[%s17335_s3 + $0x10] sm:$0xff] }
 0x35f   :  { %v2451_v59 = vperm.slane %v2393_v15, 0 }
 0x360   :  { %18183 = vst [vmem:[#allocation81_spill] sm:$0xff] %v11741_v45  ;;  %7461 = vmatmul.msk.f32.gmra.mxu1 %vm2277_vm15, %v11741_v45  ;;  %v11750_v52 = vmul.f32 %v11565_v31, %v11741_v45  ;;  %v2637_v45 = vsel %vm18186_vm5, %v2571_v20, 0.0  ;;  %v2646_v20 = vsel %vm18188_vm12, %v2574_v18, 0.0  ;;  %v11786_v18 = vmul.f32 %v11565_v31, %v11719_v38  ;;  %vm18199_vm5 = vmmov %vm18195_vm0 }
 0x361   :  { %vm18202_vm12 = vmmov %vm18195_vm0 }
 0x362   :  { %18184 = vst [vmem:[#allocation82_spill] sm:$0xff] %v11750_v52  ;;  %v2372_v39 = vsel %vm2277_vm15, %v11750_v52, 0.0  ;;  %2644 = vadd.xlane.f32.xlu1 %v2643_v27  ;;  %v2652_v52 = vsel %vm18187_vm6, %v2576_v53, 0.0  ;;  %v2396_v27 = vrot.slane %v11755_v42, 4  ;;  %vm18200_vm6 = vmmov %vm18195_vm0 }
 0x363   :  { %2373 = vadd.xlane.f32.xlu2 %v2372_v39  ;;  %v2579_v39 = vmul.f32 %v2451_v59, %v10193_v5  ;;  %v2399_v59 = vrot.slane %v11755_v42, 7 }
 0x364   :  { %v2454_v15 = vperm.slane %v2396_v27, 0 }
 0x365   :  { %v2661_v34 = vsel %vm18189_vm7, %v2579_v39, 0.0  ;;  %vm18203_vm7 = vmmov %vm18195_vm0 }
 0x36a   :  { %2653 = vadd.xlane.f32.xlu1 %v2652_v52  ;;  %v2582_v52 = vmul.f32 %v2454_v15, %v10333_v16  ;;  %v2444_v15 = vperm.slane %v2387_v49, 0 }
 0x36b   :  { %2638 = vadd.xlane.f32.xlu2 %v2637_v45  ;;  %v2394_v45 = vrot.slane %v11755_v42, 2 }
 0x36d   :  { %v2452_v27 = vperm.slane %v2394_v45, 0  ;;  %v2572_v45 = vmul.f32 %v2444_v15, %v10049_v19 }
 0x371   :  { %v2269_v36 = vpop.f32.mrf.mxu3 }
 0x372   :  { %v11768_v0 = vadd.f32 %v11502_v12, %v2269_v36  ;;  %2662 = vadd.xlane.f32.xlu1 %v2661_v34  ;;  %v2577_v12 = vmul.f32 %v2449_v35, %v10247_v37  ;;  %v2670_v36 = vsel %vm18191_vm10, %v2582_v52, 0.0  ;;  %v11791_v35 = vpop.f32.mrf.mxu1  ;;  %v2366_v34 = vsel %vm2277_vm15, %v11786_v18, 0.0  ;;  %vm18208_vm10 = vmmov %vm18195_vm0 }
 0x373   :  { %2647 = vadd.xlane.f32.xlu2 %v2646_v20  ;;  %v2457_v20 = vperm.slane %v2399_v59, 0  ;;  %v2390_v52 = vrot.slane %v11734_v61, 5  ;;  %v2404_v15 = vrot.slane %v11791_v35, 5 }
 0x374   :  { %7462 = vmatmul.msk.f32.vlgmr.msrb.gmra.mxu3 %vm2277_vm15, %v11768_v0  ;;  %v11776_v53 = vmul.f32 %v11565_v31, %v11768_v0  ;;  %v2655_v39 = vsel %vm18190_vm11, %v2577_v12, 0.0  ;;  %v2580_v31 = vmul.f32 %v2452_v27, %v10253_v43  ;;  %v2401_v12 = vrot.slane %v11791_v35, 2  ;;  %vm18204_vm11 = vmmov %vm18195_vm0 }
 0x375   :  { %v2585_v16 = vmul.f32 %v2457_v20, %v10383_v47  ;;  %v2640_v27 = vsel %vm18194_vm9, %v2572_v45, 0.0  ;;  %vm18214_vm9 = vmmov %vm18195_vm0 }
 0x376   :  { %v2375_v26 = vsel %vm2277_vm15, %v11776_v53, 0.0  ;;  %v2664_v59 = vsel %vm18192_vm14, %v2580_v31, 0.0  ;;  %v2460_v49 = vperm.slane %v2401_v12, 0  ;;  %v2463_v12 = vperm.slane %v2404_v15, 0  ;;  %vm18209_vm14 = vmmov %vm18195_vm0 }
 0x377   :  { %2376 = vadd.xlane.f32.xlu0 %v2375_v26  ;;  %v2397_v26 = vrot.slane %v11755_v42, 5 }
 0x378   :  { %v2588_v47 = vmul.f32 %v2460_v49, %v10449_v1 }
 0x37a   :  { %2671 = vadd.xlane.f32.xlu1 %v2670_v36  ;;  %v2679_v36 = vsel %vm18193_vm2, %v2585_v16, 0.0  ;;  %v2688_v16 = vsel %vm18196_vm1, %v2588_v47, 0.0  ;;  %vm18210_vm2 = vmmov %vm18195_vm0 }
 0x37b   :  { %2656 = vadd.xlane.f32.xlu2 %v2655_v39  ;;  %v2455_v39 = vperm.slane %v2397_v26, 0  ;;  %v2458_v26 = vperm.slane %v11791_v35, 0  ;;  %vm18215_vm1 = vmmov %vm18195_vm0 }
 0x37d   :  { %v2583_v20 = vmul.f32 %v2455_v39, %v10346_v46  ;;  %v2402_v39 = vrot.slane %v11791_v35, 3 }
 0x37f   :  { %2367 = vadd.xlane.f32.xlu0 %v2366_v34  ;;  %v2447_v34 = vperm.slane %v2390_v52, 0  ;;  %v2673_v31 = vsel %vm18195_vm0, %v2583_v20, 0.0  ;;  %v2450_v52 = vperm.slane %v11755_v42, 0  ;;  %v2461_v47 = vperm.slane %v2402_v39, 0 }
 0x381   :  { %v2575_v61 = vmul.f32 %v2447_v34, %v10140_v4  ;;  %v2578_v49 = vmul.f32 %v2450_v52, %v10223_v57 }
 0x382   :  { %2680 = vadd.xlane.f32.xlu1 %v2679_v36  ;;  %v2591_v36 = vmul.f32 %v2463_v12, %v10606_v25  ;;  %v2405_v12 = vrot.slane %v11791_v35, 6  ;;  %v18205_v25 = vld [vmem:[#allocation46_spill] sm:$0xff] }
 0x383   :  { %2665 = vadd.xlane.f32.xlu2 %v2664_v59  ;;  %v2649_v45 = vsel %vm18197_vm8, %v2575_v61, 0.0  ;;  %v2586_v59 = vmul.f32 %v2458_v26, %v10468_v33  ;;  %v2658_v15 = vsel %vm18200_vm6, %v2578_v49, 0.0  ;;  %v2589_v26 = vmul.f32 %v2461_v47, %v10603_v44  ;;  %v18207_v44 = vld [vmem:[#allocation72_spill] sm:$0xff]  ;;  %v18217_v33 = vld [vmem:[#allocation45_spill] sm:$0xff]  ;;  %vm18218_vm8 = vmmov %vm18195_vm0 }
 0x384   :  { %v2697_v20 = vsel %vm18199_vm5, %v2591_v36, 0.0  ;;  %v2398_v36 = vrot.slane %v11755_v42, 6  ;;  %vm18220_vm5 = vmmov %vm18195_vm0 }
 0x385   :  { %v2682_v34 = vsel %vm18198_vm3, %v2586_v59, 0.0  ;;  %v18201_v59 = vld [vmem:[#allocation70_spill] sm:$0xff]  ;;  %v2691_v49 = vsel %vm18202_vm12, %v2589_v26, 0.0  ;;  %vm18219_vm3 = vmmov %vm18195_vm0 }
 0x386   :  { %vm18222_vm6 = vmmov %vm18195_vm0 }
 0x387   :  { %2641 = vadd.xlane.f32.xlu0 %v2640_v27  ;;  %v2395_v27 = vrot.slane %v11755_v42, 3  ;;  %vm18223_vm12 = vmmov %vm18195_vm0 }
 0x38a   :  { %2689 = vadd.xlane.f32.xlu1 %v2688_v16 }
 0x38b   :  { %2674 = vadd.xlane.f32.xlu2 %v2673_v31  ;;  %v2453_v31 = vperm.slane %v2395_v27, 0  ;;  %v2464_v27 = vperm.slane %v2405_v12, 0 }
 0x38d   :  { %v2581_v39 = vmul.f32 %v2453_v31, %v18201_v59  ;;  %v2592_v1 = vmul.f32 %v2464_v27, %v18205_v25 }
 0x38f   :  { %2650 = vadd.xlane.f32.xlu0 %v2649_v45  ;;  %v2667_v47 = vsel %vm18204_vm11, %v2581_v39, 0.0  ;;  %v2700_v12 = vsel %vm18208_vm10, %v2592_v1, 0.0  ;;  %vm18228_vm11 = vmmov %vm18195_vm0 }
 0x390   :  { %v11821_v61 = vpop.f32.mrf.mxu1  ;;  %vm18229_vm10 = vmmov %vm18195_vm0 }
 0x391   :  { %v2466_v16 = vperm.slane %v11821_v61, 0  ;;  %v2409_v45 = vrot.slane %v11821_v61, 3  ;;  %v2412_v42 = vrot.slane %v11821_v61, 6 }
 0x392   :  { %2698 = vadd.xlane.f32.xlu1 %v2697_v20 }
 0x393   :  { %2683 = vadd.xlane.f32.xlu2 %v2682_v34  ;;  %v2594_v52 = vmul.f32 %v2466_v16, %v10661_v28  ;;  %v2469_v20 = vperm.slane %v2409_v45, 0  ;;  %v2407_v16 = vrot.slane %v11821_v61, 1  ;;  %v18206_v28 = vld [vmem:[#allocation50_spill] sm:$0xff] }
 0x395   :  { %v2706_v34 = vsel %vm18203_vm7, %v2594_v52, 0.0  ;;  %v2597_v31 = vmul.f32 %v2469_v20, %v18206_v28  ;;  %v2400_v52 = vrot.slane %v11791_v35, 1  ;;  %v2467_v45 = vperm.slane %v2407_v16, 0  ;;  %v18211_v20 = vld [vmem:[#allocation49_spill] sm:$0xff]  ;;  %v18213_v16 = vld [vmem:[#allocation75_spill] sm:$0xff]  ;;  %vm18224_vm7 = vmmov %vm18195_vm0 }
 0x396   :  { %v18212_v28 = vld [vmem:[#allocation53_spill] sm:$0xff] }
 0x397   :  { %2659 = vadd.xlane.f32.xlu0 %v2658_v15  ;;  %v2456_v15 = vperm.slane %v2398_v36, 0  ;;  %v2715_v39 = vsel %vm18209_vm14, %v2597_v31, 0.0  ;;  %v2472_v36 = vperm.slane %v2412_v42, 0  ;;  %v2459_v27 = vperm.slane %v2400_v52, 0  ;;  %vm18230_vm14 = vmmov %vm18195_vm0 }
 0x398   :  { %v2403_v31 = vrot.slane %v11791_v35, 4 }
 0x399   :  { %v2584_v26 = vmul.f32 %v2456_v15, %v18207_v44  ;;  %v2410_v15 = vrot.slane %v11821_v61, 4  ;;  %v2600_v25 = vmul.f32 %v2472_v36, %v18212_v28  ;;  %v2413_v28 = vrot.slane %v11821_v61, 7 }
 0x39a   :  { %2707 = vadd.xlane.f32.xlu1 %v2706_v34 }
 0x39b   :  { %2692 = vadd.xlane.f32.xlu2 %v2691_v49  ;;  %v2676_v34 = vsel %vm18210_vm2, %v2584_v26, 0.0  ;;  %v2724_v26 = vsel %vm18195_vm0, %v2600_v25, 0.0  ;;  %vm18234_vm2 = vmmov %vm18195_vm0 }
 0x39f   :  { %2668 = vadd.xlane.f32.xlu0 %v2667_v47  ;;  %v2595_v47 = vmul.f32 %v2467_v45, %v18211_v20  ;;  %v18216_v20 = vld [vmem:[#allocation52_spill] sm:$0xff] }
 0x3a1   :  { %v11841_v49 = vpop.f32.mrf.mxu1  ;;  %v2709_v42 = vsel %vm18214_vm9, %v2595_v47, 0.0  ;;  %vm18235_vm9 = vmmov %vm18195_vm0 }
 0x3a2   :  { %2716 = vadd.xlane.f32.xlu1 %v2715_v39  ;;  %v2414_v1 = vrot.slane %v11841_v49, 1  ;;  %v2470_v39 = vperm.slane %v2410_v15, 0  ;;  %v2406_v15 = vrot.slane %v11791_v35, 7  ;;  %v2420_v35 = vrot.slane %v11841_v49, 7 }
 0x3a3   :  { %2701 = vadd.xlane.f32.xlu2 %v2700_v12  ;;  %v2587_v12 = vmul.f32 %v2459_v27, %v18213_v16  ;;  %v2417_v16 = vrot.slane %v11841_v49, 4 }
 0x3a4   :  { %v2475_v52 = vperm.slane %v2414_v1, 0  ;;  %v2598_v36 = vmul.f32 %v2470_v39, %v18216_v20  ;;  %v2473_v1 = vperm.slane %v2413_v28, 0  ;;  %v2465_v39 = vperm.slane %v2406_v15, 0 }
 0x3a5   :  { %v2685_v45 = vsel %vm18215_vm1, %v2587_v12, 0.0  ;;  %v2408_v28 = vrot.slane %v11821_v61, 2  ;;  %v2481_v15 = vperm.slane %v2420_v35, 0  ;;  %vm18239_vm1 = vmmov %vm18195_vm0 }
 0x3a6   :  { %v2603_v27 = vmul.f32 %v2475_v52, %v10877_v56  ;;  %v2718_v25 = vsel %vm18218_vm8, %v2598_v36, 0.0  ;;  %v2415_v52 = vrot.slane %v11841_v49, 2  ;;  %vm18240_vm8 = vmmov %vm18195_vm0 }
 0x3a7   :  { %2677 = vadd.xlane.f32.xlu0 %v2676_v34  ;;  %v2462_v34 = vperm.slane %v2403_v31, 0  ;;  %v2478_v31 = vperm.slane %v2417_v16, 0 }
 0x3a8   :  { %v2733_v12 = vsel %vm18219_vm3, %v2603_v27, 0.0  ;;  %v2476_v16 = vperm.slane %v2415_v52, 0  ;;  %v2411_v52 = vrot.slane %v11821_v61, 5  ;;  %vm18243_vm3 = vmmov %vm18195_vm0 }
 0x3a9   :  { %v2590_v47 = vmul.f32 %v2462_v34, %v18217_v33  ;;  %v18221_v34 = vld [vmem:[#allocation48_spill] sm:$0xff] }
 0x3aa   :  { %2725 = vadd.xlane.f32.xlu1 %v2724_v26  ;;  %v2601_v26 = vmul.f32 %v2473_v1, %v10934_v8  ;;  %v2593_v36 = vmul.f32 %v2465_v39, %v18221_v34  ;;  %v2468_v1 = vperm.slane %v2408_v28, 0  ;;  %v2418_v39 = vrot.slane %v11841_v49, 5  ;;  %v18227_v8 = vld [vmem:[#allocation51_spill] sm:$0xff] }
 0x3ab   :  { %2710 = vadd.xlane.f32.xlu2 %v2709_v42  ;;  %v2694_v42 = vsel %vm18220_vm5, %v2590_v47, 0.0  ;;  %vm18244_vm5 = vmmov %vm18195_vm0 }
 0x3ac   :  { %v2727_v27 = vsel %vm18222_vm6, %v2601_v26, 0.0  ;;  %v2596_v26 = vmul.f32 %v2468_v1, %v18227_v8  ;;  %v2479_v35 = vperm.slane %v2418_v39, 0  ;;  %v18233_v1 = vld [vmem:[#allocation54_spill] sm:$0xff]  ;;  %vm18245_vm6 = vmmov %vm18195_vm0 }
 0x3ae   :  { %v2712_v28 = vsel %vm18230_vm14, %v2596_v26, 0.0  ;;  %vm18253_vm14 = vmmov %vm18195_vm0 }
 0x3af   :  { %2686 = vadd.xlane.f32.xlu0 %v2685_v45  ;;  %v2606_v45 = vmul.f32 %v2478_v31, %v10972_v3  ;;  %v18225_v31 = vld [vmem:[#allocation15_spill] sm:$0xff]  ;;  %v18226_v3 = vld [vmem:[#allocation22_spill] sm:$0xff] }
 0x3b0   :  { %v2609_v56 = vmul.f32 %v2481_v15, %v18226_v3  ;;  %v18232_v15 = vld [vmem:[#allocation18_spill] sm:$0xff] }
 0x3b1   :  { %v2742_v47 = vsel %vm18223_vm12, %v2606_v45, 0.0  ;;  %vm18247_vm12 = vmmov %vm18195_vm0 }
 0x3b2   :  { %2734 = vadd.xlane.f32.xlu1 %v2733_v12  ;;  %v11871_v12 = vpop.xlane.xlu1 %2361 }
 0x3b3   :  { %2719 = vadd.xlane.f32.xlu2 %v2718_v25  ;;  %v2703_v25 = vsel %vm18224_vm7, %v2593_v36, 0.0  ;;  %v2751_v36 = vsel %vm18229_vm10, %v2609_v56, 0.0  ;;  %vm18248_vm7 = vmmov %vm18195_vm0 }
 0x3b4   :  { %vm18252_vm10 = vmmov %vm18195_vm0 }
 0x3b7   :  { %2695 = vadd.xlane.f32.xlu0 %v2694_v42  ;;  %v2604_v42 = vmul.f32 %v2476_v16, %v18225_v31 }
 0x3b9   :  { %v2736_v45 = vsel %vm18228_vm11, %v2604_v42, 0.0  ;;  %vm18249_vm11 = vmmov %vm18195_vm0 }
 0x3ba   :  { %2743 = vadd.xlane.f32.xlu1 %v2742_v47  ;;  %v11881_v47 = vpop.xlane.xlu2 %2355 }
 0x3bb   :  { %2728 = vadd.xlane.f32.xlu2 %v2727_v27  ;;  %v2471_v27 = vperm.slane %v2411_v52, 0  ;;  %v2474_v52 = vperm.slane %v11841_v49, 0 }
 0x3bd   :  { %v2599_v3 = vmul.f32 %v2471_v27, %v18233_v1  ;;  %v18238_v1 = vld [vmem:[#allocation14_spill] sm:$0xff] }
 0x3be   :  { %v2602_v20 = vmul.f32 %v2474_v52, %v18238_v1 }
 0x3bf   :  { %2704 = vadd.xlane.f32.xlu0 %v2703_v25  ;;  %v2607_v25 = vmul.f32 %v2479_v35, %v18232_v15  ;;  %v2721_v26 = vsel %vm18235_vm9, %v2599_v3, 0.0  ;;  %v18237_v15 = vld [vmem:[#allocation25_spill] sm:$0xff]  ;;  %v2416_v3 = vrot.slane %v11841_v49, 3  ;;  %vm18255_vm9 = vmmov %vm18195_vm0 }
 0x3c1   :  { %v2745_v61 = vsel %vm18234_vm2, %v2607_v25, 0.0  ;;  %vm18254_vm2 = vmmov %vm18195_vm0 }
 0x3c2   :  { %2752 = vadd.xlane.f32.xlu1 %v2751_v36 }
 0x3c3   :  { %2737 = vadd.xlane.f32.xlu2 %v2736_v45  ;;  %v11894_v45 = vpop.xlane.xlu2 %2364 }
 0x3c5   :  { %v11883_v16 = vpop.xlane.xlu1 %2370 }
 0x3c6   :  { %18231 = vst [vmem:[#allocation83_spill] sm:$0xff] %v11883_v16 }
 0x3c7   :  { %2713 = vadd.xlane.f32.xlu0 %v2712_v28  ;;  %v18236_v28 = vld [vmem:[#allocation21_spill] sm:$0xff] }
 0x3cb   :  { %2746 = vadd.xlane.f32.xlu2 %v2745_v61 }
 0x3cc   :  { %v11888_v42 = vpop.f32.mrf.mxu1 }
 0x3cd   :  { %v2422_v56 = vrot.slane %v11888_v42, 2  ;;  %v2482_v39 = vperm.slane %v11888_v42, 0  ;;  %v11896_v35 = vpop.xlane.xlu1 %2635  ;;  %v2425_v25 = vrot.slane %v11888_v42, 5  ;;  %v2423_v61 = vrot.slane %v11888_v42, 3 }
 0x3cf   :  { %v2484_v36 = vperm.slane %v2422_v56, 0  ;;  %2722 = vadd.xlane.f32.xlu0 %v2721_v26  ;;  %v2610_v27 = vmul.f32 %v2482_v39, %v18236_v28  ;;  %v2487_v56 = vperm.slane %v2425_v25, 0  ;;  %v2485_v26 = vperm.slane %v2423_v61, 0 }
 0x3d0   :  { %v2730_v39 = vsel %vm18240_vm8, %v2602_v20, 0.0  ;;  %v2477_v28 = vperm.slane %v2416_v3, 0  ;;  %v2419_v25 = vrot.slane %v11841_v49, 6  ;;  %vm18257_vm8 = vmmov %vm18195_vm0 }
 0x3d1   :  { %v2612_v31 = vmul.f32 %v2484_v36, %v18237_v15  ;;  %v2754_v34 = vsel %vm18239_vm1, %v2610_v27, 0.0  ;;  %v2615_v33 = vmul.f32 %v2487_v56, %v11272_v40  ;;  %v2613_v52 = vmul.f32 %v2485_v26, %v11223_v55  ;;  %v18242_v15 = vld [vmem:[#allocation17_spill] sm:$0xff]  ;;  %vm18256_vm1 = vmmov %vm18195_vm0 }
 0x3d2   :  { %v2605_v27 = vmul.f32 %v2477_v28, %v18242_v15  ;;  %v2480_v56 = vperm.slane %v2419_v25, 0  ;;  %v2421_v25 = vrot.slane %v11888_v42, 1 }
 0x3d3   :  { %v2760_v8 = vsel %vm18195_vm0, %v2612_v31, 0.0  ;;  %2755 = vadd.xlane.f32.xlu2 %v2754_v34  ;;  %v2426_v31 = vrot.slane %v11888_v42, 6  ;;  %v2763_v20 = vsel %vm18244_vm5, %v2613_v52, 0.0  ;;  %vm18259_vm5 = vmmov %vm18195_vm0 }
 0x3d4   :  { %2761 = vadd.xlane.f32.xlu1 %v2760_v8  ;;  %v2769_v8 = vsel %vm18243_vm3, %v2615_v33, 0.0  ;;  %v2739_v3 = vsel %vm18245_vm6, %v2605_v27, 0.0  ;;  %v2483_v15 = vperm.slane %v2421_v25, 0  ;;  %vm18258_vm3 = vmmov %vm18195_vm0 }
 0x3d5   :  { %v11910_v36 = vpop.xlane.xlu1 %2644  ;;  %v2488_v34 = vperm.slane %v2426_v31, 0  ;;  %vm18261_vm6 = vmmov %vm18195_vm0 }
 0x3d6   :  { %v11908_v44 = vpop.xlane.xlu2 %2373 }
 0x3d7   :  { %2731 = vadd.xlane.f32.xlu0 %v2730_v39  ;;  %18241 = vst [vmem:[#allocation84_spill] sm:$0xff] %v11908_v44  ;;  %v2616_v28 = vmul.f32 %v2488_v34, %v11289_v2 }
 0x3db   :  { %2764 = vadd.xlane.f32.xlu2 %v2763_v20  ;;  %v18246_v20 = vld [vmem:[#allocation20_spill] sm:$0xff] }
 0x3dc   :  { %2770 = vadd.xlane.f32.xlu1 %v2769_v8  ;;  %v11930_v8 = vpop.xlane.xlu0 %2358  ;;  %v2608_v27 = vmul.f32 %v2480_v56, %v18246_v20 }
 0x3dd   :  { %v11918_v61 = vpop.f32.mrf.mxu1  ;;  %v11923_v39 = vpop.xlane.xlu1 %2653 }
 0x3de   :  { %v11921_v26 = vpop.xlane.xlu2 %2638  ;;  %v2490_v49 = vperm.slane %v11918_v61, 0  ;;  %v2430_v33 = vrot.slane %v11918_v61, 3  ;;  %v2428_v52 = vrot.slane %v11918_v61, 1  ;;  %v2748_v2 = vsel %vm18249_vm11, %v2608_v27, 0.0  ;;  %vm18265_vm11 = vmmov %vm18195_vm0 }
 0x3df   :  { %2740 = vadd.xlane.f32.xlu0 %v2739_v3  ;;  %v2772_v3 = vsel %vm18247_vm12, %v2616_v28, 0.0  ;;  %v2431_v28 = vrot.slane %v11918_v61, 4  ;;  %vm18262_vm12 = vmmov %vm18195_vm0 }
 0x3e0   :  { %v2618_v31 = vmul.f32 %v2490_v49, %v11319_v54  ;;  %v2493_v55 = vperm.slane %v2430_v33, 0  ;;  %v2491_v34 = vperm.slane %v2428_v52, 0  ;;  %v2433_v54 = vrot.slane %v11918_v61, 6  ;;  %v18251_v52 = vld [vmem:[#allocation23_spill] sm:$0xff] }
 0x3e2   :  { %v2778_v40 = vsel %vm18248_vm7, %v2618_v31, 0.0  ;;  %v2621_v49 = vmul.f32 %v2493_v55, %v11412_v13  ;;  %v2619_v56 = vmul.f32 %v2491_v34, %v11364_v6  ;;  %v2424_v31 = vrot.slane %v11888_v42, 4  ;;  %vm18263_vm7 = vmmov %vm18195_vm0 }
 0x3e3   :  { %2773 = vadd.xlane.f32.xlu2 %v2772_v3  ;;  %v2496_v25 = vperm.slane %v2433_v54, 0  ;;  %v2494_v55 = vperm.slane %v2431_v28, 0 }
 0x3e4   :  { %2779 = vadd.xlane.f32.xlu1 %v2778_v40  ;;  %v2611_v40 = vmul.f32 %v2483_v15, %v18251_v52  ;;  %v2781_v27 = vsel %vm18253_vm14, %v2619_v56, 0.0  ;;  %v2486_v34 = vperm.slane %v2424_v31, 0  ;;  %v2434_v52 = vrot.slane %v11918_v61, 7  ;;  %vm18267_vm14 = vmmov %vm18195_vm0 }
 0x3e5   :  { %v11943_v20 = vpop.xlane.xlu1 %2662  ;;  %v2624_v6 = vmul.f32 %v2496_v25, %v11532_v50  ;;  %v2622_v15 = vmul.f32 %v2494_v55, %v11505_v48  ;;  %v2427_v56 = vrot.slane %v11888_v42, 7 }
 0x3e6   :  { %v11937_v1 = vpop.xlane.xlu2 %2647  ;;  %v2757_v3 = vsel %vm18254_vm2, %v2611_v40, 0.0  ;;  %v2614_v54 = vmul.f32 %v2486_v34, %v11275_v23  ;;  %v2497_v31 = vperm.slane %v2434_v52, 0  ;;  %vm18268_vm2 = vmmov %vm18195_vm0 }
 0x3e7   :  { %2749 = vadd.xlane.f32.xlu0 %v2748_v2  ;;  %v2787_v2 = vsel %vm18252_vm10, %v2621_v49, 0.0  ;;  %v2796_v28 = vsel %vm18255_vm9, %v2624_v6, 0.0  ;;  %v2790_v40 = vsel %vm18195_vm0, %v2622_v15, 0.0  ;;  %vm18266_vm10 = vmmov %vm18195_vm0 }
 0x3e8   :  { %vm18269_vm9 = vmmov %vm18195_vm0 }
 0x3ea   :  { %v11945_v33 = vpop.xlane.xlu0 %2376 }
 0x3eb   :  { %18250 = vst [vmem:[#allocation85_spill] sm:$0xff] %v11945_v33  ;;  %2782 = vadd.xlane.f32.xlu2 %v2781_v27  ;;  %v2489_v27 = vperm.slane %v2427_v56, 0 }
 0x3ec   :  { %2788 = vadd.xlane.f32.xlu1 %v2787_v2  ;;  %v2766_v2 = vsel %vm18256_vm1, %v2614_v54, 0.0  ;;  %v2429_v54 = vrot.slane %v11918_v61, 2 }
 0x3ed   :  { %v11957_v46 = vpop.xlane.xlu1 %2671  ;;  %v2617_v52 = vmul.f32 %v2489_v27, %v11343_v62 }
 0x3ee   :  { %v11952_v13 = vpop.xlane.xlu2 %2656  ;;  %v2492_v48 = vperm.slane %v2429_v54, 0 }
 0x3ef   :  { %2758 = vadd.xlane.f32.xlu0 %v2757_v3  ;;  %v2625_v3 = vmul.f32 %v2497_v31, %v11547_v24  ;;  %v2775_v24 = vsel %vm18258_vm3, %v2617_v52, 0.0 }
 0x3f2   :  { %v11959_v49 = vpop.xlane.xlu0 %2367 }
 0x3f3   :  { %2791 = vadd.xlane.f32.xlu2 %v2790_v40  ;;  %v2799_v40 = vsel %vm18257_vm8, %v2625_v3, 0.0 }
 0x3f4   :  { %2797 = vadd.xlane.f32.xlu1 %v2796_v28 }
 0x3f5   :  { %v11971_v34 = vpop.xlane.xlu1 %2680 }
 0x3f6   :  { %v11968_v55 = vpop.xlane.xlu2 %2665 }
 0x3f7   :  { %2767 = vadd.xlane.f32.xlu0 %v2766_v2  ;;  %v11966_v25 = vpop.f32.mrf.mxu3 }
 0x3f8   :  { %v2435_v42 = vrot.slane %v11966_v25, 1  ;;  %v2436_v6 = vrot.slane %v11966_v25, 2  ;;  %v2438_v56 = vrot.slane %v11966_v25, 4  ;;  %v2439_v62 = vrot.slane %v11966_v25, 5 }
 0x3f9   :  { %v2441_v54 = vrot.slane %v11966_v25, 7 }
 0x3fa   :  { %v11975_v15 = vpop.xlane.xlu0 %2641  ;;  %v2499_v28 = vperm.slane %v2435_v42, 0  ;;  %v2500_v2 = vperm.slane %v2436_v6, 0  ;;  %v2502_v23 = vperm.slane %v2438_v56, 0  ;;  %v18260_v6 = vld [vmem:[#allocation32_spill] sm:$0xff] }
 0x3fb   :  { %2800 = vadd.xlane.f32.xlu2 %v2799_v40  ;;  %v2432_v40 = vrot.slane %v11918_v61, 5 }
 0x3fc   :  { %v2627_v31 = vmul.f32 %v2499_v28, %v11540_v7  ;;  %v2628_v42 = vmul.f32 %v2500_v2, %v11640_v22  ;;  %v2620_v28 = vmul.f32 %v2492_v48, %v18260_v6  ;;  %v2630_v52 = vmul.f32 %v2502_v23, %v11647_v11  ;;  %v18264_v11 = vld [vmem:[#allocation55_spill] sm:$0xff] }
 0x3fd   :  { %v11988_v59 = vpop.xlane.xlu1 %2689  ;;  %v2505_v22 = vperm.slane %v2441_v54, 0  ;;  %v2498_v54 = vperm.slane %v11966_v25, 0 }
 0x3fe   :  { %v2805_v50 = vsel %vm18259_vm5, %v2627_v31, 0.0  ;;  %v11984_v27 = vpop.xlane.xlu2 %2674  ;;  %v2784_v56 = vsel %vm18262_vm12, %v2620_v28, 0.0  ;;  %v2814_v2 = vsel %vm18263_vm7, %v2630_v52, 0.0  ;;  %v2495_v31 = vperm.slane %v2432_v40, 0 }
 0x3ff   :  { %2776 = vadd.xlane.f32.xlu0 %v2775_v24  ;;  %2806 = vadd.xlane.f32.xlu1 %v2805_v50  ;;  %v2808_v50 = vsel %vm18261_vm6, %v2628_v42, 0.0  ;;  %v2503_v24 = vperm.slane %v2439_v62, 0  ;;  %v2633_v62 = vmul.f32 %v2505_v22, %v11682_v51 }
 0x400   :  { %v2623_v42 = vmul.f32 %v2495_v31, %v18264_v11 }
 0x401   :  { %v2631_v23 = vmul.f32 %v2503_v24, %v11671_v58  ;;  %v2823_v40 = vsel %vm18267_vm14, %v2633_v62, 0.0 }
 0x402   :  { %v11990_v3 = vpop.xlane.xlu0 %2650  ;;  %v2793_v52 = vsel %vm18266_vm10, %v2623_v42, 0.0 }
 0x403   :  { %2809 = vadd.xlane.f32.xlu2 %v2808_v50  ;;  %v2817_v28 = vsel %vm18265_vm11, %v2631_v23, 0.0 }
 0x405   :  { %v12002_v48 = vpop.xlane.xlu1 %2698 }
 0x406   :  { %v11999_v7 = vpop.xlane.xlu2 %2683 }
 0x407   :  { %2785 = vadd.xlane.f32.xlu0 %v2784_v56  ;;  %2815 = vadd.xlane.f32.xlu1 %v2814_v2  ;;  %v2626_v56 = vmul.f32 %v2498_v54, %v11570_v10  ;;  %v2437_v2 = vrot.slane %v11966_v25, 3 }
 0x409   :  { %v2802_v31 = vsel %vm18268_vm2, %v2626_v56, 0.0  ;;  %v2501_v23 = vperm.slane %v2437_v2, 0  ;;  %v18270_v2 = vld [vmem:[#allocation77_spill] sm:$0xff] }
 0x40a   :  { %v12004_v61 = vpop.xlane.xlu0 %2659 }
 0x40b   :  { %2818 = vadd.xlane.f32.xlu2 %v2817_v28  ;;  %v2629_v28 = vmul.f32 %v2501_v23, %v11663_v60  ;;  %v18277_v60 = vld [vmem:[#allocation81_spill] sm:$0xff] }
 0x40d   :  { %v12018_v22 = vpop.xlane.xlu1 %2707  ;;  %v2811_v54 = vsel %vm18269_vm9, %v2629_v28, 0.0 }
 0x40e   :  { %v12012_v50 = vpop.xlane.xlu2 %2692 }
 0x40f   :  { %2794 = vadd.xlane.f32.xlu0 %v2793_v52  ;;  %2824 = vadd.xlane.f32.xlu1 %v2823_v40  ;;  %v2440_v52 = vrot.slane %v11966_v25, 6 }
 0x411   :  { %v2504_v51 = vperm.slane %v2440_v52, 0 }
 0x412   :  { %v12014_v24 = vpop.xlane.xlu0 %2668 }
 0x413   :  { %v2632_v56 = vmul.f32 %v2504_v51, %v11686_v29  ;;  %v18275_v29 = vld [vmem:[#allocation82_spill] sm:$0xff] }
 0x415   :  { %v12027_v40 = vpop.xlane.xlu1 %2716 }
 0x416   :  { %v12021_v42 = vpop.xlane.xlu2 %2701 }
 0x417   :  { %2803 = vadd.xlane.f32.xlu0 %v2802_v31  ;;  %v2820_v31 = vsel %vm18195_vm0, %v2632_v56, 0.0 }
 0x41a   :  { %v12023_v62 = vpop.xlane.xlu0 %2677 }
 0x41d   :  { %v12040_v23 = vpop.xlane.xlu1 %2725 }
 0x41e   :  { %v12030_v58 = vpop.xlane.xlu2 %2710 }
 0x41f   :  { %2812 = vadd.xlane.f32.xlu0 %v2811_v54 }
 0x422   :  { %v12032_v10 = vpop.xlane.xlu0 %2686 }
 0x423   :  { %4306 = vrot.lane.b32.xlu2 %v18270_v2, %s8289_s5 }
 0x425   :  { %v12052_v52 = vpop.xlane.xlu1 %2734 }
 0x426   :  { %v12038_v25 = vpop.xlane.xlu2 %2719 }
 0x427   :  { %2821 = vadd.xlane.f32.xlu0 %v2820_v31  ;;  %v18273_v31 = vld [vmem:[#allocation80_spill] sm:$0xff] }
 0x428   :  { %4310 = vrot.lane.b32.xlu1 %v11697_v9, %s8289_s5  ;;  %v18271_v9 = vld [vmem:[#allocation78_spill] sm:$0xff] }
 0x42a   :  { %v12044_v28 = vpop.xlane.xlu0 %2695 }
 0x42b   :  { %4314 = vrot.lane.b32.xlu2 %v11719_v38, %s8289_s5 }
 0x42d   :  { %v12066_v38 = vpop.xlane.xlu1 %2743 }
 0x42e   :  { %v12048_v51 = vpop.xlane.xlu2 %2728 }
 0x430   :  { %4316 = vrot.lane.b32.xlu1 %v11724_v21, %s8289_s5 }
 0x432   :  { %v12054_v54 = vpop.xlane.xlu0 %2704 }
 0x433   :  { %4320 = vrot.lane.b32.xlu2 %v11768_v0, %s8289_s5 }
 0x436   :  { %v12058_v56 = vpop.xlane.xlu2 %2737 }
 0x438   :  { %4387 = vrot.lane.b32.xlu1 %v18271_v9, %s8289_s5  ;;  %v12080_v9 = vpop.xlane.xlu1 %2752 }
 0x43a   :  { %v12062_v2 = vpop.xlane.xlu0 %2713 }
 0x43b   :  { %4308 = vrot.lane.b32.xlu0 %v11614_v32, %s8289_s5  ;;  %4391 = vrot.lane.b32.xlu2 %v11703_v41, %s8289_s5 }
 0x43e   :  { %v12070_v21 = vpop.xlane.xlu2 %2746 }
 0x440   :  { %4393 = vrot.lane.b32.xlu1 %v11714_v63, %s8289_s5 }
 0x442   :  { %v12074_v0 = vpop.xlane.xlu0 %2722 }
 0x443   :  { %18272 = vst [vmem:[#allocation77_spill] sm:$0xff] %v12074_v0  ;;  %4312 = vrot.lane.b32.xlu0 %v11708_v30, %s8289_s5  ;;  %4397 = vrot.lane.b32.xlu2 %v18273_v31, %s8289_s5  ;;  %v18281_v31 = vld [vmem:[#allocation79_spill] sm:$0xff] }
 0x446   :  { %v12082_v32 = vpop.xlane.xlu2 %2755 }
 0x447   :  { %18274 = vst [vmem:[#allocation78_spill] sm:$0xff] %v12082_v32  ;;  %v12092_v11 = vpop.xlane.xlu1 %2761 }
 0x448   :  { %4399 = vrot.lane.b32.xlu1 %v18275_v29, %s8289_s5  ;;  %18279 = vst [vmem:[#allocation81_spill] sm:$0xff] %v12092_v11 }
 0x44a   :  { %v12086_v41 = vpop.xlane.xlu0 %2731 }
 0x44b   :  { %18276 = vst [vmem:[#allocation80_spill] sm:$0xff] %v12086_v41  ;;  %4318 = vrot.lane.b32.xlu0 %v18277_v60, %s8289_s5 }
 0x44e   :  { %v12090_v63 = vpop.xlane.xlu2 %2764 }
 0x44f   :  { %18278 = vst [vmem:[#allocation82_spill] sm:$0xff] %v12090_v63  ;;  %v12100_v5 = vpop.xlane.xlu1 %2770 }
 0x450   :  { %18283 = vst [vmem:[#allocation87_spill] sm:$0xff] %v12100_v5 }
 0x452   :  { %v12094_v30 = vpop.xlane.xlu0 %2740 }
 0x453   :  { %18280 = vst [vmem:[#allocation86_spill] sm:$0xff] %v12094_v30  ;;  %4389 = vrot.lane.b32.xlu0 %v18281_v31, %s8289_s5 }
 0x456   :  { %v12098_v6 = vpop.xlane.xlu2 %2773 }
 0x457   :  { %18282 = vst [vmem:[#allocation79_spill] sm:$0xff] %v12098_v6  ;;  %v12108_v60 = vpop.xlane.xlu1 %2779 }
 0x458   :  { %18286 = vst [vmem:[#allocation90_spill] sm:$0xff] %v12108_v60 }
 0x45a   :  { %v12102_v43 = vpop.xlane.xlu0 %2749 }
 0x45b   :  { %18284 = vst [vmem:[#allocation88_spill] sm:$0xff] %v12102_v43  ;;  %4395 = vrot.lane.b32.xlu0 %v11786_v18, %s8289_s5  ;;  %v2275_v18 = vld [vmem:[%s17335_s3 + $0x18] sm:$0xff]  ;;  %v2837_v43 = vperm.slane %v11881_v47, 3  ;;  %s8291_s3 = smov [#allocation2]  }
 0x45c   :  { %4352 = vmatpush.msra.mxu2 %v2275_v18  ;;  %7605 = vmatpush.msra.mxu3 %v2275_v18  ;;  %s7436_s8 = sshll.u32 %s8291_s3, 4  ;;  %s7437_s8 = int_to_ptr.vmem [resolvable:$true] %s7436_s8 }
 0x45d   :  { %v2965_v18 = vadd.f32 %v2837_v43, %v11910_v36 }
 0x45e   :  { %v12106_v29 = vpop.xlane.xlu2 %2782  ;;  %4353 = vmatpush.msra.mxu2 %v2274_v17  ;;  %7606 = vmatpush.msra.mxu3 %v2274_v17 }
 0x45f   :  { %18285 = vst [vmem:[#allocation89_spill] sm:$0xff] %v12106_v29  ;;  %v12118_v4 = vpop.xlane.xlu1 %2788  ;;  %v7466_v60 = vmul.f32 -1.442695, %v2965_v18 }
 0x460   :  { %18290 = vst [vmem:[#allocation94_spill] sm:$0xff] %v12118_v4 }
 0x462   :  { %v12110_v57 = vpop.xlane.xlu0 %2758 }
 0x463   :  { %18287 = vst [vmem:[#allocation91_spill] sm:$0xff] %v12110_v57  ;;  %4401 = vrot.lane.b32.xlu0 %v11776_v53, %s8289_s5 }
 0x466   :  { %v12114_v37 = vpop.xlane.xlu2 %2791 }
 0x467   :  { %18288 = vst [vmem:[#allocation92_spill] sm:$0xff] %v12114_v37  ;;  %v12130_v53 = vpop.xlane.xlu1 %2797 }
 0x468   :  { %18293 = vst [vmem:[#allocation97_spill] sm:$0xff] %v12130_v53  ;;  %v2835_v53 = vperm.slane %v11881_v47, 1 }
 0x46a   :  { %v12116_v31 = vpop.xlane.xlu0 %2767  ;;  %v2963_v17 = vadd.f32 %v2835_v53, %v11921_v26  ;;  %v2852_v53 = vperm.slane %v11871_v12, 2 }
 0x46b   :  { %18289 = vst [vmem:[#allocation93_spill] sm:$0xff] %v12116_v31 }
 0x46c   :  { %v7464_v36 = vmul.f32 -1.442695, %v2963_v17 }
 0x46e   :  { %v12120_v14 = vpop.xlane.xlu2 %2800 }
 0x46f   :  { %18291 = vst [vmem:[#allocation95_spill] sm:$0xff] %v12120_v14  ;;  %v2834_v14 = vperm.slane %v11881_v47, 0 }
 0x472   :  { %v12122_v19 = vpop.xlane.xlu0 %2776  ;;  %v12138_v57 = vpop.xlane.xlu1 %2806 }
 0x473   :  { %18292 = vst [vmem:[#allocation96_spill] sm:$0xff] %v12122_v19  ;;  %v2962_v19 = vadd.f32 %v2834_v14, %v11896_v35  ;;  %v18298_v35 = vlaneseq }
 0x474   :  { %18296 = vst [vmem:[#allocation100_spill] sm:$0xff] %v12138_v57 }
 0x475   :  { %v7463_v4 = vmul.f32 -1.442695, %v2962_v19  ;;  %v2841_v19 = vperm.slane %v11881_v47, 7 }
 0x476   :  { %v12132_v31 = vpop.xlane.xlu2 %2809 }
 0x477   :  { %18294 = vst [vmem:[#allocation98_spill] sm:$0xff] %v12132_v31  ;;  %7750 = vpow2.f32 %v7463_v4  ;;  %v2840_v31 = vperm.slane %v11881_v47, 6  ;;  %v2843_v4 = vperm.slane %v11930_v8, 1 }
 0x478   :  { %7752 = vpow2.f32 %v7466_v60 }
 0x479   :  { %v2968_v14 = vadd.f32 %v2840_v31, %v11923_v39  ;;  %v2846_v39 = vperm.slane %v11930_v8, 4  ;;  %v2844_v31 = vperm.slane %v11930_v8, 2  ;;  %7754 = vpow2.f32 %v7464_v36 }
 0x47a   :  { %v12136_v37 = vpop.xlane.xlu0 %2785  ;;  %v12158_v18 = vpop.xlane.xlu1 %2815  ;;  %v2971_v63 = vadd.f32 %v2843_v4, %v11943_v20 }
 0x47b   :  { %18295 = vst [vmem:[#allocation99_spill] sm:$0xff] %v12136_v37  ;;  %v12149_v37 = vand.u32 127, %v18298_v35  ;;  %v2849_v35 = vperm.slane %v11930_v8, 7  ;;  %v7469_v17 = vmul.f32 -1.442695, %v2968_v14  ;;  %v2974_v26 = vadd.f32 %v2846_v39, %v11957_v46 }
 0x47c   :  { %18301 = vst [vmem:[#allocation104_spill] sm:$0xff] %v12158_v18 }
 0x47d   :  { %18299 = vst [vmem:[#allocation102_spill] sm:$0xff] %v12149_v37  ;;  %7756 = vpow2.f32 %v7469_v17  ;;  %v7475_v20 = vmul.f32 -1.442695, %v2974_v26 }
 0x47e   :  { %v12140_v29 = vpop.xlane.xlu2 %2818 }
 0x47f   :  { %18297 = vst [vmem:[#allocation101_spill] sm:$0xff] %v12140_v29  ;;  %v2838_v29 = vperm.slane %v11881_v47, 4 }
 0x481   :  { %v2966_v6 = vadd.f32 %v2838_v29, %v11937_v1  ;;  %v7472_v29 = vmul.f32 -1.442695, %v2971_v63  ;;  %v2972_v63 = vadd.f32 %v2844_v31, %v11968_v55 }
 0x482   :  { %v12153_v57 = vpop.xlane.xlu0 %2794  ;;  %v12198_v39 = vpop.xlane.xlu1 %2824 }
 0x483   :  { %18300 = vst [vmem:[#allocation103_spill] sm:$0xff] %v12153_v57  ;;  %v7751_v57 = vpop.eup %7750  ;;  %v7467_v18 = vmul.f32 -1.442695, %v2966_v6  ;;  %v7473_v6 = vmul.f32 -1.442695, %v2972_v63 }
 0x484   :  { %v12174_v14 = vadd.f32 1.0, %v7751_v57  ;;  %v7753_v1 = vpop.eup %7752  ;;  %18303 = vst [vmem:[#allocation106_spill] sm:$0xff] %v12198_v39 }
 0x485   :  { %v7755_v57 = vpop.eup %7754 }
 0x486   :  { %v4307_v43 = vpop.permute.xlu2 %4306  ;;  %7758 = vrcp.f32 %v12174_v14  ;;  %v7757_v36 = vpop.eup %7756  ;;  %v12207_v55 = vadd.f32 1.0, %v7755_v57  ;;  %vm3287_vm8 = vweird.f32 %v12174_v14 }
 0x487   :  { %7527 = vmatmul.msk.f32.vlgmr.msra.gmra.mxu2 %vm2277_vm15, %v4307_v43  ;;  %v2969_v43 = vadd.f32 %v2841_v19, %v11952_v13  ;;  %7760 = vpow2.f32 %v7467_v18  ;;  %v12200_v13 = vadd.f32 1.0, %v7753_v1  ;;  %v2977_v18 = vadd.f32 %v2849_v35, %v11971_v34 }
 0x488   :  { %7762 = vpow2.f32 %v7472_v29  ;;  %v12217_v34 = vadd.f32 1.0, %v7757_v36 }
 0x489   :  { %v7470_v4 = vmul.f32 -1.442695, %v2969_v43  ;;  %v7478_v46 = vmul.f32 -1.442695, %v2977_v18  ;;  %vm3332_vm6 = vweird.f32 %v12200_v13 }
 0x48a   :  { %v12194_v30 = vpop.xlane.xlu0 %2803  ;;  %vm3377_vm11 = vweird.f32 %v12217_v34 }
 0x48b   :  { %18302 = vst [vmem:[#allocation105_spill] sm:$0xff] %v12194_v30  ;;  %7764 = vpow2.f32 %v7470_v4  ;;  %v18304_v4 = vperm.slane %v11881_v47, 2 }
 0x48c   :  { %v12214_v29 = vpop.eup %7758  ;;  %7766 = vrcp.f32 %v12200_v13 }
 0x48d   :  { %v7761_v1 = vpop.eup %7760  ;;  %7768 = vpow2.f32 %v7475_v20  ;;  %v2964_v63 = vadd.f32 %v18304_v4, %v11975_v15  ;;  %v18305_v20 = vperm.slane %v11930_v8, 5  ;;  %vm3288_vm1 = vweird.f32 %v12214_v29 }
 0x48e   :  { %v12185_v60 = vpop.permute.xlu2 %4314  ;;  %7770 = vrcp.f32 %v12207_v55  ;;  %v7763_v17 = vpop.eup %7762  ;;  %v12239_v36 = vadd.f32 1.0, %v7761_v1  ;;  %vm12324_vm5 = vmor %vm3287_vm8, %vm3288_vm1  ;;  %vm3302_vm1 = vweird.f32 %v12207_v55 }
 0x48f   :  { %7772 = vpow2.f32 %v7473_v6  ;;  %v2975_v18 = vadd.f32 %v18305_v20, %v11984_v27  ;;  %v7465_v27 = vmul.f32 -1.442695, %v2964_v63  ;;  %v2980_v20 = vadd.f32 %v2852_v53, %v11988_v59 }
 0x490   :  { %7774 = vrcp.f32 %v12217_v34  ;;  %v12251_v31 = vadd.f32 1.0, %v7763_v17 }
 0x491   :  { %v7765_v43 = vpop.eup %7764  ;;  %7776 = vpow2.f32 %v7478_v46  ;;  %v18307_v46 = vperm.slane %v11881_v47, 5 }
 0x492   :  { %v12243_v6 = vpop.xlane.xlu0 %2812  ;;  %v12249_v19 = vpop.eup %7766  ;;  %7778 = vrcp.f32 %v12239_v36  ;;  %v12263_v17 = vadd.f32 1.0, %v7765_v43  ;;  %v18309_v43 = vperm.slane %v11871_v12, 5 }
 0x493   :  { %18306 = vst [vmem:[#allocation107_spill] sm:$0xff] %v12243_v6  ;;  %v7769_v37 = vpop.eup %7768  ;;  %v7476_v6 = vmul.f32 -1.442695, %v2975_v18  ;;  %v2967_v63 = vadd.f32 %v18307_v46, %v11990_v3  ;;  %7780 = vpow2.f32 %v7465_v27  ;;  %v7481_v18 = vmul.f32 -1.442695, %v2980_v20 }
 0x494   :  { %v12260_v15 = vpop.eup %7770  ;;  %7782 = vrcp.f32 %v12251_v31  ;;  %v18308_v27 = vperm.slane %v11871_v12, 0  ;;  %v2983_v1 = vadd.f32 %v18309_v43, %v12002_v48  ;;  %v3293_v48 = vand.u32 2147483648, %v12174_v14 }
 0x495   :  { %v7773_v30 = vpop.eup %7772  ;;  %7784 = vpow2.f32 %v7476_v6  ;;  %v7468_v59 = vmul.f32 -1.442695, %v2967_v63  ;;  %v18310_v6 = vperm.slane %v11930_v8, 0  ;;  %vm3333_vm12 = vweird.f32 %v12249_v19 }
 0x496   :  { %v4321_v57 = vpop.permute.xlu2 %4320  ;;  %v12269_v46 = vpop.eup %7774  ;;  %v2978_v20 = vadd.f32 %v18308_v27, %v11999_v7  ;;  %7786 = vrcp.f32 %v12263_v17  ;;  %v3291_v7 = vand.u32 2147483647, %v12174_v14  ;;  %vm12391_vm14 = vmor %vm3332_vm6, %vm3333_vm12  ;;  %vm3303_vm0 = vweird.f32 %v12260_v15 }
 0x497   :  { %7534 = vmatmul.msk.f32.vlgmr.msra.gmra.mxu3 %vm2277_vm15, %v4321_v57  ;;  %v3283_v57 = vmul.f32 %v12214_v29, %v12174_v14  ;;  %v7777_v26 = vpop.eup %7776  ;;  %7788 = vpow2.f32 %v7481_v18  ;;  %v2970_v63 = vadd.f32 %v18310_v6, %v12004_v61  ;;  %v3373_v18 = vmul.f32 %v12269_v46, %v12217_v34 }
 0x498   :  { %v12295_v27 = vpop.eup %7778  ;;  %v7479_v61 = vmul.f32 -1.442695, %v2978_v20  ;;  %vm12313_vm3 = vcmp.eq.f32.partialorder %v3291_v7, 8.507059e+37  ;;  %v18316_v7 = vperm.slane %v11871_v12, 3  ;;  %vm3378_vm10 = vweird.f32 %v12269_v46 }
 0x499   :  { %v3284_v53 = vsub.f32 1.0, %v3283_v57  ;;  %v12272_v57 = vadd.f32 1.0, %v7769_v37  ;;  %v12283_v37 = vadd.f32 1.0, %v7773_v30  ;;  %v12298_v30 = vadd.f32 1.0, %v7777_v26  ;;  %v7781_v43 = vpop.eup %7780  ;;  %vm12407_vm2 = vmor %vm3377_vm11, %vm3378_vm10 }
 0x49a   :  { %v12234_v4 = vpop.permute.xlu1 %4310  ;;  %v12300_v39 = vpop.xlane.xlu0 %2821  ;;  %v7484_v26 = vmul.f32 -1.442695, %v2983_v1  ;;  %v7471_v5 = vmul.f32 -1.442695, %v2970_v63  ;;  %v12320_v32 = vadd.f32 1.0, %v7781_v43  ;;  %v3294_v1 = vor.u32 1.1754944e-38, %v3293_v48 }
 0x49b   :  { %7790 = vrcp.f32 %v12272_v57  ;;  %18311 = vst [vmem:[#allocation108_spill] sm:$0xff] %v12300_v39  ;;  %vm3347_vm10 = vweird.f32 %v12239_v36 }
 0x49c   :  { %7792 = vpow2.f32 %v7468_v59  ;;  %vm3317_vm11 = vweird.f32 %v12320_v32 }
 0x49d   :  { %7794 = vrcp.f32 %v12283_v37 }
 0x49e   :  { %v4392_v35 = vpop.permute.xlu2 %4391  ;;  %7796 = vrcp.f32 %v12298_v30 }
 0x49f   :  { %v4417_v3 = vsel %vm2277_vm15, %v4392_v35, 0.0  ;;  %v3285_v35 = vmul.f32 %v12214_v29, %v3284_v53  ;;  %v3328_v53 = vmul.f32 %v12249_v19, %v12200_v13  ;;  %7798 = vpow2.f32 %v7479_v61 }
 0x4a0   :  { %4418 = vadd.xlane.f32.xlu0 %v4417_v3  ;;  %v12307_v3 = vpop.eup %7782  ;;  %7800 = vpow2.f32 %v7484_v26 }
 0x4a1   :  { %v3286_v6 = vadd.f32 %v12214_v29, %v3285_v35  ;;  %v7785_v44 = vpop.eup %7784  ;;  %v3329_v20 = vsub.f32 1.0, %v3328_v53  ;;  %v2981_v53 = vadd.f32 %v18316_v7, %v12012_v50  ;;  %7802 = vpow2.f32 %v7471_v5 }
 0x4a2   :  { %v12279_v47 = vpop.permute.xlu1 %4316  ;;  %v12317_v35 = vpop.eup %7786  ;;  %v12337_v11 = vadd.f32 1.0, %v7785_v44  ;;  %v18318_v50 = vperm.slane %v11894_v45, 0  ;;  %7804 = vrcp.f32 %v12320_v32  ;;  %vm3423_vm6 = vweird.f32 %v12307_v3 }
 0x4a3   :  { %v7789_v63 = vpop.eup %7788  ;;  %v3290_v43 = vsel %vm12324_vm5, %v12214_v29, %v3286_v6  ;;  %v3330_v29 = vmul.f32 %v12249_v19, %v3329_v20  ;;  %v3298_v6 = vmul.f32 %v12260_v15, %v12207_v55  ;;  %vm3422_vm5 = vweird.f32 %v12251_v31 }
 0x4a4   :  { %v12335_v16 = vpop.eup %7790  ;;  %18317 = vst [vmem:[#allocation109_spill] sm:$0xff] %v12337_v11  ;;  %v2986_v7 = vadd.f32 %v18318_v50, %v12018_v22  ;;  %v12349_v44 = vadd.f32 1.0, %v7789_v63  ;;  %v7482_v22 = vmul.f32 -1.442695, %v2981_v53  ;;  %v12360_v20 = vsel %vm12313_vm3, %v3294_v1, %v3290_v43  ;;  %vm12458_vm3 = vmor %vm3302_vm1, %vm3303_vm0 }
 0x4a5   :  { %v7793_v61 = vpop.eup %7792  ;;  %18320 = vst [vmem:[#allocation110_spill] sm:$0xff] %v12360_v20  ;;  %7806 = vrcp.f32 %v12337_v11  ;;  %v3299_v59 = vsub.f32 1.0, %v3298_v6  ;;  %v3418_v6 = vmul.f32 %v12307_v3, %v12251_v31  ;;  %vm12510_vm12 = vmor %vm3422_vm5, %vm3423_vm6  ;;  %vm3468_vm6 = vweird.f32 %v12335_v16 }
 0x4a6   :  { %v4398_v39 = vpop.permute.xlu2 %4397  ;;  %v12347_v14 = vpop.eup %7794  ;;  %v7487_v50 = vmul.f32 -1.442695, %v2986_v7  ;;  %7808 = vrcp.f32 %v12349_v44 }
 0x4a7   :  { %v4426_v41 = vsel %vm2277_vm15, %v4398_v39, 0.0  ;;  %v3374_v39 = vsub.f32 1.0, %v3373_v18  ;;  %v3338_v18 = vand.u32 2147483648, %v12200_v13  ;;  %v12363_v63 = vpop.eup %7796  ;;  %7810 = vpow2.f32 %v7482_v22 }
 0x4a8   :  { %4427 = vadd.xlane.f32.xlu0 %v4426_v41  ;;  %v3336_v41 = vand.u32 2147483647, %v12200_v13  ;;  %v7799_v53 = vpop.eup %7798 }
 0x4a9   :  { %v3375_v5 = vmul.f32 %v12269_v46, %v3374_v39  ;;  %v3339_v39 = vor.u32 1.1754944e-38, %v3338_v18  ;;  %v7801_v1 = vpop.eup %7800  ;;  %v18323_v18 = vperm.slane %v11871_v12, 6  ;;  %v12384_v20 = vadd.f32 1.0, %v7799_v53 }
 0x4aa   :  { %v4388_v33 = vpop.permute.xlu1 %4387  ;;  %vm12368_vm7 = vcmp.eq.f32.partialorder %v3336_v41, 8.507059e+37  ;;  %v7803_v41 = vpop.eup %7802 }
 0x4ab   :  { %v4411_v48 = vsel %vm2277_vm15, %v4388_v33, 0.0  ;;  %v18319_v33 = vperm.slane %v11930_v8, 3  ;;  %v12396_v22 = vpop.eup %7804 }
 0x4ac   :  { %4412 = vadd.xlane.f32.xlu2 %v4411_v48  ;;  %v12412_v11 = vpop.eup %7806 }
 0x4ad   :  { %v2973_v26 = vadd.f32 %v18319_v33, %v12014_v24  ;;  %v4309_v0 = vpop.permute.xlu0 %4308  ;;  %v12366_v24 = vadd.f32 1.0, %v7793_v61  ;;  %v3376_v33 = vadd.f32 %v12269_v46, %v3375_v5  ;;  %v2984_v61 = vadd.f32 %v18323_v18, %v12021_v42  ;;  %18328 = vst [vmem:[#allocation111_spill] sm:$0xff] %v12412_v11  ;;  %v12426_v11 = vpop.eup %7808 }
 0x4ae   :  { %7528 = vmatmul.msk.f32.gmra.mxu2 %vm2277_vm15, %v4309_v0  ;;  %v3331_v0 = vadd.f32 %v12249_v19, %v3330_v29  ;;  %v3381_v29 = vand.u32 2147483647, %v12217_v34  ;;  %v3383_v42 = vand.u32 2147483648, %v12217_v34  ;;  %v12398_v18 = vadd.f32 1.0, %v7801_v1 }
 0x4af   :  { %v7474_v43 = vmul.f32 -1.442695, %v2973_v26  ;;  %7812 = vrcp.f32 %v12366_v24  ;;  %v12414_v1 = vadd.f32 1.0, %v7803_v41  ;;  %v3380_v34 = vsel %vm12407_vm2, %v12269_v46, %v3376_v33  ;;  %v7811_v46 = vpop.eup %7810 }
 0x4b0   :  { %7814 = vpow2.f32 %v7487_v50  ;;  %v3335_v53 = vsel %vm12391_vm14, %v12249_v19, %v3331_v0  ;;  %v18329_v50 = vperm.slane %v11894_v45, 3  ;;  %v7485_v0 = vmul.f32 -1.442695, %v2984_v61 }
 0x4b1   :  { %7816 = vpow2.f32 %v7474_v43  ;;  %v3308_v5 = vand.u32 2147483648, %v12207_v55  ;;  %v3419_v41 = vsub.f32 1.0, %v3418_v6  ;;  %vm3382_vm9 = vcmp.eq.f32.partialorder %v3381_v29, 8.507059e+37 }
 0x4b2   :  { %v4394_v7 = vpop.permute.xlu1 %4393  ;;  %7818 = vrcp.f32 %v12384_v20  ;;  %v3384_v43 = vor.u32 1.1754944e-38, %v3383_v42  ;;  %vm3348_vm14 = vweird.f32 %v12295_v27 }
 0x4b3   :  { %v4420_v26 = vsel %vm2277_vm15, %v4394_v7, 0.0  ;;  %v3300_v7 = vmul.f32 %v12260_v15, %v3299_v59  ;;  %v3306_v59 = vand.u32 2147483647, %v12207_v55  ;;  %7820 = vrcp.f32 %v12398_v18  ;;  %vm12577_vm0 = vmor %vm3347_vm10, %vm3348_vm14 }
 0x4b4   :  { %4421 = vadd.xlane.f32.xlu2 %v4420_v26  ;;  %v2989_v26 = vadd.f32 %v18329_v50, %v12027_v40  ;;  %v12431_v40 = vsel %vm12368_vm7, %v3339_v39, %v3335_v53  ;;  %7822 = vrcp.f32 %v12414_v1  ;;  %v12442_v39 = vsel %vm3382_vm9, %v3384_v43, %v3380_v34 }
 0x4b5   :  { %v4313_v19 = vpop.permute.xlu0 %4312  ;;  %18330 = vst [vmem:[#allocation112_spill] sm:$0xff] %v12431_v40  ;;  %v3301_v61 = vadd.f32 %v12260_v15, %v3300_v7  ;;  %v12439_v6 = vpop.eup %7812  ;;  %7824 = vpow2.f32 %v7485_v0  ;;  %vm12445_vm8 = vcmp.eq.f32.partialorder %v3306_v59, 8.507059e+37  ;;  %v12450_v7 = vadd.f32 1.0, %v7811_v46 }
 0x4b6   :  { %7529 = vmatmul.msk.f32.gmra.mxu2 %vm2277_vm15, %v12234_v4  ;;  %v18331_v4 = vperm.slane %v11930_v8, 6  ;;  %v7490_v48 = vmul.f32 -1.442695, %v2989_v26  ;;  %18332 = vst [vmem:[#allocation113_spill] sm:$0xff] %v12442_v39  ;;  %v7815_v29 = vpop.eup %7814  ;;  %v3309_v8 = vor.u32 1.1754944e-38, %v3308_v5  ;;  %v18336_v50 = vperm.slane %v11894_v45, 1 }
 0x4b7   :  { %v7817_v13 = vpop.eup %7816  ;;  %18335 = vst [vmem:[#allocation114_spill] sm:$0xff] %v12450_v7  ;;  %v3343_v0 = vmul.f32 %v12295_v27, %v12239_v36  ;;  %v18339_v5 = vperm.slane %v11894_v45, 6  ;;  %v12473_v46 = vadd.f32 1.0, %v7815_v29  ;;  %v3428_v39 = vand.u32 2147483648, %v12251_v31 }
 0x4b8   :  { %v2976_v33 = vadd.f32 %v18331_v4, %v12023_v62  ;;  %v3420_v62 = vmul.f32 %v12307_v3, %v3419_v41  ;;  %v2987_v26 = vadd.f32 %v18336_v50, %v12030_v58  ;;  %v3305_v58 = vsel %vm12458_vm3, %v12260_v15, %v3301_v61  ;;  %v12471_v43 = vpop.eup %7818 }
 0x4b9   :  { %v2992_v41 = vadd.f32 %v18339_v5, %v12040_v23  ;;  %7826 = vpow2.f32 %v7490_v48  ;;  %v12480_v23 = vpop.eup %7820  ;;  %v3323_v15 = vand.u32 2147483648, %v12320_v32  ;;  %v3426_v48 = vand.u32 2147483647, %v12251_v31 }
 0x4ba   :  { %v4400_v42 = vpop.permute.xlu1 %4399  ;;  %v7477_v59 = vmul.f32 -1.442695, %v2976_v33  ;;  %v3313_v33 = vmul.f32 %v12396_v22, %v12320_v32  ;;  %v12487_v61 = vadd.f32 %v12307_v3, %v3420_v62  ;;  %v12490_v29 = vpop.eup %7822  ;;  %7828 = vrcp.f32 %v12450_v7 }
 0x4bb   :  { %v4429_v34 = vsel %vm2277_vm15, %v4400_v42, 0.0  ;;  %v12482_v42 = vadd.f32 1.0, %v7817_v13  ;;  %v7488_v50 = vmul.f32 -1.442695, %v2987_v26  ;;  %v3344_v13 = vsub.f32 1.0, %v3343_v0  ;;  %v7825_v55 = vpop.eup %7824 }
 0x4bc   :  { %4430 = vadd.xlane.f32.xlu2 %v4429_v34  ;;  %v12495_v34 = vsel %vm12445_vm8, %v3309_v8, %v3305_v58  ;;  %7830 = vpow2.f32 %v7477_v59  ;;  %v18341_v5 = vperm.slane %v11871_v12, 1  ;;  %v18342_v40 = vperm.slane %v11894_v45, 4 }
 0x4bd   :  { %v12475_v4 = vpop.permute.xlu0 %4318  ;;  %18340 = vst [vmem:[#allocation115_spill] sm:$0xff] %v12495_v34  ;;  %7832 = vrcp.f32 %v12473_v46  ;;  %v3314_v7 = vsub.f32 1.0, %v3313_v33  ;;  %v3321_v53 = vand.u32 2147483647, %v12320_v32  ;;  %vm12521_vm7 = vcmp.eq.f32.partialorder %v3426_v48, 8.507059e+37 }
 0x4be   :  { %7530 = vmatmul.msk.f32.gmra.mxu2 %vm2277_vm15, %v4313_v19  ;;  %v7493_v19 = vmul.f32 -1.442695, %v2992_v41  ;;  %v2979_v62 = vadd.f32 %v18341_v5, %v12032_v10  ;;  %v2990_v26 = vadd.f32 %v18342_v40, %v12038_v25  ;;  %7834 = vrcp.f32 %v12482_v42 }
 0x4bf   :  { %v12515_v10 = vor.u32 1.1754944e-38, %v3323_v15  ;;  %v3425_v25 = vsel %vm12510_vm12, %v12307_v3, %v12487_v61  ;;  %v7827_v0 = vpop.eup %7826  ;;  %v12525_v59 = vadd.f32 1.0, %v7825_v55  ;;  %7836 = vpow2.f32 %v7488_v50 }
 0x4c0   :  { %v18347_v31 = vperm.slane %v11959_v49, 1  ;;  %v3345_v58 = vmul.f32 %v12295_v27, %v3344_v13  ;;  %7838 = vpow2.f32 %v7493_v19  ;;  %v7480_v33 = vmul.f32 -1.442695, %v2979_v62  ;;  %v12535_v48 = vpop.eup %7828 }
 0x4c1   :  { %v18348_v3 = vperm.slane %v11871_v12, 4  ;;  %v3429_v61 = vor.u32 1.1754944e-38, %v3428_v39  ;;  %v7491_v55 = vmul.f32 -1.442695, %v2990_v26  ;;  %v3315_v50 = vmul.f32 %v12396_v22, %v3314_v7 }
 0x4c2   :  { %v2995_v41 = vadd.f32 %v18347_v31, %v12052_v52  ;;  %v3463_v52 = vmul.f32 %v12335_v16, %v12272_v57  ;;  %v7831_v8 = vpop.eup %7830  ;;  %v12541_v13 = vadd.f32 1.0, %v7827_v0  ;;  %v3351_v39 = vand.u32 2147483647, %v12239_v36 }
 0x4c3   :  { %v2982_v15 = vadd.f32 %v18348_v3, %v12044_v28  ;;  %v12548_v19 = vpop.eup %7832  ;;  %7840 = vrcp.f32 %v12525_v59  ;;  %vm12551_vm2 = vcmp.eq.f32.partialorder %v3321_v53, 8.507059e+37  ;;  %v3346_v26 = vadd.f32 %v12295_v27, %v3345_v58 }
 0x4c4   :  { %v7496_v7 = vmul.f32 -1.442695, %v2995_v41  ;;  %v12557_v0 = vpop.eup %7834  ;;  %7842 = vpow2.f32 %v7480_v33  ;;  %vm3318_vm9 = vweird.f32 %v12396_v22  ;;  %v3358_v3 = vmul.f32 %v12439_v6, %v12366_v24 }
 0x4c5   :  { %v4390_v5 = vpop.permute.xlu0 %4389  ;;  %v7483_v31 = vmul.f32 -1.442695, %v2982_v15  ;;  %v12562_v41 = vadd.f32 1.0, %v7831_v8  ;;  %7844 = vpow2.f32 %v7491_v55  ;;  %v3316_v53 = vadd.f32 %v12396_v22, %v3315_v50  ;;  %vm12598_vm8 = vmor %vm3317_vm11, %vm3318_vm9 }
 0x4c6   :  { %7531 = vmatmul.msk.f32.gmra.mxu2 %vm2277_vm15, %v12185_v60  ;;  %v4414_v28 = vsel %vm2277_vm15, %v4390_v5, 0.0  ;;  %v3353_v60 = vand.u32 2147483648, %v12239_v36  ;;  %v7837_v5 = vpop.eup %7836  ;;  %7846 = vrcp.f32 %v12541_v13  ;;  %v18351_v58 = vperm.slane %v11894_v45, 7 }
 0x4c7   :  { %4415 = vadd.xlane.f32.xlu1 %v4414_v28  ;;  %v3464_v28 = vsub.f32 1.0, %v3463_v52  ;;  %v7839_v34 = vpop.eup %7838  ;;  %v12571_v15 = vsel %vm12521_vm7, %v3429_v61, %v3425_v25  ;;  %vm12581_vm1 = vcmp.eq.f32.partialorder %v3351_v39, 8.507059e+37  ;;  %7848 = vpow2.f32 %v7496_v7 }
 0x4c8   :  { %v2993_v33 = vadd.f32 %v18351_v58, %v12048_v51  ;;  %18352 = vst [vmem:[#allocation116_spill] sm:$0xff] %v12571_v15  ;;  %v18357_v51 = vperm.slane %v11959_v49, 4  ;;  %v3350_v25 = vsel %vm12577_vm0, %v12295_v27, %v3346_v26  ;;  %v3368_v40 = vand.u32 2147483648, %v12366_v24 }
 0x4c9   :  { %v12592_v36 = vadd.f32 1.0, %v7837_v5  ;;  %7850 = vpow2.f32 %v7483_v31  ;;  %v3354_v8 = vor.u32 1.1754944e-38, %v3353_v60  ;;  %v3359_v39 = vsub.f32 1.0, %v3358_v3 }
 0x4ca   :  { %v2998_v52 = vadd.f32 %v18357_v51, %v12066_v38  ;;  %v12602_v38 = vpop.eup %7840  ;;  %7852 = vrcp.f32 %v12562_v41  ;;  %v12605_v27 = vadd.f32 1.0, %v7839_v34  ;;  %v3320_v26 = vsel %vm12598_vm8, %v12396_v22, %v3316_v53 }
 0x4cb   :  { %v3465_v31 = vmul.f32 %v12335_v16, %v3464_v28  ;;  %v7843_v32 = vpop.eup %7842  ;;  %v7494_v5 = vmul.f32 -1.442695, %v2993_v33  ;;  %v12616_v3 = vsel %vm12581_vm1, %v3354_v8, %v3350_v25  ;;  %vm3362_vm3 = vweird.f32 %v12366_v24 }
 0x4cc   :  { %18360 = vst [vmem:[#allocation117_spill] sm:$0xff] %v12616_v3  ;;  %v3366_v34 = vand.u32 2147483647, %v12366_v24  ;;  %v7845_v58 = vpop.eup %7844  ;;  %v7499_v55 = vmul.f32 -1.442695, %v2998_v52  ;;  %v18361_v22 = vperm.slane %v11871_v12, 7  ;;  %7854 = vrcp.f32 %v12592_v36 }
 0x4cd   :  { %v4396_v7 = vpop.permute.xlu0 %4395  ;;  %v12623_v28 = vor.u32 1.1754944e-38, %v3368_v40  ;;  %v12627_v33 = vpop.eup %7846  ;;  %v12633_v50 = vsel %vm12551_vm2, %v12515_v10, %v3320_v26  ;;  %v3360_v51 = vmul.f32 %v12439_v6, %v3359_v39  ;;  %vm3363_vm5 = vweird.f32 %v12439_v6  ;;  %v18388_v3 = vld [vmem:[#allocation78_spill] sm:$0xff] }
 0x4ce   :  { %7532 = vmatmul.msk.f32.gmra.mxu2 %vm2277_vm15, %v12279_v47  ;;  %v4423_v60 = vsel %vm2277_vm15, %v4396_v7, 0.0  ;;  %v2985_v53 = vadd.f32 %v18361_v22, %v12054_v54  ;;  %v3388_v47 = vmul.f32 %v12317_v35, %v12263_v17  ;;  %18362 = vst [vmem:[#allocation118_spill] sm:$0xff] %v12633_v50  ;;  %v7849_v12 = vpop.eup %7848  ;;  %7856 = vrcp.f32 %v12605_v27  ;;  %vm12691_vm10 = vmor %vm3362_vm3, %vm3363_vm5 }
 0x4cf   :  { %4424 = vadd.xlane.f32.xlu1 %v4423_v60  ;;  %v12638_v54 = vadd.f32 1.0, %v7843_v32  ;;  %v3466_v52 = vadd.f32 %v12335_v16, %v3465_v31  ;;  %v7851_v25 = vpop.eup %7850  ;;  %v12642_v40 = vadd.f32 1.0, %v7845_v58  ;;  %7858 = vpow2.f32 %v7494_v5 }
 0x4d0   :  { %v18363_v10 = vperm.slane %v11959_v49, 2  ;;  %vm3467_vm12 = vweird.f32 %v12272_v57  ;;  %v12648_v61 = vpop.eup %7852  ;;  %7860 = vpow2.f32 %v7499_v55  ;;  %v7486_v8 = vmul.f32 -1.442695, %v2985_v53 }
 0x4d1   :  { %vm12650_vm7 = vcmp.eq.f32.partialorder %v3366_v34, 8.507059e+37  ;;  %v3473_v7 = vand.u32 2147483648, %v12272_v57  ;;  %v3389_v26 = vsub.f32 1.0, %v3388_v47  ;;  %v12655_v31 = vadd.f32 1.0, %v7849_v12  ;;  %vm12663_vm11 = vmor %vm3467_vm12, %vm3468_vm6 }
 0x4d2   :  { %v2996_v62 = vadd.f32 %v18363_v10, %v12058_v56  ;;  %v18366_v32 = vperm.slane %v11959_v49, 7  ;;  %v3361_v56 = vadd.f32 %v12439_v6, %v3360_v51  ;;  %v3471_v34 = vand.u32 2147483647, %v12272_v57  ;;  %v12676_v53 = vpop.eup %7854 }
 0x4d3   :  { %7862 = vrcp.f32 %v12638_v54  ;;  %v12669_v58 = vadd.f32 1.0, %v7851_v25  ;;  %v3470_v22 = vsel %vm12663_vm11, %v12335_v16, %v3466_v52  ;;  %v18369_v57 = vperm.slane %v11894_v45, 2 }
 0x4d4   :  { %v3001_v5 = vadd.f32 %v18366_v32, %v12080_v9  ;;  %v3508_v9 = vmul.f32 %v12363_v63, %v12298_v30  ;;  %7864 = vrcp.f32 %v12642_v40  ;;  %v7497_v47 = vmul.f32 -1.442695, %v2996_v62  ;;  %v12685_v25 = vpop.eup %7856 }
 0x4d5   :  { %v4402_v55 = vpop.permute.xlu0 %4401  ;;  %v2988_v51 = vadd.f32 %v18369_v57, %v12062_v2  ;;  %7866 = vpow2.f32 %v7486_v8  ;;  %v3474_v52 = vor.u32 1.1754944e-38, %v3473_v7  ;;  %v3390_v2 = vmul.f32 %v12317_v35, %v3389_v26  ;;  %v7859_v10 = vpop.eup %7858 }
 0x4d6   :  { %7533 = vmatmul.msk.f32.gmra.mxu2 %vm2277_vm15, %v12475_v4  ;;  %v4432_v12 = vsel %vm2277_vm15, %v4402_v55, 0.0  ;;  %v3403_v4 = vmul.f32 %v12490_v29, %v12414_v1  ;;  %7868 = vrcp.f32 %v12655_v31  ;;  %v7502_v62 = vmul.f32 -1.442695, %v3001_v5  ;;  %v7861_v24 = vpop.eup %7860 }
 0x4d7   :  { %4433 = vadd.xlane.f32.xlu1 %v4432_v12  ;;  %v3365_v8 = vsel %vm12691_vm10, %v12439_v6, %v3361_v56  ;;  %vm3472_vm15 = vcmp.eq.f32.partialorder %v3471_v34, 8.507059e+37  ;;  %7870 = vrcp.f32 %v12669_v58  ;;  %v3396_v7 = vand.u32 2147483647, %v12263_v17 }
 0x4d8   :  { %v12703_v32 = vsel %vm3472_vm15, %v3474_v52, %v3470_v22  ;;  %v3509_v26 = vsub.f32 1.0, %v3508_v9  ;;  %7872 = vpow2.f32 %v7497_v47  ;;  %v7489_v60 = vmul.f32 -1.442695, %v2988_v51 }
 0x4d9   :  { %18372 = vst [vmem:[#allocation119_spill] sm:$0xff] %v12703_v32  ;;  %v18373_v55 = vperm.slane %v11959_v49, 5  ;;  %vm3393_vm14 = vweird.f32 %v12317_v35  ;;  %v12710_v5 = vpop.eup %7862  ;;  %v12712_v6 = vadd.f32 1.0, %v7859_v10  ;;  %v3391_v56 = vadd.f32 %v12317_v35, %v3390_v2 }
 0x4da   :  { %v3398_v34 = vand.u32 2147483648, %v12263_v17  ;;  %v3404_v22 = vsub.f32 1.0, %v3403_v4  ;;  %v12716_v12 = vpop.eup %7864  ;;  %v12718_v9 = vadd.f32 1.0, %v7861_v24  ;;  %7874 = vpow2.f32 %v7502_v62 }
 0x4db   :  { %v2999_v57 = vadd.f32 %v18373_v55, %v12070_v21  ;;  %18374 = vst [vmem:[#allocation120_spill] sm:$0xff] %v12712_v6  ;;  %v12723_v21 = vsel %vm12650_vm7, %v12623_v28, %v3365_v8  ;;  %vm3392_vm2 = vweird.f32 %v12263_v17  ;;  %v7867_v47 = vpop.eup %7866  ;;  %vm12726_vm9 = vcmp.eq.f32.partialorder %v3396_v7, 8.507059e+37  ;;  %v18378_v28 = vld [vmem:[#allocation77_spill] sm:$0xff] }
 0x4dc   :  { %18375 = vst [vmem:[#allocation121_spill] sm:$0xff] %v12723_v21  ;;  %vm3407_vm0 = vweird.f32 %v12414_v1  ;;  %v3510_v16 = vmul.f32 %v12363_v63, %v3509_v26  ;;  %v3433_v52 = vmul.f32 %v12347_v14, %v12283_v37  ;;  %v12734_v2 = vpop.eup %7868  ;;  %7876 = vpow2.f32 %v7489_v60  ;;  %vm12741_vm1 = vmor %vm3392_vm2, %vm3393_vm14 }
 0x4dd   :  { %v7500_v39 = vmul.f32 -1.442695, %v2999_v57  ;;  %v18379_v4 = vperm.slane %v11894_v45, 5  ;;  %v3411_v62 = vand.u32 2147483647, %v12414_v1  ;;  %v12746_v8 = vpop.eup %7870  ;;  %7878 = vrcp.f32 %v12712_v6  ;;  %v18426_v6 = vld [vmem:[#allocation88_spill] sm:$0xff] }
 0x4de   :  { %v3395_v24 = vsel %vm12741_vm1, %v12317_v35, %v3391_v56  ;;  %v3399_v7 = vor.u32 1.1754944e-38, %v3398_v34  ;;  %v3405_v45 = vmul.f32 %v12490_v29, %v3404_v22  ;;  %v7873_v26 = vpop.eup %7872  ;;  %7880 = vrcp.f32 %v12718_v9  ;;  %v18382_v34 = vld [vmem:[#allocation81_spill] sm:$0xff]  ;;  %v18383_v22 = vld [vmem:[#allocation83_spill] sm:$0xff] }
 0x4df   :  { %v2991_v17 = vadd.f32 %v18379_v4, %v18378_v28  ;;  %v12754_v60 = vadd.f32 1.0, %v7867_v47  ;;  %vm3408_vm8 = vweird.f32 %v12490_v29  ;;  %v3413_v55 = vand.u32 2147483648, %v12414_v1  ;;  %v18398_v1 = vld [vmem:[#allocation80_spill] sm:$0xff] }
 0x4e0   :  { %v3511_v57 = vadd.f32 %v12363_v63, %v3510_v16  ;;  %vm3513_vm3 = vweird.f32 %v12363_v63  ;;  %v3434_v28 = vsub.f32 1.0, %v3433_v52  ;;  %v3448_v35 = vmul.f32 %v12557_v0, %v12482_v42  ;;  %v7875_v56 = vpop.eup %7874  ;;  %vm12803_vm7 = vmor %vm3407_vm0, %vm3408_vm8 }
 0x4e1   :  { %7882 = vpow2.f32 %v7500_v39  ;;  %v18384_v4 = vperm.slane %v18383_v22, 2  ;;  %v7492_v47 = vmul.f32 -1.442695, %v2991_v17  ;;  %v3518_v32 = vand.u32 2147483648, %v12298_v30 }
 0x4e2   :  { %v12766_v15 = vadd.f32 1.0, %v7873_v26  ;;  %v3406_v21 = vadd.f32 %v12490_v29, %v3405_v45  ;;  %vm12769_vm5 = vcmp.eq.f32.partialorder %v3411_v62, 8.507059e+37  ;;  %vm3512_vm6 = vweird.f32 %v12298_v30  ;;  %v7877_v39 = vpop.eup %7876 }
 0x4e3   :  { %v3004_v10 = vadd.f32 %v18384_v4, %v18382_v34  ;;  %v3516_v52 = vand.u32 2147483647, %v12298_v30  ;;  %7884 = vrcp.f32 %v12754_v60  ;;  %v18389_v17 = vperm.slane %v18383_v22, 0  ;;  %vm12785_vm12 = vmor %vm3512_vm6, %vm3513_vm3  ;;  %v12789_v4 = vpop.eup %7878 }
 0x4e4   :  { %18385 = vst [vmem:[#allocation77_spill] sm:$0xff] %v12766_v15  ;;  %v12781_v26 = vsel %vm12726_vm9, %v3399_v7, %v3395_v24  ;;  %v3414_v45 = vor.u32 1.1754944e-38, %v3413_v55  ;;  %v12791_v30 = vadd.f32 1.0, %v7875_v56  ;;  %v3515_v50 = vsel %vm12785_vm12, %v12363_v63, %v3511_v57  ;;  %v12797_v24 = vpop.eup %7880 }
 0x4e5   :  { %v3002_v34 = vadd.f32 %v18389_v17, %v18388_v3  ;;  %18390 = vst [vmem:[#allocation81_spill] sm:$0xff] %v12781_v26  ;;  %v3435_v3 = vmul.f32 %v12347_v14, %v3434_v28  ;;  %v3449_v51 = vsub.f32 1.0, %v3448_v35  ;;  %v7505_v7 = vmul.f32 -1.442695, %v3004_v10 }
 0x4e6   :  { %18393 = vst [vmem:[#allocation83_spill] sm:$0xff] %v12789_v4  ;;  %7886 = vpow2.f32 %v7492_v47  ;;  %v3519_v56 = vor.u32 1.1754944e-38, %v3518_v32  ;;  %v3553_v17 = vmul.f32 %v12426_v11, %v12349_v44  ;;  %v12810_v63 = vadd.f32 1.0, %v7877_v39 }
 0x4e7   :  { %18394 = vst [vmem:[#allocation78_spill] sm:$0xff] %v12791_v30  ;;  %7888 = vrcp.f32 %v12766_v15  ;;  %v3410_v57 = vsel %vm12803_vm7, %v12490_v29, %v3406_v21  ;;  %vm3517_vm11 = vcmp.eq.f32.partialorder %v3516_v52, 8.507059e+37  ;;  %v7883_v28 = vpop.eup %7882  ;;  %v7503_v35 = vmul.f32 -1.442695, %v3002_v34  ;;  %v18401_v21 = vld [vmem:[#allocation87_spill] sm:$0xff] }
 0x4e8   :  { %18395 = vst [vmem:[#allocation122_spill] sm:$0xff] %v12797_v24  ;;  %v18399_v10 = vperm.slane %v11959_v49, 0  ;;  %v12818_v62 = vsel %vm3517_vm11, %v3519_v56, %v3515_v50  ;;  %vm3437_vm10 = vweird.f32 %v12283_v37  ;;  %7890 = vrcp.f32 %v12791_v30 }
 0x4e9   :  { %18400 = vst [vmem:[#allocation80_spill] sm:$0xff] %v12818_v62  ;;  %v3436_v32 = vadd.f32 %v12347_v14, %v3435_v3  ;;  %vm3438_vm15 = vweird.f32 %v12347_v14  ;;  %v3450_v39 = vmul.f32 %v12557_v0, %v3449_v51  ;;  %v12825_v29 = vpop.eup %7884  ;;  %7892 = vpow2.f32 %v7505_v7  ;;  %v18404_v62 = vld [vmem:[#allocation82_spill] sm:$0xff] }
 0x4ea   :  { %v2994_v47 = vadd.f32 %v18399_v10, %v18398_v1  ;;  %v18402_v52 = vperm.slane %v18383_v22, 5  ;;  %v3441_v50 = vand.u32 2147483647, %v12283_v37  ;;  %v3554_v55 = vsub.f32 1.0, %v3553_v17  ;;  %vm12849_vm14 = vmor %vm3437_vm10, %vm3438_vm15 }
 0x4eb   :  { %7894 = vrcp.f32 %v12810_v63  ;;  %v12832_v56 = vadd.f32 1.0, %v7883_v28  ;;  %v3443_v3 = vand.u32 2147483648, %v12283_v37  ;;  %v3456_v1 = vand.u32 2147483647, %v12482_v42 }
 0x4ec   :  { %v3007_v34 = vadd.f32 %v18402_v52, %v18401_v21  ;;  %v7887_v10 = vpop.eup %7886  ;;  %7896 = vpow2.f32 %v7503_v35  ;;  %v7495_v51 = vmul.f32 -1.442695, %v2994_v47  ;;  %v18405_v7 = vperm.slane %v18383_v22, 3 }
 0x4ed   :  { %18403 = vst [vmem:[#allocation87_spill] sm:$0xff] %v12832_v56  ;;  %v12841_v21 = vsel %vm12769_vm5, %v3414_v45, %v3410_v57  ;;  %v12843_v17 = vpop.eup %7888  ;;  %v3451_v35 = vadd.f32 %v12557_v0, %v3450_v39  ;;  %vm3452_vm2 = vweird.f32 %v12482_v42  ;;  %vm3453_vm9 = vweird.f32 %v12557_v0 }
 0x4ee   :  { %v3005_v26 = vadd.f32 %v18405_v7, %v18404_v62  ;;  %18406 = vst [vmem:[#allocation82_spill] sm:$0xff] %v12841_v21  ;;  %v3458_v16 = vand.u32 2147483648, %v12482_v42  ;;  %v7508_v45 = vmul.f32 -1.442695, %v3007_v34  ;;  %v3440_v57 = vsel %vm12849_vm14, %v12347_v14, %v3436_v32  ;;  %v12865_v62 = vpop.eup %7890  ;;  %v18415_v32 = vld [vmem:[#allocation86_spill] sm:$0xff]  ;;  %vm12881_vm8 = vmor %vm3452_vm2, %vm3453_vm9  ;;  %v18421_v42 = vld [vmem:[#allocation79_spill] sm:$0xff] }
 0x4ef   :  { %18407 = vst [vmem:[#allocation123_spill] sm:$0xff] %v12843_v17  ;;  %vm12860_vm0 = vcmp.eq.f32.partialorder %v3441_v50, 8.507059e+37  ;;  %v3555_v37 = vmul.f32 %v12426_v11, %v3554_v55  ;;  %7898 = vrcp.f32 %v12832_v56  ;;  %v12868_v39 = vadd.f32 1.0, %v7887_v10  ;;  %v7893_v34 = vpop.eup %7892  ;;  %v18423_v55 = vld [vmem:[#allocation90_spill] sm:$0xff] }
 0x4f0   :  { %18412 = vst [vmem:[#allocation124_spill] sm:$0xff] %v12865_v62  ;;  %v3444_v52 = vor.u32 1.1754944e-38, %v3443_v3  ;;  %vm12870_vm1 = vcmp.eq.f32.partialorder %v3456_v1, 8.507059e+37  ;;  %7900 = vpow2.f32 %v7495_v51  ;;  %v7506_v14 = vmul.f32 -1.442695, %v3005_v26  ;;  %v18419_v3 = vld [vmem:[#allocation109_spill] sm:$0xff] }
 0x4f1   :  { %v18416_v50 = vperm.slane %v11959_v49, 3  ;;  %v18420_v1 = vld [vmem:[#allocation111_spill] sm:$0xff]  ;;  %v12887_v21 = vpop.eup %7894  ;;  %v3455_v26 = vsel %vm12881_vm8, %v12557_v0, %v3451_v35  ;;  %v3459_v51 = vor.u32 1.1754944e-38, %v3458_v16  ;;  %vm3557_vm3 = vweird.f32 %v12349_v44  ;;  %v18424_v0 = vld [vmem:[#allocation84_spill] sm:$0xff] }
 0x4f2   :  { %v3478_v10 = vmul.f32 %v18420_v1, %v18419_v3  ;;  %vm3558_vm5 = vweird.f32 %v12426_v11  ;;  %7902 = vpow2.f32 %v7508_v45  ;;  %v3556_v17 = vadd.f32 %v12426_v11, %v3555_v37 }
 0x4f3   :  { %v2997_v28 = vadd.f32 %v18416_v50, %v18415_v32  ;;  %v7897_v32 = vpop.eup %7896  ;;  %v18422_v50 = vperm.slane %v18383_v22, 6  ;;  %v3493_v15 = vmul.f32 %v12648_v61, %v12562_v41  ;;  %v12900_v62 = vadd.f32 1.0, %v7893_v34  ;;  %vm12927_vm6 = vmor %vm3557_vm3, %vm3558_vm5 }
 0x4f4   :  { %v18425_v35 = vperm.slane %v18424_v0, 0  ;;  %v3561_v30 = vand.u32 2147483647, %v12349_v44  ;;  %v3563_v4 = vand.u32 2147483648, %v12349_v44  ;;  %7904 = vpow2.f32 %v7506_v14 }
 0x4f5   :  { %v3008_v56 = vadd.f32 %v18422_v50, %v18421_v42  ;;  %v7498_v45 = vmul.f32 -1.442695, %v2997_v28  ;;  %v18427_v42 = vperm.slane %v11959_v49, 6  ;;  %v3479_v37 = vsub.f32 1.0, %v3478_v10  ;;  %v12910_v24 = vpop.eup %7898  ;;  %v18437_v49 = vld [vmem:[#allocation89_spill] sm:$0xff] }
 0x4f6   :  { %v3010_v16 = vadd.f32 %v18425_v35, %v18423_v55  ;;  %7906 = vrcp.f32 %v12868_v39  ;;  %v12913_v34 = vadd.f32 1.0, %v7897_v32  ;;  %v12917_v55 = vsel %vm12860_vm0, %v3444_v52, %v3440_v57 }
 0x4f7   :  { %v3000_v50 = vadd.f32 %v18427_v42, %v18426_v6  ;;  %18429 = vst [vmem:[#allocation109_spill] sm:$0xff] %v12917_v55  ;;  %v12921_v35 = vsel %vm12870_vm1, %v3459_v51, %v3455_v26  ;;  %v7901_v6 = vpop.eup %7900  ;;  %v7509_v14 = vmul.f32 -1.442695, %v3008_v56  ;;  %v3560_v47 = vsel %vm12927_vm6, %v12426_v11, %v3556_v17  ;;  %v18433_v26 = vld [vmem:[#allocation94_spill] sm:$0xff]  ;;  %v18453_v55 = vld [vmem:[#allocation97_spill] sm:$0xff] }
 0x4f8   :  { %18428 = vst [vmem:[#allocation86_spill] sm:$0xff] %v12913_v34  ;;  %v3494_v57 = vsub.f32 1.0, %v3493_v15  ;;  %v3598_v52 = vmul.f32 %v12480_v23, %v12398_v18  ;;  %7908 = vrcp.f32 %v12900_v62  ;;  %v7511_v7 = vmul.f32 -1.442695, %v3010_v16  ;;  %v7903_v44 = vpop.eup %7902 }
 0x4f9   :  { %18430 = vst [vmem:[#allocation111_spill] sm:$0xff] %v12921_v35  ;;  %vm3562_vm12 = vcmp.eq.f32.partialorder %v3561_v30, 8.507059e+37  ;;  %v3564_v28 = vor.u32 1.1754944e-38, %v3563_v4  ;;  %7910 = vpow2.f32 %v7498_v45  ;;  %v7501_v10 = vmul.f32 -1.442695, %v3000_v50 }
 0x4fa   :  { %v18434_v51 = vperm.slane %v18424_v0, 3  ;;  %v3480_v32 = vmul.f32 %v18420_v1, %v3479_v37  ;;  %7912 = vrcp.f32 %v12913_v34  ;;  %v12942_v11 = vadd.f32 1.0, %v7901_v6  ;;  %v7905_v17 = vpop.eup %7904 }
 0x4fb   :  { %v12944_v15 = vsel %vm3562_vm12, %v3564_v28, %v3560_v47  ;;  %vm3482_vm7 = vweird.f32 %v18419_v3  ;;  %7914 = vpow2.f32 %v7509_v14  ;;  %vm3483_vm11 = vweird.f32 %v18420_v1 }
 0x4fc   :  { %v3013_v56 = vadd.f32 %v18434_v51, %v18433_v26  ;;  %18435 = vst [vmem:[#allocation79_spill] sm:$0xff] %v12944_v15  ;;  %v3495_v4 = vmul.f32 %v12648_v61, %v3494_v57  ;;  %v3599_v30 = vsub.f32 1.0, %v3598_v52  ;;  %v12949_v16 = vpop.eup %7906  ;;  %v12951_v45 = vadd.f32 1.0, %v7903_v44  ;;  %v18440_v44 = vld [vmem:[#allocation91_spill] sm:$0xff]  ;;  %vm12979_vm15 = vmor %vm3482_vm7, %vm3483_vm11 }
 0x4fd   :  { %7916 = vpow2.f32 %v7511_v7  ;;  %v3486_v42 = vand.u32 2147483647, %v18419_v3  ;;  %v3488_v50 = vand.u32 2147483648, %v18419_v3  ;;  %v18438_v6 = vperm.slane %v18424_v0, 1 }
 0x4fe   :  { %18436 = vst [vmem:[#allocation90_spill] sm:$0xff] %v12951_v45  ;;  %7918 = vpow2.f32 %v7501_v10  ;;  %v7514_v37 = vmul.f32 -1.442695, %v3013_v56  ;;  %v3481_v47 = vadd.f32 %v18420_v1, %v3480_v32  ;;  %v12959_v28 = vpop.eup %7908  ;;  %v12962_v57 = vadd.f32 1.0, %v7905_v17 }
 0x4ff   :  { %v3011_v14 = vadd.f32 %v18438_v6, %v18437_v49  ;;  %7920 = vrcp.f32 %v12942_v11  ;;  %vm3498_vm10 = vweird.f32 %v12648_v61  ;;  %v3501_v52 = vand.u32 2147483647, %v12562_v41  ;;  %v7911_v7 = vpop.eup %7910 }
 0x500   :  { %18439 = vst [vmem:[#allocation84_spill] sm:$0xff] %v12962_v57  ;;  %v18441_v10 = vperm.slane %v18383_v22, 1  ;;  %v3496_v51 = vadd.f32 %v12648_v61, %v3495_v4  ;;  %v3503_v56 = vand.u32 2147483648, %v12562_v41  ;;  %v3600_v32 = vmul.f32 %v12480_v23, %v3599_v30  ;;  %v12972_v49 = vpop.eup %7912 }
 0x501   :  { %18442 = vst [vmem:[#allocation88_spill] sm:$0xff] %v12972_v49  ;;  %7922 = vrcp.f32 %v12951_v45  ;;  %vm12983_vm14 = vcmp.eq.f32.partialorder %v3486_v42, 8.507059e+37  ;;  %vm3497_vm2 = vweird.f32 %v12562_v41  ;;  %v3523_v4 = vmul.f32 %v12471_v43, %v12384_v20  ;;  %v7915_v30 = vpop.eup %7914 }
 0x502   :  { %v3003_v26 = vadd.f32 %v18441_v10, %v18440_v44  ;;  %7924 = vpow2.f32 %v7514_v37  ;;  %v7512_v44 = vmul.f32 -1.442695, %v3011_v14  ;;  %v3485_v3 = vsel %vm12979_vm15, %v18420_v1, %v3481_v47  ;;  %vm12998_vm9 = vmor %vm3497_vm2, %vm3498_vm10 }
 0x503   :  { %v3489_v10 = vor.u32 1.1754944e-38, %v3488_v50  ;;  %v7917_v15 = vpop.eup %7916  ;;  %7926 = vrcp.f32 %v12962_v57  ;;  %v12994_v42 = vadd.f32 1.0, %v7911_v7  ;;  %vm13002_vm0 = vcmp.eq.f32.partialorder %v3501_v52, 8.507059e+37 }
 0x504   :  { %vm3603_vm1 = vweird.f32 %v12480_v23  ;;  %v7919_v37 = vpop.eup %7918  ;;  %v7504_v1 = vmul.f32 -1.442695, %v3003_v26  ;;  %v3500_v50 = vsel %vm12998_vm9, %v12648_v61, %v3496_v51  ;;  %v3504_v14 = vor.u32 1.1754944e-38, %v3503_v56 }
 0x505   :  { %18447 = vst [vmem:[#allocation94_spill] sm:$0xff] %v12994_v42  ;;  %v3601_v47 = vadd.f32 %v12480_v23, %v3600_v32  ;;  %v13011_v7 = vpop.eup %7920  ;;  %v13013_v17 = vadd.f32 1.0, %v7915_v30  ;;  %v18454_v52 = vperm.slane %v18424_v0, 6  ;;  %v3608_v49 = vand.u32 2147483648, %v12398_v18  ;;  %v18462_v32 = vld [vmem:[#allocation92_spill] sm:$0xff] }
 0x506   :  { %v3524_v34 = vsub.f32 1.0, %v3523_v4  ;;  %v13019_v45 = vadd.f32 1.0, %v7917_v15  ;;  %7928 = vpow2.f32 %v7512_v44  ;;  %vm3602_vm8 = vweird.f32 %v12398_v18 }
 0x507   :  { %18452 = vst [vmem:[#allocation89_spill] sm:$0xff] %v13013_v17  ;;  %v3016_v57 = vadd.f32 %v18454_v52, %v18453_v55  ;;  %v3606_v61 = vand.u32 2147483647, %v12398_v18  ;;  %v13023_v26 = vpop.eup %7922  ;;  %7930 = vrcp.f32 %v12994_v42  ;;  %v13026_v51 = vadd.f32 1.0, %v7919_v37  ;;  %vm13038_vm3 = vmor %vm3602_vm8, %vm3603_vm1  ;;  %v18466_v37 = vld [vmem:[#allocation93_spill] sm:$0xff] }
 0x508   :  { %18455 = vst [vmem:[#allocation91_spill] sm:$0xff] %v13019_v45  ;;  %v13030_v56 = vsel %vm12983_vm14, %v3489_v10, %v3485_v3  ;;  %v13034_v55 = vsel %vm13002_vm0, %v3504_v14, %v3500_v50  ;;  %v7925_v18 = vpop.eup %7924  ;;  %7932 = vpow2.f32 %v7504_v1  ;;  %v18463_v4 = vperm.slane %v18424_v0, 4 }
 0x509   :  { %18456 = vst [vmem:[#allocation97_spill] sm:$0xff] %v13023_v26  ;;  %v3605_v6 = vsel %vm13038_vm3, %v12480_v23, %v3601_v47  ;;  %v3531_v35 = vand.u32 2147483647, %v12384_v20  ;;  %v13049_v44 = vpop.eup %7926  ;;  %7934 = vrcp.f32 %v13013_v17  ;;  %v7517_v3 = vmul.f32 -1.442695, %v3016_v57 }
 0x50a   :  { %18457 = vst [vmem:[#allocation125_spill] sm:$0xff] %v13026_v51  ;;  %v3014_v30 = vadd.f32 %v18463_v4, %v18462_v32  ;;  %v3609_v10 = vor.u32 1.1754944e-38, %v3608_v49  ;;  %v3525_v41 = vmul.f32 %v12471_v43, %v3524_v34  ;;  %7936 = vrcp.f32 %v13019_v45  ;;  %v13072_v15 = vpop.f32.mrf.mxu2  ;;  %v18493_v34 = vld [vmem:[#allocation96_spill] sm:$0xff] }
 0x50b   :  { %18458 = vst [vmem:[#allocation126_spill] sm:$0xff] %v13030_v56  ;;  %vm3607_vm5 = vcmp.eq.f32.partialorder %v3606_v61, 8.507059e+37  ;;  %vm3527_vm6 = vweird.f32 %v12384_v20  ;;  %vm3528_vm12 = vweird.f32 %v12471_v43  ;;  %7938 = vrcp.f32 %v13026_v51 }
 0x50c   :  { %18459 = vst [vmem:[#allocation127_spill] sm:$0xff] %v13034_v55  ;;  %v13057_v23 = vadd.f32 1.0, %v7925_v18  ;;  %v18467_v1 = vperm.slane %v18383_v22, 4  ;;  %v13062_v14 = vsel %vm3607_vm5, %v3609_v10, %v3605_v6  ;;  %v7929_v57 = vpop.eup %7928  ;;  %v7515_v49 = vmul.f32 -1.442695, %v3014_v30  ;;  %v18475_v55 = vld [vmem:[#allocation40_spill] sm:$0xff]  ;;  %vm13096_vm11 = vmor %vm3527_vm6, %vm3528_vm12 }
 0x50d   :  { %18464 = vst [vmem:[#allocation92_spill] sm:$0xff] %v13049_v44  ;;  %vm13064_vm7 = vcmp.eq.f32.partialorder %v3531_v35, 8.507059e+37  ;;  %v3533_v47 = vand.u32 2147483648, %v12384_v20  ;;  %v13070_v61 = vpop.eup %7930  ;;  %7940 = vpow2.f32 %v7517_v3  ;;  %v3526_v18 = vadd.f32 %v12471_v43, %v3525_v41 }
 0x50e   :  { %18465 = vst [vmem:[#allocation128_spill] sm:$0xff] %v13057_v23  ;;  %v3006_v50 = vadd.f32 %v18467_v1, %v18466_v37  ;;  %v3548_v32 = vand.u32 2147483648, %v12638_v54  ;;  %v3643_v4 = vmul.f32 %v12548_v19, %v12473_v46  ;;  %v7933_v30 = vpop.eup %7932  ;;  %v4499_v6 = vperm.slane %v13072_v15, 0 }
 0x50f   :  { %18468 = vst [vmem:[#allocation93_spill] sm:$0xff] %v13062_v14  ;;  %v4443_v35 = vrot.slane %v13072_v15, 1  ;;  %v4444_v10 = vrot.slane %v13072_v15, 2  ;;  %v4445_v37 = vrot.slane %v13072_v15, 3  ;;  %v13082_v1 = vpop.eup %7934  ;;  %7942 = vrcp.f32 %v13057_v23  ;;  %v18482_v23 = vld [vmem:[#allocation42_spill] sm:$0xff] }
 0x510   :  { %18471 = vst [vmem:[#allocation129_spill] sm:$0xff] %v13070_v61  ;;  %v13085_v3 = vadd.f32 1.0, %v7929_v57  ;;  %v7507_v41 = vmul.f32 -1.442695, %v3006_v50  ;;  %v4446_v52 = vrot.slane %v13072_v15, 4  ;;  %v13088_v14 = vpop.eup %7936  ;;  %v4627_v56 = vmul.f32 %v4499_v6, %v18475_v55 }
 0x511   :  { %18472 = vst [vmem:[#allocation130_spill] sm:$0xff] %v13082_v1  ;;  %v4500_v17 = vperm.slane %v4443_v35, 0  ;;  %v4501_v45 = vperm.slane %v4444_v10, 0  ;;  %v4447_v44 = vrot.slane %v13072_v15, 5  ;;  %v13100_v57 = vpop.eup %7938  ;;  %v13102_v50 = vadd.f32 1.0, %v7933_v30  ;;  %v18481_v10 = vld [vmem:[#allocation61_spill] sm:$0xff] }
 0x512   :  { %18473 = vst [vmem:[#allocation131_spill] sm:$0xff] %v13085_v3  ;;  %7944 = vpow2.f32 %v7515_v49  ;;  %v3530_v55 = vsel %vm13096_vm11, %v12471_v43, %v3526_v18  ;;  %v3538_v6 = vmul.f32 %v12710_v5, %v12638_v54  ;;  %vm18480_vm10 = vcmask 261120   ;;  %v18483_v30 = vld [vmem:[#allocation95_spill] sm:$0xff] }
 0x513   :  { %18474 = vst [vmem:[#allocation132_spill] sm:$0xff] %v13088_v14  ;;  %v4691_v35 = vsel %vm18480_vm10, %v4627_v56, 0.0  ;;  %v4628_v20 = vmul.f32 %v4500_v17, %v18481_v10  ;;  %v4629_v14 = vmul.f32 %v4501_v45, %v18482_v23  ;;  %v4502_v51 = vperm.slane %v4445_v37, 0  ;;  %v7941_v61 = vpop.eup %7940  ;;  %vm18485_vm15 = vmmov %vm18480_vm10  ;;  %v18492_v37 = vld [vmem:[#allocation41_spill] sm:$0xff] }
 0x514   :  { %18478 = vst [vmem:[#allocation40_spill] sm:$0xff] %v13100_v57  ;;  %7946 = vrcp.f32 %v13085_v3  ;;  %v18484_v49 = vperm.slane %v18424_v0, 7  ;;  %4692 = vadd.xlane.f32.xlu0 %v4691_v35  ;;  %v3534_v1 = vor.u32 1.1754944e-38, %v3533_v47  ;;  %v3644_v43 = vsub.f32 1.0, %v3643_v4  ;;  %vm18486_vm14 = vmmov %vm18480_vm10  ;;  %v18489_v4 = vld [vmem:[#allocation100_spill] sm:$0xff]  ;;  %v18504_v3 = vld [vmem:[#allocation99_spill] sm:$0xff] }
 0x515   :  { %18479 = vst [vmem:[#allocation133_spill] sm:$0xff] %v13102_v50  ;;  %v4694_v18 = vsel %vm18485_vm15, %v4628_v20, 0.0  ;;  %v4697_v26 = vsel %vm18486_vm14, %v4629_v14, 0.0  ;;  %v4503_v56 = vperm.slane %v4446_v52, 0  ;;  %v4504_v42 = vperm.slane %v4447_v44, 0  ;;  %v13119_v45 = vpop.eup %7942  ;;  %v18490_v14 = vld [vmem:[#allocation85_spill] sm:$0xff]  ;;  %vm18501_vm8 = vmmov %vm18480_vm10 }
 0x516   :  { %v3017_v57 = vadd.f32 %v18484_v49, %v18483_v30  ;;  %vm3543_vm2 = vweird.f32 %v12710_v5  ;;  %18487 = vst [vmem:[#allocation61_spill] sm:$0xff] %v13119_v45  ;;  %7948 = vpow2.f32 %v7507_v41  ;;  %4695 = vadd.xlane.f32.xlu2 %v4694_v18  ;;  %4698 = vadd.xlane.f32.xlu1 %v4697_v26  ;;  %v13123_v17 = vsel %vm13064_vm7, %v3534_v1, %v3530_v55  ;;  %v18495_v20 = vld [vmem:[#allocation62_spill] sm:$0xff]  ;;  %v18496_v49 = vld [vmem:[#allocation64_spill] sm:$0xff]  ;;  %vm18506_vm3 = vmmov %vm18501_vm8 }
 0x517   :  { %18488 = vst [vmem:[#allocation42_spill] sm:$0xff] %v13123_v17  ;;  %v3539_v23 = vsub.f32 1.0, %v3538_v6  ;;  %v13125_v47 = vor.u32 1.1754944e-38, %v3548_v32  ;;  %7950 = vrcp.f32 %v13102_v50  ;;  %v18491_v52 = vperm.slane %v18490_v14, 1  ;;  %vm18507_vm5 = vmmov %vm18506_vm3 }
 0x518   :  { %v4630_v35 = vmul.f32 %v4502_v51, %v18492_v37  ;;  %v4448_v10 = vrot.slane %v13072_v15, 6  ;;  %vm3542_vm9 = vweird.f32 %v12638_v54  ;;  %v7945_v26 = vpop.eup %7944  ;;  %v7518_v41 = vmul.f32 -1.442695, %v3017_v57  ;;  %v18500_v37 = vld [vmem:[#allocation114_spill] sm:$0xff]  ;;  %vm18521_vm10 = vmmov %vm18506_vm3 }
 0x519   :  { %v3019_v44 = vadd.f32 %v18491_v52, %v18489_v4  ;;  %v18494_v55 = vperm.slane %v18383_v22, 7  ;;  %v3645_v32 = vmul.f32 %v12548_v19, %v3644_v43  ;;  %vm3647_vm0 = vweird.f32 %v12473_v46  ;;  %v18498_v4 = vld [vmem:[#allocation98_spill] sm:$0xff]  ;;  %vm13186_vm7 = vmor %vm3542_vm9, %vm3543_vm2 }
 0x51a   :  { %v4631_v30 = vmul.f32 %v4503_v56, %v18495_v20  ;;  %v4632_v1 = vmul.f32 %v4504_v42, %v18496_v49  ;;  %v4449_v51 = vrot.slane %v13072_v15, 7  ;;  %vm3648_vm1 = vweird.f32 %v12548_v19  ;;  %v13143_v18 = vpop.eup %7946  ;;  %vm18522_vm14 = vmmov %vm18506_vm3 }
 0x51b   :  { %v3009_v6 = vadd.f32 %v18494_v55, %v18493_v34  ;;  %18497 = vst [vmem:[#allocation95_spill] sm:$0xff] %v13143_v18  ;;  %v18499_v57 = vperm.slane %v18490_v14, 2  ;;  %v3540_v22 = vmul.f32 %v12710_v5, %v3539_v23  ;;  %v3651_v43 = vand.u32 2147483647, %v12473_v46  ;;  %v18502_v18 = vld [vmem:[#allocation104_spill] sm:$0xff]  ;;  %vm13197_vm11 = vmor %vm3647_vm0, %vm3648_vm1 }
 0x51c   :  { %v3568_v34 = vmul.f32 %v12535_v48, %v18500_v37  ;;  %v7520_v56 = vmul.f32 -1.442695, %v3019_v44  ;;  %v4700_v42 = vsel %vm18501_vm8, %v4630_v35, 0.0  ;;  %v4505_v55 = vperm.slane %v4448_v10, 0  ;;  %v7949_v20 = vpop.eup %7948 }
 0x51d   :  { %v3020_v52 = vadd.f32 %v18499_v57, %v18498_v4  ;;  %v3653_v15 = vand.u32 2147483648, %v12473_v46  ;;  %v13154_v49 = vadd.f32 1.0, %v7941_v61  ;;  %7952 = vpow2.f32 %v7518_v41  ;;  %4701 = vadd.xlane.f32.xlu0 %v4700_v42  ;;  %v13159_v57 = vpop.eup %7950  ;;  %v18525_v41 = vld [vmem:[#allocation106_spill] sm:$0xff] }
 0x51e   :  { %v7510_v17 = vmul.f32 -1.442695, %v3009_v6  ;;  %v18503_v4 = vperm.slane %v18490_v14, 4  ;;  %v18505_v44 = vperm.slane %v18424_v0, 2  ;;  %v4703_v35 = vsel %vm18506_vm3, %v4631_v30, 0.0 }
 0x51f   :  { %v4706_v10 = vsel %vm18507_vm5, %v4632_v1, 0.0  ;;  %v4506_v50 = vperm.slane %v4449_v51, 0  ;;  %v18508_v61 = vand.u32 2147483647, %v12638_v54  ;;  %v7521_v6 = vmul.f32 -1.442695, %v3020_v52  ;;  %4704 = vadd.xlane.f32.xlu2 %v4703_v35 }
 0x520   :  { %v3022_v23 = vadd.f32 %v18503_v4, %v18502_v18  ;;  %v3012_v45 = vadd.f32 %v18505_v44, %v18504_v3  ;;  %4707 = vadd.xlane.f32.xlu1 %v4706_v10  ;;  %v3541_v18 = vadd.f32 %v12710_v5, %v3540_v22  ;;  %v3646_v42 = vadd.f32 %v12548_v19, %v3645_v32  ;;  %v18511_v3 = vld [vmem:[#allocation63_spill] sm:$0xff] }
 0x521   :  { %vm13168_vm6 = vcmp.eq.f32.partialorder %v18508_v61, 8.507059e+37  ;;  %v3569_v4 = vsub.f32 1.0, %v3568_v34  ;;  %7954 = vpow2.f32 %v7520_v56  ;;  %v4633_v30 = vmul.f32 %v4505_v55, %v18511_v3  ;;  %v18516_v34 = vld [vmem:[#allocation67_spill] sm:$0xff] }
 0x522   :  { %vm13175_vm12 = vcmp.eq.f32.partialorder %v3651_v43, 8.507059e+37  ;;  %v3654_v51 = vor.u32 1.1754944e-38, %v3653_v15  ;;  %7956 = vrcp.f32 %v13154_v49  ;;  %v13180_v44 = vadd.f32 1.0, %v7945_v26  ;;  %v18519_v15 = vld [vmem:[#allocation101_spill] sm:$0xff] }
 0x523   :  { %v7523_v52 = vmul.f32 -1.442695, %v3022_v23  ;;  %v3688_v22 = vmul.f32 %v12627_v33, %v12541_v13  ;;  %7958 = vpow2.f32 %v7510_v17  ;;  %v7513_v43 = vmul.f32 -1.442695, %v3012_v45  ;;  %v7953_v55 = vpop.eup %7952 }
 0x524   :  { %v4634_v56 = vmul.f32 %v4506_v50, %v18516_v34  ;;  %v3583_v54 = vmul.f32 %v12746_v8, %v12669_v58  ;;  %7960 = vpow2.f32 %v7521_v6  ;;  %v3545_v17 = vsel %vm13186_vm7, %v12710_v5, %v3541_v18 }
 0x525   :  { %v3650_v50 = vsel %vm13197_vm11, %v12548_v19, %v3646_v42  ;;  %v3570_v45 = vmul.f32 %v12535_v48, %v3569_v4  ;;  %v13210_v46 = vadd.f32 1.0, %v7949_v20  ;;  %v18520_v23 = vperm.slane %v18490_v14, 5 }
 0x526   :  { %v4709_v10 = vsel %vm18521_vm10, %v4633_v30, 0.0  ;;  %vm3572_vm15 = vweird.f32 %v18500_v37  ;;  %7962 = vpow2.f32 %v7523_v52  ;;  %v3576_v5 = vand.u32 2147483647, %v18500_v37 }
 0x527   :  { %v3023_v35 = vadd.f32 %v18520_v23, %v18519_v15  ;;  %4710 = vadd.xlane.f32.xlu0 %v4709_v10  ;;  %v3578_v61 = vand.u32 2147483648, %v18500_v37  ;;  %v3689_v6 = vsub.f32 1.0, %v3688_v22  ;;  %v7955_v19 = vpop.eup %7954  ;;  %v13219_v18 = vadd.f32 1.0, %v7953_v55 }
 0x528   :  { %7964 = vpow2.f32 %v7513_v43  ;;  %v4712_v20 = vsel %vm18522_vm14, %v4634_v56, 0.0  ;;  %v3584_v42 = vsub.f32 1.0, %v3583_v54  ;;  %v13222_v4 = vpop.eup %7956  ;;  %v13228_v3 = vsel %vm13168_vm6, %v13125_v47, %v3545_v17 }
 0x529   :  { %7966 = vrcp.f32 %v13180_v44  ;;  %4713 = vadd.xlane.f32.xlu2 %v4712_v20  ;;  %18523 = vst [vmem:[#allocation100_spill] sm:$0xff] %v13228_v3  ;;  %v3571_v30 = vadd.f32 %v12535_v48, %v3570_v45  ;;  %vm3573_vm2 = vweird.f32 %v12535_v48  ;;  %v7959_v52 = vpop.eup %7958  ;;  %v7524_v32 = vmul.f32 -1.442695, %v3023_v35 }
 0x52a   :  { %7968 = vrcp.f32 %v13210_v46  ;;  %v13235_v22 = vsel %vm13175_vm12, %v3654_v51, %v3650_v50  ;;  %vm3587_vm9 = vweird.f32 %v12669_v58  ;;  %v7961_v43 = vpop.eup %7960  ;;  %v13238_v34 = vadd.f32 1.0, %v7955_v19  ;;  %vm13251_vm1 = vmor %vm3572_vm15, %vm3573_vm2 }
 0x52b   :  { %18524 = vst [vmem:[#allocation85_spill] sm:$0xff] %v13235_v22  ;;  %v18526_v47 = vperm.slane %v18490_v14, 7  ;;  %vm13243_vm0 = vcmp.eq.f32.partialorder %v3576_v5, 8.507059e+37  ;;  %v3690_v54 = vmul.f32 %v12627_v33, %v3689_v6  ;;  %7970 = vrcp.f32 %v13219_v18  ;;  %v18532_v5 = vld [vmem:[#allocation103_spill] sm:$0xff] }
 0x52c   :  { %v3579_v51 = vor.u32 1.1754944e-38, %v3578_v61  ;;  %v3585_v55 = vmul.f32 %v12746_v8, %v3584_v42  ;;  %v3591_v17 = vand.u32 2147483647, %v12669_v58  ;;  %v7963_v50 = vpop.eup %7962  ;;  %v13257_v45 = vadd.f32 1.0, %v7959_v52 }
 0x52d   :  { %v3025_v56 = vadd.f32 %v18526_v47, %v18525_v41  ;;  %v3575_v15 = vsel %vm13251_vm1, %v12535_v48, %v3571_v30  ;;  %v3593_v23 = vand.u32 2147483648, %v12669_v58  ;;  %v3613_v37 = vmul.f32 %v12602_v38, %v12525_v59 }
 0x52e   :  { %v7965_v35 = vpop.eup %7964  ;;  %v13265_v10 = vadd.f32 1.0, %v7961_v43  ;;  %7972 = vpow2.f32 %v7524_v32  ;;  %v18533_v61 = vperm.slane %v18424_v0, 5  ;;  %vm3692_vm8 = vweird.f32 %v12541_v13 }
 0x52f   :  { %v13271_v19 = vpop.eup %7966  ;;  %7974 = vrcp.f32 %v13238_v34  ;;  %v7526_v48 = vmul.f32 -1.442695, %v3025_v56  ;;  %v3691_v20 = vadd.f32 %v12627_v33, %v3690_v54  ;;  %vm3693_vm3 = vweird.f32 %v12627_v33 }
 0x530   :  { %18531 = vst [vmem:[#allocation41_spill] sm:$0xff] %v13265_v10  ;;  %v3015_v6 = vadd.f32 %v18533_v61, %v18532_v5  ;;  %v13276_v42 = vpop.eup %7968  ;;  %v13278_v30 = vadd.f32 1.0, %v7963_v50  ;;  %v3586_v52 = vadd.f32 %v12746_v8, %v3585_v55  ;;  %vm3588_vm5 = vweird.f32 %v12746_v8  ;;  %vm13302_vm12 = vmor %vm3692_vm8, %vm3693_vm3 }
 0x531   :  { %v3698_v0 = vand.u32 2147483648, %v12541_v13  ;;  %7976 = vrcp.f32 %v13257_v45  ;;  %v13284_v32 = vadd.f32 1.0, %v7965_v35  ;;  %v3696_v43 = vand.u32 2147483647, %v12541_v13  ;;  %v13287_v47 = vpop.eup %7970  ;;  %vm13308_vm7 = vmor %vm3587_vm9, %vm3588_vm5 }
 0x532   :  { %18534 = vst [vmem:[#allocation96_spill] sm:$0xff] %v13278_v30  ;;  %v3614_v41 = vsub.f32 1.0, %v3613_v37  ;;  %7978 = vrcp.f32 %v13265_v10  ;;  %v7516_v56 = vmul.f32 -1.442695, %v3015_v6  ;;  %v13292_v54 = vsel %vm13243_vm0, %v3579_v51, %v3575_v15  ;;  %v18544_v6 = vld [vmem:[#allocation105_spill] sm:$0xff] }
 0x533   :  { %18535 = vst [vmem:[#allocation62_spill] sm:$0xff] %v13292_v54  ;;  %vm13294_vm6 = vcmp.eq.f32.partialorder %v3591_v17, 8.507059e+37  ;;  %7980 = vpow2.f32 %v7526_v48  ;;  %v3594_v26 = vor.u32 1.1754944e-38, %v3593_v23  ;;  %v3695_v51 = vsel %vm13302_vm12, %v12627_v33, %v3691_v20 }
 0x534   :  { %v3623_v17 = vand.u32 2147483648, %v12525_v59  ;;  %v7973_v15 = vpop.eup %7972  ;;  %7982 = vrcp.f32 %v13278_v30  ;;  %v3590_v13 = vsel %vm13308_vm7, %v12746_v8, %v3586_v52  ;;  %v3699_v37 = vor.u32 1.1754944e-38, %v3698_v0  ;;  %v13338_v52 = vpop.f32.mrf.mxu2 }
 0x535   :  { %v3621_v58 = vand.u32 2147483647, %v12525_v59  ;;  %v13321_v35 = vpop.eup %7974  ;;  %7984 = vrcp.f32 %v13284_v32  ;;  %vm3697_vm11 = vcmp.eq.f32.partialorder %v3696_v43, 8.507059e+37  ;;  %v3615_v23 = vmul.f32 %v12602_v38, %v3614_v41 }
 0x536   :  { %v3733_v33 = vmul.f32 %v12685_v25, %v12605_v27  ;;  %7986 = vpow2.f32 %v7516_v56  ;;  %v13327_v5 = vsel %vm3697_vm11, %v3699_v37, %v3695_v51  ;;  %vm3617_vm10 = vweird.f32 %v12525_v59 }
 0x537   :  { %18542 = vst [vmem:[#allocation64_spill] sm:$0xff] %v13327_v5  ;;  %vm3618_vm15 = vweird.f32 %v12602_v38  ;;  %v13331_v8 = vpop.eup %7976  ;;  %v13333_v61 = vadd.f32 1.0, %v7973_v15  ;;  %v18545_v48 = vperm.slane %v18490_v14, 0  ;;  %v13342_v0 = vsel %vm13294_vm6, %v3594_v26, %v3590_v13 }
 0x538   :  { %18546 = vst [vmem:[#allocation114_spill] sm:$0xff] %v13342_v0  ;;  %v3624_v43 = vor.u32 1.1754944e-38, %v3623_v17  ;;  %v13344_v41 = vpop.eup %7978  ;;  %v4507_v56 = vperm.slane %v13338_v52, 0  ;;  %v4451_v55 = vrot.slane %v13338_v52, 2  ;;  %v4450_v50 = vrot.slane %v13338_v52, 1  ;;  %vm13376_vm0 = vmor %vm3617_vm10, %vm3618_vm15 }
 0x539   :  { %18543 = vst [vmem:[#allocation98_spill] sm:$0xff] %v13333_v61  ;;  %v3018_v20 = vadd.f32 %v18545_v48, %v18544_v6  ;;  %v4452_v51 = vrot.slane %v13338_v52, 3  ;;  %vm13350_vm14 = vcmp.eq.f32.partialorder %v3621_v58, 8.507059e+37  ;;  %v7981_v37 = vpop.eup %7980  ;;  %v4454_v1 = vrot.slane %v13338_v52, 5  ;;  %v18551_v48 = vld [vmem:[#allocation66_spill] sm:$0xff] }
 0x53a   :  { %18547 = vst [vmem:[#allocation104_spill] sm:$0xff] %v13344_v41  ;;  %v3616_v26 = vadd.f32 %v12602_v38, %v3615_v23  ;;  %v3734_v13 = vsub.f32 1.0, %v3733_v33  ;;  %v13357_v6 = vpop.eup %7982  ;;  %v4635_v5 = vmul.f32 %v4507_v56, %v18551_v48  ;;  %v4509_v0 = vperm.slane %v4451_v55, 0  ;;  %v18553_v55 = vld [vmem:[#allocation68_spill] sm:$0xff]  ;;  %v18554_v48 = vld [vmem:[#allocation65_spill] sm:$0xff] }
 0x53b   :  { %18550 = vst [vmem:[#allocation99_spill] sm:$0xff] %v13357_v6  ;;  %v4508_v54 = vperm.slane %v4450_v50, 0  ;;  %v4453_v22 = vrot.slane %v13338_v52, 4  ;;  %v13361_v58 = vpop.eup %7984  ;;  %v7519_v3 = vmul.f32 -1.442695, %v3018_v20  ;;  %v3628_v41 = vmul.f32 %v12825_v29, %v12754_v60 }
 0x53c   :  { %v3638_v10 = vand.u32 2147483648, %v12754_v60  ;;  %vm3737_vm2 = vweird.f32 %v12605_v27  ;;  %v3658_v23 = vmul.f32 %v12676_v53, %v12592_v36  ;;  %v7987_v33 = vpop.eup %7986  ;;  %vm18552_vm9 = vcmask 261120  }
 0x53d   :  { %v4715_v56 = vsel %vm18552_vm9, %v4635_v5, 0.0  ;;  %v4637_v50 = vmul.f32 %v4509_v0, %v18553_v55  ;;  %v4636_v17 = vmul.f32 %v4508_v54, %v18554_v48  ;;  %v4510_v6 = vperm.slane %v4452_v51, 0  ;;  %vm18558_vm1 = vmmov %vm18552_vm9 }
 0x53e   :  { %7988 = vrcp.f32 %v13333_v61  ;;  %v13381_v30 = vadd.f32 1.0, %v7981_v37  ;;  %4716 = vadd.xlane.f32.xlu1 %v4715_v56  ;;  %v3620_v5 = vsel %vm13376_vm0, %v12602_v38, %v3616_v26  ;;  %v3735_v54 = vmul.f32 %v12685_v25, %v3734_v13  ;;  %vm18559_vm8 = vmmov %vm18558_vm1  ;;  %v18560_v56 = vld [vmem:[#allocation70_spill] sm:$0xff] }
 0x53f   :  { %v4721_v0 = vsel %vm18558_vm1, %v4637_v50, 0.0  ;;  %v4718_v51 = vsel %vm18559_vm8, %v4636_v17, 0.0  ;;  %v4512_v59 = vperm.slane %v4454_v1, 0  ;;  %v4511_v55 = vperm.slane %v4453_v22, 0  ;;  %v18562_v1 = vld [vmem:[#allocation71_spill] sm:$0xff]  ;;  %vm18567_vm7 = vmmov %vm18558_vm1 }
 0x540   :  { %18557 = vst [vmem:[#allocation63_spill] sm:$0xff] %v13381_v30  ;;  %7990 = vpow2.f32 %v7519_v3  ;;  %4722 = vadd.xlane.f32.xlu2 %v4721_v0  ;;  %4719 = vadd.xlane.f32.xlu0 %v4718_v51  ;;  %v13389_v48 = vor.u32 1.1754944e-38, %v3638_v10  ;;  %vm3738_vm3 = vweird.f32 %v12685_v25  ;;  %v3659_v37 = vsub.f32 1.0, %v3658_v23  ;;  %v18563_v23 = vld [vmem:[#allocation69_spill] sm:$0xff]  ;;  %vm18572_vm15 = vmmov %vm18558_vm1 }
 0x541   :  { %v4638_v61 = vmul.f32 %v4510_v6, %v18560_v56  ;;  %v4455_v38 = vrot.slane %v13338_v52, 6  ;;  %v3629_v26 = vsub.f32 1.0, %v3628_v41  ;;  %v3741_v13 = vand.u32 2147483647, %v12605_v27  ;;  %vm13424_vm11 = vmor %vm3737_vm2, %vm3738_vm3 }
 0x542   :  { %7992 = vrcp.f32 %v13381_v30  ;;  %v13398_v22 = vsel %vm13350_vm14, %v3624_v43, %v3620_v5  ;;  %v3736_v3 = vadd.f32 %v12685_v25, %v3735_v54  ;;  %v3743_v10 = vand.u32 2147483648, %v12605_v27  ;;  %v18565_v43 = vld [vmem:[#allocation107_spill] sm:$0xff]  ;;  %v13414_v54 = vpop.f32.mrf.mxu2  ;;  %vm18573_vm14 = vmmov %vm18558_vm1 }
 0x543   :  { %18561 = vst [vmem:[#allocation67_spill] sm:$0xff] %v13398_v22  ;;  %v4640_v17 = vmul.f32 %v4512_v59, %v18562_v1  ;;  %v4639_v50 = vmul.f32 %v4511_v55, %v18563_v23  ;;  %v4456_v6 = vrot.slane %v13338_v52, 7  ;;  %vm3632_vm5 = vweird.f32 %v12754_v60 }
 0x544   :  { %vm3662_vm6 = vweird.f32 %v12592_v36  ;;  %v13407_v41 = vpop.eup %7988  ;;  %v13409_v20 = vadd.f32 1.0, %v7987_v33  ;;  %v18566_v15 = vperm.slane %v18490_v14, 3  ;;  %vm3633_vm12 = vweird.f32 %v12825_v29 }
 0x545   :  { %18564 = vst [vmem:[#allocation101_spill] sm:$0xff] %v13407_v41  ;;  %v3660_v0 = vmul.f32 %v12676_v53, %v3659_v37  ;;  %v4724_v52 = vsel %vm18567_vm7, %v4638_v61, 0.0  ;;  %v4513_v51 = vperm.slane %v4455_v38, 0  ;;  %v3630_v59 = vmul.f32 %v12825_v29, %v3629_v26  ;;  %v18583_v41 = vld [vmem:[#allocation76_spill] sm:$0xff]  ;;  %vm13480_vm8 = vmor %vm3632_vm5, %vm3633_vm12 }
 0x546   :  { %v3021_v5 = vadd.f32 %v18566_v15, %v18565_v43  ;;  %vm13428_vm10 = vcmp.eq.f32.partialorder %v3741_v13, 8.507059e+37  ;;  %v7991_v56 = vpop.eup %7990  ;;  %4725 = vadd.xlane.f32.xlu1 %v4724_v52  ;;  %v3740_v61 = vsel %vm13424_vm11, %v12685_v25, %v3736_v3  ;;  %v3744_v37 = vor.u32 1.1754944e-38, %v3743_v10 }
 0x547   :  { %v3666_v38 = vand.u32 2147483647, %v12592_v36  ;;  %v3778_v27 = vmul.f32 %v12734_v2, %v12655_v31  ;;  %v4730_v26 = vsel %vm18572_vm15, %v4640_v17, 0.0  ;;  %v4727_v1 = vsel %vm18573_vm14, %v4639_v50, 0.0  ;;  %v18578_v50 = vld [vmem:[#allocation72_spill] sm:$0xff] }
 0x548   :  { %v4514_v13 = vperm.slane %v4456_v6, 0  ;;  %v4515_v23 = vperm.slane %v13414_v54, 0  ;;  %v18574_v43 = vand.u32 2147483647, %v12754_v60  ;;  %v13447_v25 = vpop.eup %7992  ;;  %v7522_v3 = vmul.f32 -1.442695, %v3021_v5  ;;  %4731 = vadd.xlane.f32.xlu2 %v4730_v26  ;;  %4728 = vadd.xlane.f32.xlu0 %v4727_v1 }
 0x549   :  { %18577 = vst [vmem:[#allocation106_spill] sm:$0xff] %v13447_v25  ;;  %v3661_v10 = vadd.f32 %v12676_v53, %v3660_v0  ;;  %vm3663_vm9 = vweird.f32 %v12676_v53  ;;  %v3668_v17 = vand.u32 2147483648, %v12592_v36  ;;  %7994 = vrcp.f32 %v13409_v20  ;;  %v18582_v1 = vld [vmem:[#allocation73_spill] sm:$0xff] }
 0x54a   :  { %vm13443_vm2 = vcmp.eq.f32.partialorder %v18574_v43, 8.507059e+37  ;;  %v4641_v6 = vmul.f32 %v4513_v51, %v18578_v50  ;;  %v4457_v52 = vrot.slane %v13414_v54, 1  ;;  %v3631_v33 = vadd.f32 %v12825_v29, %v3630_v59  ;;  %vm13472_vm1 = vmor %vm3662_vm6, %vm3663_vm9 }
 0x54b   :  { %v13456_v43 = vadd.f32 1.0, %v7991_v56  ;;  %v13460_v5 = vsel %vm13428_vm10, %v3744_v37, %v3740_v61  ;;  %vm13462_vm0 = vcmp.eq.f32.partialorder %v3666_v38, 8.507059e+37  ;;  %v3779_v26 = vsub.f32 1.0, %v3778_v27  ;;  %vm18588_vm6 = vmmov %vm18567_vm7 }
 0x54c   :  { %18579 = vst [vmem:[#allocation103_spill] sm:$0xff] %v13460_v5  ;;  %v4642_v22 = vmul.f32 %v4514_v13, %v18582_v1  ;;  %v4643_v25 = vmul.f32 %v4515_v23, %v18583_v41  ;;  %v4459_v51 = vrot.slane %v13414_v54, 3  ;;  %v4458_v50 = vrot.slane %v13414_v54, 2  ;;  %vm18589_vm5 = vmmov %vm18588_vm6  ;;  %v18595_v1 = vld [vmem:[#allocation75_spill] sm:$0xff] }
 0x54d   :  { %7996 = vpow2.f32 %v7522_v3  ;;  %v3665_v41 = vsel %vm13472_vm1, %v12676_v53, %v3661_v10  ;;  %v3669_v56 = vor.u32 1.1754944e-38, %v3668_v17  ;;  %vm3782_vm3 = vweird.f32 %v12655_v31  ;;  %vm18590_vm12 = vmmov %vm18589_vm5 }
 0x54e   :  { %v4733_v61 = vsel %vm18588_vm6, %v4641_v6, 0.0  ;;  %v4516_v37 = vperm.slane %v4457_v52, 0  ;;  %v3635_v60 = vsel %vm13480_vm8, %v12825_v29, %v3631_v33  ;;  %v3703_v38 = vmul.f32 %v12716_v12, %v12642_v40 }
 0x54f   :  { %7998 = vrcp.f32 %v13456_v43  ;;  %4734 = vadd.xlane.f32.xlu1 %v4733_v61  ;;  %v3673_v53 = vmul.f32 %v12887_v21, %v12810_v63  ;;  %v3683_v27 = vand.u32 2147483648, %v12810_v63  ;;  %v3780_v13 = vmul.f32 %v12734_v2, %v3779_v26  ;;  %v13500_v23 = vpop.eup %7994 }
 0x550   :  { %v4736_v3 = vsel %vm18589_vm5, %v4642_v22, 0.0  ;;  %v4739_v10 = vsel %vm18590_vm12, %v4643_v25, 0.0  ;;  %v4518_v29 = vperm.slane %v4459_v51, 0  ;;  %v4517_v17 = vperm.slane %v4458_v50, 0  ;;  %v18593_v22 = vld [vmem:[#allocation108_spill] sm:$0xff] }
 0x551   :  { %4737 = vadd.xlane.f32.xlu0 %v4736_v3  ;;  %4740 = vadd.xlane.f32.xlu2 %v4739_v10  ;;  %v13507_v6 = vsel %vm13443_vm2, %v13389_v48, %v3635_v60  ;;  %v13511_v52 = vsel %vm13462_vm0, %v3669_v56, %v3665_v41  ;;  %vm3783_vm7 = vweird.f32 %v12734_v2  ;;  %v3786_v33 = vand.u32 2147483647, %v12655_v31  ;;  %v18596_v56 = vld [vmem:[#allocation43_spill] sm:$0xff]  ;;  %v18597_v60 = vld [vmem:[#allocation74_spill] sm:$0xff]  ;;  %vm18601_vm2 = vmmov %vm18589_vm5 }
 0x552   :  { %18591 = vst [vmem:[#allocation105_spill] sm:$0xff] %v13507_v6  ;;  %v18594_v25 = vperm.slane %v18490_v14, 6  ;;  %v4644_v51 = vmul.f32 %v4516_v37, %v18595_v1  ;;  %v4460_v50 = vrot.slane %v13414_v54, 4  ;;  %v3704_v59 = vsub.f32 1.0, %v3703_v38  ;;  %vm13545_vm9 = vmor %vm3782_vm3, %vm3783_vm7 }
 0x553   :  { %18592 = vst [vmem:[#allocation66_spill] sm:$0xff] %v13511_v52  ;;  %v7997_v15 = vpop.eup %7996  ;;  %v3674_v48 = vsub.f32 1.0, %v3673_v53  ;;  %v13520_v55 = vor.u32 1.1754944e-38, %v3683_v27  ;;  %v3781_v0 = vadd.f32 %v12734_v2, %v3780_v13  ;;  %v3788_v41 = vand.u32 2147483648, %v12655_v31  ;;  %v18600_v27 = vld [vmem:[#allocation122_spill] sm:$0xff]  ;;  %vm18605_vm0 = vmmov %vm18601_vm2  ;;  %v13559_v52 = vpop.f32.mrf.mxu2 }
 0x554   :  { %v3024_v26 = vadd.f32 %v18594_v25, %v18593_v22  ;;  %v4646_v61 = vmul.f32 %v4518_v29, %v18596_v56  ;;  %v4645_v3 = vmul.f32 %v4517_v17, %v18597_v60  ;;  %v4462_v14 = vrot.slane %v13414_v54, 6  ;;  %vm18606_vm1 = vmmov %vm18605_vm0 }
 0x555   :  { %v4461_v10 = vrot.slane %v13414_v54, 5  ;;  %vm3707_vm11 = vweird.f32 %v12642_v40  ;;  %v13529_v37 = vpop.eup %7998  ;;  %vm3677_vm10 = vweird.f32 %v12810_v63  ;;  %vm13532_vm15 = vcmp.eq.f32.partialorder %v3786_v33, 8.507059e+37  ;;  %vm18620_vm7 = vmmov %vm18605_vm0 }
 0x556   :  { %vm3708_vm14 = vweird.f32 %v12716_v12  ;;  %v3711_v53 = vand.u32 2147483647, %v12642_v40  ;;  %v3823_v13 = vmul.f32 %v18600_v27, %v12718_v9  ;;  %v7525_v29 = vmul.f32 -1.442695, %v3024_v26 }
 0x557   :  { %v4742_v17 = vsel %vm18601_vm2, %v4644_v51, 0.0  ;;  %v4519_v22 = vperm.slane %v4460_v50, 0  ;;  %v3705_v25 = vmul.f32 %v12716_v12, %v3704_v59  ;;  %v13550_v1 = vadd.f32 1.0, %v7997_v15  ;;  %vm13590_vm5 = vmor %vm3707_vm11, %vm3708_vm14 }
 0x558   :  { %4743 = vadd.xlane.f32.xlu1 %v4742_v17  ;;  %v3675_v56 = vmul.f32 %v12887_v21, %v3674_v48  ;;  %v3785_v26 = vsel %vm13545_vm9, %v12734_v2, %v3781_v0  ;;  %v3713_v51 = vand.u32 2147483648, %v12642_v40  ;;  %v4748_v50 = vsel %vm18605_vm0, %v4646_v61, 0.0  ;;  %v18607_v48 = vld [vmem:[#allocation120_spill] sm:$0xff]  ;;  %v18608_v17 = vld [vmem:[#allocation83_spill] sm:$0xff]  ;;  %v18609_v2 = vld [vmem:[#allocation45_spill] sm:$0xff] }
 0x559   :  { %18604 = vst [vmem:[#allocation68_spill] sm:$0xff] %v13550_v1  ;;  %v4745_v31 = vsel %vm18606_vm1, %v4645_v3, 0.0  ;;  %v4521_v60 = vperm.slane %v4462_v14, 0  ;;  %v4520_v36 = vperm.slane %v4461_v10, 0  ;;  %4749 = vadd.xlane.f32.xlu2 %v4748_v50  ;;  %vm3678_vm8 = vweird.f32 %v12887_v21  ;;  %v18617_v50 = vld [vmem:[#allocation44_spill] sm:$0xff]  ;;  %vm18624_vm14 = vmmov %vm18605_vm0  ;;  %v18628_v40 = vld [vmem:[#allocation78_spill] sm:$0xff] }
 0x55a   :  { %4746 = vadd.xlane.f32.xlu0 %v4745_v31  ;;  %v3789_v59 = vor.u32 1.1754944e-38, %v3788_v41  ;;  %v3824_v15 = vsub.f32 1.0, %v3823_v13  ;;  %v3748_v33 = vmul.f32 %v18608_v17, %v18607_v48  ;;  %8000 = vpow2.f32 %v7525_v29 }
 0x55b   :  { %v4647_v0 = vmul.f32 %v4519_v22, %v18609_v2  ;;  %v4463_v61 = vrot.slane %v13414_v54, 7  ;;  %v18610_v3 = vand.u32 2147483647, %v12810_v63  ;;  %v3706_v10 = vadd.f32 %v12716_v12, %v3705_v25  ;;  %v18616_v54 = vld [vmem:[#allocation46_spill] sm:$0xff] }
 0x55c   :  { %8002 = vrcp.f32 %v13550_v1  ;;  %v3676_v41 = vadd.f32 %v12887_v21, %v3675_v56  ;;  %v13577_v13 = vsel %vm13532_vm15, %v3789_v59, %v3785_v26  ;;  %vm13579_vm6 = vcmp.eq.f32.partialorder %v3711_v53, 8.507059e+37  ;;  %vm13602_vm15 = vmor %vm3677_vm10, %vm3678_vm8 }
 0x55d   :  { %vm13568_vm3 = vcmp.eq.f32.partialorder %v18610_v3, 8.507059e+37  ;;  %18613 = vst [vmem:[#allocation65_spill] sm:$0xff] %v13577_v13  ;;  %v4649_v22 = vmul.f32 %v4521_v60, %v18616_v54  ;;  %v4648_v31 = vmul.f32 %v4520_v36, %v18617_v50  ;;  %v4464_v2 = vrot.slane %v13559_v52, 1  ;;  %vm18623_vm10 = vmmov %vm18605_vm0 }
 0x55e   :  { %v3714_v3 = vor.u32 1.1754944e-38, %v3713_v51  ;;  %v3728_v38 = vand.u32 2147483648, %v12868_v39  ;;  %v3825_v53 = vmul.f32 %v18600_v27, %v3824_v15  ;;  %vm3827_vm12 = vweird.f32 %v12718_v9 }
 0x55f   :  { %v3749_v56 = vsub.f32 1.0, %v3748_v33  ;;  %v4751_v36 = vsel %vm18620_vm7, %v4647_v0, 0.0  ;;  %v4522_v26 = vperm.slane %v4463_v61, 0  ;;  %v3710_v51 = vsel %vm13590_vm5, %v12716_v12, %v3706_v10  ;;  %vm18638_vm5 = vmmov %vm18606_vm1 }
 0x560   :  { %vm3828_vm11 = vweird.f32 %v18600_v27  ;;  %4752 = vadd.xlane.f32.xlu1 %v4751_v36  ;;  %v3680_v60 = vsel %vm13602_vm15, %v12887_v21, %v3676_v41  ;;  %v3831_v15 = vand.u32 2147483647, %v12718_v9  ;;  %v3833_v63 = vand.u32 2147483648, %v12718_v9  ;;  %v8001_v33 = vpop.eup %8000 }
 0x561   :  { %v4757_v0 = vsel %vm18623_vm10, %v4649_v22, 0.0  ;;  %v4754_v61 = vsel %vm18624_vm14, %v4648_v31, 0.0  ;;  %v4523_v12 = vperm.slane %v13559_v52, 0  ;;  %v4524_v10 = vperm.slane %v4464_v2, 0  ;;  %v18627_v22 = vld [vmem:[#allocation48_spill] sm:$0xff]  ;;  %vm13655_vm0 = vmor %vm3827_vm12, %vm3828_vm11 }
 0x562   :  { %v13619_v54 = vpop.eup %8002  ;;  %4758 = vadd.xlane.f32.xlu2 %v4757_v0  ;;  %4755 = vadd.xlane.f32.xlu0 %v4754_v61  ;;  %v13623_v21 = vsel %vm13579_vm6, %v3714_v3, %v3710_v51  ;;  %v13625_v41 = vor.u32 1.1754944e-38, %v3728_v38  ;;  %v3826_v50 = vadd.f32 %v18600_v27, %v3825_v53  ;;  %v3750_v25 = vmul.f32 %v18608_v17, %v3749_v56  ;;  %v18629_v0 = vld [vmem:[#allocation124_spill] sm:$0xff]  ;;  %v18634_v38 = vld [vmem:[#allocation47_spill] sm:$0xff]  ;;  %v18635_v56 = vld [vmem:[#allocation49_spill] sm:$0xff] }
 0x563   :  { %18625 = vst [vmem:[#allocation70_spill] sm:$0xff] %v13619_v54  ;;  %v4650_v36 = vmul.f32 %v4522_v26, %v18627_v22  ;;  %v4465_v31 = vrot.slane %v13559_v52, 2  ;;  %v3718_v2 = vmul.f32 %v12949_v16, %v12868_v39  ;;  %v3868_v61 = vmul.f32 %v18629_v0, %v18628_v40  ;;  %vm18639_vm12 = vmmov %vm18606_vm1 }
 0x564   :  { %18626 = vst [vmem:[#allocation71_spill] sm:$0xff] %v13623_v21  ;;  %v13635_v59 = vadd.f32 1.0, %v8001_v33  ;;  %v13640_v29 = vsel %vm13568_vm3, %v13520_v55, %v3680_v60  ;;  %vm13642_vm2 = vcmp.eq.f32.partialorder %v3831_v15, 8.507059e+37  ;;  %vm3753_vm9 = vweird.f32 %v18608_v17  ;;  %v18665_v21 = vld [vmem:[#allocation87_spill] sm:$0xff] }
 0x565   :  { %18631 = vst [vmem:[#allocation107_spill] sm:$0xff] %v13640_v29  ;;  %v4651_v53 = vmul.f32 %v4523_v12, %v18634_v38  ;;  %v4652_v26 = vmul.f32 %v4524_v10, %v18635_v56  ;;  %v4466_v51 = vrot.slane %v13559_v52, 3  ;;  %v4467_v33 = vrot.slane %v13559_v52, 4  ;;  %v18666_v29 = vld [vmem:[#allocation53_spill] sm:$0xff] }
 0x566   :  { %18630 = vst [vmem:[#allocation69_spill] sm:$0xff] %v13635_v59  ;;  %v3830_v14 = vsel %vm13655_vm0, %v18600_v27, %v3826_v50  ;;  %v3751_v60 = vadd.f32 %v18608_v17, %v3750_v25  ;;  %v3756_v15 = vand.u32 2147483647, %v18607_v48  ;;  %v3758_v12 = vand.u32 2147483648, %v18607_v48  ;;  %vm18658_vm0 = vmmov %vm18606_vm1 }
 0x567   :  { %v4760_v10 = vsel %vm18606_vm1, %v4650_v36, 0.0  ;;  %v4525_v22 = vperm.slane %v4465_v31, 0  ;;  %v3719_v38 = vsub.f32 1.0, %v3718_v2  ;;  %v3869_v56 = vsub.f32 1.0, %v3868_v61  ;;  %v18645_v61 = vld [vmem:[#allocation51_spill] sm:$0xff] }
 0x568   :  { %8004 = vrcp.f32 %v13635_v59  ;;  %4761 = vadd.xlane.f32.xlu1 %v4760_v10  ;;  %vm3722_vm8 = vweird.f32 %v12868_v39  ;;  %vm3723_vm3 = vweird.f32 %v12949_v16  ;;  %v3834_v9 = vor.u32 1.1754944e-38, %v3833_v63 }
 0x569   :  { %vm3752_vm6 = vweird.f32 %v18607_v48  ;;  %v4763_v27 = vsel %vm18638_vm5, %v4651_v53, 0.0  ;;  %v4766_v50 = vsel %vm18639_vm12, %v4652_v26, 0.0  ;;  %v4526_v25 = vperm.slane %v4466_v51, 0 }
 0x56a   :  { %v4527_v55 = vperm.slane %v4467_v33, 0  ;;  %vm13674_vm7 = vmor %vm3752_vm6, %vm3753_vm9  ;;  %4764 = vadd.xlane.f32.xlu0 %v4763_v27  ;;  %4767 = vadd.xlane.f32.xlu2 %v4766_v50  ;;  %v13680_v31 = vsel %vm13642_vm2, %v3834_v9, %v3830_v14  ;;  %vm13685_vm15 = vcmp.eq.f32.partialorder %v3756_v15, 8.507059e+37  ;;  %v3759_v2 = vor.u32 1.1754944e-38, %v3758_v12  ;;  %v18647_v14 = vld [vmem:[#allocation123_spill] sm:$0xff]  ;;  %v18648_v15 = vld [vmem:[#allocation50_spill] sm:$0xff] }
 0x56b   :  { %18642 = vst [vmem:[#allocation72_spill] sm:$0xff] %v13680_v31  ;;  %v3755_v48 = vsel %vm13674_vm7, %v18608_v17, %v3751_v60  ;;  %v4653_v53 = vmul.f32 %v4525_v22, %v18645_v61  ;;  %v4468_v26 = vrot.slane %v13559_v52, 5  ;;  %v3720_v51 = vmul.f32 %v12949_v16, %v3719_v38  ;;  %v18646_v17 = vld [vmem:[#allocation77_spill] sm:$0xff]  ;;  %v18649_v12 = vld [vmem:[#allocation52_spill] sm:$0xff]  ;;  %vm18655_vm2 = vmmov %vm18606_vm1 }
 0x56c   :  { %v3870_v33 = vmul.f32 %v18629_v0, %v3869_v56  ;;  %vm3872_vm11 = vweird.f32 %v18628_v40  ;;  %vm3873_vm10 = vweird.f32 %v18629_v0  ;;  %v3876_v3 = vand.u32 2147483647, %v18628_v40  ;;  %vm18659_vm1 = vmmov %vm18658_vm0 }
 0x56d   :  { %v3793_v60 = vmul.f32 %v18647_v14, %v18646_v17  ;;  %v4654_v10 = vmul.f32 %v4526_v25, %v18648_v15  ;;  %v4655_v9 = vmul.f32 %v4527_v55, %v18649_v12  ;;  %v4469_v22 = vrot.slane %v13559_v52, 6  ;;  %vm13734_vm6 = vmor %vm3722_vm8, %vm3723_vm3 }
 0x56e   :  { %v4470_v27 = vrot.slane %v13559_v52, 7  ;;  %v18650_v38 = vand.u32 2147483647, %v12868_v39  ;;  %v13708_v50 = vpop.eup %8004  ;;  %v13712_v36 = vsel %vm13685_vm15, %v3759_v2, %v3755_v48  ;;  %v3771_v25 = vand.u32 2147483647, %v12942_v11  ;;  %vm13746_vm5 = vmor %vm3872_vm11, %vm3873_vm10 }
 0x56f   :  { %18653 = vst [vmem:[#allocation73_spill] sm:$0xff] %v13708_v50  ;;  %v3773_v55 = vand.u32 2147483648, %v12942_v11  ;;  %v3878_v61 = vand.u32 2147483648, %v18628_v40  ;;  %v4769_v52 = vsel %vm18655_vm2, %v4653_v53, 0.0  ;;  %v4528_v15 = vperm.slane %v4468_v26, 0  ;;  %vm18671_vm11 = vmmov %vm18658_vm0 }
 0x570   :  { %vm13704_vm14 = vcmp.eq.f32.partialorder %v18650_v38, 8.507059e+37  ;;  %18654 = vst [vmem:[#allocation76_spill] sm:$0xff] %v13712_v36  ;;  %v3721_v12 = vadd.f32 %v12949_v16, %v3720_v51  ;;  %v3871_v38 = vadd.f32 %v18629_v0, %v3870_v33  ;;  %4770 = vadd.xlane.f32.xlu1 %v4769_v52  ;;  %v3763_v31 = vmul.f32 %v13011_v7, %v12942_v11  ;;  %vm18673_vm10 = vmmov %vm18658_vm0 }
 0x571   :  { %vm13722_vm9 = vcmp.eq.f32.partialorder %v3876_v3, 8.507059e+37  ;;  %v3794_v63 = vsub.f32 1.0, %v3793_v60  ;;  %v3913_v2 = vmul.f32 %v12959_v28, %v12900_v62  ;;  %v4772_v36 = vsel %vm18658_vm0, %v4654_v10, 0.0  ;;  %v13738_v3 = vpop.f32.mrf.mxu2 }
 0x572   :  { %v4775_v53 = vsel %vm18659_vm1, %v4655_v9, 0.0  ;;  %v4529_v26 = vperm.slane %v4469_v22, 0  ;;  %v4530_v51 = vperm.slane %v4470_v27, 0  ;;  %4773 = vadd.xlane.f32.xlu0 %v4772_v36  ;;  %v13740_v60 = vor.u32 1.1754944e-38, %v3773_v55  ;;  %v18664_v22 = vld [vmem:[#allocation54_spill] sm:$0xff] }
 0x573   :  { %4776 = vadd.xlane.f32.xlu2 %v4775_v53  ;;  %v3879_v9 = vor.u32 1.1754944e-38, %v3878_v61  ;;  %vm3797_vm8 = vweird.f32 %v18646_v17  ;;  %v3801_v39 = vand.u32 2147483647, %v18646_v17  ;;  %v4656_v27 = vmul.f32 %v4528_v15, %v18664_v22  ;;  %v18667_v15 = vld [vmem:[#allocation13_spill] sm:$0xff] }
 0x574   :  { %v3725_v36 = vsel %vm13734_vm6, %v12949_v16, %v3721_v12  ;;  %v3875_v55 = vsel %vm13746_vm5, %v18629_v0, %v3871_v38  ;;  %v3803_v40 = vand.u32 2147483648, %v18646_v17  ;;  %v3764_v52 = vsub.f32 1.0, %v3763_v31  ;;  %v18680_v17 = vld [vmem:[#allocation15_spill] sm:$0xff] }
 0x575   :  { %v3795_v53 = vmul.f32 %v18647_v14, %v3794_v63  ;;  %v3914_v61 = vsub.f32 1.0, %v3913_v2  ;;  %v3838_v13 = vmul.f32 %v12910_v24, %v18665_v21  ;;  %v4657_v5 = vmul.f32 %v4529_v26, %v18666_v29 }
 0x576   :  { %v4658_v22 = vmul.f32 %v4530_v51, %v18667_v15  ;;  %v4472_v33 = vrot.slane %v13738_v3, 2  ;;  %v4471_v16 = vrot.slane %v13738_v3, 1  ;;  %vm3767_vm3 = vweird.f32 %v12942_v11  ;;  %v13816_v15 = vpop.xlane.xlu2 %4412 }
 0x577   :  { %v13771_v0 = vsel %vm13704_vm14, %v13625_v41, %v3725_v36  ;;  %vm3798_vm12 = vweird.f32 %v18647_v14  ;;  %vm13774_vm7 = vcmp.eq.f32.partialorder %v3801_v39, 8.507059e+37  ;;  %vm3917_vm15 = vweird.f32 %v12900_v62  ;;  %vm18674_vm14 = vmmov %vm18658_vm0  ;;  %v18675_v36 = vld [vmem:[#allocation14_spill] sm:$0xff] }
 0x578   :  { %18668 = vst [vmem:[#allocation108_spill] sm:$0xff] %v13771_v0  ;;  %v4778_v29 = vsel %vm18671_vm11, %v4656_v27, 0.0  ;;  %v4531_v12 = vperm.slane %v13738_v3, 0  ;;  %v13783_v38 = vsel %vm13722_vm9, %v3879_v9, %v3875_v55  ;;  %v3804_v63 = vor.u32 1.1754944e-38, %v3803_v40  ;;  %vm13804_vm1 = vmor %vm3797_vm8, %vm3798_vm12  ;;  %v18722_v0 = vld [vmem:[#allocation21_spill] sm:$0xff] }
 0x579   :  { %18672 = vst [vmem:[#allocation75_spill] sm:$0xff] %v13783_v38  ;;  %4779 = vadd.xlane.f32.xlu1 %v4778_v29  ;;  %v3765_v41 = vmul.f32 %v13011_v7, %v3764_v52  ;;  %v3796_v56 = vadd.f32 %v18647_v14, %v3795_v53  ;;  %v3915_v2 = vmul.f32 %v12959_v28, %v3914_v61  ;;  %v3839_v26 = vsub.f32 1.0, %v3838_v13  ;;  %vm18689_vm11 = vmmov %vm18673_vm10  ;;  %v18721_v38 = vld [vmem:[#allocation22_spill] sm:$0xff] }
 0x57a   :  { %v4781_v51 = vsel %vm18673_vm10, %v4657_v5, 0.0  ;;  %v4784_v10 = vsel %vm18674_vm14, %v4658_v22, 0.0  ;;  %v4533_v39 = vperm.slane %v4472_v33, 0  ;;  %v4532_v27 = vperm.slane %v4471_v16, 0  ;;  %v18681_v33 = vld [vmem:[#allocation16_spill] sm:$0xff]  ;;  %v18707_v5 = vld [vmem:[#allocation19_spill] sm:$0xff] }
 0x57b   :  { %4782 = vadd.xlane.f32.xlu0 %v4781_v51  ;;  %4785 = vadd.xlane.f32.xlu2 %v4784_v10  ;;  %vm3768_vm2 = vweird.f32 %v13011_v7  ;;  %vm3918_vm9 = vweird.f32 %v12959_v28  ;;  %v3921_v48 = vand.u32 2147483647, %v12900_v62  ;;  %v3923_v9 = vand.u32 2147483648, %v12900_v62  ;;  %v18687_v51 = vld [vmem:[#allocation90_spill] sm:$0xff]  ;;  %v18688_v10 = vld [vmem:[#allocation97_spill] sm:$0xff] }
 0x57c   :  { %v4659_v55 = vmul.f32 %v4531_v12, %v18675_v36  ;;  %v4473_v13 = vrot.slane %v13738_v3, 3  ;;  %vm13796_vm0 = vcmp.eq.f32.partialorder %v3771_v25, 8.507059e+37  ;;  %vm3842_vm6 = vweird.f32 %v18665_v21  ;;  %vm13826_vm8 = vmor %vm3767_vm3, %vm3768_vm2 }
 0x57d   :  { %vm3843_vm5 = vweird.f32 %v12910_v24  ;;  %v3766_v52 = vadd.f32 %v13011_v7, %v3765_v41  ;;  %v3800_v25 = vsel %vm13804_vm1, %v18647_v14, %v3796_v56  ;;  %v3916_v53 = vadd.f32 %v12959_v28, %v3915_v2  ;;  %v18684_v41 = vld [vmem:[#allocation94_spill] sm:$0xff]  ;;  %vm13847_vm3 = vmor %vm3917_vm15, %vm3918_vm9 }
 0x57e   :  { %v3840_v61 = vmul.f32 %v12910_v24, %v3839_v26  ;;  %v4661_v22 = vmul.f32 %v4533_v39, %v18680_v17  ;;  %v4660_v16 = vmul.f32 %v4532_v27, %v18681_v33  ;;  %v4475_v29 = vrot.slane %v13738_v3, 5  ;;  %vm13889_vm14 = vmor %vm3842_vm6, %vm3843_vm5 }
 0x57f   :  { %v4474_v12 = vrot.slane %v13738_v3, 4  ;;  %v3818_v56 = vand.u32 2147483648, %v18684_v41  ;;  %vm13831_vm12 = vcmp.eq.f32.partialorder %v3921_v48, 8.507059e+37  ;;  %v3846_v26 = vand.u32 2147483647, %v18665_v21  ;;  %v13874_v48 = vpop.xlane.xlu1 %4415 }
 0x580   :  { %v3958_v39 = vmul.f32 %v18688_v10, %v18687_v51  ;;  %v4787_v27 = vsel %vm18689_vm11, %v4659_v55, 0.0  ;;  %v4534_v36 = vperm.slane %v4473_v13, 0  ;;  %v13841_v11 = vsel %vm13774_vm7, %v3804_v63, %v3800_v25  ;;  %vm18693_vm7 = vmmov %vm18673_vm10  ;;  %18701 = vst [vmem:[#allocation74_spill] sm:$0xff] %v13874_v48 }
 0x581   :  { %18690 = vst [vmem:[#allocation43_spill] sm:$0xff] %v13841_v11  ;;  %v3924_v40 = vor.u32 1.1754944e-38, %v3923_v9  ;;  %4788 = vadd.xlane.f32.xlu1 %v4787_v27  ;;  %v3770_v17 = vsel %vm13826_vm8, %v13011_v7, %v3766_v52  ;;  %v3920_v31 = vsel %vm13847_vm3, %v12959_v28, %v3916_v53  ;;  %v3841_v63 = vadd.f32 %v12910_v24, %v3840_v61  ;;  %vm18694_vm15 = vmmov %vm18693_vm7  ;;  %v18697_v52 = vld [vmem:[#allocation17_spill] sm:$0xff] }
 0x582   :  { %v3848_v55 = vand.u32 2147483648, %v18665_v21  ;;  %v4793_v62 = vsel %vm18693_vm7, %v4661_v22, 0.0  ;;  %v4790_v13 = vsel %vm18694_vm15, %v4660_v16, 0.0  ;;  %v4536_v25 = vperm.slane %v4475_v29, 0  ;;  %v18698_v22 = vld [vmem:[#allocation129_spill] sm:$0xff]  ;;  %v18699_v29 = vld [vmem:[#allocation86_spill] sm:$0xff] }
 0x583   :  { %v4535_v33 = vperm.slane %v4474_v12, 0  ;;  %4794 = vadd.xlane.f32.xlu2 %v4793_v62  ;;  %4791 = vadd.xlane.f32.xlu0 %v4790_v13  ;;  %v3816_v9 = vand.u32 2147483647, %v18684_v41  ;;  %v13862_v14 = vor.u32 1.1754944e-38, %v3818_v56  ;;  %vm13864_vm10 = vcmp.eq.f32.partialorder %v3846_v26, 8.507059e+37  ;;  %v18700_v12 = vld [vmem:[#allocation88_spill] sm:$0xff] }
 0x584   :  { %v3959_v28 = vsub.f32 1.0, %v3958_v39  ;;  %v4662_v53 = vmul.f32 %v4534_v36, %v18697_v52  ;;  %v4476_v61 = vrot.slane %v13738_v3, 6  ;;  %v3808_v16 = vmul.f32 %v18698_v22, %v18684_v41  ;;  %v18706_v13 = vld [vmem:[#allocation18_spill] sm:$0xff] }
 0x585   :  { %v3883_v27 = vmul.f32 %v18700_v12, %v18699_v29  ;;  %v13879_v56 = vsel %vm13796_vm0, %v13740_v60, %v3770_v17  ;;  %v13883_v26 = vsel %vm13831_vm12, %v3924_v40, %v3920_v31  ;;  %v3849_v36 = vor.u32 1.1754944e-38, %v3848_v55  ;;  %v13900_v40 = vpop.f32.mrf.mxu2  ;;  %v13906_v55 = vpop.xlane.xlu0 %4418  ;;  %vm18710_vm0 = vmmov %vm18693_vm7 }
 0x586   :  { %18702 = vst [vmem:[#allocation122_spill] sm:$0xff] %v13879_v56  ;;  %v3966_v62 = vand.u32 2147483647, %v18687_v51  ;;  %v4664_v52 = vmul.f32 %v4536_v25, %v18706_v13  ;;  %v4663_v60 = vmul.f32 %v4535_v33, %v18707_v5  ;;  %v4477_v17 = vrot.slane %v13738_v3, 7  ;;  %v13908_v25 = vpop.xlane.xlu2 %4421  ;;  %vm18712_vm8 = vmmov %vm18710_vm0 }
 0x587   :  { %18703 = vst [vmem:[#allocation120_spill] sm:$0xff] %v13883_v26  ;;  %v3845_v2 = vsel %vm13889_vm14, %v12910_v24, %v3841_v63  ;;  %v3960_v21 = vmul.f32 %v18688_v10, %v3959_v28  ;;  %vm3962_vm2 = vweird.f32 %v18687_v51  ;;  %vm3963_vm9 = vweird.f32 %v18688_v10  ;;  %vm18713_vm12 = vmmov %vm18710_vm0  ;;  %v13955_v50 = vpop.xlane.xlu1 %4424 }
 0x588   :  { %v3968_v31 = vand.u32 2147483648, %v18687_v51  ;;  %18708 = vst [vmem:[#allocation83_spill] sm:$0xff] %v13906_v55  ;;  %v4796_v3 = vsel %vm18710_vm0, %v4662_v53, 0.0  ;;  %v4537_v33 = vperm.slane %v4476_v61, 0  ;;  %v3809_v13 = vsub.f32 1.0, %v3808_v16  ;;  %vm13951_vm15 = vmor %vm3962_vm2, %vm3963_vm9  ;;  %v18732_v55 = vld [vmem:[#allocation132_spill] sm:$0xff] }
 0x589   :  { %18709 = vst [vmem:[#allocation45_spill] sm:$0xff] %v13908_v25  ;;  %v3884_v39 = vsub.f32 1.0, %v3883_v27  ;;  %4797 = vadd.xlane.f32.xlu1 %v4796_v3  ;;  %vm3813_vm1 = vweird.f32 %v18698_v22  ;;  %v13914_v24 = vsel %vm13864_vm10, %v3849_v36, %v3845_v2  ;;  %vm3887_vm6 = vweird.f32 %v18699_v29  ;;  %v18717_v3 = vld [vmem:[#allocation125_spill] sm:$0xff]  ;;  %vm18730_vm14 = vmmov %vm18710_vm0  ;;  %v18731_v25 = vld [vmem:[#allocation91_spill] sm:$0xff] }
 0x58a   :  { %18711 = vst [vmem:[#allocation46_spill] sm:$0xff] %v13914_v24  ;;  %vm3888_vm5 = vweird.f32 %v18700_v12  ;;  %v4802_v63 = vsel %vm18712_vm8, %v4664_v52, 0.0  ;;  %v4799_v28 = vsel %vm18713_vm12, %v4663_v60, 0.0  ;;  %v4538_v5 = vperm.slane %v4477_v17, 0  ;;  %v18716_v52 = vld [vmem:[#allocation20_spill] sm:$0xff]  ;;  %vm18735_vm2 = vmmov %vm18710_vm0 }
 0x58b   :  { %v4539_v53 = vperm.slane %v13900_v40, 0  ;;  %vm3812_vm11 = vweird.f32 %v18684_v41  ;;  %vm13922_vm3 = vcmp.eq.f32.partialorder %v3966_v62, 8.507059e+37  ;;  %4803 = vadd.xlane.f32.xlu2 %v4802_v63  ;;  %4800 = vadd.xlane.f32.xlu0 %v4799_v28  ;;  %v3961_v7 = vadd.f32 %v18688_v10, %v3960_v21  ;;  %v18718_v24 = vld [vmem:[#allocation40_spill] sm:$0xff]  ;;  %18727 = vst [vmem:[#allocation44_spill] sm:$0xff] %v13955_v50  ;;  %vm18736_vm9 = vmmov %vm18710_vm0 }
 0x58c   :  { %v3969_v16 = vor.u32 1.1754944e-38, %v3968_v31  ;;  %v3891_v27 = vand.u32 2147483647, %v18699_v29  ;;  %v3893_v36 = vand.u32 2147483648, %v18699_v29  ;;  %v4665_v60 = vmul.f32 %v4537_v33, %v18716_v52  ;;  %v18719_v63 = vld [vmem:[#allocation84_spill] sm:$0xff]  ;;  %vm13982_vm0 = vmor %vm3887_vm6, %vm3888_vm5 }
 0x58d   :  { %v4478_v17 = vrot.slane %v13900_v40, 1  ;;  %v3810_v2 = vmul.f32 %v18698_v22, %v3809_v13  ;;  %v3885_v62 = vmul.f32 %v18700_v12, %v3884_v39  ;;  %v3853_v26 = vmul.f32 %v18718_v24, %v18717_v3  ;;  %v18720_v28 = vld [vmem:[#allocation92_spill] sm:$0xff]  ;;  %vm13990_vm8 = vmor %vm3812_vm11, %vm3813_vm1 }
 0x58e   :  { %v3928_v11 = vmul.f32 %v18720_v28, %v18719_v63  ;;  %v3936_v21 = vand.u32 2147483647, %v18719_v63  ;;  %v3938_v31 = vand.u32 2147483648, %v18719_v63  ;;  %v4666_v56 = vmul.f32 %v4538_v5, %v18721_v38 }
 0x58f   :  { %v4667_v33 = vmul.f32 %v4539_v53, %v18722_v0  ;;  %v4480_v52 = vrot.slane %v13900_v40, 3  ;;  %v4479_v13 = vrot.slane %v13900_v40, 2  ;;  %vm13943_vm7 = vcmp.eq.f32.partialorder %v3816_v9, 8.507059e+37 }
 0x590   :  { %v3863_v0 = vand.u32 2147483648, %v18717_v3  ;;  %v3965_v38 = vsel %vm13951_vm15, %v18688_v10, %v3961_v7  ;;  %vm13961_vm10 = vcmp.eq.f32.partialorder %v3891_v27, 8.507059e+37  ;;  %v3894_v5 = vor.u32 1.1754944e-38, %v3893_v36  ;;  %v13972_v10 = vpop.xlane.xlu0 %4427  ;;  %v13974_v7 = vpop.xlane.xlu2 %4430 }
 0x591   :  { %v4805_v53 = vsel %vm18730_vm14, %v4665_v60, 0.0  ;;  %v4540_v51 = vperm.slane %v4478_v17, 0  ;;  %v3811_v59 = vadd.f32 %v18698_v22, %v3810_v2  ;;  %v3886_v48 = vadd.f32 %v18700_v12, %v3885_v62  ;;  %18733 = vst [vmem:[#allocation48_spill] sm:$0xff] %v13972_v10  ;;  %vm18757_vm14 = vmmov %vm18735_vm2 }
 0x592   :  { %4806 = vadd.xlane.f32.xlu1 %v4805_v53  ;;  %v3854_v50 = vsub.f32 1.0, %v3853_v26  ;;  %v4003_v54 = vmul.f32 %v18732_v55, %v18731_v25  ;;  %v3929_v1 = vsub.f32 1.0, %v3928_v11  ;;  %v13970_v6 = vor.u32 1.1754944e-38, %v3938_v31  ;;  %18734 = vst [vmem:[#allocation78_spill] sm:$0xff] %v13974_v7  ;;  %v18742_v31 = vld [vmem:[#allocation23_spill] sm:$0xff]  ;;  %v18743_v53 = vld [vmem:[#allocation24_spill] sm:$0xff] }
 0x593   :  { %v4808_v27 = vsel %vm18735_vm2, %v4666_v56, 0.0  ;;  %v4811_v36 = vsel %vm18736_vm9, %v4667_v33, 0.0  ;;  %v4542_v60 = vperm.slane %v4480_v52, 0  ;;  %v4541_v17 = vperm.slane %v4479_v13, 0 }
 0x594   :  { %4809 = vadd.xlane.f32.xlu0 %v4808_v27  ;;  %4812 = vadd.xlane.f32.xlu2 %v4811_v36  ;;  %v3861_v56 = vand.u32 2147483647, %v18717_v3  ;;  %v13995_v2 = vor.u32 1.1754944e-38, %v3863_v0  ;;  %v13999_v29 = vsel %vm13922_vm3, %v3969_v16, %v3965_v38  ;;  %v4011_v62 = vand.u32 2147483647, %v18731_v25  ;;  %v18744_v27 = vld [vmem:[#allocation25_spill] sm:$0xff]  ;;  %vm18751_vm3 = vmmov %vm18735_vm2 }
 0x595   :  { %18741 = vst [vmem:[#allocation124_spill] sm:$0xff] %v13999_v29  ;;  %vm3932_vm6 = vweird.f32 %v18719_v63  ;;  %v4668_v33 = vmul.f32 %v4540_v51, %v18742_v31  ;;  %v4481_v41 = vrot.slane %v13900_v40, 4  ;;  %v3815_v52 = vsel %vm13990_vm8, %v18698_v22, %v3811_v59 }
 0x596   :  { %vm3857_vm1 = vweird.f32 %v18717_v3  ;;  %v3890_v61 = vsel %vm13982_vm0, %v18700_v12, %v3886_v48  ;;  %v3855_v16 = vmul.f32 %v18718_v24, %v3854_v50  ;;  %v4004_v13 = vsub.f32 1.0, %v4003_v54  ;;  %v18749_v50 = vld [vmem:[#allocation89_spill] sm:$0xff]  ;;  %v18750_v12 = vld [vmem:[#allocation130_spill] sm:$0xff] }
 0x597   :  { %v4013_v0 = vand.u32 2147483648, %v18731_v25  ;;  %v3930_v38 = vmul.f32 %v18720_v28, %v3929_v1  ;;  %v4670_v51 = vmul.f32 %v4542_v60, %v18743_v53  ;;  %v4669_v36 = vmul.f32 %v4541_v17, %v18744_v27  ;;  %v18755_v17 = vld [vmem:[#allocation133_spill] sm:$0xff] }
 0x598   :  { %v4483_v11 = vrot.slane %v13900_v40, 6  ;;  %v4482_v59 = vrot.slane %v13900_v40, 5  ;;  %v14022_v22 = vsel %vm13943_vm7, %v13862_v14, %v3815_v52  ;;  %v14026_v54 = vsel %vm13961_vm10, %v3894_v5, %v3890_v61  ;;  %v14043_v5 = vpop.xlane.xlu1 %4433  ;;  %vm18756_vm10 = vmmov %vm18735_vm2 }
 0x599   :  { %18745 = vst [vmem:[#allocation47_spill] sm:$0xff] %v14022_v22  ;;  %vm4007_vm5 = vweird.f32 %v18731_v25  ;;  %vm3933_vm12 = vweird.f32 %v18720_v28  ;;  %vm14030_vm11 = vcmp.eq.f32.partialorder %v3936_v21, 8.507059e+37  ;;  %v3973_v48 = vmul.f32 %v18750_v12, %v18749_v50  ;;  %v18760_v22 = vld [vmem:[#allocation26_spill] sm:$0xff] }
 0x59a   :  { %18746 = vst [vmem:[#allocation49_spill] sm:$0xff] %v14026_v54  ;;  %v4814_v60 = vsel %vm18751_vm3, %v4668_v33, 0.0  ;;  %v4543_v39 = vperm.slane %v4481_v41, 0  ;;  %vm3858_vm7 = vweird.f32 %v18718_v24  ;;  %vm14038_vm15 = vcmp.eq.f32.partialorder %v3861_v56, 8.507059e+37  ;;  %v14050_v41 = vpop.xlane.xlu0 %4692  ;;  %v14052_v56 = vpop.xlane.xlu2 %4695  ;;  %vm14071_vm0 = vmor %vm3932_vm6, %vm3933_vm12 }
 0x59b   :  { %v3983_v9 = vand.u32 2147483648, %v18749_v50  ;;  %18754 = vst [vmem:[#allocation51_spill] sm:$0xff] %v14043_v5  ;;  %4815 = vadd.xlane.f32.xlu1 %v4814_v60  ;;  %v3856_v21 = vadd.f32 %v18718_v24, %v3855_v16  ;;  %v3898_v26 = vmul.f32 %v13159_v57, %v18755_v17  ;;  %v4005_v31 = vmul.f32 %v18732_v55, %v4004_v13  ;;  %v14056_v60 = vpop.f32.mrf.mxu2  ;;  %vm14081_vm8 = vmor %vm3857_vm1, %vm3858_vm7  ;;  %v18768_v5 = vld [vmem:[#allocation61_spill] sm:$0xff] }
 0x59c   :  { %v3931_v33 = vadd.f32 %v18720_v28, %v3930_v38  ;;  %v4820_v52 = vsel %vm18756_vm10, %v4670_v51, 0.0  ;;  %v4817_v61 = vsel %vm18757_vm14, %v4669_v36, 0.0  ;;  %v4545_v53 = vperm.slane %v4483_v11, 0  ;;  %vm18769_vm12 = vmmov %vm18751_vm3 }
 0x59d   :  { %v4544_v27 = vperm.slane %v4482_v59, 0  ;;  %4821 = vadd.xlane.f32.xlu2 %v4820_v52  ;;  %4818 = vadd.xlane.f32.xlu0 %v4817_v61  ;;  %v3908_v16 = vand.u32 2147483648, %v18755_v17  ;;  %vm14059_vm2 = vcmp.eq.f32.partialorder %v4011_v62, 8.507059e+37  ;;  %v4014_v38 = vor.u32 1.1754944e-38, %v4013_v0  ;;  %vm18775_vm7 = vmmov %vm18756_vm10 }
 0x59e   :  { %v3974_v54 = vsub.f32 1.0, %v3973_v48  ;;  %v3981_v29 = vand.u32 2147483647, %v18749_v50  ;;  %v4671_v51 = vmul.f32 %v4543_v39, %v18760_v22  ;;  %v4484_v36 = vrot.slane %v13900_v40, 7  ;;  %v18765_v48 = vld [vmem:[#allocation27_spill] sm:$0xff] }
 0x59f   :  { %vm4008_vm9 = vweird.f32 %v18732_v55  ;;  %v14075_v62 = vor.u32 1.1754944e-38, %v3983_v9  ;;  %v3899_v40 = vsub.f32 1.0, %v3898_v26  ;;  %v3906_v59 = vand.u32 2147483647, %v18755_v17  ;;  %v18766_v9 = vld [vmem:[#allocation28_spill] sm:$0xff] }
 0x5a0   :  { %v4006_v22 = vadd.f32 %v18732_v55, %v4005_v31  ;;  %v3935_v63 = vsel %vm14071_vm0, %v18720_v28, %v3931_v33  ;;  %vm3977_vm6 = vweird.f32 %v18749_v50  ;;  %v4673_v39 = vmul.f32 %v4545_v53, %v18765_v48  ;;  %v18767_v31 = vld [vmem:[#allocation128_spill] sm:$0xff]  ;;  %vm14109_vm3 = vmor %vm4007_vm5, %vm4008_vm9 }
 0x5a1   :  { %v4672_v52 = vmul.f32 %v4544_v27, %v18766_v9  ;;  %v4485_v3 = vrot.slane %v14056_v60, 1  ;;  %v3860_v26 = vsel %vm14081_vm8, %v18718_v24, %v3856_v21  ;;  %vm3902_vm1 = vweird.f32 %v18755_v17  ;;  %v18784_v24 = vld [vmem:[#allocation31_spill] sm:$0xff]  ;;  %vm18788_vm8 = vmmov %vm18775_vm7 }
 0x5a2   :  { %v14098_v61 = vor.u32 1.1754944e-38, %v3908_v16  ;;  %v4048_v11 = vmul.f32 %v18768_v5, %v18767_v31  ;;  %v4058_v28 = vand.u32 2147483648, %v18767_v31  ;;  %v3975_v33 = vmul.f32 %v18750_v12, %v3974_v54  ;;  %v14142_v9 = vpop.xlane.xlu0 %4701 }
 0x5a3   :  { %v4823_v53 = vsel %vm18769_vm12, %v4671_v51, 0.0  ;;  %v4546_v27 = vperm.slane %v4484_v36, 0  ;;  %v14116_v21 = vsel %vm14030_vm11, %v13970_v6, %v3935_v63  ;;  %v4056_v16 = vand.u32 2147483647, %v18767_v31  ;;  %v14129_v36 = vpop.xlane.xlu1 %4698  ;;  %vm18774_vm11 = vmmov %vm18756_vm10 }
 0x5a4   :  { %18772 = vst [vmem:[#allocation77_spill] sm:$0xff] %v14116_v21  ;;  %4824 = vadd.xlane.f32.xlu1 %v4823_v53  ;;  %v14122_v54 = vsel %vm14038_vm15, %v13995_v2, %v3860_v26  ;;  %v3900_v51 = vmul.f32 %v13159_v57, %v3899_v40  ;;  %v4010_v25 = vsel %vm14109_vm3, %v18732_v55, %v4006_v22  ;;  %vm3978_vm5 = vweird.f32 %v18750_v12  ;;  %v18778_v22 = vld [vmem:[#allocation131_spill] sm:$0xff]  ;;  %vm18791_vm12 = vmmov %vm18775_vm7 }
 0x5a5   :  { %18773 = vst [vmem:[#allocation123_spill] sm:$0xff] %v14122_v54  ;;  %v4829_v6 = vsel %vm18774_vm11, %v4673_v39, 0.0  ;;  %v4826_v1 = vsel %vm18775_vm7, %v4672_v52, 0.0  ;;  %v4547_v0 = vperm.slane %v14056_v60, 0  ;;  %v4548_v63 = vperm.slane %v4485_v3, 0  ;;  %v14144_v39 = vpop.xlane.xlu2 %4704  ;;  %v18779_v52 = vld [vmem:[#allocation29_spill] sm:$0xff] }
 0x5a6   :  { %vm14134_vm10 = vcmp.eq.f32.partialorder %v3981_v29, 8.507059e+37  ;;  %4830 = vadd.xlane.f32.xlu2 %v4829_v6  ;;  %4827 = vadd.xlane.f32.xlu0 %v4826_v1  ;;  %v4049_v14 = vsub.f32 1.0, %v4048_v11  ;;  %v14138_v40 = vor.u32 1.1754944e-38, %v4058_v28  ;;  %v3976_v55 = vadd.f32 %v18750_v12, %v3975_v33  ;;  %v18783_v28 = vld [vmem:[#allocation95_spill] sm:$0xff]  ;;  %v18785_v1 = vld [vmem:[#allocation30_spill] sm:$0xff] }
 0x5a7   :  { %v4028_v48 = vand.u32 2147483648, %v18778_v22  ;;  %v4674_v26 = vmul.f32 %v4546_v27, %v18779_v52  ;;  %v4486_v29 = vrot.slane %v14056_v60, 2  ;;  %vm14148_vm15 = vcmp.eq.f32.partialorder %v3906_v59, 8.507059e+37 }
 0x5a8   :  { %v14154_v11 = vsel %vm14059_vm2, %v4014_v38, %v4010_v25  ;;  %v4018_v33 = vmul.f32 %v18783_v28, %v18778_v22  ;;  %v3901_v53 = vadd.f32 %v13159_v57, %v3900_v51  ;;  %vm3903_vm14 = vweird.f32 %v13159_v57  ;;  %vm14172_vm2 = vmor %vm3977_vm6, %vm3978_vm5 }
 0x5a9   :  { %18782 = vst [vmem:[#allocation50_spill] sm:$0xff] %v14154_v11  ;;  %v3943_v27 = vmul.f32 %v13276_v42, %v13210_v46  ;;  %vm4052_vm9 = vweird.f32 %v18767_v31  ;;  %v4026_v59 = vand.u32 2147483647, %v18778_v22  ;;  %v4675_v6 = vmul.f32 %v4547_v0, %v18784_v24  ;;  %vm14188_vm6 = vmor %vm3902_vm1, %vm3903_vm14 }
 0x5aa   :  { %v4676_v13 = vmul.f32 %v4548_v63, %v18785_v1  ;;  %v4487_v38 = vrot.slane %v14056_v60, 3  ;;  %v4488_v25 = vrot.slane %v14056_v60, 4  ;;  %v4050_v52 = vmul.f32 %v18768_v5, %v4049_v14  ;;  %vm18792_vm1 = vmmov %vm18775_vm7  ;;  %v14230_v50 = vpop.xlane.xlu0 %4710 }
 0x5ab   :  { %vm4053_vm0 = vweird.f32 %v18768_v5  ;;  %v3980_v0 = vsel %vm14172_vm2, %v18750_v12, %v3976_v55  ;;  %v14181_v63 = vor.u32 1.1754944e-38, %v4028_v48  ;;  %v4832_v24 = vsel %vm18788_vm8, %v4674_v26, 0.0  ;;  %vm18807_vm8 = vmmov %vm18792_vm1 }
 0x5ac   :  { %v4549_v1 = vperm.slane %v4486_v29, 0  ;;  %v4093_v14 = vmul.f32 %v13222_v4, %v13154_v49  ;;  %v4019_v21 = vsub.f32 1.0, %v4018_v33  ;;  %4833 = vadd.xlane.f32.xlu1 %v4832_v24  ;;  %v3905_v12 = vsel %vm14188_vm6, %v13159_v57, %v3901_v53  ;;  %vm14242_vm7 = vmor %vm4052_vm9, %vm4053_vm0 }
 0x5ad   :  { %v3944_v55 = vsub.f32 1.0, %v3943_v27  ;;  %v3951_v48 = vand.u32 2147483647, %v13210_v46  ;;  %v3953_v26 = vand.u32 2147483648, %v13210_v46  ;;  %v4835_v17 = vsel %vm18791_vm12, %v4675_v6, 0.0  ;;  %v14215_v27 = vpop.xlane.xlu1 %4707  ;;  %v18796_v6 = vld [vmem:[#allocation32_spill] sm:$0xff]  ;;  %vm18804_vm9 = vmmov %vm18792_vm1 }
 0x5ae   :  { %v4838_v29 = vsel %vm18792_vm1, %v4676_v13, 0.0  ;;  %v4550_v51 = vperm.slane %v4487_v38, 0  ;;  %v4551_v11 = vperm.slane %v4488_v25, 0  ;;  %vm14201_vm3 = vcmp.eq.f32.partialorder %v4056_v16, 8.507059e+37  ;;  %4836 = vadd.xlane.f32.xlu0 %v4835_v17  ;;  %v18798_v17 = vld [vmem:[#allocation34_spill] sm:$0xff]  ;;  %vm18808_vm6 = vmmov %vm18792_vm1 }
 0x5af   :  { %vm4022_vm5 = vweird.f32 %v18778_v22  ;;  %4839 = vadd.xlane.f32.xlu2 %v4838_v29  ;;  %vm3947_vm11 = vweird.f32 %v13210_v46  ;;  %v4051_v57 = vadd.f32 %v18768_v5, %v4050_v52  ;;  %v14211_v33 = vsel %vm14134_vm10, %v14075_v62, %v3980_v0  ;;  %v18799_v29 = vld [vmem:[#allocation33_spill] sm:$0xff] }
 0x5b0   :  { %18795 = vst [vmem:[#allocation52_spill] sm:$0xff] %v14211_v33  ;;  %v4101_v53 = vand.u32 2147483647, %v13154_v49  ;;  %v4103_v16 = vand.u32 2147483648, %v13154_v49  ;;  %v4677_v13 = vmul.f32 %v4549_v1, %v18796_v6  ;;  %v4489_v38 = vrot.slane %v14056_v60, 5  ;;  %v14232_v1 = vpop.xlane.xlu2 %4713 }
 0x5b1   :  { %v4094_v25 = vsub.f32 1.0, %v4093_v14  ;;  %v4020_v24 = vmul.f32 %v18783_v28, %v4019_v21  ;;  %v14223_v52 = vsel %vm14148_vm15, %v14098_v61, %v3905_v12  ;;  %v3945_v62 = vmul.f32 %v13276_v42, %v3944_v55 }
 0x5b2   :  { %18797 = vst [vmem:[#allocation54_spill] sm:$0xff] %v14223_v52  ;;  %v14226_v2 = vor.u32 1.1754944e-38, %v3953_v26  ;;  %v4063_v0 = vmul.f32 %v13271_v19, %v13180_v44  ;;  %v4678_v14 = vmul.f32 %v4550_v51, %v18798_v17  ;;  %v4679_v21 = vmul.f32 %v4551_v11, %v18799_v29 }
 0x5b3   :  { %v4490_v6 = vrot.slane %v14056_v60, 6  ;;  %v4491_v61 = vrot.slane %v14056_v60, 7  ;;  %vm4097_vm10 = vweird.f32 %v13154_v49  ;;  %vm14247_vm15 = vcmp.eq.f32.partialorder %v4026_v59, 8.507059e+37 }
 0x5b4   :  { %v4055_v11 = vsel %vm14242_vm7, %v18768_v5, %v4051_v57  ;;  %v14254_v55 = vor.u32 1.1754944e-38, %v4103_v16  ;;  %vm4023_vm14 = vweird.f32 %v18783_v28  ;;  %v4073_v60 = vand.u32 2147483648, %v13180_v44 }
 0x5b5   :  { %v4841_v31 = vsel %vm18804_vm9, %v4677_v13, 0.0  ;;  %v4552_v26 = vperm.slane %v4489_v38, 0  ;;  %vm14259_vm2 = vcmp.eq.f32.partialorder %v3951_v48, 8.507059e+37  ;;  %v4095_v59 = vmul.f32 %v13222_v4, %v4094_v25  ;;  %v14274_v25 = vpop.f32.mrf.mxu3  ;;  %vm14288_vm1 = vmor %vm4022_vm5, %vm4023_vm14  ;;  %v14295_v54 = vpop.xlane.xlu1 %4716 }
 0x5b6   :  { %v4021_v17 = vadd.f32 %v18783_v28, %v4020_v24  ;;  %4842 = vadd.xlane.f32.xlu1 %v4841_v31  ;;  %v3946_v5 = vadd.f32 %v13276_v42, %v3945_v62  ;;  %vm3948_vm0 = vweird.f32 %v13276_v42  ;;  %v4064_v57 = vsub.f32 1.0, %v4063_v0  ;;  %vm18822_vm9 = vmmov %vm18808_vm6 }
 0x5b7   :  { %v4071_v16 = vand.u32 2147483647, %v13180_v44  ;;  %v4844_v29 = vsel %vm18807_vm8, %v4678_v14, 0.0  ;;  %v4847_v13 = vsel %vm18808_vm6, %v4679_v21, 0.0  ;;  %v4553_v48 = vperm.slane %v4490_v6, 0  ;;  %vm18827_vm8 = vmmov %vm18808_vm6 }
 0x5b8   :  { %v4554_v38 = vperm.slane %v4491_v61, 0  ;;  %vm14270_vm12 = vcmp.eq.f32.partialorder %v4101_v53, 8.507059e+37  ;;  %4845 = vadd.xlane.f32.xlu0 %v4844_v29  ;;  %4848 = vadd.xlane.f32.xlu2 %v4847_v13  ;;  %v14279_v24 = vsel %vm14201_vm3, %v14138_v40, %v4055_v11  ;;  %v3988_v62 = vmul.f32 %v13331_v8, %v13257_v45  ;;  %v18814_v40 = vld [vmem:[#allocation55_spill] sm:$0xff]  ;;  %vm14302_vm3 = vmor %vm3947_vm11, %vm3948_vm0  ;;  %v14317_v31 = vpop.xlane.xlu2 %4722 }
 0x5b9   :  { %18811 = vst [vmem:[#allocation87_spill] sm:$0xff] %v14279_v24  ;;  %v3998_v0 = vand.u32 2147483648, %v13257_v45  ;;  %vm4067_vm7 = vweird.f32 %v13180_v44  ;;  %v14293_v14 = vor.u32 1.1754944e-38, %v4073_v60  ;;  %v4680_v21 = vmul.f32 %v4552_v26, %v18814_v40  ;;  %v14319_v26 = vpop.xlane.xlu0 %4719  ;;  %v18818_v13 = vld [vmem:[#allocation35_spill] sm:$0xff]  ;;  %v18832_v44 = vld [vmem:[#allocation38_spill] sm:$0xff] }
 0x5ba   :  { %v4096_v22 = vadd.f32 %v13222_v4, %v4095_v59  ;;  %vm4098_vm5 = vweird.f32 %v13222_v4  ;;  %v4025_v61 = vsel %vm14288_vm1, %v18783_v28, %v4021_v17  ;;  %v3950_v11 = vsel %vm14302_vm3, %v13276_v42, %v3946_v5  ;;  %v18817_v59 = vld [vmem:[#allocation36_spill] sm:$0xff]  ;;  %vm18836_vm3 = vmmov %vm18827_vm8 }
 0x5bb   :  { %v3996_v60 = vand.u32 2147483647, %v13257_v45  ;;  %v4065_v46 = vmul.f32 %v13271_v19, %v4064_v57  ;;  %vm4068_vm11 = vweird.f32 %v13271_v19  ;;  %v4681_v29 = vmul.f32 %v4553_v48, %v18817_v59  ;;  %vm14329_vm14 = vmor %vm4097_vm10, %vm4098_vm5 }
 0x5bc   :  { %v4682_v40 = vmul.f32 %v4554_v38, %v18818_v13  ;;  %v4492_v28 = vrot.slane %v14274_v25, 1  ;;  %v4493_v17 = vrot.slane %v14274_v25, 2  ;;  %v3989_v53 = vsub.f32 1.0, %v3988_v62  ;;  %v18840_v13 = vld [vmem:[#allocation104_spill] sm:$0xff] }
 0x5bd   :  { %v14325_v42 = vor.u32 1.1754944e-38, %v3998_v0  ;;  %v14336_v57 = vsel %vm14247_vm15, %v14181_v63, %v4025_v61  ;;  %v4148_v48 = vand.u32 2147483648, %v13238_v34  ;;  %v4850_v38 = vsel %vm18822_vm9, %v4680_v21, 0.0  ;;  %vm18826_vm15 = vmmov %vm18808_vm6 }
 0x5be   :  { %18821 = vst [vmem:[#allocation53_spill] sm:$0xff] %v14336_v57  ;;  %v4555_v6 = vperm.slane %v14274_v25, 0  ;;  %v4100_v62 = vsel %vm14329_vm14, %v13222_v4, %v4096_v22  ;;  %vm14344_vm0 = vcmp.eq.f32.partialorder %v4071_v16, 8.507059e+37  ;;  %v4118_v0 = vand.u32 2147483648, %v13219_v18  ;;  %4851 = vadd.xlane.f32.xlu1 %v4850_v38  ;;  %vm14379_vm6 = vmor %vm4067_vm7, %vm4068_vm11 }
 0x5bf   :  { %v14352_v63 = vsel %vm14259_vm2, %v14226_v2, %v3950_v11  ;;  %vm3992_vm10 = vweird.f32 %v13257_v45  ;;  %v4138_v12 = vmul.f32 %v13321_v35, %v13238_v34  ;;  %v4146_v21 = vand.u32 2147483647, %v13238_v34  ;;  %vm18842_vm11 = vmmov %vm18836_vm3 }
 0x5c0   :  { %18825 = vst [vmem:[#allocation13_spill] sm:$0xff] %v14352_v63  ;;  %v4066_v4 = vadd.f32 %v13271_v19, %v4065_v46  ;;  %v4853_v16 = vsel %vm18826_vm15, %v4681_v29, 0.0  ;;  %v4856_v22 = vsel %vm18827_vm8, %v4682_v40, 0.0  ;;  %v4556_v61 = vperm.slane %v4492_v28, 0  ;;  %v14370_v46 = vpop.xlane.xlu1 %4725  ;;  %v18829_v29 = vld [vmem:[#allocation56_spill] sm:$0xff]  ;;  %v18839_v28 = vld [vmem:[#allocation41_spill] sm:$0xff]  ;;  %vm18843_vm14 = vmmov %vm18836_vm3 }
 0x5c1   :  { %v4557_v59 = vperm.slane %v4493_v17, 0  ;;  %4854 = vadd.xlane.f32.xlu0 %v4853_v16  ;;  %4857 = vadd.xlane.f32.xlu2 %v4856_v22  ;;  %v3990_v2 = vmul.f32 %v13331_v8, %v3989_v53  ;;  %v14365_v51 = vsel %vm14270_vm12, %v14254_v55, %v4100_v62  ;;  %v14367_v11 = vor.u32 1.1754944e-38, %v4148_v48  ;;  %v14390_v48 = vpop.xlane.xlu2 %4731  ;;  %v14392_v38 = vpop.xlane.xlu0 %4728  ;;  %v18833_v62 = vld [vmem:[#allocation37_spill] sm:$0xff] }
 0x5c2   :  { %18828 = vst [vmem:[#allocation14_spill] sm:$0xff] %v14365_v51  ;;  %v4683_v5 = vmul.f32 %v4555_v6, %v18829_v29  ;;  %v4494_v40 = vrot.slane %v14274_v25, 3  ;;  %vm3993_vm2 = vweird.f32 %v13331_v8  ;;  %v14383_v55 = vor.u32 1.1754944e-38, %v4118_v0 }
 0x5c3   :  { %v4139_v17 = vsub.f32 1.0, %v4138_v12  ;;  %vm4143_vm12 = vweird.f32 %v13321_v35  ;;  %v4070_v53 = vsel %vm14379_vm6, %v13271_v19, %v4066_v4  ;;  %v4684_v6 = vmul.f32 %v4556_v61, %v18832_v44  ;;  %v18837_v44 = vld [vmem:[#allocation96_spill] sm:$0xff]  ;;  %vm14429_vm9 = vmor %vm3992_vm10, %vm3993_vm2 }
 0x5c4   :  { %v4685_v16 = vmul.f32 %v4557_v59, %v18833_v62  ;;  %v4495_v0 = vrot.slane %v14274_v25, 4  ;;  %v4496_v22 = vrot.slane %v14274_v25, 5  ;;  %vm14398_vm1 = vcmp.eq.f32.partialorder %v3996_v60, 8.507059e+37  ;;  %v18838_v60 = vld [vmem:[#allocation99_spill] sm:$0xff]  ;;  %vm18852_vm6 = vmmov %vm18836_vm3 }
 0x5c5   :  { %v3991_v29 = vadd.f32 %v13331_v8, %v3990_v2  ;;  %v4033_v19 = vmul.f32 %v13361_v58, %v13284_v32  ;;  %v4043_v4 = vand.u32 2147483648, %v13284_v32  ;;  %vm4142_vm7 = vweird.f32 %v13238_v34 }
 0x5c6   :  { %v4108_v61 = vmul.f32 %v13287_v47, %v13219_v18  ;;  %v4859_v59 = vsel %vm18836_vm3, %v4683_v5, 0.0  ;;  %v4558_v3 = vperm.slane %v4494_v40, 0  ;;  %v4183_v62 = vmul.f32 %v18838_v60, %v18837_v44  ;;  %vm14474_vm3 = vmor %vm4142_vm7, %vm4143_vm12 }
 0x5c7   :  { %v4153_v57 = vmul.f32 %v18840_v13, %v18839_v28  ;;  %4860 = vadd.xlane.f32.xlu1 %v4859_v59  ;;  %v4140_v2 = vmul.f32 %v13321_v35, %v4139_v17  ;;  %v14418_v51 = vsel %vm14344_vm0, %v14293_v14, %v4070_v53  ;;  %v4078_v33 = vmul.f32 %v13500_v23, %v13409_v20  ;;  %v18849_v17 = vld [vmem:[#allocation39_spill] sm:$0xff]  ;;  %vm18856_vm12 = vmmov %vm18852_vm6 }
 0x5c8   :  { %18841 = vst [vmem:[#allocation15_spill] sm:$0xff] %v14418_v51  ;;  %vm4113_vm5 = vweird.f32 %v13287_v47  ;;  %v4862_v5 = vsel %vm18842_vm11, %v4684_v6, 0.0  ;;  %v4865_v40 = vsel %vm18843_vm14, %v4685_v16, 0.0  ;;  %v4559_v24 = vperm.slane %v4495_v0, 0  ;;  %v14439_v16 = vpop.xlane.xlu1 %4734  ;;  %v18846_v0 = vld [vmem:[#allocation57_spill] sm:$0xff]  ;;  %vm18855_vm11 = vmmov %vm18852_vm6 }
 0x5c9   :  { %v4560_v63 = vperm.slane %v4496_v22, 0  ;;  %4863 = vadd.xlane.f32.xlu0 %v4862_v5  ;;  %4866 = vadd.xlane.f32.xlu2 %v4865_v40  ;;  %v3995_v14 = vsel %vm14429_vm9, %v13331_v8, %v3991_v29  ;;  %v4034_v49 = vsub.f32 1.0, %v4033_v19  ;;  %v14436_v53 = vor.u32 1.1754944e-38, %v4043_v4  ;;  %v14454_v40 = vpop.xlane.xlu0 %4737 }
 0x5ca   :  { %v4109_v6 = vsub.f32 1.0, %v4108_v61  ;;  %vm4112_vm0 = vweird.f32 %v13219_v18  ;;  %v4686_v45 = vmul.f32 %v4558_v3, %v18846_v0  ;;  %v4497_v22 = vrot.slane %v14274_v25, 6  ;;  %v14452_v3 = vpop.xlane.xlu2 %4740  ;;  %v18850_v0 = vld [vmem:[#allocation58_spill] sm:$0xff] }
 0x5cb   :  { %vm4037_vm10 = vweird.f32 %v13284_v32  ;;  %vm14444_vm15 = vcmp.eq.f32.partialorder %v4146_v21, 8.507059e+37  ;;  %v4184_v5 = vsub.f32 1.0, %v4183_v62  ;;  %v4154_v8 = vsub.f32 1.0, %v4153_v57 }
 0x5cc   :  { %v4141_v29 = vadd.f32 %v13321_v35, %v4140_v2  ;;  %v4079_v19 = vsub.f32 1.0, %v4078_v33  ;;  %vm4187_vm8 = vweird.f32 %v18837_v44  ;;  %v4191_v4 = vand.u32 2147483647, %v18837_v44 }
 0x5cd   :  { %v4193_v61 = vand.u32 2147483648, %v18837_v44  ;;  %v4687_v21 = vmul.f32 %v4559_v24, %v18849_v17  ;;  %v4688_v51 = vmul.f32 %v4560_v63, %v18850_v0  ;;  %v4498_v62 = vrot.slane %v14274_v25, 7 }
 0x5ce   :  { %v4123_v57 = vmul.f32 %v13529_v37, %v13456_v43  ;;  %v14464_v33 = vsel %vm14398_vm1, %v14325_v42, %v3995_v14  ;;  %v4035_v2 = vmul.f32 %v13361_v58, %v4034_v49  ;;  %v4110_v52 = vmul.f32 %v13287_v47, %v4109_v6 }
 0x5cf   :  { %18851 = vst [vmem:[#allocation16_spill] sm:$0xff] %v14464_v33  ;;  %vm4157_vm2 = vweird.f32 %v18839_v28  ;;  %v4868_v24 = vsel %vm18852_vm6, %v4686_v45, 0.0  ;;  %v4561_v17 = vperm.slane %v4497_v22, 0  ;;  %v4185_v42 = vmul.f32 %v18838_v60, %v4184_v5 }
 0x5d0   :  { %v4155_v63 = vmul.f32 %v18840_v13, %v4154_v8  ;;  %4869 = vadd.xlane.f32.xlu1 %v4868_v24  ;;  %vm4038_vm1 = vweird.f32 %v13361_v58  ;;  %v4145_v12 = vsel %vm14474_vm3, %v13321_v35, %v4141_v29  ;;  %v4080_v14 = vmul.f32 %v13500_v23, %v4079_v19  ;;  %v14503_v0 = vpop.xlane.xlu1 %4743  ;;  %vm14515_vm3 = vmor %vm4112_vm0, %vm4113_vm5 }
 0x5d1   :  { %v4161_v49 = vand.u32 2147483647, %v18839_v28  ;;  %v4871_v34 = vsel %vm18855_vm11, %v4687_v21, 0.0  ;;  %v4874_v6 = vsel %vm18856_vm12, %v4688_v51, 0.0  ;;  %v4562_v45 = vperm.slane %v4498_v62, 0  ;;  %v18863_v62 = vld [vmem:[#allocation59_spill] sm:$0xff]  ;;  %vm14525_vm12 = vmor %vm4037_vm10, %vm4038_vm1 }
 0x5d2   :  { %v18857_v22 = vand.u32 2147483647, %v13219_v18  ;;  %v4124_v8 = vsub.f32 1.0, %v4123_v57  ;;  %4872 = vadd.xlane.f32.xlu0 %v4871_v34  ;;  %4875 = vadd.xlane.f32.xlu2 %v4874_v6  ;;  %v4036_v35 = vadd.f32 %v13361_v58, %v4035_v2  ;;  %v18860_v29 = vand.u32 2147483647, %v13284_v32  ;;  %v14541_v34 = vpop.xlane.xlu2 %4749  ;;  %v14543_v32 = vpop.xlane.xlu0 %4746  ;;  %v18874_v6 = vld [vmem:[#allocation60_spill] sm:$0xff] }
 0x5d3   :  { %vm4188_vm9 = vweird.f32 %v18838_v60  ;;  %v4194_v51 = vor.u32 1.1754944e-38, %v4193_v61  ;;  %v4111_v21 = vadd.f32 %v13287_v47, %v4110_v52  ;;  %v4689_v24 = vmul.f32 %v4561_v17, %v18863_v62  ;;  %v18871_v61 = vld [vmem:[#allocation106_spill] sm:$0xff] }
 0x5d4   :  { %vm14490_vm7 = vcmp.eq.f32.partialorder %v18857_v22, 8.507059e+37  ;;  %vm14497_vm14 = vcmp.eq.f32.partialorder %v18860_v29, 8.507059e+37  ;;  %v4186_v57 = vadd.f32 %v18838_v60, %v4185_v42  ;;  %vm14507_vm6 = vcmp.eq.f32.partialorder %v4191_v4, 8.507059e+37  ;;  %vm14552_vm10 = vmor %vm4187_vm8, %vm4188_vm9 }
 0x5d5   :  { %v4156_v52 = vadd.f32 %v18840_v13, %v4155_v63  ;;  %vm4158_vm11 = vweird.f32 %v18840_v13  ;;  %v14532_v18 = vsel %vm14444_vm15, %v14367_v11, %v4145_v12  ;;  %v4228_v17 = vmul.f32 %v18871_v61, %v13381_v30 }
 0x5d6   :  { %18870 = vst [vmem:[#allocation94_spill] sm:$0xff] %v14532_v18  ;;  %vm14536_vm5 = vcmp.eq.f32.partialorder %v4161_v49, 8.507059e+37  ;;  %v4163_v63 = vand.u32 2147483648, %v18839_v28  ;;  %v4690_v22 = vmul.f32 %v4562_v45, %v18874_v6  ;;  %v4081_v29 = vadd.f32 %v13500_v23, %v4080_v14  ;;  %vm14567_vm8 = vmor %vm4157_vm2, %vm4158_vm11  ;;  %v18885_v6 = vld [vmem:[#allocation68_spill] sm:$0xff] }
 0x5d7   :  { %vm4083_vm0 = vweird.f32 %v13500_v23  ;;  %v4125_v59 = vmul.f32 %v13529_v37, %v4124_v8  ;;  %vm4082_vm15 = vweird.f32 %v13409_v20  ;;  %v4086_v12 = vand.u32 2147483647, %v13409_v20 }
 0x5d8   :  { %v4088_v49 = vand.u32 2147483648, %v13409_v20  ;;  %v4115_v14 = vsel %vm14515_vm3, %v13287_v47, %v4111_v21  ;;  %vm18879_vm1 = vcmask 261120   ;;  %v4040_v8 = vsel %vm14525_vm12, %v13361_v58, %v4036_v35  ;;  %vm14582_vm2 = vmor %vm4082_vm15, %vm4083_vm0 }
 0x5d9   :  { %v4877_v45 = vsel %vm18879_vm1, %v4689_v24, 0.0  ;;  %v4190_v20 = vsel %vm14552_vm10, %v18838_v60, %v4186_v57  ;;  %v4160_v47 = vsel %vm14567_vm8, %v18840_v13, %v4156_v52  ;;  %v4891_v28 = vperm.slane %v13816_v15, 0  ;;  %vm18882_vm9 = vmmov %vm18879_vm1 }
 0x5da   :  { %4878 = vadd.xlane.f32.xlu1 %v4877_v45  ;;  %v4131_v62 = vand.u32 2147483647, %v13456_v43  ;;  %v4133_v24 = vand.u32 2147483648, %v13456_v43  ;;  %v4229_v58 = vsub.f32 1.0, %v4228_v17  ;;  %v4880_v35 = vsel %vm18882_vm9, %v4690_v22, 0.0  ;;  %v14600_v17 = vpop.xlane.xlu1 %4752  ;;  %v14629_v11 = vpop.xlane.xlu2 %4758 }
 0x5db   :  { %v4085_v60 = vsel %vm14582_vm2, %v13500_v23, %v4081_v29  ;;  %v4126_v13 = vadd.f32 %v13529_v37, %v4125_v59  ;;  %vm4128_vm3 = vweird.f32 %v13529_v37  ;;  %v5019_v57 = vadd.f32 %v4891_v28, %v14050_v41  ;;  %4881 = vadd.xlane.f32.xlu0 %v4880_v35  ;;  %v18886_v41 = vld [vmem:[#allocation70_spill] sm:$0xff]  ;;  %v14631_v59 = vpop.xlane.xlu0 %4755 }
 0x5dc   :  { %v4089_v2 = vor.u32 1.1754944e-38, %v4088_v49  ;;  %v14598_v52 = vsel %vm14490_vm7, %v14383_v55, %v4115_v14  ;;  %v4164_v4 = vor.u32 1.1754944e-38, %v4163_v63  ;;  %v14605_v23 = vsel %vm14497_vm14, %v14436_v53, %v4040_v8  ;;  %v18894_v53 = vld [vmem:[#allocation83_spill] sm:$0xff]  ;;  %v18899_v8 = vld [vmem:[#allocation5_spill] sm:$0xff] }
 0x5dd   :  { %18883 = vst [vmem:[#allocation90_spill] sm:$0xff] %v14598_v52  ;;  %vm4087_vm11 = vcmp.eq.f32.partialorder %v4086_v12, 8.507059e+37  ;;  %vm4127_vm12 = vweird.f32 %v13456_v43  ;;  %v4168_v22 = vmul.f32 %v18886_v41, %v18885_v6  ;;  %v14614_v55 = vsel %vm14507_vm6, %v4194_v51, %v4190_v20 }
 0x5de   :  { %18884 = vst [vmem:[#allocation97_spill] sm:$0xff] %v14605_v23  ;;  %v14610_v29 = vsel %vm4087_vm11, %v4089_v2, %v4085_v60  ;;  %vm14616_vm7 = vmor %vm4127_vm12, %vm4128_vm3  ;;  %vm14620_vm0 = vcmp.eq.f32.partialorder %v4131_v62, 8.507059e+37  ;;  %v14626_v43 = vsel %vm14536_vm5, %v4164_v4, %v4160_v47  ;;  %v4134_v25 = vor.u32 1.1754944e-38, %v4133_v24  ;;  %v18897_v2 = vld [vmem:[#allocation45_spill] sm:$0xff] }
 0x5df   :  { %18887 = vst [vmem:[#allocation17_spill] sm:$0xff] %v14610_v29  ;;  %v4130_v51 = vsel %vm14616_vm7, %v13529_v37, %v4126_v13  ;;  %v14637_v12 = vmul.f32 %v18871_v61, %v4229_v58  ;;  %v7535_v49 = vmul.f32 -1.442695, %v5019_v57  ;;  %v4893_v45 = vperm.slane %v13816_v15, 2 }
 0x5e0   :  { %18888 = vst [vmem:[#allocation129_spill] sm:$0xff] %v14614_v55  ;;  %v4169_v47 = vsub.f32 1.0, %v4168_v22  ;;  %v4892_v37 = vperm.slane %v13816_v15, 1  ;;  %v14650_v62 = vsel %vm14620_vm0, %v4134_v25, %v4130_v51  ;;  %v4894_v58 = vperm.slane %v13816_v15, 3 }
 0x5e1   :  { %18893 = vst [vmem:[#allocation86_spill] sm:$0xff] %v14626_v43  ;;  %v5021_v24 = vadd.f32 %v4893_v45, %v14129_v36  ;;  %v4895_v35 = vperm.slane %v13816_v15, 4  ;;  %v4896_v60 = vperm.slane %v13816_v15, 5  ;;  %8006 = vpow2.f32 %v7535_v49 }
 0x5e2   :  { %18895 = vst [vmem:[#allocation88_spill] sm:$0xff] %v14637_v12  ;;  %v4897_v13 = vperm.slane %v13816_v15, 6  ;;  %v4898_v57 = vperm.slane %v13816_v15, 7  ;;  %v14659_v4 = vpop.xlane.xlu1 %4761  ;;  %v4170_v19 = vmul.f32 %v18886_v41, %v4169_v47  ;;  %v5022_v51 = vadd.f32 %v4894_v58, %v14142_v9  ;;  %v14670_v28 = vpop.xlane.xlu2 %4767 }
 0x5e3   :  { %18896 = vst [vmem:[#allocation18_spill] sm:$0xff] %v14650_v62  ;;  %v7537_v45 = vmul.f32 -1.442695, %v5021_v24  ;;  %v14673_v5 = vpop.xlane.xlu0 %4764  ;;  %v5020_v47 = vadd.f32 %v4892_v37, %v14052_v56  ;;  %v5023_v36 = vadd.f32 %v4895_v35, %v14144_v39  ;;  %v18898_v56 = vld [vmem:[#allocation74_spill] sm:$0xff]  ;;  %v18900_v39 = vperm.slane %v18899_v8, 0 }
 0x5e4   :  { %v14684_v22 = vadd.f32 %v18886_v41, %v4170_v19  ;;  %v7538_v20 = vmul.f32 -1.442695, %v5022_v51  ;;  %v4899_v37 = vperm.slane %v18898_v56, 0  ;;  %v5025_v49 = vadd.f32 %v4897_v13, %v14230_v50  ;;  %v18904_v50 = vld [vmem:[#allocation69_spill] sm:$0xff] }
 0x5e5   :  { %8008 = vpow2.f32 %v7537_v45  ;;  %v7536_v58 = vmul.f32 -1.442695, %v5020_v47  ;;  %v5024_v45 = vadd.f32 %v4896_v60, %v14215_v27  ;;  %vm4173_vm14 = vweird.f32 %v18886_v41  ;;  %v18910_v13 = vld [vmem:[#allocation101_spill] sm:$0xff] }
 0x5e6   :  { %8010 = vpow2.f32 %v7538_v20  ;;  %v7539_v47 = vmul.f32 -1.442695, %v5023_v36  ;;  %v5026_v44 = vadd.f32 %v4898_v57, %v14232_v1  ;;  %v7541_v63 = vmul.f32 -1.442695, %v5025_v49  ;;  %v18909_v57 = vld [vmem:[#allocation98_spill] sm:$0xff] }
 0x5e7   :  { %v8007_v21 = vpop.eup %8006  ;;  %vm4172_vm6 = vweird.f32 %v18885_v6  ;;  %8012 = vpow2.f32 %v7536_v58  ;;  %v18902_v20 = vperm.slane %v18899_v8, 2  ;;  %v7540_v27 = vmul.f32 -1.442695, %v5024_v45  ;;  %v18905_v45 = vld [vmem:[#allocation73_spill] sm:$0xff] }
 0x5e8   :  { %v14697_v35 = vadd.f32 1.0, %v8007_v21  ;;  %v7542_v14 = vmul.f32 -1.442695, %v5026_v44  ;;  %v18903_v1 = vperm.slane %v18899_v8, 1  ;;  %v4213_v51 = vmul.f32 %v18905_v45, %v18904_v50  ;;  %vm14766_vm5 = vmor %vm4172_vm6, %vm4173_vm14 }
 0x5e9   :  { %v18906_v44 = vperm.slane %v18899_v8, 3  ;;  %v5027_v25 = vadd.f32 %v4899_v37, %v14295_v54  ;;  %v4198_v24 = vmul.f32 %v18910_v13, %v18909_v57  ;;  %v18911_v54 = vperm.slane %v18899_v8, 4 }
 0x5ea   :  { %6440 = vperm.xlu2 %7614, %v18900_v39   ;;  %v14702_v9 = vpop.xlane.xlu1 %4770  ;;  %v14707_v39 = vpop.xlane.xlu2 %4776  ;;  %8014 = vrcp.f32 %v14697_v35  ;;  %v4208_v37 = vand.u32 2147483648, %v18909_v57  ;;  %vm4217_vm15 = vweird.f32 %v18904_v50  ;;  %vm4218_vm8 = vweird.f32 %v18905_v45 }
 0x5eb   :  { %v14709_v21 = vpop.xlane.xlu0 %4773  ;;  %v8009_v49 = vpop.eup %8008  ;;  %8016 = vpow2.f32 %v7539_v47  ;;  %v4176_v47 = vand.u32 2147483647, %v18885_v6  ;;  %v7543_v43 = vmul.f32 -1.442695, %v5027_v25  ;;  %v5350_v62 = vand.u32 2147483648, %v14697_v35  ;;  %vm14848_vm1 = vmor %vm4217_vm15, %vm4218_vm8 }
 0x5ec   :  { %8018 = vpow2.f32 %v7541_v63  ;;  %v8011_v60 = vpop.eup %8010  ;;  %v14731_v19 = vadd.f32 1.0, %v8009_v49  ;;  %vm5344_vm2 = vweird.f32 %v14697_v35 }
 0x5ed   :  { %8020 = vpow2.f32 %v7540_v27  ;;  %v8013_v49 = vpop.eup %8012  ;;  %v14748_v58 = vadd.f32 1.0, %v8011_v60  ;;  %v4175_v60 = vsel %vm14766_vm5, %v18886_v41, %v14684_v22  ;;  %vm14781_vm10 = vcmp.eq.f32.partialorder %v4176_v47, 8.507059e+37 }
 0x5ee   :  { %8022 = vpow2.f32 %v7542_v14  ;;  %v4214_v14 = vsub.f32 1.0, %v4213_v51  ;;  %v4178_v51 = vand.u32 2147483648, %v18885_v6  ;;  %v14771_v55 = vadd.f32 1.0, %v8013_v49 }
 0x5ef   :  { %6454 = vperm.xlu0 %7612, %v18902_v20   ;;  %8024 = vrcp.f32 %v14731_v19  ;;  %v4199_v41 = vsub.f32 1.0, %v4198_v24  ;;  %v18918_v47 = vperm.slane %v18899_v8, 6  ;;  %v18919_v24 = vperm.slane %v18898_v56, 1 }
 0x5f0   :  { %v14746_v63 = vpop.eup %8014  ;;  %8026 = vrcp.f32 %v14748_v58  ;;  %v4215_v22 = vmul.f32 %v18905_v45, %v4214_v14  ;;  %v4179_v52 = vor.u32 1.1754944e-38, %v4178_v51  ;;  %v5365_v61 = vand.u32 2147483648, %v14771_v55 }
 0x5f1   :  { %v8017_v30 = vpop.eup %8016  ;;  %v5340_v6 = vmul.f32 %v14746_v63, %v14697_v35  ;;  %8028 = vrcp.f32 %v14771_v55  ;;  %v14871_v33 = vor.u32 1.1754944e-38, %v5350_v62  ;;  %vm5345_vm9 = vweird.f32 %v14746_v63 }
 0x5f2   :  { %6461 = vperm.xlu2 %7614, %v18906_v44   ;;  %v14750_v27 = vpop.xlane.xlu2 %4785  ;;  %v8019_v44 = vpop.eup %8018  ;;  %8030 = vpow2.f32 %v7543_v43  ;;  %v18925_v43 = vperm.slane %v18899_v8, 7  ;;  %vm5374_vm11 = vweird.f32 %v14731_v19  ;;  %vm5389_vm12 = vweird.f32 %v14748_v58  ;;  %vm14933_vm0 = vmor %vm5344_vm2, %vm5345_vm9 }
 0x5f3   :  { %6447 = vperm.xlu1 %7613, %v18903_v1   ;;  %v14738_v1 = vpop.xlane.xlu1 %4779  ;;  %v14752_v15 = vpop.xlane.xlu0 %4782  ;;  %v14793_v36 = vadd.f32 1.0, %v8019_v44  ;;  %v14806_v44 = vor.u32 1.1754944e-38, %v4208_v37  ;;  %v4200_v37 = vmul.f32 %v18910_v13, %v4199_v41  ;;  %v18927_v41 = vperm.slane %v18898_v56, 3 }
 0x5f4   :  { %18908 = vst [vmem:[#allocation19_spill] sm:$0xff] %v14752_v15  ;;  %v8021_v49 = vpop.eup %8020  ;;  %vm5359_vm5 = vweird.f32 %v14771_v55 }
 0x5f5   :  { %v8023_v25 = vpop.eup %8022  ;;  %18921 = vst [vmem:[#allocation125_spill] sm:$0xff] %v14806_v44 }
 0x5f6   :  { %v14808_v57 = vpop.eup %8024 }
 0x5f7   :  { %6468 = vperm.xlu0 %7612, %v18911_v54   ;;  %v18914_v54 = vperm.slane %v18898_v56, 2  ;;  %v14833_v51 = vpop.eup %8026  ;;  %v5370_v29 = vmul.f32 %v14808_v57, %v14731_v19  ;;  %vm5375_vm7 = vweird.f32 %v14808_v57 }
 0x5f8   :  { %vm5390_vm15 = vweird.f32 %v14833_v51  ;;  %vm14985_vm8 = vmor %vm5374_vm11, %vm5375_vm7 }
 0x5f9   :  { %v5029_v12 = vadd.f32 %v18914_v54, %v14317_v31  ;;  %v14788_v31 = vadd.f32 1.0, %v8017_v30  ;;  %v18917_v54 = vperm.slane %v18899_v8, 5  ;;  %v5348_v8 = vand.u32 2147483647, %v14697_v35  ;;  %vm15016_vm9 = vmor %vm5389_vm12, %vm5390_vm15 }
 0x5fa   :  { %6482 = vperm.xlu2 %7614, %v18918_v47   ;;  %v14810_v47 = vadd.f32 1.0, %v8021_v49  ;;  %v14817_v18 = vpop.xlane.xlu2 %4794  ;;  %v5341_v49 = vsub.f32 1.0, %v5340_v6  ;;  %v5380_v6 = vand.u32 2147483648, %v14731_v19 }
 0x5fb   :  { %6475 = vperm.xlu1 %7613, %v18917_v54   ;;  %v7545_v30 = vmul.f32 -1.442695, %v5029_v12  ;;  %v5028_v54 = vadd.f32 %v18919_v24, %v14319_v26  ;;  %v14804_v14 = vpop.xlane.xlu1 %4788  ;;  %8032 = vrcp.f32 %v14788_v31  ;;  %v14815_v12 = vadd.f32 1.0, %v8023_v25  ;;  %18922 = vst [vmem:[#allocation40_spill] sm:$0xff] %v14817_v18  ;;  %v14819_v26 = vpop.xlane.xlu0 %4791 }
 0x5fc   :  { %18920 = vst [vmem:[#allocation20_spill] sm:$0xff] %v14804_v14  ;;  %v14823_v24 = vadd.f32 %v18905_v45, %v4215_v22  ;;  %8034 = vrcp.f32 %v14793_v36  ;;  %v14831_v25 = vsel %vm14781_vm10, %v4179_v52, %v4175_v60  ;;  %v5030_v22 = vadd.f32 %v18927_v41, %v14370_v46  ;;  %v14852_v46 = vpop.eup %8028  ;;  %v18931_v60 = vld [vmem:[#allocation6_spill] sm:$0xff] }
 0x5fd   :  { %18923 = vst [vmem:[#allocation84_spill] sm:$0xff] %v14819_v26  ;;  %8036 = vpow2.f32 %v7545_v30  ;;  %v7544_v44 = vmul.f32 -1.442695, %v5028_v54  ;;  %v18928_v52 = vmov 0  ;;  %v18932_v30 = vperm.slane %v18931_v60, 0  ;;  %v8031_v41 = vpop.eup %8030 }
 0x5fe   :  { %18924 = vst [vmem:[#allocation92_spill] sm:$0xff] %v14823_v24  ;;  %8038 = vrcp.f32 %v14810_v47  ;;  %v18929_v52 = vsel %vm14848_vm1, 4294967295, %v18928_v52  ;;  %v14859_v54 = vadd.f32 %v18910_v13, %v4200_v37  ;;  %v18935_v23 = vperm.slane %v18931_v60, 1 }
 0x5ff   :  { %6489 = vperm.xlu0 %7612, %v18925_v43   ;;  %18926 = vst [vmem:[#allocation22_spill] sm:$0xff] %v14831_v25  ;;  %8040 = vrcp.f32 %v14815_v12  ;;  %v18934_v25 = vperm.slane %v18898_v56, 5  ;;  %v5385_v37 = vmul.f32 %v14833_v51, %v14748_v58  ;;  %v5371_v24 = vsub.f32 1.0, %v5370_v29 }
 0x600   :  { %18930 = vst [vmem:[#allocation21_spill] sm:$0xff] %v18929_v52  ;;  %8042 = vpow2.f32 %v7544_v44  ;;  %v7546_v52 = vmul.f32 -1.442695, %v5030_v22  ;;  %v5378_v45 = vand.u32 2147483647, %v14731_v19  ;;  %vm14883_vm3 = vcmp.eq.f32.partialorder %v5348_v8, 8.507059e+37 }
 0x601   :  { %18933 = vst [vmem:[#allocation91_spill] sm:$0xff] %v14859_v54  ;;  %v5032_v50 = vadd.f32 %v18934_v25, %v14390_v48  ;;  %v14875_v54 = vpop.eup %8032  ;;  %v14887_v62 = vor.u32 1.1754944e-38, %v5380_v6  ;;  %v14890_v25 = vor.u32 1.1754944e-38, %v5365_v61  ;;  %v14892_v22 = vadd.f32 1.0, %v8031_v41 }
 0x602   :  { %6503 = vperm.xlu2 %7614, %v18935_v23   ;;  %v14880_v48 = vpop.eup %8034  ;;  %v18939_v29 = vperm.slane %v18898_v56, 4  ;;  %v14897_v20 = vpop.xlane.xlu2 %4803  ;;  %v5395_v8 = vand.u32 2147483648, %v14748_v58  ;;  %v5355_v6 = vmul.f32 %v14852_v46, %v14771_v55  ;;  %v18942_v41 = vperm.slane %v18898_v56, 6 }
 0x603   :  { %6496 = vperm.xlu1 %7613, %v18932_v30   ;;  %v5342_v30 = vmul.f32 %v14746_v63, %v5341_v49  ;;  %v14877_v43 = vpop.xlane.xlu1 %4797  ;;  %v8037_v44 = vpop.eup %8036  ;;  %18940 = vst [vmem:[#allocation23_spill] sm:$0xff] %v14897_v20  ;;  %v7548_v49 = vmul.f32 -1.442695, %v5032_v50  ;;  %8044 = vpow2.f32 %v7546_v52  ;;  %v5430_v50 = vmul.f32 %v14880_v48, %v14793_v36 }
 0x604   :  { %18936 = vst [vmem:[#allocation132_spill] sm:$0xff] %v14877_v43  ;;  %v5031_v13 = vadd.f32 %v18939_v29, %v14392_v38  ;;  %v14899_v7 = vpop.xlane.xlu0 %4800  ;;  %v14905_v61 = vpop.eup %8038  ;;  %v5033_v10 = vadd.f32 %v18942_v41, %v14439_v16  ;;  %v18943_v38 = vperm.slane %v18931_v60, 2  ;;  %v18944_v43 = vperm.slane %v18894_v53, 0 }
 0x605   :  { %18941 = vst [vmem:[#allocation24_spill] sm:$0xff] %v14899_v7  ;;  %v5343_v29 = vadd.f32 %v14746_v63, %v5342_v30  ;;  %v5386_v7 = vsub.f32 1.0, %v5385_v37  ;;  %v14913_v20 = vpop.eup %8040  ;;  %v5372_v18 = vmul.f32 %v14808_v57, %v5371_v24  ;;  %v14921_v42 = vadd.f32 1.0, %v8037_v44 }
 0x606   :  { %v5035_v26 = vadd.f32 %v18944_v43, %v14452_v3  ;;  %v5393_v16 = vand.u32 2147483647, %v14748_v58  ;;  %v8043_v30 = vpop.eup %8042  ;;  %8046 = vrcp.f32 %v14892_v22  ;;  %v7547_v52 = vmul.f32 -1.442695, %v5031_v13 }
 0x607   :  { %6510 = vperm.xlu0 %7612, %v18943_v38   ;;  %v18945_v37 = vperm.slane %v18931_v60, 3  ;;  %v14937_v24 = vor.u32 1.1754944e-38, %v5395_v8  ;;  %vm14939_vm14 = vcmp.eq.f32.partialorder %v5378_v45, 8.507059e+37  ;;  %v5356_v44 = vsub.f32 1.0, %v5355_v6 }
 0x608   :  { %8048 = vpow2.f32 %v7548_v49  ;;  %v7549_v13 = vmul.f32 -1.442695, %v5033_v10  ;;  %v18950_v41 = vperm.slane %v18931_v60, 4  ;;  %v5347_v35 = vsel %vm14933_vm0, %v14746_v63, %v5343_v29 }
 0x609   :  { %v5387_v38 = vmul.f32 %v14833_v51, %v5386_v7  ;;  %v18951_v8 = vperm.slane %v18898_v56, 7  ;;  %v5431_v15 = vsub.f32 1.0, %v5430_v50  ;;  %v5373_v49 = vadd.f32 %v14808_v57, %v5372_v18 }
 0x60a   :  { %6524 = vperm.xlu2 %7614, %v18950_v41   ;;  %8050 = vrcp.f32 %v14921_v42  ;;  %v14956_v10 = vadd.f32 1.0, %v8043_v30  ;;  %vm14958_vm6 = vcmp.eq.f32.partialorder %v5393_v16, 8.507059e+37  ;;  %vm5360_vm10 = vweird.f32 %v14852_v46  ;;  %v14968_v63 = vpop.xlane.xlu2 %4812 }
 0x60b   :  { %6517 = vperm.xlu1 %7613, %v18945_v37   ;;  %v7551_v37 = vmul.f32 -1.442695, %v5035_v26  ;;  %v5034_v45 = vadd.f32 %v18951_v8, %v14454_v40  ;;  %v14952_v14 = vpop.xlane.xlu1 %4806  ;;  %v5408_v7 = vand.u32 2147483647, %v14788_v31  ;;  %v8045_v40 = vpop.eup %8044  ;;  %8052 = vpow2.f32 %v7547_v52  ;;  %v18959_v8 = vld [vmem:[#allocation110_spill] sm:$0xff]  ;;  %vm15061_vm0 = vmor %vm5359_vm5, %vm5360_vm10 }
 0x60c   :  { %v18954_v56 = vperm.slane %v18894_v53, 1  ;;  %v14970_v26 = vpop.xlane.xlu0 %4809  ;;  %v5352_v29 = vsel %vm14883_vm3, %v14871_v33, %v5347_v35  ;;  %v5400_v50 = vmul.f32 %v14875_v54, %v14788_v31  ;;  %8054 = vpow2.f32 %v7549_v13  ;;  %v14990_v23 = vpop.eup %8046 }
 0x60d   :  { %v18955_v16 = vperm.slane %v18931_v60, 5  ;;  %v5388_v30 = vadd.f32 %v14833_v51, %v5387_v38  ;;  %v5357_v33 = vmul.f32 %v14852_v46, %v5356_v44  ;;  %8056 = vpow2.f32 %v7551_v37 }
 0x60e   :  { %v5036_v18 = vadd.f32 %v18954_v56, %v14503_v0  ;;  %v7550_v52 = vmul.f32 -1.442695, %v5034_v45  ;;  %v5432_v3 = vmul.f32 %v14880_v48, %v5431_v15  ;;  %v5377_v13 = vsel %vm14985_vm8, %v14808_v57, %v5373_v49  ;;  %v8049_v41 = vpop.eup %8048 }
 0x60f   :  { %6531 = vperm.xlu0 %7612, %v18955_v16   ;;  %v14996_v35 = vadd.f32 1.0, %v8045_v40  ;;  %v18958_v19 = vperm.slane %v18894_v53, 3  ;;  %v6299_v56 = vadd.f32 %v5352_v29, %v18959_v8  ;;  %v5438_v44 = vand.u32 2147483647, %v14793_v36 }
 0x610   :  { %v18960_v37 = vand.u32 2147483647, %v14771_v55  ;;  %8058 = vrcp.f32 %v14956_v10  ;;  %v7552_v15 = vmul.f32 -1.442695, %v5036_v18  ;;  %v18963_v57 = vperm.slane %v18931_v60, 6  ;;  %v15021_v40 = vpop.eup %8050  ;;  %v18977_v55 = vld [vmem:[#allocation118_spill] sm:$0xff] }
 0x611   :  { %v5038_v38 = vadd.f32 %v18958_v19, %v14541_v34  ;;  %vm5434_vm3 = vweird.f32 %v14793_v36  ;;  %v5401_v49 = vsub.f32 1.0, %v5400_v50  ;;  %v18966_v29 = vperm.slane %v18931_v60, 7  ;;  %v8053_v19 = vpop.eup %8052 }
 0x612   :  { %vm15005_vm2 = vcmp.eq.f32.partialorder %v18960_v37, 8.507059e+37  ;;  %v5392_v18 = vsel %vm15016_vm9, %v14833_v51, %v5388_v30  ;;  %v5440_v16 = vand.u32 2147483648, %v14793_v36  ;;  %v5382_v58 = vsel %vm14939_vm14, %v14887_v62, %v5377_v13  ;;  %v8055_v60 = vpop.eup %8054  ;;  %v15050_v13 = vpop.xlane.xlu2 %4821 }
 0x613   :  { %6538 = vperm.xlu1 %7613, %v18963_v57   ;;  %6545 = vperm.xlu2 %7614, %v18966_v29   ;;  %v5358_v0 = vadd.f32 %v14852_v46, %v5357_v33  ;;  %v15033_v8 = vadd.f32 1.0, %v8049_v41  ;;  %8060 = vpow2.f32 %v7550_v52  ;;  %v5433_v50 = vadd.f32 %v14880_v48, %v5432_v3  ;;  %v15039_v30 = vpop.xlane.xlu1 %4815  ;;  %v8057_v33 = vpop.eup %8056 }
 0x614   :  { %vm5435_vm11 = vweird.f32 %v14880_v48  ;;  %vm5404_vm12 = vweird.f32 %v14788_v31  ;;  %8062 = vrcp.f32 %v14996_v35  ;;  %v7554_v51 = vmul.f32 -1.442695, %v5038_v38  ;;  %v15052_v41 = vpop.xlane.xlu0 %4818 }
 0x615   :  { %v15041_v43 = vmul.f32 0.5, %v6299_v56  ;;  %vm15043_vm7 = vcmp.eq.f32.partialorder %v5438_v44, 8.507059e+37  ;;  %8064 = vpow2.f32 %v7552_v15  ;;  %v18970_v52 = vperm.slane %v18894_v53, 2  ;;  %vm15074_vm14 = vmor %vm5434_vm3, %vm5435_vm11 }
 0x616   :  { %v5397_v38 = vsel %vm14958_vm6, %v14937_v24, %v5392_v18  ;;  %v5402_v44 = vmul.f32 %v14875_v54, %v5401_v49  ;;  %v15066_v37 = vadd.f32 1.0, %v8053_v19  ;;  %v6301_v6 = vadd.f32 %v5382_v58, %v18977_v55  ;;  %v15084_v49 = vpop.eup %8058 }
 0x617   :  { %18967 = vst [vmem:[#allocation25_spill] sm:$0xff] %v15041_v43  ;;  %v5037_v3 = vadd.f32 %v18970_v52, %v14543_v32  ;;  %v18973_v32 = vld [vmem:[#allocation7_spill] sm:$0xff]  ;;  %v5362_v57 = vsel %vm15061_vm0, %v14852_v46, %v5358_v0  ;;  %v5415_v34 = vmul.f32 %v14905_v61, %v14810_v47  ;;  %8066 = vrcp.f32 %v15033_v8  ;;  %v18979_v46 = vld [vmem:[#allocation112_spill] sm:$0xff] }
 0x618   :  { %v18974_v15 = vperm.slane %v18973_v32, 0  ;;  %v15087_v29 = vadd.f32 1.0, %v8055_v60  ;;  %v18978_v36 = vperm.slane %v18894_v53, 4  ;;  %v5437_v58 = vsel %vm15074_vm14, %v14880_v48, %v5433_v50 }
 0x619   :  { %v15095_v19 = vadd.f32 1.0, %v8057_v33  ;;  %8068 = vpow2.f32 %v7554_v51  ;;  %v6302_v0 = vadd.f32 %v5397_v38, %v18979_v46  ;;  %v5441_v52 = vor.u32 1.1754944e-38, %v5440_v16  ;;  %v8061_v56 = vpop.eup %8060 }
 0x61a   :  { %6552 = vperm.xlu0 %7612, %v18974_v15   ;;  %v5039_v18 = vadd.f32 %v18978_v36, %v14600_v17  ;;  %v7553_v15 = vmul.f32 -1.442695, %v5037_v3  ;;  %v18980_v55 = vperm.slane %v18973_v32, 1  ;;  %v5367_v60 = vsel %vm15005_vm2, %v14890_v25, %v5362_v57  ;;  %v15105_v48 = vpop.eup %8062  ;;  %v18985_v57 = vld [vmem:[#allocation115_spill] sm:$0xff] }
 0x61b   :  { %v5403_v17 = vadd.f32 %v14875_v54, %v5402_v44  ;;  %vm5405_vm6 = vweird.f32 %v14875_v54  ;;  %8070 = vrcp.f32 %v15066_v37  ;;  %v18981_v50 = vperm.slane %v18973_v32, 2  ;;  %v8065_v3 = vpop.eup %8064 }
 0x61c   :  { %6559 = vperm.xlu1 %7613, %v18980_v55   ;;  %v5442_v16 = vsel %vm15043_vm7, %v5441_v52, %v5437_v58  ;;  %v15112_v51 = vmul.f32 0.5, %v6301_v6  ;;  %v5416_v33 = vsub.f32 1.0, %v5415_v34  ;;  %8072 = vrcp.f32 %v15087_v29  ;;  %vm15130_vm5 = vmor %vm5404_vm12, %vm5405_vm6  ;;  %v15138_v58 = vpop.xlane.xlu0 %4827 }
 0x61d   :  { %6566 = vperm.xlu2 %7614, %v18981_v50   ;;  %v7555_v25 = vmul.f32 -1.442695, %v5039_v18  ;;  %v18983_v45 = vperm.slane %v18894_v53, 6  ;;  %v5410_v44 = vand.u32 2147483648, %v14788_v31  ;;  %8074 = vrcp.f32 %v15095_v19  ;;  %v15136_v18 = vpop.xlane.xlu2 %4830 }
 0x61e   :  { %18982 = vst [vmem:[#allocation89_spill] sm:$0xff] %v15112_v51  ;;  %v15120_v24 = vadd.f32 1.0, %v8061_v56  ;;  %v18984_v62 = vperm.slane %v18894_v53, 5  ;;  %v6300_v34 = vadd.f32 %v5367_v60, %v18985_v57  ;;  %8076 = vpow2.f32 %v7553_v15 }
 0x61f   :  { %v5041_v38 = vadd.f32 %v18983_v45, %v14629_v11  ;;  %v15134_v11 = vpop.eup %8066  ;;  %v15140_v46 = vmul.f32 0.5, %v6302_v0  ;;  %v5407_v56 = vsel %vm15130_vm5, %v14875_v54, %v5403_v17  ;;  %v15146_v60 = vadd.f32 1.0, %v8065_v3  ;;  %v15159_v3 = vpop.xlane.xlu1 %4824 }
 0x620   :  { %v5040_v6 = vadd.f32 %v18984_v62, %v14631_v59  ;;  %v18989_v59 = vld [vmem:[#allocation113_spill] sm:$0xff]  ;;  %v8069_v55 = vpop.eup %8068  ;;  %v18991_v50 = vperm.slane %v18894_v53, 7  ;;  %v18992_v15 = vperm.slane %v18973_v32, 3  ;;  %v5475_v0 = vmul.f32 %v15084_v49, %v14956_v10 }
 0x621   :  { %18988 = vst [vmem:[#allocation130_spill] sm:$0xff] %v15140_v46  ;;  %v6305_v52 = vadd.f32 %v5442_v16, %v18989_v59  ;;  %v5417_v62 = vmul.f32 %v14905_v61, %v5416_v33  ;;  %8078 = vpow2.f32 %v7555_v25  ;;  %v7557_v16 = vmul.f32 -1.442695, %v5041_v38  ;;  %v15161_v36 = vpop.eup %8070 }
 0x622   :  { %18990 = vst [vmem:[#allocation133_spill] sm:$0xff] %v15146_v60  ;;  %v5042_v45 = vadd.f32 %v18991_v50, %v14659_v4  ;;  %6573 = vperm.xlu0 %7612, %v18992_v15   ;;  %v18993_v54 = vperm.slane %v18897_v2, 1  ;;  %v5411_v57 = vor.u32 1.1754944e-38, %v5410_v44  ;;  %8080 = vrcp.f32 %v15120_v24  ;;  %v15168_v33 = vpop.eup %8072 }
 0x623   :  { %v7556_v53 = vmul.f32 -1.442695, %v5040_v6  ;;  %v15164_v4 = vmul.f32 0.5, %v6300_v34  ;;  %vm5409_vm10 = vcmp.eq.f32.partialorder %v5408_v7, 8.507059e+37  ;;  %v15170_v25 = vadd.f32 1.0, %v8069_v55  ;;  %v15177_v59 = vpop.eup %8074 }
 0x624   :  { %v5044_v17 = vadd.f32 %v18993_v54, %v14670_v28  ;;  %v18996_v38 = vperm.slane %v18973_v32, 4  ;;  %v15174_v28 = vmul.f32 0.5, %v6305_v52  ;;  %v5412_v44 = vsel %vm5409_vm10, %v5411_v57, %v5407_v56  ;;  %v8077_v55 = vpop.eup %8076 }
 0x625   :  { %18994 = vst [vmem:[#allocation26_spill] sm:$0xff] %v15164_v4  ;;  %vm5420_vm15 = vweird.f32 %v14905_v61  ;;  %8082 = vrcp.f32 %v15146_v60  ;;  %v7558_v6 = vmul.f32 -1.442695, %v5042_v45  ;;  %v18998_v31 = vperm.slane %v18973_v32, 5 }
 0x626   :  { %18995 = vst [vmem:[#allocation27_spill] sm:$0xff] %v15170_v25  ;;  %6580 = vperm.xlu1 %7613, %v18996_v38   ;;  %v5476_v7 = vsub.f32 1.0, %v5475_v0  ;;  %v5418_v34 = vadd.f32 %v14905_v61, %v5417_v62  ;;  %8084 = vpow2.f32 %v7557_v16  ;;  %v7560_v50 = vmul.f32 -1.442695, %v5044_v17  ;;  %v15193_v16 = vpop.xlane.xlu2 %4839  ;;  %v19000_v17 = vld [vmem:[#allocation117_spill] sm:$0xff] }
 0x627   :  { %18997 = vst [vmem:[#allocation28_spill] sm:$0xff] %v15174_v28  ;;  %6587 = vperm.xlu2 %7614, %v18998_v31   ;;  %vm5419_vm8 = vweird.f32 %v14810_v47  ;;  %v5425_v52 = vand.u32 2147483648, %v14810_v47  ;;  %8086 = vpow2.f32 %v7556_v53  ;;  %vm5479_vm2 = vweird.f32 %v14956_v10  ;;  %v8079_v54 = vpop.eup %8078  ;;  %v15206_v31 = vpop.xlane.xlu0 %4836 }
 0x628   :  { %v5483_v56 = vand.u32 2147483647, %v14956_v10  ;;  %v5485_v45 = vand.u32 2147483648, %v14956_v10  ;;  %v5423_v15 = vand.u32 2147483647, %v14810_v47  ;;  %8088 = vrcp.f32 %v15170_v25  ;;  %vm15198_vm9 = vmor %vm5419_vm8, %vm5420_vm15  ;;  %v15204_v38 = vpop.eup %8080 }
 0x629   :  { %v18999_v0 = vperm.slane %v18897_v2, 0  ;;  %v6303_v57 = vadd.f32 %v5412_v44, %v19000_v17  ;;  %v5445_v47 = vmul.f32 %v14913_v20, %v14815_v12  ;;  %8090 = vpow2.f32 %v7558_v6 }
 0x62a   :  { %v5422_v44 = vsel %vm15198_vm9, %v14905_v61, %v5418_v34  ;;  %v5520_v17 = vmul.f32 %v15161_v36, %v15066_v37  ;;  %v15216_v28 = vadd.f32 1.0, %v8077_v55  ;;  %8092 = vpow2.f32 %v7560_v50 }
 0x62b   :  { %v5043_v62 = vadd.f32 %v18999_v0, %v14673_v5  ;;  %v19003_v5 = vperm.slane %v18973_v32, 6  ;;  %v5477_v0 = vmul.f32 %v15084_v49, %v5476_v7  ;;  %v19004_v6 = vperm.slane %v18897_v2, 2  ;;  %v15221_v4 = vpop.eup %8082 }
 0x62c   :  { %v5426_v51 = vor.u32 1.1754944e-38, %v5425_v52  ;;  %19005 = vst [vmem:[#allocation128_spill] sm:$0xff] %v15221_v4  ;;  %v19006_v7 = vperm.slane %v18897_v2, 4  ;;  %vm15228_vm3 = vcmp.eq.f32.partialorder %v5483_v56, 8.507059e+37  ;;  %vm5424_vm11 = vcmp.eq.f32.partialorder %v5423_v15, 8.507059e+37  ;;  %v8085_v34 = vpop.eup %8084  ;;  %v19011_v56 = vld [vmem:[#allocation8_spill] sm:$0xff] }
 0x62d   :  { %6594 = vperm.xlu0 %7612, %v19003_v5   ;;  %v5045_v46 = vadd.f32 %v19004_v6, %v14702_v9  ;;  %v15223_v5 = vadd.f32 1.0, %v8079_v54  ;;  %v19009_v55 = vperm.slane %v18897_v2, 3  ;;  %v15235_v9 = vpop.xlane.xlu1 %4833  ;;  %v19010_v52 = vperm.slane %v18973_v32, 7  ;;  %v8087_v25 = vpop.eup %8086 }
 0x62e   :  { %v5047_v53 = vadd.f32 %v19006_v7, %v14707_v39  ;;  %v5486_v54 = vor.u32 1.1754944e-38, %v5485_v45  ;;  %v5427_v6 = vsel %vm5424_vm11, %v5426_v51, %v5422_v44  ;;  %v5446_v43 = vsub.f32 1.0, %v5445_v47  ;;  %v15243_v60 = vpop.eup %8088  ;;  %v19015_v47 = vld [vmem:[#allocation121_spill] sm:$0xff] }
 0x62f   :  { %v5046_v50 = vadd.f32 %v19009_v55, %v14709_v21  ;;  %6601 = vperm.xlu1 %7613, %v19010_v52   ;;  %v7559_v39 = vmul.f32 -1.442695, %v5043_v62  ;;  %v19012_v7 = vperm.slane %v19011_v56, 0  ;;  %v5478_v15 = vadd.f32 %v15084_v49, %v5477_v0  ;;  %v8091_v51 = vpop.eup %8090  ;;  %v15255_v52 = vpop.xlane.xlu2 %4848 }
 0x630   :  { %vm5480_vm12 = vweird.f32 %v15084_v49  ;;  %v5521_v4 = vsub.f32 1.0, %v5520_v17  ;;  %8094 = vrcp.f32 %v15216_v28  ;;  %v7561_v21 = vmul.f32 -1.442695, %v5045_v46  ;;  %v8093_v44 = vpop.eup %8092  ;;  %v19025_v46 = vld [vmem:[#allocation19_spill] sm:$0xff] }
 0x631   :  { %6608 = vperm.xlu2 %7614, %v19012_v7   ;;  %v15246_v32 = vmul.f32 0.5, %v6303_v57  ;;  %vm5449_vm7 = vweird.f32 %v14815_v12  ;;  %8096 = vrcp.f32 %v15223_v5  ;;  %v15250_v45 = vadd.f32 1.0, %v8085_v34  ;;  %vm15261_vm0 = vmor %vm5479_vm2, %vm5480_vm12 }
 0x632   :  { %v7563_v62 = vmul.f32 -1.442695, %v5047_v53  ;;  %v6304_v0 = vadd.f32 %v5427_v6, %v19015_v47  ;;  %v15253_v55 = vadd.f32 1.0, %v8087_v25  ;;  %v7562_v17 = vmul.f32 -1.442695, %v5046_v50  ;;  %v15282_v47 = vpop.xlane.xlu0 %4845 }
 0x633   :  { %19013 = vst [vmem:[#allocation61_spill] sm:$0xff] %v15246_v32  ;;  %vm5524_vm14 = vweird.f32 %v15066_v37  ;;  %v5447_v57 = vmul.f32 %v14913_v20, %v5446_v43  ;;  %8098 = vpow2.f32 %v7559_v39  ;;  %v19018_v53 = vperm.slane %v19011_v56, 1 }
 0x634   :  { %19014 = vst [vmem:[#allocation131_spill] sm:$0xff] %v15250_v45  ;;  %v5482_v25 = vsel %vm15261_vm0, %v15084_v49, %v5478_v15  ;;  %v5522_v34 = vmul.f32 %v15161_v36, %v5521_v4  ;;  %v5528_v10 = vand.u32 2147483647, %v15066_v37  ;;  %v15274_v50 = vadd.f32 1.0, %v8091_v51 }
 0x635   :  { %6615 = vperm.xlu0 %7612, %v19018_v53   ;;  %8100 = vpow2.f32 %v7561_v21  ;;  %v19020_v6 = vperm.slane %v18897_v2, 5  ;;  %v5530_v43 = vand.u32 2147483648, %v15066_v37  ;;  %v15280_v39 = vadd.f32 1.0, %v8093_v44 }
 0x636   :  { %19019 = vst [vmem:[#allocation29_spill] sm:$0xff] %v15274_v50  ;;  %8102 = vpow2.f32 %v7563_v62  ;;  %vm5450_vm6 = vweird.f32 %v14913_v20  ;;  %v5460_v49 = vmul.f32 %v14990_v23, %v14892_v22  ;;  %v15287_v4 = vpop.eup %8094  ;;  %v19022_v15 = vperm.slane %v18897_v2, 7 }
 0x637   :  { %v5048_v7 = vadd.f32 %v19020_v6, %v14738_v1  ;;  %19021 = vst [vmem:[#allocation95_spill] sm:$0xff] %v15280_v39  ;;  %8104 = vpow2.f32 %v7562_v17  ;;  %v19023_v1 = vperm.slane %v19011_v56, 2  ;;  %v5487_v51 = vsel %vm15228_vm3, %v5486_v54, %v5482_v25  ;;  %v15297_v44 = vpop.eup %8096  ;;  %v15308_v54 = vpop.xlane.xlu1 %4842  ;;  %vm15322_vm15 = vmor %vm5449_vm7, %vm5450_vm6 }
 0x638   :  { %v5050_v21 = vadd.f32 %v19022_v15, %v14750_v27  ;;  %v5448_v62 = vadd.f32 %v14913_v20, %v5447_v57  ;;  %19024 = vst [vmem:[#allocation31_spill] sm:$0xff] %v15297_v44  ;;  %v19026_v53 = vperm.slane %v18897_v2, 6  ;;  %v19027_v17 = vperm.slane %v19011_v56, 3  ;;  %v19038_v44 = vld [vmem:[#allocation44_spill] sm:$0xff] }
 0x639   :  { %6622 = vperm.xlu1 %7613, %v19023_v1   ;;  %v5523_v32 = vadd.f32 %v15161_v36, %v5522_v34  ;;  %vm5525_vm5 = vweird.f32 %v15161_v36  ;;  %v5455_v27 = vand.u32 2147483648, %v14815_v12  ;;  %8106 = vrcp.f32 %v15250_v45  ;;  %v8099_v2 = vpop.eup %8098  ;;  %v19037_v45 = vld [vmem:[#allocation20_spill] sm:$0xff] }
 0x63a   :  { %v5049_v6 = vadd.f32 %v19026_v53, %v19025_v46  ;;  %6629 = vperm.xlu2 %7614, %v19027_v17   ;;  %v7564_v61 = vmul.f32 -1.442695, %v5048_v7  ;;  %v15310_v57 = vmul.f32 0.5, %v6304_v0  ;;  %v5453_v25 = vand.u32 2147483647, %v14815_v12  ;;  %v15327_v53 = vpop.xlane.xlu2 %4857  ;;  %vm15334_vm8 = vmor %vm5524_vm14, %vm5525_vm5 }
 0x63b   :  { %8108 = vrcp.f32 %v15253_v55  ;;  %vm15314_vm10 = vcmp.eq.f32.partialorder %v5528_v10, 8.507059e+37  ;;  %v5531_v34 = vor.u32 1.1754944e-38, %v5530_v43  ;;  %v5461_v0 = vsub.f32 1.0, %v5460_v49  ;;  %v8101_v1 = vpop.eup %8100  ;;  %v19033_v10 = vld [vmem:[#allocation116_spill] sm:$0xff] }
 0x63c   :  { %19028 = vst [vmem:[#allocation30_spill] sm:$0xff] %v15310_v57  ;;  %8110 = vrcp.f32 %v15274_v50  ;;  %v7566_v46 = vmul.f32 -1.442695, %v5050_v21  ;;  %v6308_v17 = vadd.f32 %v5487_v51, %v19033_v10  ;;  %v5452_v12 = vsel %vm15322_vm15, %v14913_v20, %v5448_v62  ;;  %v8103_v49 = vpop.eup %8102 }
 0x63d   :  { %8112 = vrcp.f32 %v15280_v39  ;;  %v7565_v21 = vmul.f32 -1.442695, %v5049_v6  ;;  %v19036_v57 = vperm.slane %v19011_v56, 4  ;;  %v5527_v51 = vsel %vm15334_vm8, %v15161_v36, %v5523_v32  ;;  %v8105_v10 = vpop.eup %8104  ;;  %v19043_v32 = vld [vmem:[#allocation40_spill] sm:$0xff] }
 0x63e   :  { %v5456_v37 = vor.u32 1.1754944e-38, %v5455_v27  ;;  %v15347_v50 = vadd.f32 1.0, %v8099_v2  ;;  %8114 = vpow2.f32 %v7564_v61  ;;  %v19039_v7 = vperm.slane %v19038_v44, 0 }
 0x63f   :  { %6636 = vperm.xlu0 %7612, %v19036_v57   ;;  %vm5454_vm2 = vcmp.eq.f32.partialorder %v5453_v25, 8.507059e+37  ;;  %v15352_v62 = vadd.f32 1.0, %v8101_v1  ;;  %v5462_v39 = vmul.f32 %v14990_v23, %v5461_v0  ;;  %v5565_v57 = vmul.f32 %v15204_v38, %v15120_v24  ;;  %v15357_v43 = vpop.eup %8106  ;;  %v19047_v1 = vld [vmem:[#allocation84_spill] sm:$0xff] }
 0x640   :  { %v5051_v20 = vadd.f32 %v19039_v7, %v19037_v45  ;;  %v5457_v6 = vsel %vm5454_vm2, %v5456_v37, %v5452_v12  ;;  %19041 = vst [vmem:[#allocation34_spill] sm:$0xff] %v15357_v43  ;;  %v15359_v36 = vadd.f32 1.0, %v8103_v49  ;;  %8116 = vpow2.f32 %v7566_v46  ;;  %v15375_v46 = vpop.xlane.xlu0 %4854 }
 0x641   :  { %19040 = vst [vmem:[#allocation32_spill] sm:$0xff] %v15352_v62  ;;  %v19044_v27 = vperm.slane %v19038_v44, 2  ;;  %v19045_v45 = vperm.slane %v19011_v56, 5  ;;  %v5532_v25 = vsel %vm15314_vm10, %v5531_v34, %v5527_v51  ;;  %v15368_v2 = vpop.eup %8108  ;;  %v15370_v0 = vadd.f32 1.0, %v8105_v10  ;;  %v19051_v34 = vld [vmem:[#allocation81_spill] sm:$0xff]  ;;  %v19053_v10 = vld [vmem:[#allocation119_spill] sm:$0xff] }
 0x642   :  { %19042 = vst [vmem:[#allocation33_spill] sm:$0xff] %v15359_v36  ;;  %8118 = vpow2.f32 %v7565_v21  ;;  %v19048_v12 = vperm.slane %v19038_v44, 1  ;;  %v19049_v37 = vperm.slane %v19011_v56, 6  ;;  %v5490_v7 = vmul.f32 %v15021_v40, %v14921_v42 }
 0x643   :  { %v5053_v61 = vadd.f32 %v19044_v27, %v19043_v32  ;;  %6643 = vperm.xlu1 %7613, %v19045_v45   ;;  %19046 = vst [vmem:[#allocation55_spill] sm:$0xff] %v15370_v0  ;;  %v15381_v32 = vpop.eup %8110  ;;  %8120 = vrcp.f32 %v15347_v50  ;;  %v7567_v15 = vmul.f32 -1.442695, %v5051_v20  ;;  %v6306_v51 = vadd.f32 %v5457_v6, %v19051_v34  ;;  %v15395_v6 = vpop.xlane.xlu1 %4851 }
 0x644   :  { %v5052_v49 = vadd.f32 %v19048_v12, %v19047_v1  ;;  %6650 = vperm.xlu2 %7614, %v19049_v37   ;;  %19050 = vst [vmem:[#allocation36_spill] sm:$0xff] %v15381_v32  ;;  %vm5465_vm9 = vweird.f32 %v14990_v23  ;;  %v15386_v21 = vpop.eup %8112  ;;  %8122 = vrcp.f32 %v15352_v62  ;;  %v6311_v27 = vadd.f32 %v5532_v25, %v19053_v10  ;;  %v19054_v32 = vld [vmem:[#allocation132_spill] sm:$0xff]  ;;  %v15397_v34 = vpop.xlane.xlu2 %4866 }
 0x645   :  { %19052 = vst [vmem:[#allocation35_spill] sm:$0xff] %v15386_v21  ;;  %v5463_v45 = vadd.f32 %v14990_v23, %v5462_v39  ;;  %v5566_v1 = vsub.f32 1.0, %v5565_v57  ;;  %v8115_v12 = vpop.eup %8114  ;;  %8124 = vrcp.f32 %v15359_v36  ;;  %v7569_v37 = vmul.f32 -1.442695, %v5053_v61 }
 0x646   :  { %v19055_v20 = vperm.slane %v19038_v44, 3  ;;  %v5470_v21 = vand.u32 2147483648, %v14892_v22  ;;  %8126 = vrcp.f32 %v15370_v0  ;;  %v7568_v25 = vmul.f32 -1.442695, %v5052_v49  ;;  %v8117_v61 = vpop.eup %8116 }
 0x647   :  { %v19056_v39 = vperm.slane %v19011_v56, 7  ;;  %vm5464_vm3 = vweird.f32 %v14892_v22  ;;  %v5491_v57 = vsub.f32 1.0, %v5490_v7  ;;  %8128 = vpow2.f32 %v7567_v15 }
 0x648   :  { %v5054_v43 = vadd.f32 %v19055_v20, %v19054_v32  ;;  %v15404_v10 = vmul.f32 0.5, %v6308_v17  ;;  %v15406_v32 = vmul.f32 0.5, %v6306_v51  ;;  %vm15410_vm11 = vmor %vm5464_vm3, %vm5465_vm9  ;;  %v5468_v49 = vand.u32 2147483647, %v14892_v22  ;;  %v8119_v36 = vpop.eup %8118  ;;  %v19065_v22 = vld [vmem:[#allocation9_spill] sm:$0xff] }
 0x649   :  { %6657 = vperm.xlu0 %7612, %v19056_v39   ;;  %v15415_v56 = vadd.f32 1.0, %v8115_v12  ;;  %v15417_v39 = vmul.f32 0.5, %v6311_v27  ;;  %v5467_v17 = vsel %vm15410_vm11, %v14990_v23, %v5463_v45  ;;  %v5567_v7 = vmul.f32 %v15204_v38, %v5566_v1  ;;  %v15423_v15 = vpop.eup %8120  ;;  %v19069_v23 = vld [vmem:[#allocation24_spill] sm:$0xff] }
 0x64a   :  { %19057 = vst [vmem:[#allocation56_spill] sm:$0xff] %v15404_v10  ;;  %8130 = vpow2.f32 %v7569_v37  ;;  %v7570_v51 = vmul.f32 -1.442695, %v5054_v43  ;;  %v19064_v10 = vperm.slane %v19038_v44, 5  ;;  %v19066_v0 = vperm.slane %v19065_v22, 0  ;;  %v15430_v27 = vpop.eup %8122 }
 0x64b   :  { %19058 = vst [vmem:[#allocation38_spill] sm:$0xff] %v15406_v32  ;;  %v19063_v32 = vld [vmem:[#allocation23_spill] sm:$0xff]  ;;  %v5471_v12 = vor.u32 1.1754944e-38, %v5470_v21  ;;  %8132 = vpow2.f32 %v7568_v25  ;;  %v19070_v45 = vperm.slane %v19038_v44, 4  ;;  %v19071_v37 = vperm.slane %v19065_v22, 1  ;;  %v15440_v20 = vpop.eup %8124  ;;  %v15449_v25 = vpop.xlane.xlu0 %4863 }
 0x64c   :  { %19061 = vst [vmem:[#allocation37_spill] sm:$0xff] %v15415_v56  ;;  %v5056_v62 = vadd.f32 %v19064_v10, %v19063_v32  ;;  %6664 = vperm.xlu1 %7613, %v19066_v0   ;;  %v5492_v43 = vmul.f32 %v15021_v40, %v5491_v57  ;;  %v15442_v10 = vadd.f32 1.0, %v8119_v36  ;;  %vm5469_vm12 = vcmp.eq.f32.partialorder %v5468_v49, 8.507059e+37  ;;  %v15446_v21 = vpop.eup %8126 }
 0x64d   :  { %19062 = vst [vmem:[#allocation96_spill] sm:$0xff] %v15417_v39  ;;  %v15432_v39 = vadd.f32 1.0, %v8117_v61  ;;  %v5055_v1 = vadd.f32 %v19070_v45, %v19069_v23  ;;  %6671 = vperm.xlu2 %7614, %v19071_v37   ;;  %vm5569_vm7 = vweird.f32 %v15120_v24  ;;  %v5573_v0 = vand.u32 2147483647, %v15120_v24  ;;  %v8129_v57 = vpop.eup %8128  ;;  %v15453_v23 = vpop.xlane.xlu2 %4875 }
 0x64e   :  { %19067 = vst [vmem:[#allocation99_spill] sm:$0xff] %v15430_v27  ;;  %8134 = vrcp.f32 %v15415_v56  ;;  %v5472_v61 = vsel %vm5469_vm12, %v5471_v12, %v5467_v17  ;;  %v5568_v32 = vadd.f32 %v15204_v38, %v5567_v7  ;;  %vm5570_vm0 = vweird.f32 %v15204_v38 }
 0x64f   :  { %19068 = vst [vmem:[#allocation41_spill] sm:$0xff] %v15432_v39  ;;  %8136 = vpow2.f32 %v7570_v51  ;;  %v7572_v36 = vmul.f32 -1.442695, %v5056_v62  ;;  %v5575_v49 = vand.u32 2147483648, %v15120_v24  ;;  %v5505_v45 = vmul.f32 %v15105_v48, %v14996_v35  ;;  %v15464_v62 = vpop.xlane.xlu1 %4860  ;;  %v19077_v51 = vld [vmem:[#allocation82_spill] sm:$0xff]  ;;  %vm15471_vm6 = vmor %vm5569_vm7, %vm5570_vm0 }
 0x650   :  { %19072 = vst [vmem:[#allocation104_spill] sm:$0xff] %v15440_v20  ;;  %8138 = vrcp.f32 %v15432_v39  ;;  %v7571_v37 = vmul.f32 -1.442695, %v5055_v1  ;;  %v19076_v56 = vperm.slane %v19065_v22, 2  ;;  %v5493_v17 = vadd.f32 %v15021_v40, %v5492_v43  ;;  %v8131_v7 = vpop.eup %8130  ;;  %v19088_v1 = vld [vmem:[#allocation48_spill] sm:$0xff] }
 0x651   :  { %19073 = vst [vmem:[#allocation57_spill] sm:$0xff] %v15442_v10  ;;  %vm5495_vm14 = vweird.f32 %v15021_v40  ;;  %8140 = vrcp.f32 %v15442_v10  ;;  %v6307_v12 = vadd.f32 %v5472_v61, %v19077_v51  ;;  %vm5494_vm5 = vweird.f32 %v14921_v42  ;;  %v8133_v43 = vpop.eup %8132 }
 0x652   :  { %19074 = vst [vmem:[#allocation39_spill] sm:$0xff] %v15446_v21  ;;  %6678 = vperm.xlu0 %7612, %v19076_v56   ;;  %v5500_v56 = vand.u32 2147483648, %v14921_v42  ;;  %v15477_v39 = vadd.f32 1.0, %v8129_v57  ;;  %v5572_v20 = vsel %vm15471_vm6, %v15204_v38, %v5568_v32  ;;  %v5498_v61 = vand.u32 2147483647, %v14921_v42  ;;  %vm15492_vm10 = vmor %vm5494_vm5, %vm5495_vm14 }
 0x653   :  { %19075 = vst [vmem:[#allocation58_spill] sm:$0xff] %v15453_v23  ;;  %v5610_v24 = vmul.f32 %v15287_v4, %v15216_v28  ;;  %8142 = vpow2.f32 %v7572_v36  ;;  %v19081_v51 = vperm.slane %v19038_v44, 6  ;;  %v19082_v10 = vperm.slane %v19065_v22, 3 }
 0x654   :  { %19080 = vst [vmem:[#allocation59_spill] sm:$0xff] %v15477_v39  ;;  %v5576_v21 = vor.u32 1.1754944e-38, %v5575_v49  ;;  %v5506_v38 = vsub.f32 1.0, %v5505_v45  ;;  %v15496_v42 = vpop.eup %8134  ;;  %v15498_v32 = vadd.f32 1.0, %v8131_v7  ;;  %8144 = vpow2.f32 %v7571_v37 }
 0x655   :  { %v5057_v27 = vadd.f32 %v19081_v51, %v14952_v14  ;;  %6685 = vperm.xlu1 %7613, %v19082_v10   ;;  %19085 = vst [vmem:[#allocation60_spill] sm:$0xff] %v15496_v42  ;;  %v19087_v36 = vperm.slane %v19065_v22, 4  ;;  %vm5574_vm15 = vcmp.eq.f32.partialorder %v5573_v0, 8.507059e+37  ;;  %v5497_v14 = vsel %vm15492_vm10, %v15021_v40, %v5493_v17  ;;  %v8137_v10 = vpop.eup %8136 }
 0x656   :  { %19086 = vst [vmem:[#allocation68_spill] sm:$0xff] %v15498_v32  ;;  %v15505_v49 = vadd.f32 1.0, %v8133_v43  ;;  %v19089_v51 = vperm.slane %v19088_v1, 0  ;;  %v5577_v23 = vsel %vm5574_vm15, %v5576_v21, %v5572_v20  ;;  %v5501_v42 = vor.u32 1.1754944e-38, %v5500_v56  ;;  %v15510_v7 = vpop.eup %8138  ;;  %v15518_v43 = vpop.permute.xlu2 %6440 }
 0x657   :  { %6692 = vperm.xlu2 %7614, %v19087_v36   ;;  %19090 = vst [vmem:[#allocation70_spill] sm:$0xff] %v15510_v7  ;;  %8146 = vrcp.f32 %v15477_v39  ;;  %v19091_v0 = vperm.slane %v19038_v44, 7  ;;  %vm5499_vm8 = vcmp.eq.f32.partialorder %v5498_v61, 8.507059e+37  ;;  %v5611_v57 = vsub.f32 1.0, %v5610_v24  ;;  %v15516_v40 = vpop.eup %8140  ;;  %v15526_v56 = vpop.xlane.xlu0 %4872 }
 0x658   :  { %v5059_v45 = vadd.f32 %v19089_v51, %v14968_v63  ;;  %v7573_v17 = vmul.f32 -1.442695, %v5057_v27  ;;  %v5502_v36 = vsel %vm5499_vm8, %v5501_v42, %v5497_v14  ;;  %v5507_v63 = vmul.f32 %v15105_v48, %v5506_v38  ;;  %v19094_v27 = vld [vmem:[#allocation80_spill] sm:$0xff] }
 0x659   :  { %v5058_v37 = vadd.f32 %v19091_v0, %v14970_v26  ;;  %v5535_v20 = vmul.f32 %v15134_v11, %v15033_v8  ;;  %8148 = vrcp.f32 %v15498_v32  ;;  %v15524_v21 = vadd.f32 1.0, %v8137_v10  ;;  %v8143_v24 = vpop.eup %8142  ;;  %v19096_v0 = vld [vmem:[#allocation109_spill] sm:$0xff] }
 0x65a   :  { %v19093_v26 = vperm.slane %v19065_v22, 5  ;;  %v15530_v44 = vmul.f32 0.5, %v6307_v12  ;;  %v15533_v61 = vadd.f32 %v5577_v23, %v19094_v27  ;;  %8150 = vrcp.f32 %v15505_v49  ;;  %v8145_v10 = vpop.eup %8144 }
 0x65b   :  { %19092 = vst [vmem:[#allocation83_spill] sm:$0xff] %v15524_v21  ;;  %v7575_v38 = vmul.f32 -1.442695, %v5059_v45  ;;  %v19095_v42 = vperm.slane %v19088_v1, 1  ;;  %vm5509_vm2 = vweird.f32 %v14996_v35  ;;  %v7574_v51 = vmul.f32 -1.442695, %v5058_v37 }
 0x65c   :  { %6699 = vperm.xlu0 %7612, %v19093_v26   ;;  %v15541_v32 = vadd.f32 %v5502_v36, %v19096_v0  ;;  %vm5510_vm9 = vweird.f32 %v15105_v48  ;;  %v5612_v23 = vmul.f32 %v15287_v4, %v5611_v57  ;;  %8152 = vpow2.f32 %v7573_v17  ;;  %v15548_v26 = vpop.xlane.xlu1 %4869 }
 0x65d   :  { %v5060_v14 = vadd.f32 %v19095_v42, %v15039_v30  ;;  %v19097_v12 = vperm.slane %v19088_v1, 3  ;;  %v19098_v30 = vperm.slane %v19065_v22, 6  ;;  %v5508_v27 = vadd.f32 %v15105_v48, %v5507_v63  ;;  %v15553_v42 = vpop.eup %8146  ;;  %vm15573_vm3 = vmor %vm5509_vm2, %vm5510_vm9 }
 0x65e   :  { %v5536_v37 = vsub.f32 1.0, %v5535_v20  ;;  %19099 = vst [vmem:[#allocation45_spill] sm:$0xff] %v15553_v42  ;;  %8154 = vrcp.f32 %v15524_v21  ;;  %v15556_v36 = vadd.f32 1.0, %v8143_v24  ;;  %v19101_v57 = vperm.slane %v19065_v22, 7  ;;  %v19107_v21 = vld [vmem:[#allocation10_spill] sm:$0xff] }
 0x65f   :  { %v5062_v45 = vadd.f32 %v19097_v12, %v15050_v13  ;;  %6706 = vperm.xlu1 %7613, %v19098_v30   ;;  %v5513_v17 = vand.u32 2147483647, %v14996_v35  ;;  %v5515_v13 = vand.u32 2147483648, %v14996_v35  ;;  %v15562_v0 = vadd.f32 1.0, %v8145_v10  ;;  %v15567_v30 = vpop.eup %8148  ;;  %v15582_v10 = vpop.permute.xlu2 %6461 }
 0x660   :  { %19100 = vst [vmem:[#allocation74_spill] sm:$0xff] %v15556_v36  ;;  %6713 = vperm.xlu2 %7614, %v19101_v57   ;;  %8156 = vpow2.f32 %v7575_v38  ;;  %v7576_v12 = vmul.f32 -1.442695, %v5060_v14  ;;  %v19102_v63 = vperm.slane %v19088_v1, 2  ;;  %v5613_v24 = vadd.f32 %v15287_v4, %v5612_v23  ;;  %v15580_v14 = vpop.eup %8150 }
 0x661   :  { %19103 = vst [vmem:[#allocation5_spill] sm:$0xff] %v15567_v30  ;;  %8158 = vpow2.f32 %v7574_v51  ;;  %vm5615_vm11 = vweird.f32 %v15287_v4  ;;  %v5618_v38 = vand.u32 2147483647, %v15216_v28  ;;  %v5512_v51 = vsel %vm15573_vm3, %v15105_v48, %v5508_v27 }
 0x662   :  { %v5061_v20 = vadd.f32 %v19102_v63, %v15052_v41  ;;  %v7578_v41 = vmul.f32 -1.442695, %v5062_v45  ;;  %v5620_v35 = vand.u32 2147483648, %v15216_v28  ;;  %v5537_v57 = vmul.f32 %v15134_v11, %v5536_v37  ;;  %v8153_v42 = vpop.eup %8152 }
 0x663   :  { %8160 = vrcp.f32 %v15556_v36  ;;  %v19106_v23 = vperm.slane %v19088_v1, 4  ;;  %v19108_v30 = vperm.slane %v19107_v21, 0  ;;  %v5516_v45 = vor.u32 1.1754944e-38, %v5515_v13  ;;  %v15608_v13 = vpop.xlane.xlu0 %4881  ;;  %v19121_v36 = vld [vmem:[#allocation111_spill] sm:$0xff] }
 0x664   :  { %vm5614_vm12 = vweird.f32 %v15216_v28  ;;  %8162 = vpow2.f32 %v7576_v12  ;;  %v7577_v22 = vmul.f32 -1.442695, %v5061_v20  ;;  %v19109_v48 = vperm.slane %v19088_v1, 6 }
 0x665   :  { %v5063_v63 = vadd.f32 %v19106_v23, %v15159_v3  ;;  %6720 = vperm.xlu0 %7612, %v19108_v30   ;;  %vm5514_vm7 = vcmp.eq.f32.partialorder %v5513_v17, 8.507059e+37  ;;  %vm15601_vm0 = vmor %vm5614_vm12, %vm5615_vm11  ;;  %v15605_v3 = vpop.eup %8154  ;;  %8164 = vrcp.f32 %v15562_v0  ;;  %vm15613_vm14 = vcmp.eq.f32.partialorder %v5618_v38, 8.507059e+37 }
 0x666   :  { %v5065_v27 = vadd.f32 %v19109_v48, %v15136_v18  ;;  %19112 = vst [vmem:[#allocation6_spill] sm:$0xff] %v15605_v3  ;;  %v5517_v28 = vsel %vm5514_vm7, %v5516_v45, %v5512_v51  ;;  %v5617_v12 = vsel %vm15601_vm0, %v15287_v4, %v5613_v24  ;;  %v8157_v17 = vpop.eup %8156  ;;  %8166 = vpow2.f32 %v7578_v41 }
 0x667   :  { %v19115_v20 = vperm.slane %v19107_v21, 1  ;;  %v5621_v30 = vor.u32 1.1754944e-38, %v5620_v35  ;;  %v5538_v23 = vadd.f32 %v15134_v11, %v5537_v57  ;;  %vm5540_vm6 = vweird.f32 %v15134_v11  ;;  %v8159_v48 = vpop.eup %8158  ;;  %v15629_v57 = vpop.xlane.xlu1 %4878 }
 0x668   :  { %v7579_v51 = vmul.f32 -1.442695, %v5063_v63  ;;  %v19116_v45 = vperm.slane %v19107_v21, 2  ;;  %vm5539_vm5 = vweird.f32 %v15033_v8  ;;  %v5543_v4 = vand.u32 2147483647, %v15033_v8  ;;  %v15653_v18 = vpop.permute.xlu2 %6482 }
 0x669   :  { %6727 = vperm.xlu1 %7613, %v19115_v20   ;;  %v5545_v24 = vand.u32 2147483648, %v15033_v8  ;;  %8168 = vpow2.f32 %v7577_v22  ;;  %v7581_v38 = vmul.f32 -1.442695, %v5065_v27  ;;  %v19117_v41 = vperm.slane %v19088_v1, 5  ;;  %v15633_v37 = vpop.eup %8160  ;;  %vm15642_vm10 = vmor %vm5539_vm5, %vm5540_vm6 }
 0x66a   :  { %6734 = vperm.xlu2 %7614, %v19116_v45   ;;  %v5622_v63 = vsel %vm15613_vm14, %v5621_v30, %v5617_v12  ;;  %19118 = vst [vmem:[#allocation110_spill] sm:$0xff] %v15633_v37  ;;  %v15635_v20 = vadd.f32 1.0, %v8153_v42  ;;  %v15637_v45 = vadd.f32 1.0, %v8157_v17  ;;  %v6310_v3 = vadd.f32 %v5517_v28, %v19121_v36  ;;  %v8163_v22 = vpop.eup %8162  ;;  %v19125_v30 = vld [vmem:[#allocation78_spill] sm:$0xff] }
 0x66b   :  { %v5064_v35 = vadd.f32 %v19117_v41, %v15138_v58  ;;  %v5550_v58 = vmul.f32 %v15168_v33, %v15087_v29  ;;  %v15648_v27 = vadd.f32 1.0, %v8159_v48  ;;  %v19124_v42 = vperm.slane %v19088_v1, 7  ;;  %v15660_v17 = vpop.eup %8164 }
 0x66c   :  { %19119 = vst [vmem:[#allocation7_spill] sm:$0xff] %v15635_v20  ;;  %v5542_v36 = vsel %vm15642_vm10, %v15134_v11, %v5538_v23  ;;  %v5655_v28 = vmul.f32 %v15368_v2, %v15253_v55  ;;  %8170 = vpow2.f32 %v7579_v51  ;;  %v19126_v48 = vperm.slane %v19125_v30, 1  ;;  %v8167_v39 = vpop.eup %8166  ;;  %v15674_v51 = vpop.permute.xlu0 %6454 }
 0x66d   :  { %19120 = vst [vmem:[#allocation118_spill] sm:$0xff] %v15637_v45  ;;  %v5066_v12 = vadd.f32 %v19124_v42, %v15235_v9  ;;  %v19127_v37 = vperm.slane %v19107_v21, 3  ;;  %v19128_v9 = vld [vmem:[#allocation79_spill] sm:$0xff]  ;;  %v5546_v42 = vor.u32 1.1754944e-38, %v5545_v24  ;;  %8172 = vpow2.f32 %v7581_v38 }
 0x66e   :  { %v5068_v41 = vadd.f32 %v19126_v48, %v15193_v16  ;;  %v6317_v1 = vadd.f32 %v5622_v63, %v19128_v9  ;;  %v7580_v8 = vmul.f32 -1.442695, %v5064_v35  ;;  %v15669_v11 = vmul.f32 0.5, %v15533_v61 }
 0x66f   :  { %6741 = vperm.xlu0 %7612, %v19127_v37   ;;  %vm5544_vm15 = vcmp.eq.f32.partialorder %v5543_v4, 8.507059e+37  ;;  %8174 = vrcp.f32 %v15635_v20  ;;  %v15672_v23 = vadd.f32 1.0, %v8163_v22  ;;  %v5551_v48 = vsub.f32 1.0, %v5550_v58  ;;  %v8169_v7 = vpop.eup %8168 }
 0x670   :  { %19129 = vst [vmem:[#allocation112_spill] sm:$0xff] %v15669_v11  ;;  %v5547_v16 = vsel %vm5544_vm15, %v5546_v42, %v5542_v36  ;;  %8176 = vrcp.f32 %v15637_v45  ;;  %v7582_v63 = vmul.f32 -1.442695, %v5066_v12  ;;  %v19131_v24 = vperm.slane %v19107_v21, 4 }
 0x671   :  { %19130 = vst [vmem:[#allocation115_spill] sm:$0xff] %v15672_v23  ;;  %v15680_v38 = vmul.f32 0.5, %v15541_v32  ;;  %v5656_v61 = vsub.f32 1.0, %v5655_v28  ;;  %8178 = vrcp.f32 %v15648_v27  ;;  %v7584_v4 = vmul.f32 -1.442695, %v5068_v41  ;;  %v15694_v32 = vpop.permute.xlu1 %6447  ;;  %v19136_v28 = vld [vmem:[#allocation126_spill] sm:$0xff] }
 0x672   :  { %6748 = vperm.xlu1 %7613, %v19131_v24   ;;  %v19132_v35 = vperm.slane %v19107_v21, 5  ;;  %v15685_v37 = vmul.f32 0.5, %v6310_v3  ;;  %v15687_v58 = vmul.f32 0.5, %v6317_v1  ;;  %v15689_v22 = vadd.f32 1.0, %v8167_v39  ;;  %v8171_v42 = vpop.eup %8170  ;;  %v15702_v1 = vpop.permute.xlu2 %6503 }
 0x673   :  { %8180 = vpow2.f32 %v7580_v8  ;;  %v19135_v12 = vperm.slane %v19125_v30, 0  ;;  %v6312_v9 = vadd.f32 %v5547_v16, %v19136_v28  ;;  %v15698_v41 = vadd.f32 1.0, %v8169_v7  ;;  %v8173_v39 = vpop.eup %8172 }
 0x674   :  { %6755 = vperm.xlu2 %7614, %v19132_v35   ;;  %19133 = vst [vmem:[#allocation113_spill] sm:$0xff] %v15687_v58  ;;  %8182 = vrcp.f32 %v15672_v23  ;;  %v5552_v3 = vmul.f32 %v15168_v33, %v5551_v48  ;;  %vm5554_vm8 = vweird.f32 %v15087_v29  ;;  %vm5555_vm2 = vweird.f32 %v15168_v33 }
 0x675   :  { %19134 = vst [vmem:[#allocation117_spill] sm:$0xff] %v15689_v22  ;;  %v5067_v36 = vadd.f32 %v19135_v12, %v15206_v31  ;;  %8184 = vpow2.f32 %v7582_v63  ;;  %v5657_v31 = vmul.f32 %v15368_v2, %v5656_v61  ;;  %v5580_v8 = vmul.f32 %v15177_v59, %v15095_v19  ;;  %v15708_v16 = vpop.eup %8174  ;;  %vm15756_vm11 = vmor %vm5554_vm8, %vm5555_vm2 }
 0x676   :  { %19137 = vst [vmem:[#allocation8_spill] sm:$0xff] %v15698_v41  ;;  %8186 = vpow2.f32 %v7584_v4  ;;  %v19139_v7 = vperm.slane %v19125_v30, 2  ;;  %v19140_v24 = vperm.slane %v19107_v21, 6  ;;  %v5558_v63 = vand.u32 2147483647, %v15087_v29  ;;  %v15717_v12 = vpop.eup %8176 }
 0x677   :  { %19138 = vst [vmem:[#allocation121_spill] sm:$0xff] %v15708_v16  ;;  %v5560_v35 = vand.u32 2147483648, %v15087_v29  ;;  %8188 = vrcp.f32 %v15689_v22  ;;  %v7583_v61 = vmul.f32 -1.442695, %v5067_v36  ;;  %v19142_v28 = vperm.slane %v19125_v30, 4  ;;  %v15725_v45 = vpop.eup %8178 }
 0x678   :  { %v5069_v48 = vadd.f32 %v19139_v7, %v15308_v54  ;;  %6762 = vperm.xlu0 %7612, %v19140_v24   ;;  %19141 = vst [vmem:[#allocation19_spill] sm:$0xff] %v15717_v12  ;;  %v15723_v23 = vmul.f32 0.5, %v6312_v9  ;;  %8190 = vrcp.f32 %v15698_v41  ;;  %v15728_v54 = vadd.f32 1.0, %v8171_v42  ;;  %v15732_v24 = vpop.permute.xlu0 %6468 }
 0x679   :  { %v5071_v4 = vadd.f32 %v19142_v28, %v15255_v52  ;;  %v15730_v7 = vadd.f32 1.0, %v8173_v39  ;;  %v5553_v12 = vadd.f32 %v15168_v33, %v5552_v3  ;;  %v8181_v22 = vpop.eup %8180  ;;  %v19146_v36 = vperm.slane %v19107_v21, 7  ;;  %v19148_v39 = vld [vmem:[#allocation11_spill] sm:$0xff]  ;;  %v19152_v21 = vld [vmem:[#allocation133_spill] sm:$0xff] }
 0x67a   :  { %19143 = vst [vmem:[#allocation116_spill] sm:$0xff] %v15723_v23  ;;  %v5658_v52 = vadd.f32 %v15368_v2, %v5657_v31  ;;  %vm5660_vm9 = vweird.f32 %v15368_v2  ;;  %v5665_v9 = vand.u32 2147483648, %v15253_v55  ;;  %v5581_v28 = vsub.f32 1.0, %v5580_v8  ;;  %v15740_v16 = vpop.eup %8182  ;;  %v15750_v23 = vpop.permute.xlu1 %6475 }
 0x67b   :  { %19144 = vst [vmem:[#allocation20_spill] sm:$0xff] %v15728_v54  ;;  %6769 = vperm.xlu1 %7613, %v19146_v36   ;;  %v7585_v42 = vmul.f32 -1.442695, %v5069_v48  ;;  %v19149_v20 = vperm.slane %v19148_v39, 0  ;;  %vm15744_vm3 = vcmp.eq.f32.partialorder %v5558_v63, 8.507059e+37  ;;  %v5561_v3 = vor.u32 1.1754944e-38, %v5560_v35  ;;  %v8185_v31 = vpop.eup %8184 }
 0x67c   :  { %19145 = vst [vmem:[#allocation44_spill] sm:$0xff] %v15730_v7  ;;  %v19153_v36 = vld [vmem:[#allocation128_spill] sm:$0xff]  ;;  %8192 = vpow2.f32 %v7583_v61  ;;  %v7587_v11 = vmul.f32 -1.442695, %v5071_v4  ;;  %vm5659_vm12 = vweird.f32 %v15253_v55  ;;  %v8187_v48 = vpop.eup %8186  ;;  %v15763_v63 = vadd.f32 1.0, %v8181_v22  ;;  %v15780_v22 = vpop.permute.xlu2 %6524 }
 0x67d   :  { %19147 = vst [vmem:[#allocation40_spill] sm:$0xff] %v15740_v16  ;;  %6776 = vperm.xlu2 %7614, %v19149_v20   ;;  %v5595_v41 = vmul.f32 %v19153_v36, %v19152_v21  ;;  %v5663_v20 = vand.u32 2147483647, %v15253_v55  ;;  %8194 = vrcp.f32 %v15728_v54  ;;  %v19157_v35 = vperm.slane %v19125_v30, 3  ;;  %vm15773_vm7 = vmor %vm5659_vm12, %vm5660_vm9  ;;  %v15777_v55 = vpop.eup %8188 }
 0x67e   :  { %19156 = vst [vmem:[#allocation84_spill] sm:$0xff] %v15763_v63  ;;  %v5557_v29 = vsel %vm15756_vm11, %v15168_v33, %v5553_v12  ;;  %8196 = vrcp.f32 %v15730_v7  ;;  %v5582_v8 = vmul.f32 %v15177_v59, %v5581_v28  ;;  %v15786_v33 = vpop.eup %8190  ;;  %v15788_v12 = vadd.f32 1.0, %v8185_v31 }
 0x67f   :  { %v5070_v61 = vadd.f32 %v19157_v35, %v15282_v47  ;;  %19160 = vst [vmem:[#allocation81_spill] sm:$0xff] %v15777_v55  ;;  %v5662_v47 = vsel %vm15773_vm7, %v15368_v2, %v5658_v52  ;;  %v5666_v35 = vor.u32 1.1754944e-38, %v5665_v9  ;;  %8198 = vpow2.f32 %v7585_v42 }
 0x680   :  { %19161 = vst [vmem:[#allocation119_spill] sm:$0xff] %v15780_v22  ;;  %v19163_v54 = vperm.slane %v19125_v30, 5  ;;  %v19164_v7 = vperm.slane %v19148_v39, 1  ;;  %v5596_v16 = vsub.f32 1.0, %v5595_v41  ;;  %v15795_v22 = vadd.f32 1.0, %v8187_v48  ;;  %v15803_v42 = vpop.permute.xlu0 %6489 }
 0x681   :  { %19162 = vst [vmem:[#allocation132_spill] sm:$0xff] %v15788_v12  ;;  %8200 = vpow2.f32 %v7587_v11  ;;  %v5562_v2 = vsel %vm15744_vm3, %v5561_v3, %v5557_v29  ;;  %vm5664_vm0 = vcmp.eq.f32.partialorder %v5663_v20, 8.507059e+37  ;;  %v7586_v52 = vmul.f32 -1.442695, %v5070_v61 }
 0x682   :  { %v5072_v55 = vadd.f32 %v19163_v54, %v15395_v6  ;;  %6783 = vperm.xlu0 %7612, %v19164_v7   ;;  %19165 = vst [vmem:[#allocation23_spill] sm:$0xff] %v15795_v22  ;;  %8202 = vrcp.f32 %v15763_v63  ;;  %v19166_v9 = vperm.slane %v19125_v30, 7  ;;  %v5667_v6 = vsel %vm5664_vm0, %v5666_v35, %v5662_v47  ;;  %v8193_v54 = vpop.eup %8192  ;;  %v15824_v4 = vpop.permute.xlu1 %6496  ;;  %v19172_v47 = vld [vmem:[#allocation127_spill] sm:$0xff] }
 0x683   :  { %v19167_v41 = vperm.slane %v19148_v39, 2  ;;  %v5583_v11 = vadd.f32 %v15177_v59, %v5582_v8  ;;  %vm5585_vm14 = vweird.f32 %v15177_v59  ;;  %v5590_v58 = vand.u32 2147483648, %v15095_v19  ;;  %v15812_v3 = vpop.eup %8194  ;;  %v19173_v8 = vld [vmem:[#allocation93_spill] sm:$0xff] }
 0x684   :  { %v5074_v28 = vadd.f32 %v19166_v9, %v15327_v53  ;;  %v5700_v7 = vmul.f32 %v15423_v15, %v15347_v50  ;;  %19168 = vst [vmem:[#allocation9_spill] sm:$0xff] %v15812_v3  ;;  %8204 = vrcp.f32 %v15788_v12  ;;  %v7588_v53 = vmul.f32 -1.442695, %v5072_v55  ;;  %v15821_v29 = vpop.eup %8196 }
 0x685   :  { %6790 = vperm.xlu1 %7613, %v19167_v41   ;;  %v19169_v31 = vperm.slane %v19125_v30, 6  ;;  %v19170_v48 = vperm.slane %v19148_v39, 3  ;;  %v5597_v61 = vmul.f32 %v19153_v36, %v5596_v16  ;;  %19171 = vst [vmem:[#allocation24_spill] sm:$0xff] %v15821_v29  ;;  %8206 = vrcp.f32 %v15795_v22  ;;  %v8199_v55 = vpop.eup %8198  ;;  %v19180_v16 = vld [vmem:[#allocation51_spill] sm:$0xff] }
 0x686   :  { %v6313_v35 = vadd.f32 %v5562_v2, %v19172_v47  ;;  %v6320_v9 = vadd.f32 %v5667_v6, %v19173_v8  ;;  %vm5584_vm6 = vweird.f32 %v15095_v19  ;;  %v15829_v30 = vadd.f32 1.0, %v8193_v54 }
 0x687   :  { %v5073_v20 = vadd.f32 %v19169_v31, %v15375_v46  ;;  %6797 = vperm.xlu2 %7614, %v19170_v48   ;;  %8208 = vpow2.f32 %v7586_v52  ;;  %v7590_v46 = vmul.f32 -1.442695, %v5074_v28  ;;  %vm15833_vm5 = vmor %vm5584_vm6, %vm5585_vm14  ;;  %v5588_v41 = vand.u32 2147483647, %v15095_v19  ;;  %v8201_v31 = vpop.eup %8200  ;;  %v15838_v48 = vpop.permute.xlu2 %6545 }
 0x688   :  { %19174 = vst [vmem:[#allocation82_spill] sm:$0xff] %v15829_v30  ;;  %v5587_v2 = vsel %vm15833_vm5, %v15177_v59, %v5583_v11  ;;  %v5591_v6 = vor.u32 1.1754944e-38, %v5590_v58  ;;  %vm5599_vm10 = vweird.f32 %v19152_v21  ;;  %v5701_v52 = vsub.f32 1.0, %v5700_v7  ;;  %v15844_v28 = vpop.eup %8202 }
 0x689   :  { %19177 = vst [vmem:[#allocation48_spill] sm:$0xff] %v15844_v28  ;;  %8210 = vpow2.f32 %v7588_v53  ;;  %v7589_v54 = vmul.f32 -1.442695, %v5073_v20  ;;  %v19178_v47 = vperm.slane %v19148_v39, 4  ;;  %v5598_v19 = vadd.f32 %v19153_v36, %v5597_v61 }
 0x68a   :  { %vm5600_vm15 = vweird.f32 %v19153_v36  ;;  %v15850_v8 = vadd.f32 1.0, %v8199_v55  ;;  %v19181_v59 = vperm.slane %v19180_v16, 0  ;;  %v5603_v58 = vand.u32 2147483647, %v19152_v21  ;;  %v15857_v22 = vpop.eup %8204  ;;  %v19185_v55 = vld [vmem:[#allocation27_spill] sm:$0xff] }
 0x68b   :  { %6804 = vperm.xlu0 %7612, %v19178_v47   ;;  %v5605_v7 = vand.u32 2147483648, %v19152_v21  ;;  %19182 = vst [vmem:[#allocation109_spill] sm:$0xff] %v15857_v22  ;;  %v15859_v53 = vadd.f32 1.0, %v8201_v31  ;;  %8212 = vpow2.f32 %v7590_v46  ;;  %v19184_v20 = vperm.slane %v19180_v16, 2  ;;  %v15864_v47 = vpop.permute.xlu0 %6510  ;;  %v15868_v29 = vpop.eup %8206  ;;  %vm15879_vm2 = vmor %vm5599_vm10, %vm5600_vm15 }
 0x68c   :  { %19179 = vst [vmem:[#allocation80_spill] sm:$0xff] %v15850_v8  ;;  %v5075_v11 = vadd.f32 %v19181_v59, %v15464_v62  ;;  %v5625_v12 = vmul.f32 %v15243_v60, %v19185_v55  ;;  %8214 = vrcp.f32 %v15829_v30  ;;  %v19187_v62 = vperm.slane %v19148_v39, 5 }
 0x68d   :  { %19183 = vst [vmem:[#allocation10_spill] sm:$0xff] %v15859_v53  ;;  %v5077_v61 = vadd.f32 %v19184_v20, %v15397_v34  ;;  %v15873_v59 = vmul.f32 0.5, %v6313_v35  ;;  %vm5589_vm8 = vcmp.eq.f32.partialorder %v5588_v41, 8.507059e+37  ;;  %v5702_v46 = vmul.f32 %v15423_v15, %v5701_v52  ;;  %v8209_v31 = vpop.eup %8208 }
 0x68e   :  { %19186 = vst [vmem:[#allocation111_spill] sm:$0xff] %v15868_v29  ;;  %6811 = vperm.xlu1 %7613, %v19187_v62   ;;  %8216 = vpow2.f32 %v7589_v54  ;;  %v19190_v20 = vperm.slane %v19148_v39, 6  ;;  %v15886_v29 = vmul.f32 0.5, %v6320_v9  ;;  %v5592_v35 = vsel %vm5589_vm8, %v5591_v6, %v5587_v2  ;;  %v15892_v62 = vpop.permute.xlu1 %6517 }
 0x68f   :  { %v5602_v41 = vsel %vm15879_vm2, %v19153_v36, %v5598_v19  ;;  %8218 = vrcp.f32 %v15850_v8  ;;  %v7591_v21 = vmul.f32 -1.442695, %v5075_v11  ;;  %vm5604_vm9 = vcmp.eq.f32.partialorder %v5603_v58, 8.507059e+37  ;;  %v8211_v52 = vpop.eup %8210  ;;  %v15900_v34 = vpop.permute.xlu2 %6566 }
 0x690   :  { %6818 = vperm.xlu2 %7614, %v19190_v20   ;;  %19191 = vst [vmem:[#allocation78_spill] sm:$0xff] %v15886_v29  ;;  %v5606_v22 = vor.u32 1.1754944e-38, %v5605_v7  ;;  %8220 = vrcp.f32 %v15859_v53  ;;  %v7593_v54 = vmul.f32 -1.442695, %v5077_v61  ;;  %v19192_v9 = vperm.slane %v19180_v16, 1 }
 0x691   :  { %v5626_v2 = vsub.f32 1.0, %v5625_v12  ;;  %v15898_v6 = vadd.f32 1.0, %v8209_v31  ;;  %v5703_v19 = vadd.f32 %v15423_v15, %v5702_v46  ;;  %vm5705_vm3 = vweird.f32 %v15423_v15  ;;  %v8213_v11 = vpop.eup %8212  ;;  %v19196_v31 = vld [vmem:[#allocation31_spill] sm:$0xff] }
 0x692   :  { %v5076_v20 = vadd.f32 %v19192_v9, %v15449_v25  ;;  %v5607_v36 = vsel %vm5604_vm9, %v5606_v22, %v5602_v41  ;;  %v19194_v58 = vperm.slane %v19180_v16, 3  ;;  %v19195_v61 = vperm.slane %v19148_v39, 7  ;;  %v15913_v22 = vpop.eup %8214  ;;  %v19199_v41 = vld [vmem:[#allocation42_spill] sm:$0xff] }
 0x693   :  { %19193 = vst [vmem:[#allocation79_spill] sm:$0xff] %v15898_v6  ;;  %v5708_v25 = vand.u32 2147483647, %v15347_v50  ;;  %v5710_v12 = vand.u32 2147483648, %v15347_v50  ;;  %v5640_v9 = vmul.f32 %v19196_v31, %v15223_v5  ;;  %v15915_v46 = vadd.f32 1.0, %v8211_v52  ;;  %v15922_v3 = vpop.permute.xlu0 %6531  ;;  %v19206_v52 = vld [vmem:[#allocation12_spill] sm:$0xff] }
 0x694   :  { %v5078_v7 = vadd.f32 %v19194_v58, %v15548_v26  ;;  %6825 = vperm.xlu0 %7612, %v19195_v61   ;;  %19197 = vst [vmem:[#allocation126_spill] sm:$0xff] %v15913_v22  ;;  %8222 = vpow2.f32 %v7591_v21  ;;  %v6315_v53 = vadd.f32 %v5592_v35, %v19199_v41  ;;  %vm5704_vm11 = vweird.f32 %v15347_v50  ;;  %v8217_v26 = vpop.eup %8216  ;;  %v19200_v58 = vld [vmem:[#allocation58_spill] sm:$0xff] }
 0x695   :  { %19198 = vst [vmem:[#allocation11_spill] sm:$0xff] %v15915_v46  ;;  %8224 = vpow2.f32 %v7593_v54  ;;  %v7592_v39 = vmul.f32 -1.442695, %v5076_v20  ;;  %v19201_v61 = vperm.slane %v19180_v16, 5  ;;  %vm15926_vm12 = vmor %vm5704_vm11, %vm5705_vm3  ;;  %v5627_v21 = vmul.f32 %v15243_v60, %v5626_v2  ;;  %v15931_v35 = vpop.eup %8218  ;;  %v19208_v20 = vld [vmem:[#allocation100_spill] sm:$0xff] }
 0x696   :  { %19204 = vst [vmem:[#allocation133_spill] sm:$0xff] %v15931_v35  ;;  %8226 = vrcp.f32 %v15898_v6  ;;  %v15934_v50 = vadd.f32 1.0, %v8213_v11  ;;  %v19207_v54 = vperm.slane %v19206_v52, 0  ;;  %v6316_v41 = vadd.f32 %v5607_v36, %v19208_v20  ;;  %v19214_v20 = vld [vmem:[#allocation39_spill] sm:$0xff] }
 0x697   :  { %v5080_v8 = vadd.f32 %v19201_v61, %v19200_v58  ;;  %v5707_v58 = vsel %vm15926_vm12, %v15423_v15, %v5703_v19  ;;  %v15942_v61 = vpop.eup %8220  ;;  %v7594_v30 = vmul.f32 -1.442695, %v5078_v7  ;;  %v19210_v2 = vperm.slane %v19206_v52, 1 }
 0x698   :  { %19205 = vst [vmem:[#allocation128_spill] sm:$0xff] %v15934_v50  ;;  %6832 = vperm.xlu1 %7613, %v19207_v54   ;;  %vm5709_vm7 = vcmp.eq.f32.partialorder %v5708_v25, 8.507059e+37  ;;  %v5711_v35 = vor.u32 1.1754944e-38, %v5710_v12  ;;  %v5641_v6 = vsub.f32 1.0, %v5640_v9  ;;  %8228 = vrcp.f32 %v15915_v46  ;;  %v15949_v54 = vpop.permute.xlu1 %6538  ;;  %v15955_v25 = vpop.permute.xlu2 %6587 }
 0x699   :  { %19209 = vst [vmem:[#allocation127_spill] sm:$0xff] %v15942_v61  ;;  %6839 = vperm.xlu2 %7614, %v19210_v2   ;;  %v15947_v11 = vadd.f32 1.0, %v8217_v26  ;;  %vm5630_vm0 = vweird.f32 %v15243_v60  ;;  %v5633_v36 = vand.u32 2147483647, %v19185_v55  ;;  %8230 = vpow2.f32 %v7592_v39  ;;  %v19213_v26 = vld [vmem:[#allocation55_spill] sm:$0xff] }
 0x69a   :  { %v7596_v15 = vmul.f32 -1.442695, %v5080_v8  ;;  %v5712_v19 = vsel %vm5709_vm7, %v5711_v35, %v5707_v58  ;;  %v5628_v7 = vadd.f32 %v15243_v60, %v5627_v21  ;;  %v8223_v22 = vpop.eup %8222  ;;  %8232 = vrcp.f32 %v15934_v50  ;;  %19212 = vst [vmem:[#allocation51_spill] sm:$0xff] %v15955_v25  ;;  %v19218_v50 = vld [vmem:[#allocation85_spill] sm:$0xff] }
 0x69b   :  { %19211 = vst [vmem:[#allocation93_spill] sm:$0xff] %v15947_v11  ;;  %v15957_v12 = vmul.f32 0.5, %v6315_v53  ;;  %v5635_v9 = vand.u32 2147483648, %v19185_v55  ;;  %v5745_v2 = vmul.f32 %v19214_v20, %v19213_v26  ;;  %v8225_v61 = vpop.eup %8224  ;;  %8234 = vpow2.f32 %v7594_v30 }
 0x69c   :  { %v19215_v8 = vperm.slane %v19180_v16, 4  ;;  %v19216_v21 = vperm.slane %v19206_v52, 2  ;;  %vm5629_vm14 = vweird.f32 %v19185_v55  ;;  %v5642_v35 = vmul.f32 %v19196_v31, %v5641_v6  ;;  %v15969_v53 = vpop.eup %8226 }
 0x69d   :  { %19217 = vst [vmem:[#allocation27_spill] sm:$0xff] %v15969_v53  ;;  %8236 = vrcp.f32 %v15947_v11  ;;  %v15972_v58 = vmul.f32 0.5, %v6316_v41  ;;  %v6323_v46 = vadd.f32 %v5712_v19, %v19218_v50  ;;  %vm15977_vm6 = vmor %vm5629_vm14, %vm5630_vm0  ;;  %vm15981_vm5 = vcmp.eq.f32.partialorder %v5633_v36, 8.507059e+37  ;;  %v19229_v53 = vld [vmem:[#allocation34_spill] sm:$0xff] }
 0x69e   :  { %v5079_v39 = vadd.f32 %v19215_v8, %v15526_v56  ;;  %6846 = vperm.xlu0 %7612, %v19216_v21   ;;  %v15985_v55 = vadd.f32 1.0, %v8223_v22  ;;  %8238 = vpow2.f32 %v7596_v15  ;;  %v19224_v6 = vperm.slane %v19180_v16, 6  ;;  %v15990_v8 = vpop.permute.xlu0 %6552  ;;  %v15995_v19 = vpop.eup %8228  ;;  %v19228_v15 = vld [vmem:[#allocation131_spill] sm:$0xff] }
 0x69f   :  { %v5632_v50 = vsel %vm15977_vm6, %v15243_v60, %v5628_v7  ;;  %19225 = vst [vmem:[#allocation42_spill] sm:$0xff] %v15995_v19  ;;  %v15997_v21 = vadd.f32 1.0, %v8225_v61  ;;  %v19227_v36 = vperm.slane %v19206_v52, 3  ;;  %v5636_v22 = vor.u32 1.1754944e-38, %v5635_v9  ;;  %v8231_v29 = vpop.eup %8230  ;;  %v19234_v19 = vld [vmem:[#allocation36_spill] sm:$0xff] }
 0x6a0   :  { %19223 = vst [vmem:[#allocation31_spill] sm:$0xff] %v15985_v55  ;;  %v5081_v41 = vadd.f32 %v19224_v6, %v15629_v57  ;;  %v5746_v11 = vsub.f32 1.0, %v5745_v2  ;;  %v5670_v25 = vmul.f32 %v19229_v53, %v19228_v15  ;;  %v7595_v57 = vmul.f32 -1.442695, %v5079_v39  ;;  %v16008_v61 = vpop.eup %8232  ;;  %v16010_v7 = vpop.permute.xlu1 %6559 }
 0x6a1   :  { %19226 = vst [vmem:[#allocation58_spill] sm:$0xff] %v15997_v21  ;;  %6853 = vperm.xlu1 %7613, %v19227_v36   ;;  %v19230_v6 = vperm.slane %v19206_v52, 4  ;;  %v5643_v30 = vadd.f32 %v19196_v31, %v5642_v35  ;;  %vm5645_vm10 = vweird.f32 %v19196_v31  ;;  %v5648_v60 = vand.u32 2147483647, %v15223_v5  ;;  %v19233_v36 = vld [vmem:[#allocation29_spill] sm:$0xff]  ;;  %v8235_v28 = vpop.eup %8234 }
 0x6a2   :  { %19231 = vst [vmem:[#allocation12_spill] sm:$0xff] %v16008_v61  ;;  %v16012_v9 = vmul.f32 0.5, %v6323_v46  ;;  %v5637_v2 = vsel %vm15981_vm5, %v5636_v22, %v5632_v50  ;;  %v5650_v39 = vand.u32 2147483648, %v15223_v5  ;;  %8240 = vrcp.f32 %v15985_v55  ;;  %v16029_v50 = vpop.permute.xlu2 %6608 }
 0x6a3   :  { %6860 = vperm.xlu2 %7614, %v19230_v6   ;;  %v5685_v6 = vmul.f32 %v19234_v19, %v19233_v36  ;;  %v7597_v35 = vmul.f32 -1.442695, %v5081_v41  ;;  %v19235_v63 = vperm.slane %v19180_v16, 7  ;;  %vm5644_vm15 = vweird.f32 %v15223_v5  ;;  %v16024_v46 = vpop.eup %8236  ;;  %19238 = vst [vmem:[#allocation85_spill] sm:$0xff] %v16029_v50 }
 0x6a4   :  { %19232 = vst [vmem:[#allocation100_spill] sm:$0xff] %v16012_v9  ;;  %8242 = vrcp.f32 %v15997_v21  ;;  %v16027_v56 = vadd.f32 1.0, %v8231_v29  ;;  %vm16033_vm8 = vmor %vm5644_vm15, %vm5645_vm10  ;;  %v5747_v41 = vmul.f32 %v19214_v20, %v5746_v11  ;;  %v5671_v16 = vsub.f32 1.0, %v5670_v25  ;;  %v19244_v9 = vld [vmem:[#allocation57_spill] sm:$0xff] }
 0x6a5   :  { %v5082_v61 = vadd.f32 %v19235_v63, %v15608_v13  ;;  %19236 = vst [vmem:[#allocation55_spill] sm:$0xff] %v16024_v46  ;;  %v8239_v13 = vpop.eup %8238  ;;  %8244 = vpow2.f32 %v7595_v57  ;;  %v19241_v5 = vperm.slane %v19206_v52, 5  ;;  %v19242_v63 = vld [vmem:[#allocation62_spill] sm:$0xff]  ;;  %v5647_v29 = vsel %vm16033_vm8, %v19196_v31, %v5643_v30 }
 0x6a6   :  { %19237 = vst [vmem:[#allocation39_spill] sm:$0xff] %v16027_v56  ;;  %v6318_v21 = vadd.f32 %v5637_v2, %v19242_v63  ;;  %vm5649_vm2 = vcmp.eq.f32.partialorder %v5648_v60, 8.507059e+37  ;;  %v16044_v55 = vadd.f32 1.0, %v8235_v28  ;;  %v5651_v46 = vor.u32 1.1754944e-38, %v5650_v39  ;;  %v16048_v57 = vpop.permute.xlu0 %6573  ;;  %v19250_v63 = vld [vmem:[#allocation25_spill] sm:$0xff] }
 0x6a7   :  { %6867 = vperm.xlu0 %7612, %v19241_v5   ;;  %v5686_v50 = vsub.f32 1.0, %v5685_v6  ;;  %v5790_v11 = vmul.f32 %v15516_v40, %v19244_v9  ;;  %8246 = vpow2.f32 %v7597_v35  ;;  %v7598_v25 = vmul.f32 -1.442695, %v5082_v61 }
 0x6a8   :  { %19243 = vst [vmem:[#allocation131_spill] sm:$0xff] %v16044_v55  ;;  %vm5750_vm9 = vweird.f32 %v19214_v20  ;;  %v5753_v2 = vand.u32 2147483647, %v19213_v26  ;;  %v16052_v5 = vadd.f32 1.0, %v8239_v13  ;;  %v19246_v31 = vperm.slane %v19206_v52, 6  ;;  %v16058_v39 = vpop.eup %8240 }
 0x6a9   :  { %v5652_v28 = vsel %vm5649_vm2, %v5651_v46, %v5647_v29  ;;  %v5748_v30 = vadd.f32 %v19214_v20, %v5747_v41  ;;  %v5672_v60 = vmul.f32 %v19229_v53, %v5671_v16  ;;  %19247 = vst [vmem:[#allocation29_spill] sm:$0xff] %v16058_v39  ;;  %8248 = vrcp.f32 %v16027_v56  ;;  %v16070_v46 = vpop.permute.xlu1 %6580 }
 0x6aa   :  { %19245 = vst [vmem:[#allocation34_spill] sm:$0xff] %v16052_v5  ;;  %6874 = vperm.xlu1 %7613, %v19246_v31   ;;  %v16061_v61 = vmul.f32 0.5, %v6318_v21  ;;  %v19248_v6 = vperm.slane %v19206_v52, 7  ;;  %vm5749_vm3 = vweird.f32 %v19213_v26  ;;  %v5755_v35 = vand.u32 2147483648, %v19213_v26  ;;  %v16067_v22 = vpop.eup %8242  ;;  %v19251_v52 = vld [vmem:[#allocation114_spill] sm:$0xff] }
 0x6ab   :  { %19249 = vst [vmem:[#allocation36_spill] sm:$0xff] %v16067_v22  ;;  %8250 = vrcp.f32 %v16044_v55  ;;  %v5687_v41 = vmul.f32 %v19234_v19, %v5686_v50  ;;  %v5791_v16 = vsub.f32 1.0, %v5790_v11  ;;  %v8245_v13 = vpop.eup %8244  ;;  %v6947_v21 = vmul.f32 %v15518_v43, %v19250_v63  ;;  %vm16078_vm11 = vmor %vm5749_vm3, %vm5750_vm9  ;;  %v16087_v50 = vpop.permute.xlu2 %6629  ;;  %v19261_v22 = vld [vmem:[#allocation26_spill] sm:$0xff] }
 0x6ac   :  { %6881 = vperm.xlu2 %7614, %v19248_v6   ;;  %8252 = vpow2.f32 %v7598_v25  ;;  %v6319_v29 = vadd.f32 %v5652_v28, %v19251_v52  ;;  %vm16082_vm12 = vcmp.eq.f32.partialorder %v5753_v2, 8.507059e+37  ;;  %19256 = vst [vmem:[#allocation62_spill] sm:$0xff] %v16087_v50  ;;  %v5752_v43 = vsel %vm16078_vm11, %v19214_v20, %v5748_v30  ;;  %v19257_v30 = vld [vmem:[#allocation95_spill] sm:$0xff] }
 0x6ad   :  { %8254 = vrcp.f32 %v16052_v5  ;;  %v5673_v11 = vadd.f32 %v19229_v53, %v5672_v60  ;;  %vm5675_vm7 = vweird.f32 %v19229_v53  ;;  %v8247_v25 = vpop.eup %8246  ;;  %v5756_v28 = vor.u32 1.1754944e-38, %v5755_v35  ;;  %v19258_v60 = vld [vmem:[#allocation35_spill] sm:$0xff] }
 0x6ae   :  { %v8290_v6 = vmov 0   ;;  %vm5674_vm0 = vweird.f32 %v19228_v15  ;;  %v5678_v2 = vand.u32 2147483647, %v19228_v15  ;;  %v5680_v63 = vand.u32 2147483648, %v19228_v15 }
 0x6af   :  { %7615 = vset.pattern.permute.xlu0 %v8290_v6  ;;  %v5688_v52 = vadd.f32 %v19234_v19, %v5687_v41  ;;  %vm5690_vm14 = vweird.f32 %v19234_v19  ;;  %v5792_v20 = vmul.f32 %v15516_v40, %v5791_v16  ;;  %v5715_v26 = vmul.f32 %v19258_v60, %v19257_v30  ;;  %v16102_v5 = vpop.eup %8248  ;;  %vm16112_vm6 = vmor %vm5674_vm0, %vm5675_vm7  ;;  %v16116_v16 = vpop.permute.xlu0 %6594  ;;  %v19274_v41 = vld [vmem:[#allocation64_spill] sm:$0xff] }
 0x6b0   :  { %7076 = vperm.xlu0 %7615, %v6947_v21   ;;  %19259 = vst [vmem:[#allocation57_spill] sm:$0xff] %v16102_v5  ;;  %v16104_v35 = vadd.f32 1.0, %v8245_v13  ;;  %v6948_v55 = vmul.f32 %v15694_v32, %v19261_v22  ;;  %v5757_v15 = vsel %vm16082_vm12, %v5756_v28, %v5752_v43  ;;  %v5695_v21 = vand.u32 2147483648, %v19233_v36  ;;  %v19266_v13 = vld [vmem:[#allocation89_spill] sm:$0xff] }
 0x6b1   :  { %19264 = vst [vmem:[#allocation114_spill] sm:$0xff] %v16116_v16  ;;  %v16119_v39 = vpop.eup %8250  ;;  %v6949_v5 = vmul.f32 %v15674_v51, %v19266_v13  ;;  %v5677_v32 = vsel %vm16112_vm6, %v19229_v53, %v5673_v11  ;;  %vm5689_vm5 = vweird.f32 %v19233_v36  ;;  %v5693_v22 = vand.u32 2147483647, %v19233_v36  ;;  %v16139_v11 = vpop.permute.xlu1 %6601  ;;  %v19281_v51 = vld [vmem:[#allocation61_spill] sm:$0xff] }
 0x6b2   :  { %19260 = vst [vmem:[#allocation25_spill] sm:$0xff] %v16104_v35  ;;  %7616 = vset.pattern.permute.xlu1 %v8290_v6  ;;  %v8253_v31 = vpop.eup %8252  ;;  %v16128_v43 = vadd.f32 1.0, %v8247_v25  ;;  %vm5679_vm10 = vcmp.eq.f32.partialorder %v5678_v2, 8.507059e+37  ;;  %v5681_v28 = vor.u32 1.1754944e-38, %v5680_v63  ;;  %vm16132_vm15 = vmor %vm5689_vm5, %vm5690_vm14  ;;  %vm5795_vm8 = vweird.f32 %v15516_v40  ;;  %v19273_v2 = vld [vmem:[#allocation99_spill] sm:$0xff] }
 0x6b3   :  { %19265 = vst [vmem:[#allocation95_spill] sm:$0xff] %v16119_v39  ;;  %7079 = vperm.xlu1 %7616, %v6948_v55   ;;  %v16137_v53 = vpop.eup %8254  ;;  %v5692_v36 = vsel %vm16132_vm15, %v19234_v19, %v5688_v52  ;;  %v5793_v25 = vadd.f32 %v15516_v40, %v5792_v20  ;;  %v5716_v55 = vsub.f32 1.0, %v5715_v26  ;;  %v6326_v13 = vadd.f32 %v5757_v15, %v19274_v41 }
 0x6b4   :  { %19267 = vst [vmem:[#allocation35_spill] sm:$0xff] %v16128_v43  ;;  %7617 = vset.pattern.permute.xlu2 %v8290_v6  ;;  %v19272_v6 = vld [vmem:[#allocation32_spill] sm:$0xff]  ;;  %v5682_v39 = vsel %vm5679_vm10, %v5681_v28, %v5677_v32  ;;  %v5696_v56 = vor.u32 1.1754944e-38, %v5695_v21  ;;  %v5800_v50 = vand.u32 2147483648, %v19244_v9  ;;  %vm5694_vm2 = vcmp.eq.f32.partialorder %v5693_v22, 8.507059e+37  ;;  %v19280_v32 = vld [vmem:[#allocation67_spill] sm:$0xff] }
 0x6b5   :  { %19270 = vst [vmem:[#allocation26_spill] sm:$0xff] %v16137_v53  ;;  %7082 = vperm.xlu2 %7617, %v6949_v5   ;;  %v5730_v63 = vmul.f32 %v19273_v2, %v19272_v6  ;;  %v19275_v53 = vld [vmem:[#allocation30_spill] sm:$0xff]  ;;  %vm5794_vm9 = vweird.f32 %v19244_v9  ;;  %v5798_v19 = vand.u32 2147483647, %v19244_v9  ;;  %8256 = vrcp.f32 %v16104_v35 }
 0x6b6   :  { %19271 = vst [vmem:[#allocation89_spill] sm:$0xff] %v16139_v11  ;;  %v6952_v16 = vmul.f32 %v15750_v23, %v19275_v53  ;;  %v16151_v11 = vpop.permute.xlu2 %6650  ;;  %v16156_v5 = vadd.f32 1.0, %v8253_v31  ;;  %v16158_v52 = vmul.f32 0.5, %v6319_v29  ;;  %v5697_v20 = vsel %vm5694_vm2, %v5696_v56, %v5692_v36  ;;  %vm16162_vm3 = vmor %vm5794_vm9, %vm5795_vm8  ;;  %v19279_v56 = vld [vmem:[#allocation130_spill] sm:$0xff]  ;;  %v19282_v53 = vld [vmem:[#allocation33_spill] sm:$0xff] }
 0x6b7   :  { %v5797_v23 = vsel %vm16162_vm3, %v15516_v40, %v5793_v25  ;;  %v5717_v9 = vmul.f32 %v19258_v60, %v5716_v55  ;;  %v5731_v15 = vsub.f32 1.0, %v5730_v63  ;;  %v5835_v21 = vmul.f32 %v15580_v14, %v15505_v49  ;;  %v16176_v28 = vpop.permute.xlu0 %6615  ;;  %v19283_v36 = vld [vmem:[#allocation104_spill] sm:$0xff]  ;;  %v19284_v55 = vld [vmem:[#allocation105_spill] sm:$0xff] }
 0x6b8   :  { %19276 = vst [vmem:[#allocation32_spill] sm:$0xff] %v16156_v5  ;;  %7091 = vperm.xlu0 %7615, %v6952_v16   ;;  %8258 = vrcp.f32 %v16128_v43  ;;  %v6950_v29 = vmul.f32 %v15582_v10, %v19279_v56  ;;  %v6321_v22 = vadd.f32 %v5682_v39, %v19280_v32  ;;  %v5801_v31 = vor.u32 1.1754944e-38, %v5800_v50  ;;  %v19285_v10 = vld [vmem:[#allocation37_spill] sm:$0xff]  ;;  %v19286_v39 = vld [vmem:[#allocation60_spill] sm:$0xff] }
 0x6b9   :  { %v6951_v40 = vmul.f32 %v15732_v24, %v19281_v51  ;;  %v16180_v16 = vmul.f32 0.5, %v6326_v13  ;;  %vm5799_vm11 = vcmp.eq.f32.partialorder %v5798_v19, 8.507059e+37  ;;  %v5760_v25 = vmul.f32 %v19283_v36, %v19282_v53  ;;  %v16191_v13 = vpop.permute.xlu1 %6622  ;;  %v19288_v32 = vld [vmem:[#allocation28_spill] sm:$0xff]  ;;  %v19289_v51 = vld [vmem:[#allocation103_spill] sm:$0xff] }
 0x6ba   :  { %8260 = vrcp.f32 %v16156_v5  ;;  %v6322_v63 = vadd.f32 %v5697_v20, %v19284_v55  ;;  %v5802_v41 = vsel %vm5799_vm11, %v5801_v31, %v5797_v23  ;;  %v5775_v50 = vmul.f32 %v19286_v39, %v19285_v10 }
 0x6bb   :  { %7085 = vperm.xlu1 %7616, %v6950_v29   ;;  %v5718_v26 = vadd.f32 %v19258_v60, %v5717_v9  ;;  %vm5720_vm12 = vweird.f32 %v19258_v60  ;;  %v5732_v24 = vmul.f32 %v19273_v2, %v5731_v15  ;;  %v5836_v19 = vsub.f32 1.0, %v5835_v21  ;;  %v16193_v56 = vpop.eup %8256 }
 0x6bc   :  { %19287 = vst [vmem:[#allocation99_spill] sm:$0xff] %v16193_v56  ;;  %v6953_v20 = vmul.f32 %v15653_v18, %v19288_v32  ;;  %v16197_v23 = vmul.f32 0.5, %v6321_v22  ;;  %v5723_v29 = vand.u32 2147483647, %v19257_v30  ;;  %v5725_v31 = vand.u32 2147483648, %v19257_v30  ;;  %v19294_v18 = vld [vmem:[#allocation56_spill] sm:$0xff] }
 0x6bd   :  { %7088 = vperm.xlu2 %7617, %v6951_v40   ;;  %v6955_v9 = vmul.f32 %v15824_v4, %v15530_v44  ;;  %v6329_v15 = vadd.f32 %v5802_v41, %v19289_v51  ;;  %vm5719_vm7 = vweird.f32 %v19257_v30  ;;  %v5761_v21 = vsub.f32 1.0, %v5760_v25 }
 0x6be   :  { %v16205_v40 = vpop.permute.xlu2 %6671  ;;  %v16207_v55 = vpop.eup %8258  ;;  %v16209_v5 = vmul.f32 0.5, %v6322_v63  ;;  %vm16213_vm0 = vmor %vm5719_vm7, %vm5720_vm12  ;;  %v5738_v22 = vand.u32 2147483647, %v19272_v6  ;;  %v5740_v44 = vand.u32 2147483648, %v19272_v6  ;;  %v5776_v4 = vsub.f32 1.0, %v5775_v50 }
 0x6bf   :  { %19290 = vst [vmem:[#allocation64_spill] sm:$0xff] %v16207_v55  ;;  %v5722_v30 = vsel %vm16213_vm0, %v19258_v60, %v5718_v26  ;;  %v5733_v25 = vadd.f32 %v19273_v2, %v5732_v24  ;;  %vm5735_vm14 = vweird.f32 %v19273_v2  ;;  %v5837_v63 = vmul.f32 %v15580_v14, %v5836_v19  ;;  %v16228_v51 = vpop.permute.xlu0 %6636  ;;  %v19295_v26 = vld [vmem:[#allocation38_spill] sm:$0xff] }
 0x6c0   :  { %7100 = vperm.xlu0 %7615, %v6955_v9   ;;  %v16225_v41 = vpop.eup %8260  ;;  %vm5724_vm6 = vcmp.eq.f32.partialorder %v5723_v29, 8.507059e+37  ;;  %v5726_v32 = vor.u32 1.1754944e-38, %v5725_v31  ;;  %vm5734_vm5 = vweird.f32 %v19272_v6  ;;  %v5880_v50 = vmul.f32 %v15660_v17, %v15562_v0  ;;  %v19304_v29 = vld [vmem:[#allocation66_spill] sm:$0xff] }
 0x6c1   :  { %19293 = vst [vmem:[#allocation30_spill] sm:$0xff] %v16225_v41  ;;  %v6956_v60 = vmul.f32 %v15702_v1, %v19294_v18  ;;  %v6954_v24 = vmul.f32 %v15803_v42, %v19295_v26  ;;  %v16236_v56 = vmul.f32 0.5, %v6329_v15  ;;  %v5762_v19 = vmul.f32 %v19283_v36, %v5761_v21  ;;  %vm16239_vm10 = vmor %vm5734_vm5, %vm5735_vm14  ;;  %v16254_v21 = vpop.permute.xlu1 %6643 }
 0x6c2   :  { %v5727_v9 = vsel %vm5724_vm6, %v5726_v32, %v5722_v30  ;;  %vm16243_vm15 = vcmp.eq.f32.partialorder %v5738_v22, 8.507059e+37  ;;  %v5741_v31 = vor.u32 1.1754944e-38, %v5740_v44  ;;  %v5777_v1 = vmul.f32 %v19286_v39, %v5776_v4 }
 0x6c3   :  { %7094 = vperm.xlu1 %7616, %v6953_v20   ;;  %v5737_v42 = vsel %vm16239_vm10, %v19273_v2, %v5733_v25  ;;  %v5838_v15 = vadd.f32 %v15580_v14, %v5837_v63  ;;  %vm5839_vm8 = vweird.f32 %v15505_v49  ;;  %vm5840_vm2 = vweird.f32 %v15580_v14  ;;  %v19300_v25 = vld [vmem:[#allocation41_spill] sm:$0xff]  ;;  %v19301_v63 = vld [vmem:[#allocation70_spill] sm:$0xff] }
 0x6c4   :  { %v5843_v22 = vand.u32 2147483647, %v15505_v49  ;;  %v5845_v44 = vand.u32 2147483648, %v15505_v49  ;;  %vm5764_vm9 = vweird.f32 %v19282_v53  ;;  %v5881_v20 = vsub.f32 1.0, %v5880_v50  ;;  %vm16269_vm11 = vmor %vm5839_vm8, %vm5840_vm2 }
 0x6c5   :  { %7097 = vperm.xlu2 %7617, %v6954_v24   ;;  %v6958_v4 = vmul.f32 %v15892_v62, %v15685_v37  ;;  %v5763_v2 = vadd.f32 %v19283_v36, %v5762_v19  ;;  %vm5765_vm3 = vweird.f32 %v19283_v36  ;;  %v5805_v32 = vmul.f32 %v19301_v63, %v19300_v25 }
 0x6c6   :  { %v16263_v30 = vpop.permute.xlu2 %6692  ;;  %v5742_v18 = vsel %vm16243_vm15, %v5741_v31, %v5737_v42  ;;  %v5770_v50 = vand.u32 2147483648, %v19282_v53  ;;  %v5778_v37 = vadd.f32 %v19286_v39, %v5777_v1  ;;  %vm5780_vm12 = vweird.f32 %v19286_v39  ;;  %vm16287_vm7 = vmor %vm5764_vm9, %vm5765_vm3 }
 0x6c7   :  { %v5842_v62 = vsel %vm16269_vm11, %v15580_v14, %v5838_v15  ;;  %v5768_v26 = vand.u32 2147483647, %v19282_v53  ;;  %v5783_v24 = vand.u32 2147483647, %v19285_v10  ;;  %v5785_v19 = vand.u32 2147483648, %v19285_v10  ;;  %v16293_v42 = vpop.permute.xlu0 %6657 }
 0x6c8   :  { %7109 = vperm.xlu0 %7615, %v6958_v4   ;;  %v6324_v6 = vadd.f32 %v5727_v9, %v19304_v29  ;;  %v5846_v31 = vor.u32 1.1754944e-38, %v5845_v44  ;;  %vm5779_vm0 = vweird.f32 %v19285_v10  ;;  %v5882_v14 = vmul.f32 %v15660_v17, %v5881_v20  ;;  %v19309_v10 = vld [vmem:[#allocation107_spill] sm:$0xff] }
 0x6c9   :  { %v6957_v15 = vmul.f32 %v15864_v47, %v15680_v38  ;;  %vm5844_vm14 = vcmp.eq.f32.partialorder %v5843_v22, 8.507059e+37  ;;  %v5767_v9 = vsel %vm16287_vm7, %v19283_v36, %v5763_v2  ;;  %vm16302_vm6 = vmor %vm5779_vm0, %vm5780_vm12  ;;  %v5806_v44 = vsub.f32 1.0, %v5805_v32  ;;  %v19310_v36 = vld [vmem:[#allocation59_spill] sm:$0xff]  ;;  %v19311_v22 = vld [vmem:[#allocation45_spill] sm:$0xff]  ;;  %v16312_v29 = vpop.permute.xlu1 %6664 }
 0x6ca   :  { %v6325_v4 = vadd.f32 %v5742_v18, %v19309_v10  ;;  %v5847_v20 = vsel %vm5844_vm14, %v5846_v31, %v5842_v62  ;;  %v5771_v49 = vor.u32 1.1754944e-38, %v5770_v50  ;;  %v5782_v38 = vsel %vm16302_vm6, %v19286_v39, %v5778_v37  ;;  %v19318_v10 = vld [vmem:[#allocation5_spill] sm:$0xff] }
 0x6cb   :  { %7103 = vperm.xlu1 %7616, %v6956_v60   ;;  %vm5769_vm5 = vcmp.eq.f32.partialorder %v5768_v26, 8.507059e+37  ;;  %vm5784_vm10 = vcmp.eq.f32.partialorder %v5783_v24, 8.507059e+37  ;;  %v5786_v47 = vor.u32 1.1754944e-38, %v5785_v19  ;;  %v5820_v2 = vmul.f32 %v19311_v22, %v19310_v36  ;;  %v19312_v26 = vld [vmem:[#allocation96_spill] sm:$0xff]  ;;  %v19313_v24 = vld [vmem:[#allocation119_spill] sm:$0xff] }
 0x6cc   :  { %v5772_v1 = vsel %vm5769_vm5, %v5771_v49, %v5767_v9  ;;  %v5883_v32 = vadd.f32 %v15660_v17, %v5882_v14  ;;  %vm5885_vm15 = vweird.f32 %v15660_v17  ;;  %v5890_v18 = vand.u32 2147483648, %v15562_v0  ;;  %v19322_v9 = vld [vmem:[#allocation83_spill] sm:$0xff] }
 0x6cd   :  { %7106 = vperm.xlu2 %7617, %v6957_v15   ;;  %v6961_v39 = vmul.f32 %v15949_v54, %v15873_v59  ;;  %v5787_v60 = vsel %vm5784_vm10, %v5786_v47, %v5782_v38  ;;  %v5807_v50 = vmul.f32 %v19301_v63, %v5806_v44  ;;  %v5925_v62 = vmul.f32 %v15725_v45, %v15648_v27  ;;  %v19314_v59 = vld [vmem:[#allocation65_spill] sm:$0xff]  ;;  %v19317_v44 = vld [vmem:[#allocation68_spill] sm:$0xff]  ;;  %v19319_v38 = vld [vmem:[#allocation71_spill] sm:$0xff] }
 0x6ce   :  { %v16320_v37 = vpop.permute.xlu2 %6713  ;;  %v6959_v19 = vmul.f32 %v19313_v24, %v19312_v26  ;;  %v16326_v31 = vmul.f32 0.5, %v6324_v6  ;;  %vm5884_vm8 = vweird.f32 %v15562_v0  ;;  %v5888_v14 = vand.u32 2147483647, %v15562_v0  ;;  %v19320_v47 = vld [vmem:[#allocation108_spill] sm:$0xff] }
 0x6cf   :  { %v16330_v15 = vmul.f32 0.5, %v6325_v4  ;;  %v6332_v54 = vadd.f32 %v5847_v20, %v19314_v59  ;;  %vm16333_vm2 = vmor %vm5884_vm8, %vm5885_vm15  ;;  %v5821_v53 = vsub.f32 1.0, %v5820_v2  ;;  %v5850_v49 = vmul.f32 %v19318_v10, %v19317_v44  ;;  %v16344_v24 = vpop.permute.xlu0 %6678  ;;  %v19321_v20 = vld [vmem:[#allocation116_spill] sm:$0xff] }
 0x6d0   :  { %7118 = vperm.xlu0 %7615, %v6961_v39   ;;  %v6327_v6 = vadd.f32 %v5772_v1, %v19319_v38  ;;  %v6328_v26 = vadd.f32 %v5787_v60, %v19320_v47  ;;  %v5887_v0 = vsel %vm16333_vm2, %v15660_v17, %v5883_v32  ;;  %v5891_v4 = vor.u32 1.1754944e-38, %v5890_v18  ;;  %v19323_v38 = vld [vmem:[#allocation6_spill] sm:$0xff] }
 0x6d1   :  { %v6960_v59 = vmul.f32 %v15922_v3, %v19321_v20  ;;  %v5808_v2 = vadd.f32 %v19301_v63, %v5807_v50  ;;  %vm5810_vm9 = vweird.f32 %v19301_v63  ;;  %v5926_v39 = vsub.f32 1.0, %v5925_v62  ;;  %v16356_v47 = vpop.permute.xlu1 %6685  ;;  %v19324_v50 = vld [vmem:[#allocation112_spill] sm:$0xff] }
 0x6d2   :  { %vm5889_vm3 = vcmp.eq.f32.partialorder %v5888_v14, 8.507059e+37  ;;  %vm5809_vm11 = vweird.f32 %v19300_v25  ;;  %v5813_v1 = vand.u32 2147483647, %v19300_v25  ;;  %v5815_v60 = vand.u32 2147483648, %v19300_v25 }
 0x6d3   :  { %7112 = vperm.xlu1 %7616, %v6959_v19   ;;  %v5892_v17 = vsel %vm5889_vm3, %v5891_v4, %v5887_v0  ;;  %v5822_v32 = vmul.f32 %v19311_v22, %v5821_v53  ;;  %v5851_v18 = vsub.f32 1.0, %v5850_v49  ;;  %v5865_v3 = vmul.f32 %v19323_v38, %v19322_v9  ;;  %vm16368_vm12 = vmor %vm5809_vm11, %vm5810_vm9  ;;  %v19327_v49 = vld [vmem:[#allocation8_spill] sm:$0xff] }
 0x6d4   :  { %v6962_v62 = vmul.f32 %v15838_v48, %v19324_v50  ;;  %v16360_v14 = vmul.f32 0.5, %v6332_v54  ;;  %v16362_v20 = vmul.f32 0.5, %v6327_v6  ;;  %v16364_v41 = vmul.f32 0.5, %v6328_v26  ;;  %v19328_v26 = vld [vmem:[#allocation72_spill] sm:$0xff] }
 0x6d5   :  { %7115 = vperm.xlu2 %7617, %v6960_v59   ;;  %v6964_v19 = vmul.f32 %v16010_v7, %v15972_v58  ;;  %v5812_v53 = vsel %vm16368_vm12, %v19301_v63, %v5808_v2  ;;  %v5927_v48 = vmul.f32 %v15725_v45, %v5926_v39  ;;  %v5970_v6 = vmul.f32 %v15786_v33, %v19327_v49 }
 0x6d6   :  { %v16378_v54 = vpop.permute.xlu2 %6734  ;;  %v16383_v0 = vadd.f32 %v5892_v17, %v19328_v26  ;;  %vm5814_vm7 = vcmp.eq.f32.partialorder %v5813_v1, 8.507059e+37  ;;  %v5816_v4 = vor.u32 1.1754944e-38, %v5815_v60  ;;  %v5828_v59 = vand.u32 2147483647, %v19310_v36 }
 0x6d7   :  { %v5823_v58 = vadd.f32 %v19311_v22, %v5822_v32  ;;  %vm5825_vm0 = vweird.f32 %v19311_v22  ;;  %v5852_v7 = vmul.f32 %v19318_v10, %v5851_v18  ;;  %v5866_v63 = vsub.f32 1.0, %v5865_v3  ;;  %v16392_v17 = vpop.permute.xlu0 %6699  ;;  %v19329_v18 = vld [vmem:[#allocation113_spill] sm:$0xff] }
 0x6d8   :  { %7127 = vperm.xlu0 %7615, %v6964_v19   ;;  %v5817_v2 = vsel %vm5814_vm7, %v5816_v4, %v5812_v53  ;;  %vm5824_vm14 = vweird.f32 %v19310_v36  ;;  %v5830_v39 = vand.u32 2147483648, %v19310_v36  ;;  %vm5929_vm6 = vweird.f32 %v15648_v27 }
 0x6d9   :  { %v6963_v1 = vmul.f32 %v15990_v8, %v15957_v12  ;;  %v5928_v60 = vadd.f32 %v15725_v45, %v5927_v48  ;;  %vm5930_vm5 = vweird.f32 %v15725_v45  ;;  %v5971_v32 = vsub.f32 1.0, %v5970_v6  ;;  %vm16400_vm10 = vmor %vm5824_vm14, %vm5825_vm0  ;;  %v16416_v53 = vpop.permute.xlu1 %6706  ;;  %v19334_v48 = vld [vmem:[#allocation76_spill] sm:$0xff] }
 0x6da   :  { %v6965_v3 = vmul.f32 %v15900_v34, %v19329_v18  ;;  %vm16404_vm15 = vcmp.eq.f32.partialorder %v5828_v59, 8.507059e+37  ;;  %v5933_v25 = vand.u32 2147483647, %v15648_v27  ;;  %v5935_v12 = vand.u32 2147483648, %v15648_v27  ;;  %vm16423_vm2 = vmor %vm5929_vm6, %vm5930_vm5 }
 0x6db   :  { %7121 = vperm.xlu1 %7616, %v6962_v62   ;;  %v5827_v8 = vsel %vm16400_vm10, %v19311_v22, %v5823_v58  ;;  %v5853_v19 = vadd.f32 %v19318_v10, %v5852_v7  ;;  %vm5855_vm8 = vweird.f32 %v19318_v10  ;;  %v5867_v34 = vmul.f32 %v19323_v38, %v5866_v63  ;;  %v19344_v62 = vld [vmem:[#allocation7_spill] sm:$0xff] }
 0x6dc   :  { %v6330_v6 = vadd.f32 %v5817_v2, %v19334_v48  ;;  %v5831_v26 = vor.u32 1.1754944e-38, %v5830_v39  ;;  %v5858_v22 = vand.u32 2147483647, %v19317_v44  ;;  %v5860_v4 = vand.u32 2147483648, %v19317_v44  ;;  %v19351_v39 = vld [vmem:[#allocation89_spill] sm:$0xff] }
 0x6dd   :  { %7124 = vperm.xlu2 %7617, %v6963_v1   ;;  %v6967_v59 = vmul.f32 %v16070_v46, %v16158_v52  ;;  %v5932_v58 = vsel %vm16423_vm2, %v15725_v45, %v5928_v60  ;;  %vm5854_vm9 = vweird.f32 %v19317_v44  ;;  %v5972_v7 = vmul.f32 %v15786_v33, %v5971_v32  ;;  %v19339_v52 = vld [vmem:[#allocation74_spill] sm:$0xff] }
 0x6de   :  { %v16436_v27 = vpop.permute.xlu2 %6755  ;;  %v5832_v63 = vsel %vm16404_vm15, %v5831_v26, %v5827_v8  ;;  %vm5934_vm3 = vcmp.eq.f32.partialorder %v5933_v25, 8.507059e+37  ;;  %v5936_v2 = vor.u32 1.1754944e-38, %v5935_v12  ;;  %vm16442_vm11 = vmor %vm5854_vm9, %vm5855_vm8  ;;  %vm5869_vm12 = vweird.f32 %v19322_v9  ;;  %v19340_v44 = vld [vmem:[#allocation110_spill] sm:$0xff] }
 0x6df   :  { %v5857_v45 = vsel %vm16442_vm11, %v19318_v10, %v5853_v19  ;;  %v5868_v46 = vadd.f32 %v19323_v38, %v5867_v34  ;;  %vm5870_vm7 = vweird.f32 %v19323_v38  ;;  %v5895_v1 = vmul.f32 %v19340_v44, %v19339_v52  ;;  %v16455_v50 = vpop.permute.xlu0 %6720  ;;  %v19341_v12 = vld [vmem:[#allocation122_spill] sm:$0xff] }
 0x6e0   :  { %7136 = vperm.xlu0 %7615, %v6967_v59   ;;  %v5937_v60 = vsel %vm5934_vm3, %v5936_v2, %v5932_v58  ;;  %vm5859_vm0 = vcmp.eq.f32.partialorder %v5858_v22, 8.507059e+37  ;;  %v5861_v32 = vor.u32 1.1754944e-38, %v5860_v4  ;;  %v5875_v18 = vand.u32 2147483648, %v19322_v9  ;;  %vm16465_vm6 = vmor %vm5869_vm12, %vm5870_vm7  ;;  %v19345_v22 = vld [vmem:[#allocation121_spill] sm:$0xff]  ;;  %v19346_v58 = vld [vmem:[#allocation75_spill] sm:$0xff] }
 0x6e1   :  { %v6966_v36 = vmul.f32 %v16048_v57, %v16061_v61  ;;  %v5873_v10 = vand.u32 2147483647, %v19322_v9  ;;  %v5973_v25 = vadd.f32 %v15786_v33, %v5972_v7  ;;  %vm5975_vm14 = vweird.f32 %v15786_v33  ;;  %v16477_v9 = vpop.permute.xlu1 %6727 }
 0x6e2   :  { %v6331_v8 = vadd.f32 %v5832_v63, %v19341_v12  ;;  %v5862_v19 = vsel %vm5859_vm0, %v5861_v32, %v5857_v45  ;;  %vm5974_vm5 = vweird.f32 %v19327_v49  ;;  %v5980_v48 = vand.u32 2147483648, %v19327_v49 }
 0x6e3   :  { %7130 = vperm.xlu1 %7616, %v6965_v3   ;;  %v5872_v57 = vsel %vm16465_vm6, %v19323_v38, %v5868_v46  ;;  %v5978_v61 = vand.u32 2147483647, %v19327_v49  ;;  %v5896_v26 = vsub.f32 1.0, %v5895_v1  ;;  %v5910_v4 = vmul.f32 %v19345_v22, %v19344_v62  ;;  %vm16485_vm10 = vmor %vm5974_vm5, %vm5975_vm14  ;;  %v19349_v38 = vld [vmem:[#allocation84_spill] sm:$0xff]  ;;  %v19352_v46 = vld [vmem:[#allocation118_spill] sm:$0xff] }
 0x6e4   :  { %v16480_v59 = vmul.f32 0.5, %v16383_v0  ;;  %v6338_v7 = vadd.f32 %v5937_v60, %v19346_v58  ;;  %v5876_v63 = vor.u32 1.1754944e-38, %v5875_v18  ;;  %v19350_v49 = vld [vmem:[#allocation48_spill] sm:$0xff]  ;;  %v6970_v45 = vmul.f32 %v19351_v39, %v16209_v5  ;;  %v19353_v1 = vld [vmem:[#allocation19_spill] sm:$0xff]  ;;  %v19355_v3 = vld [vmem:[#allocation78_spill] sm:$0xff] }
 0x6e5   :  { %7133 = vperm.xlu2 %7617, %v6966_v36   ;;  %v6015_v2 = vmul.f32 %v19350_v49, %v19349_v38  ;;  %vm5874_vm15 = vcmp.eq.f32.partialorder %v5873_v10, 8.507059e+37  ;;  %v5977_v0 = vsel %vm16485_vm10, %v15786_v33, %v5973_v25  ;;  %v5940_v60 = vmul.f32 %v19353_v1, %v19352_v46  ;;  %v19354_v36 = vld [vmem:[#allocation43_spill] sm:$0xff] }
 0x6e6   :  { %v16498_v32 = vpop.permute.xlu2 %6776  ;;  %v16500_v18 = vmul.f32 0.5, %v6330_v6  ;;  %v6333_v12 = vadd.f32 %v5862_v19, %v19354_v36  ;;  %v5877_v34 = vsel %vm5874_vm15, %v5876_v63, %v5872_v57  ;;  %v5981_v58 = vor.u32 1.1754944e-38, %v5980_v48  ;;  %v19356_v33 = vld [vmem:[#allocation51_spill] sm:$0xff]  ;;  %v19357_v19 = vld [vmem:[#allocation114_spill] sm:$0xff]  ;;  %v19361_v36 = vld [vmem:[#allocation40_spill] sm:$0xff] }
 0x6e7   :  { %v16503_v35 = vmul.f32 0.5, %v6331_v8  ;;  %vm5979_vm8 = vcmp.eq.f32.partialorder %v5978_v61, 8.507059e+37  ;;  %v5897_v5 = vmul.f32 %v19340_v44, %v5896_v26  ;;  %v5911_v10 = vsub.f32 1.0, %v5910_v4  ;;  %v16510_v6 = vpop.permute.xlu0 %6741  ;;  %v19358_v48 = vld [vmem:[#allocation47_spill] sm:$0xff] }
 0x6e8   :  { %7145 = vperm.xlu0 %7615, %v6970_v45   ;;  %v6968_v25 = vmul.f32 %v19356_v33, %v19355_v3  ;;  %v16508_v39 = vmul.f32 0.5, %v6338_v7  ;;  %v5982_v55 = vsel %vm5979_vm8, %v5981_v58, %v5977_v0  ;;  %v6016_v43 = vsub.f32 1.0, %v6015_v2  ;;  %v19359_v7 = vld [vmem:[#allocation120_spill] sm:$0xff]  ;;  %v19360_v0 = vld [vmem:[#allocation115_spill] sm:$0xff] }
 0x6e9   :  { %v6969_v57 = vmul.f32 %v19357_v19, %v16197_v23  ;;  %v6334_v8 = vadd.f32 %v5877_v34, %v19358_v48  ;;  %v5903_v61 = vand.u32 2147483647, %v19339_v52  ;;  %v5941_v63 = vsub.f32 1.0, %v5940_v60  ;;  %v16526_v58 = vpop.permute.xlu1 %6748  ;;  %v19362_v60 = vld [vmem:[#allocation100_spill] sm:$0xff] }
 0x6ea   :  { %v16516_v26 = vmul.f32 0.5, %v6333_v12  ;;  %vm5899_vm2 = vweird.f32 %v19339_v52  ;;  %vm5900_vm9 = vweird.f32 %v19340_v44  ;;  %v5905_v4 = vand.u32 2147483648, %v19339_v52  ;;  %v19363_v12 = vld [vmem:[#allocation85_spill] sm:$0xff] }
 0x6eb   :  { %7139 = vperm.xlu1 %7616, %v6968_v25   ;;  %v6341_v2 = vadd.f32 %v5982_v55, %v19359_v7  ;;  %v5898_v45 = vadd.f32 %v19340_v44, %v5897_v5  ;;  %v5912_v23 = vmul.f32 %v19345_v22, %v5911_v10  ;;  %v5955_v34 = vmul.f32 %v19361_v36, %v19360_v0  ;;  %vm16548_vm12 = vmor %vm5899_vm2, %vm5900_vm9 }
 0x6ec   :  { %v6971_v3 = vmul.f32 %v19363_v12, %v19362_v60  ;;  %vm5914_vm3 = vweird.f32 %v19344_v62  ;;  %v5918_v33 = vand.u32 2147483647, %v19344_v62  ;;  %v6017_v25 = vmul.f32 %v19350_v49, %v6016_v43 }
 0x6ed   :  { %7142 = vperm.xlu2 %7617, %v6969_v57   ;;  %v6973_v55 = vmul.f32 %v16191_v13, %v16330_v15  ;;  %v16535_v5 = vmul.f32 0.5, %v6334_v8  ;;  %vm16537_vm11 = vcmp.eq.f32.partialorder %v5903_v61, 8.507059e+37  ;;  %v5942_v19 = vmul.f32 %v19353_v1, %v5941_v63  ;;  %v19369_v15 = vld [vmem:[#allocation82_spill] sm:$0xff] }
 0x6ee   :  { %v16542_v57 = vpop.permute.xlu2 %6797  ;;  %v5906_v43 = vor.u32 1.1754944e-38, %v5905_v4  ;;  %vm5915_vm7 = vweird.f32 %v19345_v22  ;;  %v5920_v13 = vand.u32 2147483648, %v19344_v62  ;;  %v19370_v8 = vld [vmem:[#allocation126_spill] sm:$0xff]  ;;  %v16556_v7 = vmul.f32 0.5, %v6341_v2 }
 0x6ef   :  { %19366 = vst [vmem:[#allocation130_spill] sm:$0xff] %v16542_v57  ;;  %v6060_v61 = vmul.f32 %v19370_v8, %v19369_v15  ;;  %v5902_v63 = vsel %vm16548_vm12, %v19340_v44, %v5898_v45  ;;  %v5913_v52 = vadd.f32 %v19345_v22, %v5912_v23  ;;  %v5956_v60 = vsub.f32 1.0, %v5955_v34  ;;  %v16569_v2 = vpop.permute.xlu0 %6762  ;;  %vm16582_vm10 = vmor %vm5914_vm3, %vm5915_vm7 }
 0x6f0   :  { %7154 = vperm.xlu0 %7615, %v6973_v55   ;;  %vm16562_vm0 = vcmp.eq.f32.partialorder %v5918_v33, 8.507059e+37  ;;  %v6018_v4 = vadd.f32 %v19350_v49, %v6017_v25  ;;  %vm6019_vm14 = vweird.f32 %v19349_v38  ;;  %vm6020_vm6 = vweird.f32 %v19350_v49 }
 0x6f1   :  { %v6972_v48 = vmul.f32 %v16176_v28, %v16326_v31  ;;  %v6025_v44 = vand.u32 2147483648, %v19349_v38  ;;  %v5943_v45 = vadd.f32 %v19353_v1, %v5942_v19  ;;  %vm5945_vm5 = vweird.f32 %v19353_v1  ;;  %vm16591_vm15 = vmor %vm6019_vm14, %vm6020_vm6  ;;  %v16598_v19 = vpop.permute.xlu1 %6769 }
 0x6f2   :  { %v5907_v23 = vsel %vm16537_vm11, %v5906_v43, %v5902_v63  ;;  %v6023_v33 = vand.u32 2147483647, %v19349_v38  ;;  %v5950_v28 = vand.u32 2147483648, %v19352_v46  ;;  %v6061_v31 = vsub.f32 1.0, %v6060_v61  ;;  %v19377_v38 = vld [vmem:[#allocation62_spill] sm:$0xff]  ;;  %v19381_v63 = vld [vmem:[#allocation81_spill] sm:$0xff] }
 0x6f3   :  { %7148 = vperm.xlu1 %7616, %v6971_v3   ;;  %v5917_v25 = vsel %vm16582_vm10, %v19345_v22, %v5913_v52  ;;  %vm5944_vm8 = vweird.f32 %v19352_v46  ;;  %v5948_v62 = vand.u32 2147483647, %v19352_v46  ;;  %v5957_v10 = vmul.f32 %v19361_v36, %v5956_v60  ;;  %v19380_v46 = vld [vmem:[#allocation117_spill] sm:$0xff] }
 0x6f4   :  { %v6974_v3 = vmul.f32 %v19377_v38, %v16180_v16  ;;  %v5921_v43 = vor.u32 1.1754944e-38, %v5920_v13  ;;  %v6022_v22 = vsel %vm16591_vm15, %v19350_v49, %v6018_v4  ;;  %vm16607_vm2 = vmor %vm5944_vm8, %vm5945_vm5  ;;  %v5985_v52 = vmul.f32 %v19381_v63, %v19380_v46 }
 0x6f5   :  { %7151 = vperm.xlu2 %7617, %v6972_v48   ;;  %v6976_v60 = vmul.f32 %v16254_v21, %v16364_v41  ;;  %v19382_v48 = vld [vmem:[#allocation46_spill] sm:$0xff]  ;;  %v6026_v16 = vor.u32 1.1754944e-38, %v6025_v44  ;;  %v5947_v13 = vsel %vm16607_vm2, %v19353_v1, %v5943_v45  ;;  %vm6024_vm9 = vcmp.eq.f32.partialorder %v6023_v33, 8.507059e+37  ;;  %v19383_v45 = vld [vmem:[#allocation20_spill] sm:$0xff] }
 0x6f6   :  { %v6336_v34 = vadd.f32 %v5907_v23, %v19382_v48  ;;  %v16619_v49 = vpop.permute.xlu2 %6818  ;;  %v5922_v4 = vsel %vm16562_vm0, %v5921_v43, %v5917_v25  ;;  %v5951_v55 = vor.u32 1.1754944e-38, %v5950_v28  ;;  %v6062_v38 = vmul.f32 %v19370_v8, %v6061_v31  ;;  %v19384_v23 = vld [vmem:[#allocation9_spill] sm:$0xff]  ;;  %v19385_v31 = vld [vmem:[#allocation79_spill] sm:$0xff] }
 0x6f7   :  { %v6027_v57 = vsel %vm6024_vm9, %v6026_v16, %v6022_v22  ;;  %vm5949_vm3 = vcmp.eq.f32.partialorder %v5948_v62, 8.507059e+37  ;;  %v5958_v41 = vadd.f32 %v19361_v36, %v5957_v10  ;;  %vm5960_vm11 = vweird.f32 %v19361_v36  ;;  %v16629_v12 = vpop.permute.xlu0 %6783  ;;  %v19386_v25 = vld [vmem:[#allocation27_spill] sm:$0xff]  ;;  %v19388_v22 = vld [vmem:[#allocation124_spill] sm:$0xff] }
 0x6f8   :  { %7163 = vperm.xlu0 %7615, %v6976_v60   ;;  %v5952_v21 = vsel %vm5949_vm3, %v5951_v55, %v5947_v13  ;;  %v5965_v44 = vand.u32 2147483648, %v19360_v0  ;;  %v5986_v1 = vsub.f32 1.0, %v5985_v52  ;;  %v6000_v61 = vmul.f32 %v19384_v23, %v19383_v45  ;;  %v19387_v10 = vld [vmem:[#allocation123_spill] sm:$0xff] }
 0x6f9   :  { %v6975_v33 = vmul.f32 %v16228_v51, %v16362_v20  ;;  %vm5959_vm12 = vweird.f32 %v19360_v0  ;;  %v5963_v28 = vand.u32 2147483647, %v19360_v0  ;;  %v6105_v62 = vmul.f32 %v19386_v25, %v19385_v31  ;;  %v19391_v51 = vld [vmem:[#allocation49_spill] sm:$0xff] }
 0x6fa   :  { %v6337_v43 = vadd.f32 %v5922_v4, %v19387_v10  ;;  %v6344_v60 = vadd.f32 %v6027_v57, %v19388_v22  ;;  %vm16639_vm7 = vmor %vm5959_vm12, %vm5960_vm11  ;;  %v6063_v48 = vadd.f32 %v19370_v8, %v6062_v38  ;;  %vm6065_vm0 = vweird.f32 %v19370_v8  ;;  %v16651_v57 = vpop.permute.xlu1 %6790  ;;  %v19395_v10 = vld [vmem:[#allocation24_spill] sm:$0xff] }
 0x6fb   :  { %7157 = vperm.xlu1 %7616, %v6974_v3   ;;  %v6339_v20 = vadd.f32 %v5952_v21, %v19391_v51  ;;  %v5962_v0 = vsel %vm16639_vm7, %v19361_v36, %v5958_v41  ;;  %vm6064_vm14 = vweird.f32 %v19369_v15  ;;  %v6070_v16 = vand.u32 2147483648, %v19369_v15 }
 0x6fc   :  { %v5966_v13 = vor.u32 1.1754944e-38, %v5965_v44  ;;  %v6068_v4 = vand.u32 2147483647, %v19369_v15  ;;  %v5987_v55 = vmul.f32 %v19381_v63, %v5986_v1  ;;  %v6001_v38 = vsub.f32 1.0, %v6000_v61  ;;  %vm16661_vm5 = vmor %vm6064_vm14, %vm6065_vm0 }
 0x6fd   :  { %7160 = vperm.xlu2 %7617, %v6975_v33   ;;  %v6979_v3 = vmul.f32 %v16312_v29, %v16503_v35  ;;  %v16657_v21 = vmul.f32 0.5, %v6336_v34  ;;  %vm5964_vm6 = vcmp.eq.f32.partialorder %v5963_v28, 8.507059e+37  ;;  %v6106_v41 = vsub.f32 1.0, %v6105_v62  ;;  %v19394_v28 = vld [vmem:[#allocation44_spill] sm:$0xff] }
 0x6fe   :  { %v16665_v33 = vpop.permute.xlu2 %6839  ;;  %v6977_v15 = vmul.f32 %v16151_v11, %v16236_v56  ;;  %v16669_v44 = vmul.f32 0.5, %v6337_v43  ;;  %v5967_v1 = vsel %vm5964_vm6, %v5966_v13, %v5962_v0  ;;  %v6067_v35 = vsel %vm16661_vm5, %v19370_v8, %v6063_v48  ;;  %v19396_v43 = vld [vmem:[#allocation54_spill] sm:$0xff]  ;;  %v19400_v13 = vld [vmem:[#allocation109_spill] sm:$0xff] }
 0x6ff   :  { %v16674_v29 = vmul.f32 0.5, %v6344_v60  ;;  %v16676_v34 = vmul.f32 0.5, %v6339_v20  ;;  %v6071_v61 = vor.u32 1.1754944e-38, %v6070_v16  ;;  %v6030_v62 = vmul.f32 %v19395_v10, %v19394_v28  ;;  %v16683_v56 = vpop.permute.xlu0 %6804 }
 0x700   :  { %7172 = vperm.xlu0 %7615, %v6979_v3   ;;  %vm6069_vm10 = vcmp.eq.f32.partialorder %v6068_v4, 8.507059e+37  ;;  %v5988_v22 = vadd.f32 %v19381_v63, %v5987_v55  ;;  %vm5990_vm15 = vweird.f32 %v19381_v63  ;;  %v6002_v11 = vmul.f32 %v19384_v23, %v6001_v38 }
 0x701   :  { %v6978_v8 = vmul.f32 %v16293_v42, %v16500_v18  ;;  %v6340_v60 = vadd.f32 %v5967_v1, %v19396_v43  ;;  %v6072_v52 = vsel %vm6069_vm10, %v6071_v61, %v6067_v35  ;;  %v6107_v48 = vmul.f32 %v19386_v25, %v6106_v41  ;;  %v19399_v18 = vld [vmem:[#allocation132_spill] sm:$0xff]  ;;  %v19403_v1 = vld [vmem:[#allocation55_spill] sm:$0xff] }
 0x702   :  { %v6980_v51 = vmul.f32 %v16205_v40, %v16360_v14  ;;  %vm5989_vm8 = vweird.f32 %v19380_v46  ;;  %v5993_v20 = vand.u32 2147483647, %v19380_v46  ;;  %v5995_v0 = vand.u32 2147483648, %v19380_v46  ;;  %v16702_v40 = vpop.permute.xlu1 %6811  ;;  %v19401_v14 = vld [vmem:[#allocation50_spill] sm:$0xff] }
 0x703   :  { %7166 = vperm.xlu1 %7616, %v6977_v15   ;;  %vm16694_vm2 = vmor %vm5989_vm8, %vm5990_vm15  ;;  %vm6004_vm9 = vweird.f32 %v19383_v45  ;;  %vm6005_vm3 = vweird.f32 %v19384_v23  ;;  %v6031_v42 = vsub.f32 1.0, %v6030_v62  ;;  %v6045_v4 = vmul.f32 %v19400_v13, %v19399_v18  ;;  %v19402_v15 = vld [vmem:[#allocation93_spill] sm:$0xff] }
 0x704   :  { %v6347_v55 = vadd.f32 %v6072_v52, %v19401_v14  ;;  %v5992_v46 = vsel %vm16694_vm2, %v19381_v63, %v5988_v22  ;;  %v6003_v38 = vadd.f32 %v19384_v23, %v6002_v11  ;;  %v6010_v3 = vand.u32 2147483648, %v19383_v45  ;;  %vm16725_vm7 = vmor %vm6004_vm9, %vm6005_vm3 }
 0x705   :  { %7169 = vperm.xlu2 %7617, %v6978_v8   ;;  %v6982_v36 = vmul.f32 %v16356_v47, %v16535_v5  ;;  %v6108_v41 = vadd.f32 %v19386_v25, %v6107_v48  ;;  %vm6110_vm11 = vweird.f32 %v19386_v25  ;;  %v6150_v35 = vmul.f32 %v19403_v1, %v19402_v15 }
 0x706   :  { %v16716_v61 = vpop.permute.xlu2 %6860  ;;  %v5996_v62 = vor.u32 1.1754944e-38, %v5995_v0  ;;  %v6008_v8 = vand.u32 2147483647, %v19383_v45  ;;  %v6113_v63 = vand.u32 2147483647, %v19385_v31  ;;  %v6115_v22 = vand.u32 2147483648, %v19385_v31 }
 0x707   :  { %vm5994_vm12 = vcmp.eq.f32.partialorder %v5993_v20, 8.507059e+37  ;;  %vm6109_vm0 = vweird.f32 %v19385_v31  ;;  %v6032_v5 = vmul.f32 %v19395_v10, %v6031_v42  ;;  %v6046_v11 = vsub.f32 1.0, %v6045_v4  ;;  %v16744_v31 = vpop.permute.xlu0 %6825  ;;  %v19423_v45 = vld [vmem:[#allocation42_spill] sm:$0xff] }
 0x708   :  { %7181 = vperm.xlu0 %7615, %v6982_v36   ;;  %v16731_v43 = vmul.f32 0.5, %v6340_v60  ;;  %v16733_v52 = vmul.f32 0.5, %v6347_v55  ;;  %v5997_v48 = vsel %vm5994_vm12, %v5996_v62, %v5992_v46  ;;  %v6007_v20 = vsel %vm16725_vm7, %v19384_v23, %v6003_v38  ;;  %vm16740_vm14 = vmor %vm6109_vm0, %vm6110_vm11  ;;  %v19408_v46 = vld [vmem:[#allocation23_spill] sm:$0xff] }
 0x709   :  { %v6981_v0 = vmul.f32 %v16344_v24, %v16516_v26  ;;  %v6011_v60 = vor.u32 1.1754944e-38, %v6010_v3  ;;  %v6112_v16 = vsel %vm16740_vm14, %v19386_v25, %v6108_v41  ;;  %v6151_v42 = vsub.f32 1.0, %v6150_v35  ;;  %v19409_v38 = vld [vmem:[#allocation111_spill] sm:$0xff]  ;;  %v19410_v41 = vld [vmem:[#allocation80_spill] sm:$0xff]  ;;  %v19411_v35 = vld [vmem:[#allocation133_spill] sm:$0xff] }
 0x70a   :  { %vm6009_vm6 = vcmp.eq.f32.partialorder %v6008_v8, 8.507059e+37  ;;  %vm6114_vm5 = vcmp.eq.f32.partialorder %v6113_v63, 8.507059e+37  ;;  %v6116_v23 = vor.u32 1.1754944e-38, %v6115_v22  ;;  %vm6035_vm10 = vweird.f32 %v19395_v10  ;;  %v16756_v26 = vpop.permute.xlu1 %6832  ;;  %v19412_v8 = vld [vmem:[#allocation77_spill] sm:$0xff] }
 0x70b   :  { %7175 = vperm.xlu1 %7616, %v6980_v51   ;;  %v6012_v4 = vsel %vm6009_vm6, %v6011_v60, %v6007_v20  ;;  %v6033_v14 = vadd.f32 %v19395_v10, %v6032_v5  ;;  %v6047_v55 = vmul.f32 %v19400_v13, %v6046_v11  ;;  %v6075_v24 = vmul.f32 %v19409_v38, %v19408_v46  ;;  %v19413_v11 = vld [vmem:[#allocation13_spill] sm:$0xff] }
 0x70c   :  { %v6117_v3 = vsel %vm6114_vm5, %v6116_v23, %v6112_v16  ;;  %v6038_v25 = vand.u32 2147483647, %v19394_v28  ;;  %v6040_v36 = vand.u32 2147483648, %v19394_v28  ;;  %v6090_v62 = vmul.f32 %v19411_v35, %v19410_v41 }
 0x70d   :  { %7178 = vperm.xlu2 %7617, %v6981_v0   ;;  %v6985_v51 = vmul.f32 %v16416_v53, %v16669_v44  ;;  %v6342_v63 = vadd.f32 %v5997_v48, %v19412_v8  ;;  %vm6034_vm15 = vweird.f32 %v19394_v28  ;;  %v6152_v22 = vmul.f32 %v19403_v1, %v6151_v42  ;;  %v19416_v53 = vld [vmem:[#allocation87_spill] sm:$0xff] }
 0x70e   :  { %v16767_v47 = vpop.permute.xlu2 %6881  ;;  %v6983_v5 = vmul.f32 %v16263_v30, %v16480_v59  ;;  %v6343_v20 = vadd.f32 %v6012_v4, %v19413_v11  ;;  %vm16774_vm8 = vmor %vm6034_vm15, %vm6035_vm10  ;;  %vm6049_vm2 = vweird.f32 %v19399_v18  ;;  %vm6050_vm9 = vweird.f32 %v19400_v13 }
 0x70f   :  { %v6350_v44 = vadd.f32 %v6117_v3, %v19416_v53  ;;  %v6037_v28 = vsel %vm16774_vm8, %v19395_v10, %v6033_v14  ;;  %v6048_v30 = vadd.f32 %v19400_v13, %v6047_v55  ;;  %v6076_v59 = vsub.f32 1.0, %v6075_v24  ;;  %vm16799_vm12 = vmor %vm6049_vm2, %vm6050_vm9 }
 0x710   :  { %7190 = vperm.xlu0 %7615, %v6985_v51   ;;  %vm6039_vm3 = vcmp.eq.f32.partialorder %v6038_v25, 8.507059e+37  ;;  %v6041_v48 = vor.u32 1.1754944e-38, %v6040_v36  ;;  %v6055_v0 = vand.u32 2147483648, %v19399_v18  ;;  %v6091_v60 = vsub.f32 1.0, %v6090_v62  ;;  %v16786_v16 = vpop.permute.xlu0 %6846 }
 0x711   :  { %v6984_v42 = vmul.f32 %v16392_v17, %v16657_v21  ;;  %v6053_v23 = vand.u32 2147483647, %v19399_v18  ;;  %v6153_v4 = vadd.f32 %v19403_v1, %v6152_v22  ;;  %vm6155_vm11 = vweird.f32 %v19403_v1 }
 0x712   :  { %v16793_v10 = vmul.f32 0.5, %v6342_v63  ;;  %v6407_v14 = vmul.f32 0.5, %v6343_v20  ;;  %v6042_v55 = vsel %vm6039_vm3, %v6041_v48, %v6037_v28  ;;  %v6160_v17 = vand.u32 2147483648, %v19402_v15  ;;  %v19421_v63 = vld [vmem:[#allocation52_spill] sm:$0xff]  ;;  %v19422_v20 = vld [vmem:[#allocation11_spill] sm:$0xff]  ;;  %v19425_v28 = vld [vmem:[#allocation57_spill] sm:$0xff] }
 0x713   :  { %7184 = vperm.xlu1 %7616, %v6983_v5   ;;  %v6052_v21 = vsel %vm16799_vm12, %v19400_v13, %v6048_v30  ;;  %vm6154_vm7 = vweird.f32 %v19402_v15  ;;  %v6158_v3 = vand.u32 2147483647, %v19402_v15  ;;  %v6077_v25 = vmul.f32 %v19409_v38, %v6076_v59  ;;  %v16810_v36 = vpop.permute.xlu1 %6853  ;;  %v19426_v48 = vld [vmem:[#allocation10_spill] sm:$0xff] }
 0x714   :  { %v6986_v18 = vmul.f32 %v16320_v37, %v16508_v39  ;;  %v16814_v62 = vmul.f32 0.5, %v6350_v44  ;;  %v6056_v51 = vor.u32 1.1754944e-38, %v6055_v0  ;;  %vm16818_vm0 = vmor %vm6154_vm7, %vm6155_vm11  ;;  %v6092_v13 = vmul.f32 %v19411_v35, %v6091_v60  ;;  %v19427_v0 = vld [vmem:[#allocation127_spill] sm:$0xff] }
 0x715   :  { %7187 = vperm.xlu2 %7617, %v6984_v42   ;;  %v6988_v15 = vmul.f32 %v16477_v9, %v16731_v43  ;;  %v6345_v22 = vadd.f32 %v6042_v55, %v19421_v63  ;;  %vm6054_vm14 = vcmp.eq.f32.partialorder %v6053_v23, 8.507059e+37  ;;  %v6157_v37 = vsel %vm16818_vm0, %v19403_v1, %v6153_v4  ;;  %v19424_v43 = vld [vmem:[#allocation39_spill] sm:$0xff] }
 0x716   :  { %v16829_v39 = vpop.permute.xlu2 %7082  ;;  %v6057_v5 = vsel %vm6054_vm14, %v6056_v51, %v6052_v21  ;;  %v6161_v11 = vor.u32 1.1754944e-38, %v6160_v17  ;;  %vm6080_vm6 = vweird.f32 %v19409_v38  ;;  %v6135_v53 = vmul.f32 %v19423_v45, %v19422_v20  ;;  %v19453_v17 = vld [vmem:[#allocation36_spill] sm:$0xff] }
 0x717   :  { %vm6159_vm5 = vcmp.eq.f32.partialorder %v6158_v3, 8.507059e+37  ;;  %v6078_v44 = vadd.f32 %v19409_v38, %v6077_v25  ;;  %v6085_v9 = vand.u32 2147483648, %v19408_v46  ;;  %v6195_v30 = vmul.f32 %v19425_v28, %v19424_v43  ;;  %v19431_v25 = vld [vmem:[#allocation14_spill] sm:$0xff] }
 0x718   :  { %7199 = vperm.xlu0 %7615, %v6988_v15   ;;  %v6162_v59 = vsel %vm6159_vm5, %v6161_v11, %v6157_v37  ;;  %v6093_v1 = vadd.f32 %v19411_v35, %v6092_v13  ;;  %vm6095_vm10 = vweird.f32 %v19411_v35  ;;  %v6120_v60 = vmul.f32 %v19427_v0, %v19426_v48 }
 0x719   :  { %v16842_v42 = vpop.permute.xlu0 %6867  ;;  %v6987_v23 = vmul.f32 %v16455_v50, %v16676_v34  ;;  %vm6079_vm15 = vweird.f32 %v19408_v46  ;;  %v6083_v4 = vand.u32 2147483647, %v19408_v46  ;;  %v6100_v55 = vand.u32 2147483648, %v19410_v41  ;;  %v19430_v50 = vld [vmem:[#allocation16_spill] sm:$0xff] }
 0x71a   :  { %v16849_v24 = vmul.f32 0.5, %v6345_v22  ;;  %vm16853_vm8 = vmor %vm6079_vm15, %vm6080_vm6  ;;  %vm6094_vm2 = vweird.f32 %v19410_v41  ;;  %v6098_v21 = vand.u32 2147483647, %v19410_v41  ;;  %v6136_v3 = vsub.f32 1.0, %v6135_v53 }
 0x71b   :  { %7193 = vperm.xlu1 %7616, %v6986_v18   ;;  %v6346_v34 = vadd.f32 %v6057_v5, %v19430_v50  ;;  %v6353_v46 = vadd.f32 %v6162_v59, %v19431_v25  ;;  %v6082_v51 = vsel %vm16853_vm8, %v19409_v38, %v6078_v44  ;;  %vm16866_vm9 = vmor %vm6094_vm2, %vm6095_vm10  ;;  %v6196_v13 = vsub.f32 1.0, %v6195_v30  ;;  %v19435_v59 = vld [vmem:[#allocation29_spill] sm:$0xff] }
 0x71c   :  { %v16870_v15 = vpop.permute.xlu1 %6874  ;;  %v6989_v41 = vmul.f32 %v16378_v54, %v16556_v7  ;;  %v6086_v18 = vor.u32 1.1754944e-38, %v6085_v9  ;;  %v6097_v63 = vsel %vm16866_vm9, %v19411_v35, %v6093_v1  ;;  %v6121_v22 = vsub.f32 1.0, %v6120_v60 }
 0x71d   :  { %7196 = vperm.xlu2 %7617, %v6987_v23   ;;  %v6991_v38 = vmul.f32 %v16526_v58, %v6407_v14  ;;  %vm6084_vm3 = vcmp.eq.f32.partialorder %v6083_v4, 8.507059e+37  ;;  %v6101_v37 = vor.u32 1.1754944e-38, %v6100_v55  ;;  %v6203_v5 = vand.u32 2147483647, %v19424_v43  ;;  %v19434_v14 = vld [vmem:[#allocation31_spill] sm:$0xff]  ;;  %v19436_v4 = vld [vmem:[#allocation53_spill] sm:$0xff] }
 0x71e   :  { %v16879_v11 = vpop.permute.xlu2 %7088  ;;  %v6087_v53 = vsel %vm6084_vm3, %v6086_v18, %v6082_v51  ;;  %vm6099_vm11 = vcmp.eq.f32.partialorder %v6098_v21, 8.507059e+37  ;;  %v6205_v44 = vand.u32 2147483648, %v19424_v43  ;;  %v6137_v54 = vmul.f32 %v19423_v45, %v6136_v3  ;;  %v19439_v3 = vld [vmem:[#allocation97_spill] sm:$0xff] }
 0x71f   :  { %v6410_v7 = vmul.f32 0.5, %v6346_v34  ;;  %v16883_v9 = vmul.f32 0.5, %v6353_v46  ;;  %v6102_v30 = vsel %vm6099_vm11, %v6101_v37, %v6097_v63  ;;  %v6197_v35 = vmul.f32 %v19425_v28, %v6196_v13 }
 0x720   :  { %7208 = vperm.xlu0 %7615, %v6991_v38   ;;  %vm6199_vm12 = vweird.f32 %v19424_v43  ;;  %vm6200_vm7 = vweird.f32 %v19425_v28  ;;  %v6122_v58 = vmul.f32 %v19427_v0, %v6121_v22  ;;  %v6180_v1 = vmul.f32 %v19435_v59, %v19434_v14  ;;  %v19444_v38 = vld [vmem:[#allocation102_spill] sm:$0xff] }
 0x721   :  { %v6992_v60 = vmul.f32 %v16436_v27, %v16674_v29  ;;  %v6990_v23 = vmul.f32 %v16510_v6, %v16793_v10  ;;  %v6348_v55 = vadd.f32 %v6087_v53, %v19436_v4  ;;  %vm16896_vm0 = vcmp.eq.f32.partialorder %v6203_v5, 8.507059e+37  ;;  %v19440_v29 = vld [vmem:[#allocation128_spill] sm:$0xff]  ;;  %vm16925_vm15 = vmor %vm6199_vm12, %vm6200_vm7  ;;  %v19449_v4 = vld [vmem:[#allocation131_spill] sm:$0xff] }
 0x722   :  { %v7077_v21 = vpop.permute.xlu0 %7076  ;;  %v6349_v50 = vadd.f32 %v6102_v30, %v19439_v3  ;;  %v6206_v34 = vor.u32 1.1754944e-38, %v6205_v44  ;;  %v6138_v25 = vadd.f32 %v19423_v45, %v6137_v54  ;;  %vm6140_vm14 = vweird.f32 %v19423_v45  ;;  %v19441_v10 = vld [vmem:[#allocation12_spill] sm:$0xff] }
 0x723   :  { %7202 = vperm.xlu1 %7616, %v6989_v41   ;;  %v6198_v27 = vadd.f32 %v19425_v28, %v6197_v35  ;;  %vm6125_vm6 = vweird.f32 %v19427_v0  ;;  %v6145_v6 = vand.u32 2147483648, %v19422_v20  ;;  %v6165_v46 = vmul.f32 %v19441_v10, %v19440_v29 }
 0x724   :  { %v6123_v51 = vadd.f32 %v19427_v0, %v6122_v58  ;;  %vm6139_vm5 = vweird.f32 %v19422_v20  ;;  %v6143_v8 = vand.u32 2147483647, %v19422_v20  ;;  %v6181_v13 = vsub.f32 1.0, %v6180_v1 }
 0x725   :  { %7205 = vperm.xlu2 %7617, %v6990_v23   ;;  %v7080_v18 = vpop.permute.xlu1 %7079  ;;  %v6994_v41 = vmul.f32 %v16598_v19, %v6410_v7  ;;  %v6130_v63 = vand.u32 2147483648, %v19426_v48  ;;  %vm16913_vm10 = vmor %vm6139_vm5, %vm6140_vm14  ;;  %v7269_v37 = vperm.slane %v7077_v21, %v19444_v38  ;;  %vm6124_vm8 = vweird.f32 %v19426_v48  ;;  %v19450_v21 = vld [vmem:[#allocation95_spill] sm:$0xff] }
 0x726   :  { %v7270_v5 = vperm.slane %v7080_v18, %v19444_v38  ;;  %v16919_v53 = vpop.permute.xlu2 %7097  ;;  %v6128_v19 = vand.u32 2147483647, %v19426_v48  ;;  %v6142_v44 = vsel %vm16913_vm10, %v19423_v45, %v6138_v25  ;;  %v7271_v54 = vperm.slane %v16829_v39, %v19444_v38  ;;  %vm16941_vm2 = vmor %vm6124_vm8, %vm6125_vm6 }
 0x727   :  { %v6202_v7 = vsel %vm16925_vm15, %v19425_v28, %v6198_v27  ;;  %v6146_v30 = vor.u32 1.1754944e-38, %v6145_v6  ;;  %v6166_v35 = vsub.f32 1.0, %v6165_v46  ;;  %v6127_v45 = vsel %vm16941_vm2, %v19427_v0, %v6123_v51 }
 0x728   :  { %v7333_v48 = vsel %vm2097_vm4, %v7270_v5, %v7269_v37  ;;  %7217 = vperm.xlu0 %7615, %v6994_v41   ;;  %vm6144_vm9 = vcmp.eq.f32.partialorder %v6143_v8, 8.507059e+37  ;;  %v6182_v39 = vmul.f32 %v19435_v59, %v6181_v13  ;;  %v6993_v58 = vmul.f32 %v16569_v2, %v16849_v24  ;;  %v19451_v2 = vld [vmem:[#allocation17_spill] sm:$0xff] }
 0x729   :  { %v7334_v28 = vsel %vm2100_vm13, %v7271_v54, %v7333_v48  ;;  %v6131_v1 = vor.u32 1.1754944e-38, %v6130_v63  ;;  %v6147_v23 = vsel %vm6144_vm9, %v6146_v30, %v6142_v44  ;;  %v6225_v3 = vmul.f32 %v19450_v21, %v19449_v4 }
 0x72a   :  { %v7092_v25 = vpop.permute.xlu0 %7091  ;;  %v6412_v27 = vmul.f32 0.5, %v6348_v55  ;;  %v6413_v6 = vmul.f32 0.5, %v6349_v50  ;;  %v6207_v46 = vsel %vm16896_vm0, %v6206_v34, %v6202_v7  ;;  %vm6129_vm3 = vcmp.eq.f32.partialorder %v6128_v19, 8.507059e+37  ;;  %v19452_v55 = vld [vmem:[#allocation58_spill] sm:$0xff] }
 0x72b   :  { %7211 = vperm.xlu1 %7616, %v6992_v60   ;;  %v6995_v0 = vmul.f32 %v16498_v32, %v16733_v52  ;;  %v6132_v51 = vsel %vm6129_vm3, %v6131_v1, %v6127_v45  ;;  %v6167_v8 = vmul.f32 %v19441_v10, %v6166_v35  ;;  %vm6170_vm11 = vweird.f32 %v19441_v10  ;;  %v19458_v35 = vld [vmem:[#allocation35_spill] sm:$0xff]  ;;  %v19462_v1 = vld [vmem:[#allocation25_spill] sm:$0xff] }
 0x72c   :  { %v6352_v24 = vadd.f32 %v6147_v23, %v19451_v2  ;;  %v6183_v13 = vadd.f32 %v19435_v59, %v6182_v39  ;;  %vm6185_vm12 = vweird.f32 %v19435_v59  ;;  %v6210_v50 = vmul.f32 %v19453_v17, %v19452_v55  ;;  %v19463_v23 = vld [vmem:[#allocation99_spill] sm:$0xff]  ;;  %v19468_v2 = vld [vmem:[#allocation34_spill] sm:$0xff] }
 0x72d   :  { %7214 = vperm.xlu2 %7617, %v6993_v58   ;;  %v7086_v34 = vpop.permute.xlu1 %7085  ;;  %v6997_v60 = vmul.f32 %v16651_v57, %v6413_v6  ;;  %v6173_v32 = vand.u32 2147483647, %v19440_v29  ;;  %v6226_v52 = vsub.f32 1.0, %v6225_v3  ;;  %v6175_v63 = vand.u32 2147483648, %v19440_v29 }
 0x72e   :  { %v7272_v18 = vperm.slane %v7086_v34, %v19444_v38  ;;  %v16969_v41 = vpop.permute.xlu2 %7106  ;;  %vm6184_vm7 = vweird.f32 %v19434_v14  ;;  %v6190_v22 = vand.u32 2147483648, %v19434_v14  ;;  %v7273_v37 = vperm.slane %v16879_v11, %v19444_v38 }
 0x72f   :  { %v6168_v5 = vadd.f32 %v19441_v10, %v6167_v8  ;;  %vm16977_vm0 = vmor %vm6184_vm7, %vm6185_vm12  ;;  %v6188_v20 = vand.u32 2147483647, %v19434_v14  ;;  %v7274_v19 = vperm.slane %v7092_v25, %v19444_v38  ;;  %vm19456_vm14 = vcmask 1043459   ;;  %v19459_v14 = vld [vmem:[#allocation64_spill] sm:$0xff] }
 0x730   :  { %v7335_v44 = vsel %vm19456_vm14, %v7272_v18, %v7334_v28  ;;  %7226 = vperm.xlu0 %7615, %v6997_v60   ;;  %vm6169_vm6 = vweird.f32 %v19440_v29  ;;  %v6187_v54 = vsel %vm16977_vm0, %v19435_v59, %v6183_v13  ;;  %v6211_v11 = vsub.f32 1.0, %v6210_v50  ;;  %v19461_v28 = vld [vmem:[#allocation15_spill] sm:$0xff] }
 0x731   :  { %vm19457_vm5 = vcmask 1044484   ;;  %v6996_v43 = vmul.f32 %v16629_v12, %v6412_v27  ;;  %v6227_v30 = vmul.f32 %v19450_v21, %v6226_v52  ;;  %v6270_v48 = vmul.f32 %v19459_v14, %v19458_v35  ;;  %vm17001_vm15 = vmor %vm6169_vm6, %vm6170_vm11  ;;  %v19470_v52 = vld [vmem:[#allocation94_spill] sm:$0xff] }
 0x732   :  { %v7336_v7 = vsel %vm19457_vm5, %v7273_v37, %v7335_v44  ;;  %v16993_v45 = vpop.permute.xlu0 %7100  ;;  %vm19460_vm10 = vcmask 1045509   ;;  %v6351_v29 = vadd.f32 %v6132_v51, %v19461_v28  ;;  %v6416_v58 = vmul.f32 0.5, %v6352_v24  ;;  %v19469_v24 = vld [vmem:[#allocation26_spill] sm:$0xff] }
 0x733   :  { %v7337_v39 = vsel %vm19460_vm10, %v7274_v19, %v7336_v7  ;;  %v6240_v59 = vmul.f32 %v19463_v23, %v19462_v1  ;;  %v6191_v12 = vor.u32 1.1754944e-38, %v6190_v22  ;;  %7220 = vperm.xlu1 %7616, %v6995_v0   ;;  %v6172_v25 = vsel %vm17001_vm15, %v19441_v10, %v6168_v5  ;;  %v19471_v5 = vld [vmem:[#allocation18_spill] sm:$0xff] }
 0x734   :  { %vm17008_vm8 = vcmp.eq.f32.partialorder %v6173_v32, 8.507059e+37  ;;  %v6176_v6 = vor.u32 1.1754944e-38, %v6175_v63  ;;  %vm6189_vm2 = vcmp.eq.f32.partialorder %v6188_v20, 8.507059e+37  ;;  %v6212_v8 = vmul.f32 %v19453_v17, %v6211_v11  ;;  %v19472_v20 = vld [vmem:[#allocation101_spill] sm:$0xff]  ;;  %v19478_v28 = vld [vmem:[#allocation90_spill] sm:$0xff] }
 0x735   :  { %7223 = vperm.xlu2 %7617, %v6996_v43   ;;  %v6192_v51 = vsel %vm6189_vm2, %v6191_v12, %v6187_v54  ;;  %vm6230_vm9 = vweird.f32 %v19450_v21  ;;  %v6255_v13 = vmul.f32 %v19469_v24, %v19468_v2  ;;  %v7095_v0 = vpop.permute.xlu1 %7094  ;;  %v7000_v50 = vmul.f32 %v16702_v40, %v6416_v58  ;;  %v19482_v27 = vld [vmem:[#allocation30_spill] sm:$0xff] }
 0x736   :  { %v6228_v10 = vadd.f32 %v19450_v21, %v6227_v30  ;;  %v6271_v34 = vsub.f32 1.0, %v6270_v48  ;;  %v7275_v60 = vperm.slane %v7095_v0, %v19444_v38  ;;  %v17019_v32 = vpop.permute.xlu2 %7115  ;;  %v17022_v18 = vadd.f32 %v6207_v46, %v19470_v52  ;;  %v19474_v46 = vld [vmem:[#allocation130_spill] sm:$0xff] }
 0x737   :  { %v6415_v63 = vmul.f32 0.5, %v6351_v29  ;;  %v6177_v22 = vsel %vm17008_vm8, %v6176_v6, %v6172_v25  ;;  %v6235_v37 = vand.u32 2147483648, %v19449_v4  ;;  %v6355_v57 = vadd.f32 %v6192_v51, %v19471_v5  ;;  %v19477_v30 = vld [vmem:[#allocation98_spill] sm:$0xff]  ;;  %v19481_v25 = vld [vmem:[#allocation32_spill] sm:$0xff] }
 0x738   :  { %vm6229_vm3 = vweird.f32 %v19449_v4  ;;  %v6233_v40 = vand.u32 2147483647, %v19449_v4  ;;  %vm4203_vm11 = vweird.f32 %v19472_v20  ;;  %vm19473_vm12 = vcmask 1046534   ;;  %7235 = vperm.xlu0 %7615, %v7000_v50  }
 0x739   :  { %v17032_v19 = vsel %vm19473_vm12, %v7275_v60, %v7337_v39  ;;  %v6998_v44 = vmul.f32 %v19474_v46, %v16814_v62  ;;  %v6241_v54 = vsub.f32 1.0, %v6240_v59  ;;  %v6213_v11 = vadd.f32 %v19453_v17, %v6212_v8  ;;  %vm17040_vm0 = vmor %vm6229_vm3, %vm6230_vm9 }
 0x73a   :  { %vm6215_vm7 = vweird.f32 %v19453_v17  ;;  %v6999_v4 = vmul.f32 %v16683_v56, %v6415_v63  ;;  %v6232_v43 = vsel %vm17040_vm0, %v19450_v21, %v6228_v10  ;;  %vm4202_vm14 = vweird.f32 %v19477_v30  ;;  %v17050_v39 = vpop.permute.xlu0 %7109  ;;  %v19483_v10 = vld [vmem:[#allocation69_spill] sm:$0xff] }
 0x73b   :  { %v6256_v62 = vsub.f32 1.0, %v6255_v13  ;;  %v6272_v48 = vmul.f32 %v19459_v14, %v6271_v34  ;;  %vm6244_vm6 = vweird.f32 %v19462_v1  ;;  %v6354_v29 = vadd.f32 %v6177_v22, %v19478_v28  ;;  %7229 = vperm.xlu1 %7616, %v6998_v44   ;;  %v19495_v28 = vld [vmem:[#allocation86_spill] sm:$0xff] }
 0x73c   :  { %vm6214_vm5 = vweird.f32 %v19452_v55  ;;  %v6220_v58 = vand.u32 2147483648, %v19452_v55  ;;  %v6236_v56 = vor.u32 1.1754944e-38, %v6235_v37  ;;  %vm6245_vm10 = vweird.f32 %v19463_v23  ;;  %v19487_v37 = vld [vmem:[#allocation22_spill] sm:$0xff] }
 0x73d   :  { %v6419_v21 = vmul.f32 0.5, %v6355_v57  ;;  %vm17059_vm15 = vmor %vm6214_vm5, %vm6215_vm7  ;;  %v6218_v3 = vand.u32 2147483647, %v19452_v55  ;;  %vm6234_vm8 = vcmp.eq.f32.partialorder %v6233_v40, 8.507059e+37  ;;  %7232 = vperm.xlu2 %7617, %v6999_v4   ;;  %v6242_v12 = vmul.f32 %v19463_v23, %v6241_v54  ;;  %v17070_v13 = vpop.permute.xlu1 %7103 }
 0x73e   :  { %v6285_v6 = vmul.f32 %v19482_v27, %v19481_v25  ;;  %v6217_v51 = vsel %vm17059_vm15, %v19453_v17, %v6213_v11  ;;  %v6237_v8 = vsel %vm6234_vm8, %v6236_v56, %v6232_v43  ;;  %v6257_v50 = vmul.f32 %v19469_v24, %v6256_v62  ;;  %v17082_v52 = vpop.permute.xlu2 %7124  ;;  %v19490_v43 = vld [vmem:[#allocation106_spill] sm:$0xff]  ;;  %vm17112_vm15 = vmor %vm4202_vm14, %vm4203_vm11 }
 0x73f   :  { %v7003_v0 = vmul.f32 %v16756_v26, %v6419_v21  ;;  %v19484_v55 = vand.u32 2147483647, %v19483_v10  ;;  %v6273_v60 = vadd.f32 %v19459_v14, %v6272_v48  ;;  %vm6275_vm9 = vweird.f32 %v19459_v14 }
 0x740   :  { %v6250_v17 = vand.u32 2147483648, %v19462_v1  ;;  %v6418_v63 = vmul.f32 0.5, %v6354_v29  ;;  %v6221_v22 = vor.u32 1.1754944e-38, %v6220_v58  ;;  %v6280_v26 = vand.u32 2147483648, %v19458_v35 }
 0x741   :  { %vm17076_vm2 = vcmp.eq.f32.partialorder %v19484_v55, 8.507059e+37  ;;  %vm6219_vm3 = vcmp.eq.f32.partialorder %v6218_v3, 8.507059e+37  ;;  %v6358_v5 = vadd.f32 %v6237_v8, %v19487_v37  ;;  %vm6274_vm12 = vweird.f32 %v19458_v35  ;;  %7244 = vperm.xlu0 %7615, %v7003_v0   ;;  %v19499_v0 = vld [vmem:[#allocation91_spill] sm:$0xff] }
 0x742   :  { %v6278_v57 = vand.u32 2147483647, %v19458_v35  ;;  %v7001_v40 = vmul.f32 %v16619_v49, %v16883_v9  ;;  %v6243_v46 = vadd.f32 %v19463_v23, %v6242_v12  ;;  %v6286_v44 = vsub.f32 1.0, %v6285_v6  ;;  %vm17094_vm7 = vmor %vm6274_vm12, %vm6275_vm9  ;;  %v17104_v9 = vpop.permute.xlu0 %7118 }
 0x743   :  { %v6222_v54 = vsel %vm6219_vm3, %v6221_v22, %v6217_v51  ;;  %v7002_v7 = vmul.f32 %v16744_v31, %v6418_v63  ;;  %v6258_v4 = vadd.f32 %v19469_v24, %v6257_v50  ;;  %vm6260_vm0 = vweird.f32 %v19469_v24  ;;  %vm17122_vm9 = vmor %vm6244_vm6, %vm6245_vm10  ;;  %v19502_v22 = vld [vmem:[#allocation92_spill] sm:$0xff]  ;;  %v19508_v31 = vld [vmem:[#allocation63_spill] sm:$0xff] }
 0x744   :  { %v6277_v49 = vsel %vm17094_vm7, %v19459_v14, %v6273_v60  ;;  %v6248_v35 = vand.u32 2147483647, %v19462_v1  ;;  %vm4233_vm5 = vweird.f32 %v19490_v43  ;;  %vm6259_vm8 = vweird.f32 %v19468_v2  ;;  %7238 = vperm.xlu1 %7616, %v7001_v40   ;;  %v19504_v40 = vld [vmem:[#allocation88_spill] sm:$0xff] }
 0x745   :  { %v6265_v62 = vand.u32 2147483648, %v19468_v2  ;;  %v6281_v48 = vor.u32 1.1754944e-38, %v6280_v26  ;;  %v6357_v29 = vadd.f32 %v6222_v54, %v19495_v28  ;;  %v6422_v58 = vmul.f32 0.5, %v6358_v5  ;;  %7241 = vperm.xlu2 %7617, %v7002_v7   ;;  %vm17134_vm14 = vmor %vm6259_vm8, %vm6260_vm0  ;;  %v17140_v51 = vpop.permute.xlu1 %7112  ;;  %v19506_v7 = vld [vmem:[#allocation129_spill] sm:$0xff] }
 0x746   :  { %v6263_v56 = vand.u32 2147483647, %v19468_v2  ;;  %vm6279_vm11 = vcmp.eq.f32.partialorder %v6278_v57, 8.507059e+37  ;;  %v6247_v21 = vsel %vm17122_vm9, %v19463_v23, %v6243_v46  ;;  %v6287_v59 = vmul.f32 %v19482_v27, %v6286_v44  ;;  %v17150_v55 = vpop.permute.xlu2 %7133 }
 0x747   :  { %v19498_v3 = vand.u32 2147483648, %v19483_v10  ;;  %v6282_v6 = vsel %vm6279_vm11, %v6281_v48, %v6277_v49  ;;  %v6251_v2 = vor.u32 1.1754944e-38, %v6250_v17  ;;  %v7006_v8 = vmul.f32 %v16810_v36, %v6422_v58  ;;  %v19501_v17 = vld [vmem:[#allocation73_spill] sm:$0xff] }
 0x748   :  { %v4205_v23 = vsel %vm17112_vm15, %v19472_v20, %v19499_v0  ;;  %v6262_v50 = vsel %vm17134_vm14, %v19469_v24, %v6258_v4  ;;  %v6420_v10 = vmul.f32 0.5, %v17022_v18  ;;  %vm6249_vm6 = vcmp.eq.f32.partialorder %v6248_v35, 8.507059e+37  ;;  %v19507_v49 = vld [vmem:[#allocation125_spill] sm:$0xff] }
 0x749   :  { %v4224_v12 = vor.u32 1.1754944e-38, %v19498_v3  ;;  %v6266_v60 = vor.u32 1.1754944e-38, %v6265_v62  ;;  %v19503_v36 = vsel %vm14848_vm1, %v19501_v17, %v19502_v22  ;;  %v6252_v37 = vsel %vm6249_vm6, %v6251_v2, %v6247_v21  ;;  %7253 = vperm.xlu0 %7615, %v7006_v8  }
 0x74a   :  { %v6421_v20 = vmul.f32 0.5, %v6357_v29  ;;  %vm6264_vm10 = vcmp.eq.f32.partialorder %v6263_v56, 8.507059e+37  ;;  %v7004_v24 = vmul.f32 %v16665_v33, %v6420_v10  ;;  %v6288_v57 = vadd.f32 %v19482_v27, %v6287_v59  ;;  %v17169_v11 = vpop.permute.xlu0 %7127 }
 0x74b   :  { %v4225_v26 = vsel %vm17076_vm2, %v4224_v12, %v19503_v36  ;;  %vm6290_vm3 = vweird.f32 %v19482_v27  ;;  %v6267_v18 = vsel %vm6264_vm10, %v6266_v60, %v6262_v50  ;;  %v4231_v46 = vadd.f32 %v19490_v43, %v19504_v40 }
 0x74c   :  { %v6361_v5 = vadd.f32 %v6282_v6, %v4225_v26  ;;  %v6295_v44 = vand.u32 2147483648, %v19481_v25  ;;  %v7005_v34 = vmul.f32 %v16786_v16, %v6421_v20  ;;  %v19505_v54 = vand.u32 2147483647, %v19477_v30  ;;  %7247 = vperm.xlu1 %7616, %v7004_v24  }
 0x74d   :  { %v6359_v4 = vadd.f32 %v6252_v37, %v19506_v7  ;;  %vm6289_vm2 = vweird.f32 %v19481_v25  ;;  %v6293_v33 = vand.u32 2147483647, %v19481_v25  ;;  %v4238_v62 = vand.u32 2147483648, %v19508_v31  ;;  %v17185_v28 = vpop.permute.xlu1 %7121 }
 0x74e   :  { %vm4207_vm1 = vcmp.eq.f32.partialorder %v19505_v54, 8.507059e+37  ;;  %vm17176_vm12 = vmor %vm6289_vm2, %vm6290_vm3  ;;  %v6425_v30 = vmul.f32 0.5, %v6361_v5  ;;  %7250 = vperm.xlu2 %7617, %v7005_v34   ;;  %vm4232_vm7 = vweird.f32 %v19508_v31  ;;  %v4236_v14 = vand.u32 2147483647, %v19508_v31  ;;  %v17190_v56 = vpop.permute.xlu2 %7142 }
 0x74f   :  { %v4210_v35 = vsel %vm4207_vm1, %v19507_v49, %v4205_v23  ;;  %v6292_v25 = vsel %vm17176_vm12, %v19482_v27, %v6288_v57  ;;  %vm4234_vm0 = vmor %vm4232_vm7, %vm4233_vm5  ;;  %v6296_v29 = vor.u32 1.1754944e-38, %v6295_v44  ;;  %v6423_v21 = vmul.f32 0.5, %v6359_v4 }
 0x750   :  { %v6360_v16 = vadd.f32 %v6267_v18, %v4210_v35  ;;  %v7009_v58 = vmul.f32 %v16870_v15, %v6425_v30  ;;  %v4235_v59 = vsel %vm4234_vm0, %v19490_v43, %v4231_v46  ;;  %vm6294_vm15 = vcmp.eq.f32.partialorder %v6293_v33, 8.507059e+37 }
 0x751   :  { %v4239_v1 = vor.u32 1.1754944e-38, %v4238_v62  ;;  %v6297_v3 = vsel %vm6294_vm15, %v6296_v29, %v6292_v25  ;;  %v7007_v27 = vmul.f32 %v16716_v61, %v6423_v21  ;;  %vm4237_vm8 = vcmp.eq.f32.partialorder %v4236_v14, 8.507059e+37 }
 0x752   :  { %v6424_v12 = vmul.f32 0.5, %v6360_v16  ;;  %7262 = vperm.xlu0 %7615, %v7009_v58   ;;  %v7137_v8 = vpop.permute.xlu0 %7136  ;;  %v7276_v23 = vperm.slane %v16919_v53, %v19444_v38  ;;  %vm19511_vm5 = vcmask 1047559   ;;  %v7278_v53 = vperm.slane %v17070_v13, %v19444_v38 }
 0x753   :  { %v4240_v6 = vsel %vm4237_vm8, %v4239_v1, %v4235_v59  ;;  %v7279_v24 = vperm.slane %v16969_v41, %v19444_v38  ;;  %v7281_v40 = vperm.slane %v17140_v51, %v19444_v38  ;;  %v7280_v46 = vperm.slane %v17050_v39, %v19444_v38  ;;  %vm19517_vm3 = vmmov %vm19511_vm5 }
 0x754   :  { %v7008_v2 = vmul.f32 %v16842_v42, %v6424_v12  ;;  %v6362_v0 = vadd.f32 %v6297_v3, %v4240_v6  ;;  %7256 = vperm.xlu1 %7616, %v7007_v27   ;;  %v7339_v10 = vsel %vm19511_vm5, %v7276_v23, %v17032_v19  ;;  %v7277_v19 = vperm.slane %v16993_v45, %v19444_v38  ;;  %vm19522_vm0 = vmmov %vm19517_vm3 }
 0x755   :  { %v7131_v15 = vpop.permute.xlu1 %7130  ;;  %v7286_v13 = vperm.slane %v17169_v11, %v19444_v38  ;;  %v7285_v34 = vperm.slane %v17082_v52, %v19444_v38  ;;  %vm19512_vm9 = vcmask 1043459   ;;  %vm19513_vm11 = vcmask 1044484  }
 0x756   :  { %7259 = vperm.xlu2 %7617, %v7008_v2   ;;  %v7152_v43 = vpop.permute.xlu2 %7151  ;;  %v6426_v50 = vmul.f32 0.5, %v6362_v0  ;;  %v7340_v5 = vsel %vm2097_vm4, %v7278_v53, %v7277_v19  ;;  %v7287_v45 = vperm.slane %v7131_v15, %v19444_v38  ;;  %v7282_v51 = vperm.slane %v17019_v32, %v19444_v38  ;;  %vm19515_vm6 = vmmov %vm19512_vm9 }
 0x757   :  { %v7341_v18 = vsel %vm2100_vm13, %v7279_v24, %v7340_v5  ;;  %v7347_v39 = vsel %vm2097_vm4, %v7286_v13, %v7285_v34  ;;  %vm19514_vm14 = vcmask 1045509   ;;  %v7288_v33 = vperm.slane %v17150_v55, %v19444_v38  ;;  %vm19518_vm1 = vmmov %vm19513_vm11 }
 0x758   :  { %v7010_v60 = vmul.f32 %v16767_v47, %v6426_v50  ;;  %v7342_v41 = vsel %vm19512_vm9, %v7280_v46, %v7341_v18  ;;  %v7348_v11 = vsel %vm2100_vm13, %v7287_v45, %v7347_v39  ;;  %v7284_v52 = vperm.slane %v17185_v28, %v19444_v38  ;;  %vm19519_vm2 = vmmov %vm19514_vm14 }
 0x759   :  { %v7343_v54 = vsel %vm19513_vm11, %v7281_v40, %v7342_v41  ;;  %v7283_v35 = vperm.slane %v17104_v9, %v19444_v38  ;;  %v7349_v31 = vsel %vm19515_vm6, %v7288_v33, %v7348_v11  ;;  %v7289_v48 = vperm.slane %v7137_v8, %v19444_v38  ;;  %vm19521_vm7 = vmmov %vm19515_vm6 }
 0x75a   :  { %v7146_v61 = vpop.permute.xlu0 %7145  ;;  %v7344_v4 = vsel %vm19514_vm14, %v7282_v51, %v7343_v54  ;;  %vm19516_vm10 = vcmask 1046534   ;;  %v7294_v30 = vperm.slane %v7152_v43, %v19444_v38  ;;  %v7291_v21 = vperm.slane %v17190_v56, %v19444_v38  ;;  %vm19523_vm15 = vmmov %vm19518_vm1 }
 0x75b   :  { %v7345_v16 = vsel %vm19516_vm10, %v7283_v35, %v7344_v4  ;;  %v7350_v25 = vsel %vm19518_vm1, %v7289_v48, %v7349_v31  ;;  %vm19520_vm12 = vmmov %vm19516_vm10  ;;  %v7292_v27 = vperm.slane %v7146_v61, %v19444_v38 }
 0x75c   :  { %7265 = vperm.xlu1 %7616, %v7010_v60   ;;  %v7346_v14 = vsel %vm19517_vm3, %v7284_v52, %v7345_v16  ;;  %vm19524_vm8 = vmmov %vm19519_vm2 }
 0x75d   :  { %v7140_v63 = vpop.permute.xlu1 %7139  ;;  %vm19525_vm5 = vmmov %vm19516_vm10 }
 0x75e   :  { %v7161_v17 = vpop.permute.xlu2 %7160  ;;  %v7290_v32 = vperm.slane %v7140_v63, %v19444_v38  ;;  %vm19526_vm9 = vmmov %vm19515_vm6 }
 0x75f   :  { %v7297_v8 = vperm.slane %v7161_v17, %v19444_v38  ;;  %vm19527_vm11 = vmmov %vm19522_vm0 }
 0x760   :  { %v7351_v9 = vsel %vm19519_vm2, %v7290_v32, %v7350_v25  ;;  %vm19528_vm14 = vmmov %vm19518_vm1 }
 0x761   :  { %v7352_v12 = vsel %vm19520_vm12, %v7291_v21, %v7351_v9  ;;  %vm19529_vm6 = vmmov %vm19519_vm2 }
 0x762   :  { %v7155_v42 = vpop.permute.xlu0 %7154  ;;  %v7353_v15 = vsel %vm19522_vm0, %v7292_v27, %v7352_v12  ;;  %vm19530_vm10 = vmmov %vm19525_vm5 }
 0x763   :  { %v7295_v59 = vperm.slane %v7155_v42, %v19444_v38  ;;  %vm19531_vm3 = vmmov %vm19522_vm0 }
 0x764   :  { %vm19532_vm1 = vmmov %vm19521_vm7 }
 0x765   :  { %v7149_v22 = vpop.permute.xlu1 %7148  ;;  %vm19533_vm2 = vmmov %vm19528_vm14 }
 0x766   :  { %v17200_v36 = vpop.permute.xlu2 %7169  ;;  %v7293_v62 = vperm.slane %v7149_v22, %v19444_v38  ;;  %vm19534_vm12 = vmmov %vm19529_vm6 }
 0x767   :  { %v7300_v53 = vperm.slane %v17200_v36, %v19444_v38 }
 0x768   :  { %v7354_v29 = vsel %vm2097_vm4, %v7294_v30, %v7293_v62 }
 0x769   :  { %v7355_v3 = vsel %vm2100_vm13, %v7295_v59, %v7354_v29 }
 0x76a   :  { %v17202_v26 = vpop.permute.xlu0 %7163 }
 0x76b   :  { %v7298_v50 = vperm.slane %v17202_v26, %v19444_v38 }
 0x76d   :  { %v7158_v37 = vpop.permute.xlu1 %7157 }
 0x76e   :  { %v17204_v20 = vpop.permute.xlu2 %7178  ;;  %v7296_v58 = vperm.slane %v7158_v37, %v19444_v38 }
 0x76f   :  { %v7303_v61 = vperm.slane %v17204_v20, %v19444_v38 }
 0x770   :  { %v7356_v6 = vsel %vm19521_vm7, %v7296_v58, %v7355_v3  ;;  %vm19535_vm7 = vmmov %vm19525_vm5 }
 0x771   :  { %v7357_v56 = vsel %vm19523_vm15, %v7297_v8, %v7356_v6  ;;  %vm19536_vm15 = vmmov %vm19532_vm1 }
 0x772   :  { %v7173_v47 = vpop.permute.xlu0 %7172  ;;  %v7358_v63 = vsel %vm19524_vm8, %v7298_v50, %v7357_v56  ;;  %vm19537_vm8 = vmmov %vm19533_vm2 }
 0x773   :  { %v7301_v0 = vperm.slane %v7173_v47, %v19444_v38 }
 0x775   :  { %v7167_v57 = vpop.permute.xlu1 %7166 }
 0x776   :  { %v17220_v44 = vpop.permute.xlu2 %7187  ;;  %v7299_v23 = vperm.slane %v7167_v57, %v19444_v38 }
 0x777   :  { %v7306_v24 = vperm.slane %v17220_v44, %v19444_v38 }
 0x778   :  { %v7359_v42 = vsel %vm19525_vm5, %v7299_v23, %v7358_v63  ;;  %vm19538_vm5 = vmmov %vm19529_vm6 }
 0x779   :  { %v7360_v47 = vsel %vm19527_vm11, %v7300_v53, %v7359_v42  ;;  %vm19540_vm11 = vmmov %vm19522_vm0 }
 0x77a   :  { %v7182_v7 = vpop.permute.xlu0 %7181 }
 0x77b   :  { %v7304_v26 = vperm.slane %v7182_v7, %v19444_v38 }
 0x77c   :  { %7397 = vxpose.xlu2.b32.start [1/8] (short) (narrow) %v7339_v10, 8 }
 0x77d   :  { %v7176_v49 = vpop.permute.xlu1 %7175 }
 0x77e   :  { %v7197_v55 = vpop.permute.xlu2 %7196  ;;  %v7302_v2 = vperm.slane %v7176_v49, %v19444_v38 }
 0x77f   :  { %v7309_v13 = vperm.slane %v7197_v55, %v19444_v38 }
 0x780   :  { %v7361_v10 = vsel %vm2097_vm4, %v7302_v2, %v7301_v0 }
 0x781   :  { %v7362_v22 = vsel %vm2100_vm13, %v7303_v61, %v7361_v10 }
 0x782   :  { %v7191_v28 = vpop.permute.xlu0 %7190  ;;  %v7363_v19 = vsel %vm19526_vm9, %v7304_v26, %v7362_v22  ;;  %vm19539_vm9 = vmmov %vm19535_vm7 }
 0x783   :  { %v7307_v45 = vperm.slane %v7191_v28, %v19444_v38 }
 0x784   :  { %7398 = vxpose.xlu2.b32.cont [2/8] (short) (narrow) %v7346_v14, 8 }
 0x785   :  { %v7185_v1 = vpop.permute.xlu1 %7184 }
 0x786   :  { %v7206_v60 = vpop.permute.xlu2 %7205  ;;  %v7305_v37 = vperm.slane %v7185_v1, %v19444_v38 }
 0x787   :  { %v7312_v51 = vperm.slane %v7206_v60, %v19444_v38 }
 0x788   :  { %v7364_v20 = vsel %vm19528_vm14, %v7305_v37, %v7363_v19  ;;  %vm19541_vm14 = vmmov %vm19532_vm1 }
 0x789   :  { %v7365_v18 = vsel %vm19529_vm6, %v7306_v24, %v7364_v20  ;;  %vm19542_vm6 = vmmov %vm19533_vm2 }
 0x78a   :  { %v7200_v43 = vpop.permute.xlu0 %7199  ;;  %v7366_v54 = vsel %vm19530_vm10, %v7307_v45, %v7365_v18  ;;  %vm19543_vm10 = vmmov %vm19538_vm5 }
 0x78b   :  { %v7310_v57 = vperm.slane %v7200_v43, %v19444_v38 }
 0x78c   :  { %7399 = vxpose.xlu2.b32.cont [3/8] (short) (narrow) %v7353_v15, 8 }
 0x78d   :  { %v7194_v17 = vpop.permute.xlu1 %7193  ;;  %v7368_v41 = vsel %vm2097_vm4, %v7310_v57, %v7309_v13 }
 0x78e   :  { %v7308_v40 = vperm.slane %v7194_v17, %v19444_v38  ;;  %v7215_v36 = vpop.permute.xlu2 %7214 }
 0x78f   :  { %v7315_v49 = vperm.slane %v7215_v36, %v19444_v38 }
 0x790   :  { %v7367_v7 = vsel %vm19531_vm3, %v7308_v40, %v7366_v54  ;;  %vm7429_vm3 = vcmask 523264  }
 0x792   :  { %v7209_v5 = vpop.permute.xlu0 %7208 }
 0x793   :  { %v7313_v4 = vperm.slane %v7209_v5, %v19444_v38 }
 0x794   :  { %7400 = vxpose.xlu2.b32.cont [4/8] (short) (narrow) %v7360_v47, 8 }
 0x795   :  { %v7203_v46 = vpop.permute.xlu1 %7202 }
 0x796   :  { %v7311_v34 = vperm.slane %v7203_v46, %v19444_v38  ;;  %v7224_v35 = vpop.permute.xlu2 %7223 }
 0x797   :  { %v7318_v28 = vperm.slane %v7224_v35, %v19444_v38 }
 0x798   :  { %v7369_v44 = vsel %vm2100_vm13, %v7311_v34, %v7368_v41 }
 0x799   :  { %v7370_v11 = vsel %vm19532_vm1, %v7312_v51, %v7369_v44 }
 0x79a   :  { %v7218_v39 = vpop.permute.xlu0 %7217  ;;  %v7371_v31 = vsel %vm19533_vm2, %v7313_v4, %v7370_v11 }
 0x79b   :  { %v7316_v32 = vperm.slane %v7218_v39, %v19444_v38 }
 0x79c   :  { %7401 = vxpose.xlu2.b32.cont [5/8] (short) (narrow) %v7367_v7, 8 }
 0x79d   :  { %v7212_v33 = vpop.permute.xlu1 %7211 }
 0x79e   :  { %v7314_v52 = vperm.slane %v7212_v33, %v19444_v38  ;;  %v7233_v14 = vpop.permute.xlu2 %7232 }
 0x79f   :  { %v7321_v12 = vperm.slane %v7233_v14, %v19444_v38 }
 0x7a0   :  { %v7372_v62 = vsel %vm19534_vm12, %v7314_v52, %v7371_v31 }
 0x7a1   :  { %v7373_v48 = vsel %vm19535_vm7, %v7315_v49, %v7372_v62 }
 0x7a2   :  { %v7227_v16 = vpop.permute.xlu0 %7226  ;;  %v7374_v30 = vsel %vm19522_vm0, %v7316_v32, %v7373_v48 }
 0x7a3   :  { %v7319_v21 = vperm.slane %v7227_v16, %v19444_v38 }
 0x7a4   :  { %7402 = vxpose.xlu2.b32.cont [6/8] (short) (narrow) %v7374_v30, 8 }
 0x7a5   :  { %v7221_v55 = vpop.permute.xlu1 %7220 }
 0x7a6   :  { %v7317_v25 = vperm.slane %v7221_v55, %v19444_v38  ;;  %v7242_v27 = vpop.permute.xlu2 %7241 }
 0x7a7   :  { %v7324_v56 = vperm.slane %v7242_v27, %v19444_v38 }
 0x7a8   :  { %v7375_v29 = vsel %vm2097_vm4, %v7318_v28, %v7317_v25 }
 0x7a9   :  { %v7376_v1 = vsel %vm2100_vm13, %v7319_v21, %v7375_v29 }
 0x7aa   :  { %v7236_v9 = vpop.permute.xlu0 %7235 }
 0x7ab   :  { %v7322_v2 = vperm.slane %v7236_v9, %v19444_v38 }
 0x7ad   :  { %v7230_v58 = vpop.permute.xlu1 %7229 }
 0x7ae   :  { %v7320_v59 = vperm.slane %v7230_v58, %v19444_v38  ;;  %v7251_v10 = vpop.permute.xlu2 %7250 }
 0x7af   :  { %v7327_v22 = vperm.slane %v7251_v10, %v19444_v38 }
 0x7b0   :  { %v7377_v3 = vsel %vm19536_vm15, %v7320_v59, %v7376_v1 }
 0x7b1   :  { %v7378_v6 = vsel %vm19537_vm8, %v7321_v12, %v7377_v3 }
 0x7b2   :  { %v7379_v23 = vsel %vm19538_vm5, %v7322_v2, %v7378_v6 }
 0x7b3   :  { %v7245_v0 = vpop.permute.xlu0 %7244 }
 0x7b4   :  { %v7325_v63 = vperm.slane %v7245_v0, %v19444_v38 }
 0x7b6   :  { %v7239_v8 = vpop.permute.xlu1 %7238  ;;  %v7260_v47 = vpop.permute.xlu2 %7259 }
 0x7b7   :  { %v7323_v15 = vperm.slane %v7239_v8, %v19444_v38  ;;  %v7330_v24 = vperm.slane %v7260_v47, %v19444_v38 }
 0x7b9   :  { %v7380_v43 = vsel %vm19539_vm9, %v7323_v15, %v7379_v23 }
 0x7ba   :  { %v7381_v50 = vsel %vm19540_vm11, %v7324_v56, %v7380_v43 }
 0x7bb   :  { %7403 = vxpose.xlu2.b32.cont [7/8] (short) (narrow) %v7381_v50, 8  ;;  %v7254_v17 = vpop.permute.xlu0 %7253 }
 0x7bc   :  { %v7328_v26 = vperm.slane %v7254_v17, %v19444_v38 }
 0x7be   :  { %v7248_v60 = vpop.permute.xlu1 %7247 }
 0x7bf   :  { %v7326_v61 = vperm.slane %v7248_v60, %v19444_v38 }
 0x7c1   :  { %v7382_v42 = vsel %vm2097_vm4, %v7326_v61, %v7325_v63  ;;  %vm19544_vm4 = vmmov %vm19535_vm7 }
 0x7c2   :  { %v7383_v37 = vsel %vm2100_vm13, %v7327_v22, %v7382_v42  ;;  %vm19545_vm13 = vmmov %vm19522_vm0 }
 0x7c3   :  { %v7384_v20 = vsel %vm19541_vm14, %v7328_v26, %v7383_v37 }
 0x7c4   :  { %v7263_v57 = vpop.permute.xlu0 %7262 }
 0x7c5   :  { %v7331_v40 = vperm.slane %v7263_v57, %v19444_v38 }
 0x7c6   :  { %v7257_v53 = vpop.permute.xlu1 %7256 }
 0x7c7   :  { %v7329_v19 = vperm.slane %v7257_v53, %v19444_v38 }
 0x7c9   :  { %v7385_v5 = vsel %vm19542_vm6, %v7329_v19, %v7384_v20 }
 0x7ca   :  { %v7386_v18 = vsel %vm19543_vm10, %v7330_v24, %v7385_v5 }
 0x7cb   :  { %v7387_v13 = vsel %vm19544_vm4, %v7331_v40, %v7386_v18 }
 0x7ce   :  { %v7266_v36 = vpop.permute.xlu1 %7265 }
 0x7cf   :  { %v7332_v46 = vperm.slane %v7266_v36, %v19444_v38 }
 0x7d1   :  { %v7388_v45 = vsel %vm19545_vm13, %v7332_v46, %v7387_v13 }
 0x7d2   :  { %7404 = vxpose.xlu2.b32.end [8/8] (short) (narrow) %v7388_v45, 8 }
 0x833   :  { %v7413_v34 = vpop.trf.xlu2 }
 0x834   :  { %7430 = vst.msk [vmem:[#allocation2] sm:$0xff] %vm7429_vm3, %v7413_v34 }
 0x835   :  { %7441 = dma.vmem_to_hbm [thread:$0]  %s7437_s8, 128, %s7439_s11, [#allocation3]  }
 0x836   :  { %8286 = dma.done.wait [#allocation3], 128  }
 0x837   :  { %8287 = vsyncadd [#allocation3], 4294967168 }
 0x838   :  { %7446 = vsyncpa [#allocation3], 1 }

</bundles_post_ra>
